<compile_context>
chip_gen: v7x
topology: tpu7x:2x2x1
jax: 0.10.0
libtpu: 0.0.40
codegen_flags: <defaults>
</compile_context>

<pallas_src>
import math
from functools import partial

import jax
import jax.numpy as jnp
from jax.experimental import pallas as pl
from jax.experimental.pallas import tpu as pltpu


# ------------------------- fused transformer body ---------------------------

def _ln(x, g, b, eps=1e-5):
    """GPT-2 LayerNorm (eps=1e-5). x:(M,E) f32, g/b:(1,E)."""
    mu = jnp.mean(x, axis=-1, keepdims=True)
    var = jnp.mean(jnp.square(x - mu), axis=-1, keepdims=True)
    return (x - mu) * jax.lax.rsqrt(var + eps) * g + b


def _gelu_new(x):
    c = math.sqrt(2.0 / math.pi)
    return 0.5 * x * (1.0 + jnp.tanh(c * (x + 0.044715 * x * x * x)))


def _body_kernel(x_ref,
                 ln1_g_ref, ln1_b_ref,
                 wq_ref, wk_ref, wv_ref, bq_ref, bk_ref, bv_ref,
                 wproj_ref, proj_b_ref,
                 ln2_g_ref, ln2_b_ref, fc_w_ref, fc_b_ref,
                 mlp_w_ref, mlp_b_ref,
                 lnf_g_ref, lnf_b_ref,
                 o_ref, x_sc, *, n_head, batch, seq):
    li = pl.program_id(0)

    @pl.when(li == 0)
    def _():
        x_sc[...] = x_ref[...]          # load residual stream once (f32)

    M, E = x_sc.shape
    hd = E // n_head
    scale = 1.0 / math.sqrt(hd)
    neg = jnp.finfo(jnp.float32).min

    x = x_sc[...]                       # (M, E) f32 carried across layers

    # causal mask (1, S, S) broadcast over the batch dim of stacked scores
    row = jax.lax.broadcasted_iota(jnp.int32, (seq, seq), 0)
    col = jax.lax.broadcasted_iota(jnp.int32, (seq, seq), 1)
    causal = (col <= row)[None, :, :]

    # ------------------------- attention (pre-LN) ---------------------------
    a = _ln(x, ln1_g_ref[...], ln1_b_ref[...]).astype(jnp.bfloat16)  # (M, E)

    attn = jnp.zeros((M, E), jnp.float32)
    for h in range(n_head):
        # Per-head projections: weights stored (hd, E) so both operands
        # contract their lane dim (no lane slicing, no lane padding).
        qh = jax.lax.dot_general(a, wq_ref[h], (((1,), (1,)), ((), ())),
                                 preferred_element_type=jnp.float32) + bq_ref[h]
        kh = jax.lax.dot_general(a, wk_ref[h], (((1,), (1,)), ((), ())),
                                 preferred_element_type=jnp.float32) + bk_ref[h]
        vh = jax.lax.dot_general(a, wv_ref[h], (((1,), (1,)), ((), ())),
                                 preferred_element_type=jnp.float32) + bv_ref[h]
        # tile-aligned sublane split (M, hd) -> (B, S, hd); no relayout
        qb = qh.reshape(batch, seq, hd)
        kb = kh.reshape(batch, seq, hd)
        vb = vh.reshape(batch, seq, hd)

        s = jnp.einsum('bqd,bkd->bqk', qb, kb,
                       preferred_element_type=jnp.float32) * scale
        s = jnp.where(causal, s, neg)
        p = jnp.exp(s - jnp.max(s, axis=-1, keepdims=True))
        p = p * pl.reciprocal(jnp.sum(p, axis=-1, keepdims=True), approx=True)
        ob = jnp.einsum('bqk,bkd->bqd', p, vb,
                        preferred_element_type=jnp.float32)       # (B, S, hd)

        # per-head slice of the output projection accumulated in f32:
        # concat_h(o_h) @ P == sum_h o_h @ P[h*hd:(h+1)*hd, :]
        oh = ob.reshape(M, hd).astype(jnp.bfloat16)
        attn = attn + jnp.dot(oh, wproj_ref[h],
                              preferred_element_type=jnp.float32)

    x = x + attn + proj_b_ref[...]

    # --------------------------- MLP (pre-LN) -------------------------------
    m2 = _ln(x, ln2_g_ref[...], ln2_b_ref[...]).astype(jnp.bfloat16)
    hid = jnp.dot(m2, fc_w_ref[...],
                  preferred_element_type=jnp.float32) + fc_b_ref[...]
    hid = _gelu_new(hid)
    x = x + jnp.dot(hid.astype(jnp.bfloat16), mlp_w_ref[...],
                    preferred_element_type=jnp.float32) + mlp_b_ref[...]

    x_sc[...] = x

    @pl.when(li == pl.num_programs(0) - 1)
    def _():
        # final LayerNorm fused; output stored bf16 for the lm_head
        o_ref[...] = _ln(x, lnf_g_ref[...], lnf_b_ref[...]).astype(o_ref.dtype)


def _per_layer_spec(arr):
    """Block = one layer slab: leading L dim squeezed, trailing dims full."""
    nd = arr.ndim
    return pl.BlockSpec((None,) + tuple(arr.shape[1:]),
                        lambda l, _n=nd: (l,) + (0,) * (_n - 1))


def _resident_spec(arr):
    """Full array resident across the whole layer grid."""
    nd = arr.ndim
    return pl.BlockSpec(tuple(arr.shape), lambda l, _n=nd: (0,) * _n)


def transformer_body(x, params, *, n_head, batch, seq):
    """x: (batch*seq, E) f32 -> final-LN'd hidden state (bf16), one pallas_call
    pipelined over layers (per-layer bf16 weight blocks double-buffered)."""
    M, E = x.shape
    n_layer = params["ln1_g"].shape[0]
    kern = partial(_body_kernel, n_head=n_head, batch=batch, seq=seq)

    per_layer_keys = ("ln1_g", "ln1_b",
                      "k_wq", "k_wk", "k_wv", "k_bq", "k_bk", "k_bv",
                      "k_wproj", "attn_proj_b",
                      "ln2_g", "ln2_b", "k_fc_w", "fc_b",
                      "k_mlp_w", "mlp_proj_b")
    operands = (x,) + tuple(params[k] for k in per_layer_keys) \
        + (params["lnf_g"], params["lnf_b"])
    in_specs = ([_resident_spec(x)]
                + [_per_layer_spec(params[k]) for k in per_layer_keys]
                + [_resident_spec(params["lnf_g"]),
                   _resident_spec(params["lnf_b"])])

    return pl.pallas_call(
        kern,
        out_shape=jax.ShapeDtypeStruct((M, E), jnp.bfloat16),
        grid=(n_layer,),
        in_specs=in_specs,
        out_specs=pl.BlockSpec((M, E), lambda l: (0, 0)),
        scratch_shapes=[pltpu.VMEM((M, E), jnp.float32)],
        compiler_params=pltpu.CompilerParams(
            dimension_semantics=("arbitrary",)),
    )(*operands)


# --------------------------------- lm_head -----------------------------------

LM_HEAD_TILE = 12800         # vocab cols per grid step (multiple of 128)


def _lm_head_kernel(x_ref, w_ref, o_ref):
    # logits block = x @ w_block : bf16 operands already lane-major,
    # f32 accumulation, no bias, no accumulator scratch, no per-step casts.
    o_ref[...] = jnp.dot(x_ref[...], w_ref[...],
                         preferred_element_type=jnp.float32).astype(o_ref.dtype)


def lm_head(x, w_lm_t, vocab_size):
    """x: (M, E) bf16, w_lm_t: (E, Vp) bf16 (pre-transposed tied wte)
    -> (M, vocab_size) f32."""
    M, E = x.shape
    E2, Vp = w_lm_t.shape
    assert E == E2 and Vp % LM_HEAD_TILE == 0
    tv = LM_HEAD_TILE
    ce = pl.CostEstimate(
        flops=2 * M * E * Vp,
        transcendentals=0,
        bytes_accessed=Vp * E * 2 + M * E * 2 + M * vocab_size * 4)
    return pl.pallas_call(
        _lm_head_kernel,
        out_shape=jax.ShapeDtypeStruct((M, vocab_size), jnp.float32),
        grid=(Vp // tv,),
        in_specs=[
            pl.BlockSpec((M, E), lambda j: (0, 0)),    # bf16 activations, resident
            pl.BlockSpec((E, tv), lambda j: (0, j)),   # streamed bf16 weights
        ],
        # last block is partially out-of-bounds (50257 < 51200) -> masked writes
        out_specs=pl.BlockSpec((M, tv), lambda j: (0, j)),
        compiler_params=pltpu.CompilerParams(
            dimension_semantics=("parallel",)),
        cost_estimate=ce,
    )(x, w_lm_t)


# ------------------------------ parameters -----------------------------------

def init_params(key, vocab_size, n_embd, n_layer, n_head, n_positions=1024):
    std = 0.02
    proj_std = std / math.sqrt(2 * n_layer)        # GPT-2 residual-proj scaling
    L, E, H = n_layer, n_embd, n_head
    hd = E // H
    k = jax.random.split(key, 6)
    p = {
        "wte": jax.random.normal(k[0], (vocab_size, E), jnp.float32) * std,
        "wpe": jax.random.normal(k[1], (n_positions, E), jnp.float32) * std,
        "lnf_g": jnp.ones((1, E), jnp.float32),
        "lnf_b": jnp.zeros((1, E), jnp.float32),
        "ln1_g": jnp.ones((L, 1, E), jnp.float32),
        "ln1_b": jnp.zeros((L, 1, E), jnp.float32),
        "attn_w": jax.random.normal(k[2], (L, E, 3 * E), jnp.float32) * std,
        "attn_b": jnp.zeros((L, 1, 3 * E), jnp.float32),
        "attn_proj_w": jax.random.normal(k[3], (L, E, E), jnp.float32) * proj_std,
        "attn_proj_b": jnp.zeros((L, 1, E), jnp.float32),
        "ln2_g": jnp.ones((L, 1, E), jnp.float32),
        "ln2_b": jnp.zeros((L, 1, E), jnp.float32),
        "fc_w": jax.random.normal(k[4], (L, E, 4 * E), jnp.float32) * std,
        "fc_b": jnp.zeros((L, 1, 4 * E), jnp.float32),
        "mlp_proj_w": jax.random.normal(k[5], (L, 4 * E, E), jnp.float32) * proj_std,
        "mlp_proj_b": jnp.zeros((L, 1, E), jnp.float32),
    }

    # ---- kernel-layout weights: derived ONCE here, never per forward ----
    # Per-head QKV weights transposed to (L, H, hd, E): lane dim stays E=128
    # (no lane padding in VMEM) and the kernel contracts the minor dims.
    aw = p["attn_w"].reshape(L, E, 3, H, hd)        # 3E columns = [qkv, head, hd]
    ab = p["attn_b"].reshape(L, 1, 3, H, hd)
    p["k_wq"] = jnp.transpose(aw[:, :, 0], (0, 2, 3, 1)).astype(jnp.bfloat16)
    p["k_wk"] = jnp.transpose(aw[:, :, 1], (0, 2, 3, 1)).astype(jnp.bfloat16)
    p["k_wv"] = jnp.transpose(aw[:, :, 2], (0, 2, 3, 1)).astype(jnp.bfloat16)
    p["k_bq"] = jnp.transpose(ab[:, :, 0], (0, 2, 1, 3))   # (L, H, 1, hd) f32
    p["k_bk"] = jnp.transpose(ab[:, :, 1], (0, 2, 1, 3))
    p["k_bv"] = jnp.transpose(ab[:, :, 2], (0, 2, 1, 3))
    p["k_wproj"] = p["attn_proj_w"].reshape(L, H, hd, E).astype(jnp.bfloat16)
    p["k_fc_w"] = p["fc_w"].astype(jnp.bfloat16)
    p["k_mlp_w"] = p["mlp_proj_w"].astype(jnp.bfloat16)

    # Tied lm_head weight: padded + transposed to (E, Vp) bf16 ONCE here.
    Vp = pl.cdiv(vocab_size, LM_HEAD_TILE) * LM_HEAD_TILE
    p["wte_lm_t"] = jnp.pad(
        p["wte"], ((0, Vp - vocab_size), (0, 0))).T.astype(jnp.bfloat16)
    return p


# -------------------------------- forward -------------------------------------

def child_transformer_forward(params, input_ids, labels=None, n_head=4):
    B, S = input_ids.shape
    V, E = params["wte"].shape

    # token + position embeddings (gather is glue, done in plain JAX)
    h = jnp.take(params["wte"], input_ids, axis=0) + params["wpe"][:S][None, :, :]
    x = h.reshape(B * S, E)

    # entire 4-layer body + final LN in one layer-pipelined Pallas kernel
    x = transformer_body(x, params, n_head=n_head, batch=B, seq=S)   # bf16

    # tied lm_head (no bias): logits = x @ wte.T, lane-dense bf16 weight stream
    logits = lm_head(x, params["wte_lm_t"], V).reshape(B, S, V)

    loss = None
    if labels is not None:
        # HF GPT2LMHeadModel loss: shift by one, ignore_index=-100 (JAX glue)
        shift_logits = logits[:, :-1, :]
        shift_labels = labels[:, 1:]
        logz = jax.nn.log_softmax(shift_logits, axis=-1)
        safe_labels = jnp.maximum(shift_labels, 0)
        nll = -jnp.take_along_axis(logz, safe_labels[..., None], axis=-1)[..., 0]
        mask = (shift_labels != -100).astype(jnp.float32)
        loss = jnp.sum(nll * mask) / jnp.maximum(jnp.sum(mask), 1.0)
    return logits, loss


# ---------------------------------- main --------------------------------------

if __name__ == "__main__":
    vocab_size, n_embd, n_layer, n_head = 50257, 128, 4, 4
    B, S = 2, 8

    key = jax.random.PRNGKey(0)
    pkey, dkey = jax.random.split(key)
    params = init_params(pkey, vocab_size, n_embd, n_layer, n_head)
    input_ids = jax.random.randint(dkey, (B, S), 0, vocab_size, dtype=jnp.int32)

    fwd = jax.jit(partial(child_transformer_forward, n_head=n_head))
    logits, _ = fwd(params, input_ids)
    logits = jax.block_until_ready(logits)

    assert logits.shape == (B, S, vocab_size)
    assert bool(jnp.all(jnp.isfinite(logits)))
    print("KERNEL_OK")
</pallas_src>

<mosaic_0001>
module attributes {stable_mosaic.version = 11 : i64} {
  func.func @_lm_head_kernel(%arg0: i32, %arg1: memref<16x128xbf16, #tpu.memory_space<vmem>>, %arg2: memref<128x12800xbf16, #tpu.memory_space<vmem>>, %arg3: memref<16x12800xf32, #tpu.memory_space<vmem>>) attributes {dimension_semantics = [#tpu.dimension_semantics<parallel>], iteration_bounds = array<i64: 4>, scalar_prefetch = 0 : i64, scratch_operands = 0 : i64, tpu.core_type = #tpu.core_type<tc>, window_params = [{pipeline_mode = #tpu.pipeline_mode<synchronous>, transform_indices = @transform_0, window_bounds = array<i64: 16, 128>}, {transform_indices = @transform_1, window_bounds = array<i64: 128, 12800>}, {transform_indices = @transform_2, window_bounds = array<i64: 16, 12800>}]} {
    %c0 = arith.constant 0 : index
    %c0_0 = arith.constant 0 : index
    %0 = vector.load %arg1[%c0, %c0_0] : memref<16x128xbf16, #tpu.memory_space<vmem>>, vector<16x128xbf16>
    %c0_1 = arith.constant 0 : index
    %c0_2 = arith.constant 0 : index
    %1 = vector.load %arg2[%c0_1, %c0_2] : memref<128x12800xbf16, #tpu.memory_space<vmem>>, vector<128x12800xbf16>
    %cst = arith.constant dense<0.000000e+00> : vector<16x12800xf32>
    %2 = tpu.matmul %0, %1, %cst {dimension_numbers = #tpu.dot_dimension_numbers<[1], [0], [0], [1], [0, 0, 1, 1], [], []>} : vector<16x128xbf16>, vector<128x12800xbf16>, vector<16x12800xf32> -> vector<16x12800xf32>
    %c0_3 = arith.constant 0 : index
    %c0_4 = arith.constant 0 : index
    %3 = vector.load %arg3[%c0_3, %c0_4] : memref<16x12800xf32, #tpu.memory_space<vmem>>, vector<16x12800xf32>
    tpu.vector_store %arg3[%c0_3, %c0_4], %2 {strides = array<i32>} : memref<16x12800xf32, #tpu.memory_space<vmem>>, vector<16x12800xf32>,
    return
  }
  func.func @transform_0(%arg0: i32) -> (i32, i32) {
    %c0_i32 = arith.constant 0 : i32
    %c0_i32_0 = arith.constant 0 : i32
    %c0_i32_1 = arith.constant 0 : i32
    return %c0_i32, %c0_i32_0 : i32, i32
  }
  func.func @transform_1(%arg0: i32) -> (i32, i32) {
    %c0_i32 = arith.constant 0 : i32
    %c0_i32_0 = arith.constant 0 : i32
    return %c0_i32, %arg0 : i32, i32
  }
  func.func @transform_2(%arg0: i32) -> (i32, i32) {
    %c0_i32 = arith.constant 0 : i32
    %c0_i32_0 = arith.constant 0 : i32
    return %c0_i32, %arg0 : i32, i32
  }
}

module attributes {stable_mosaic.version = 11 : i64} {
  func.func @_body_kernel(%arg0: i32, %arg1: memref<16x128xf32, #tpu.memory_space<vmem>>, %arg2: memref<1x1x128xf32, #tpu.memory_space<vmem>>, %arg3: memref<1x1x128xf32, #tpu.memory_space<vmem>>, %arg4: memref<1x4x32x128xbf16, #tpu.memory_space<vmem>>, %arg5: memref<1x4x32x128xbf16, #tpu.memory_space<vmem>>, %arg6: memref<1x4x32x128xbf16, #tpu.memory_space<vmem>>, %arg7: memref<1x4x1x32xf32, #tpu.memory_space<vmem>>, %arg8: memref<1x4x1x32xf32, #tpu.memory_space<vmem>>, %arg9: memref<1x4x1x32xf32, #tpu.memory_space<vmem>>, %arg10: memref<1x4x32x128xbf16, #tpu.memory_space<vmem>>, %arg11: memref<1x1x128xf32, #tpu.memory_space<vmem>>, %arg12: memref<1x1x128xf32, #tpu.memory_space<vmem>>, %arg13: memref<1x1x128xf32, #tpu.memory_space<vmem>>, %arg14: memref<1x128x512xbf16, #tpu.memory_space<vmem>>, %arg15: memref<1x1x512xf32, #tpu.memory_space<vmem>>, %arg16: memref<1x512x128xbf16, #tpu.memory_space<vmem>>, %arg17: memref<1x1x128xf32, #tpu.memory_space<vmem>>, %arg18: memref<1x128xf32, #tpu.memory_space<vmem>>, %arg19: memref<1x128xf32, #tpu.memory_space<vmem>>, %arg20: memref<16x128xbf16, #tpu.memory_space<vmem>>, %arg21: memref<16x128xf32, #tpu.memory_space<vmem>>) attributes {dimension_semantics = [#tpu.dimension_semantics<arbitrary>], iteration_bounds = array<i64: 4>, scalar_prefetch = 0 : i64, scratch_operands = 1 : i64, tpu.core_type = #tpu.core_type<tc>, window_params = [{pipeline_mode = #tpu.pipeline_mode<synchronous>, transform_indices = @transform_0, window_bounds = array<i64: 16, 128>}, {transform_indices = @transform_1, window_bounds = array<i64: 1, 1, 128>}, {transform_indices = @transform_2, window_bounds = array<i64: 1, 1, 128>}, {transform_indices = @transform_3, window_bounds = array<i64: 1, 4, 32, 128>}, {transform_indices = @transform_4, window_bounds = array<i64: 1, 4, 32, 128>}, {transform_indices = @transform_5, window_bounds = array<i64: 1, 4, 32, 128>}, {transform_indices = @transform_6, window_bounds = array<i64: 1, 4, 1, 32>}, {transform_indices = @transform_7, window_bounds = array<i64: 1, 4, 1, 32>}, {transform_indices = @transform_8, window_bounds = array<i64: 1, 4, 1, 32>}, {transform_indices = @transform_9, window_bounds = array<i64: 1, 4, 32, 128>}, {transform_indices = @transform_10, window_bounds = array<i64: 1, 1, 128>}, {transform_indices = @transform_11, window_bounds = array<i64: 1, 1, 128>}, {transform_indices = @transform_12, window_bounds = array<i64: 1, 1, 128>}, {transform_indices = @transform_13, window_bounds = array<i64: 1, 128, 512>}, {transform_indices = @transform_14, window_bounds = array<i64: 1, 1, 512>}, {transform_indices = @transform_15, window_bounds = array<i64: 1, 512, 128>}, {transform_indices = @transform_16, window_bounds = array<i64: 1, 1, 128>}, {pipeline_mode = #tpu.pipeline_mode<synchronous>, transform_indices = @transform_17, window_bounds = array<i64: 1, 128>}, {pipeline_mode = #tpu.pipeline_mode<synchronous>, transform_indices = @transform_18, window_bounds = array<i64: 1, 128>}, {pipeline_mode = #tpu.pipeline_mode<synchronous>, transform_indices = @transform_19, window_bounds = array<i64: 16, 128>}]} {
    %c0_i32 = arith.constant 0 : i32
    %0 = arith.cmpi eq, %arg0, %c0_i32 : i32
    %1 = arith.extui %0 : i1 to i32
    %c0_i32_0 = arith.constant 0 : i32
    %2 = arith.cmpi ne, %1, %c0_i32_0 : i32
    scf.if %2 {
      %c0_197 = arith.constant 0 : index
      %c0_198 = arith.constant 0 : index
      %293 = vector.load %arg1[%c0_197, %c0_198] : memref<16x128xf32, #tpu.memory_space<vmem>>, vector<16x128xf32>
      %c0_199 = arith.constant 0 : index
      %c0_200 = arith.constant 0 : index
      %294 = vector.load %arg21[%c0_199, %c0_200] : memref<16x128xf32, #tpu.memory_space<vmem>>, vector<16x128xf32>
      tpu.vector_store %arg21[%c0_199, %c0_200], %293 {strides = array<i32>} : memref<16x128xf32, #tpu.memory_space<vmem>>, vector<16x128xf32>,
    } else {
    }
    %c0 = arith.constant 0 : index
    %c0_1 = arith.constant 0 : index
    %3 = vector.load %arg21[%c0, %c0_1] : memref<16x128xf32, #tpu.memory_space<vmem>>, vector<16x128xf32>
    %4 = tpu.iota {dimensions = array<i32: 0>} : vector<8x8xi32>
    %5 = tpu.iota {dimensions = array<i32: 1>} : vector<8x8xi32>
    %6 = arith.cmpi sle, %5, %4 : vector<8x8xi32>
    %7 = vector.shape_cast %6 : vector<8x8xi1> to vector<1x8x8xi1>
    %c0_2 = arith.constant 0 : index
    %c0_3 = arith.constant 0 : index
    %c0_4 = arith.constant 0 : index
    %8 = vector.load %arg2[%c0_2, %c0_3, %c0_4] : memref<1x1x128xf32, #tpu.memory_space<vmem>>, vector<1x1x128xf32>
    %9 = vector.shape_cast %8 : vector<1x1x128xf32> to vector<1x128xf32>
    %c0_5 = arith.constant 0 : index
    %c0_6 = arith.constant 0 : index
    %c0_7 = arith.constant 0 : index
    %10 = vector.load %arg3[%c0_5, %c0_6, %c0_7] : memref<1x1x128xf32, #tpu.memory_space<vmem>>, vector<1x1x128xf32>
    %11 = vector.shape_cast %10 : vector<1x1x128xf32> to vector<1x128xf32>
    %cst = arith.constant dense<0.000000e+00> : vector<16xf32>
    %12 = vector.multi_reduction <add>, %3, %cst [1] : vector<16x128xf32> to vector<16xf32>
    %13 = vector.shape_cast %12 : vector<16xf32> to vector<16x1xf32>
    %cst_8 = arith.constant 1.280000e+02 : f32
    %14 = vector.broadcast %cst_8 : f32 to vector<16x1xf32>
    %15 = arith.divf %13, %14 : vector<16x1xf32>
    %16 = vector.broadcast %15 : vector<16x1xf32> to vector<16x128xf32>
    %17 = arith.subf %3, %16 : vector<16x128xf32>
    %18 = arith.mulf %17, %17 : vector<16x128xf32>
    %cst_9 = arith.constant dense<0.000000e+00> : vector<16xf32>
    %19 = vector.multi_reduction <add>, %18, %cst_9 [1] : vector<16x128xf32> to vector<16xf32>
    %20 = vector.shape_cast %19 : vector<16xf32> to vector<16x1xf32>
    %cst_10 = arith.constant 1.280000e+02 : f32
    %21 = vector.broadcast %cst_10 : f32 to vector<16x1xf32>
    %22 = arith.divf %20, %21 : vector<16x1xf32>
    %23 = vector.broadcast %15 : vector<16x1xf32> to vector<16x128xf32>
    %24 = arith.subf %3, %23 : vector<16x128xf32>
    %cst_11 = arith.constant 9.99999974E-6 : f32
    %25 = vector.broadcast %cst_11 : f32 to vector<16x1xf32>
    %26 = arith.addf %22, %25 : vector<16x1xf32>
    %27 = math.rsqrt %26 : vector<16x1xf32>
    %28 = vector.broadcast %27 : vector<16x1xf32> to vector<16x128xf32>
    %29 = arith.mulf %24, %28 : vector<16x128xf32>
    %30 = vector.broadcast %9 : vector<1x128xf32> to vector<16x128xf32>
    %31 = arith.mulf %29, %30 : vector<16x128xf32>
    %32 = vector.broadcast %11 : vector<1x128xf32> to vector<16x128xf32>
    %33 = arith.addf %31, %32 : vector<16x128xf32>
    %34 = arith.truncf %33 : vector<16x128xf32> to vector<16x128xbf16>
    %cst_12 = arith.constant 0.000000e+00 : f32
    %35 = vector.broadcast %cst_12 : f32 to vector<16x128xf32>
    %c0_13 = arith.constant 0 : index
    %c0_14 = arith.constant 0 : index
    %c0_15 = arith.constant 0 : index
    %c0_16 = arith.constant 0 : index
    %36 = vector.load %arg4[%c0_13, %c0_14, %c0_15, %c0_16] : memref<1x4x32x128xbf16, #tpu.memory_space<vmem>>, vector<1x1x32x128xbf16>
    %37 = vector.shape_cast %36 : vector<1x1x32x128xbf16> to vector<32x128xbf16>
    %cst_17 = arith.constant dense<0.000000e+00> : vector<16x32xf32>
    %38 = tpu.matmul %34, %37, %cst_17 {dimension_numbers = #tpu.dot_dimension_numbers<[1], [1], [0], [0], [0, 0, 1, 0], [], []>} : vector<16x128xbf16>, vector<32x128xbf16>, vector<16x32xf32> -> vector<16x32xf32>
    %c0_18 = arith.constant 0 : index
    %c0_19 = arith.constant 0 : index
    %c0_20 = arith.constant 0 : index
    %c0_21 = arith.constant 0 : index
    %39 = vector.load %arg7[%c0_18, %c0_19, %c0_20, %c0_21] : memref<1x4x1x32xf32, #tpu.memory_space<vmem>>, vector<1x1x1x32xf32>
    %40 = vector.shape_cast %39 : vector<1x1x1x32xf32> to vector<1x32xf32>
    %41 = vector.broadcast %40 : vector<1x32xf32> to vector<16x32xf32>
    %42 = arith.addf %38, %41 : vector<16x32xf32>
    %c0_22 = arith.constant 0 : index
    %c0_23 = arith.constant 0 : index
    %c0_24 = arith.constant 0 : index
    %c0_25 = arith.constant 0 : index
    %43 = vector.load %arg5[%c0_22, %c0_23, %c0_24, %c0_25] : memref<1x4x32x128xbf16, #tpu.memory_space<vmem>>, vector<1x1x32x128xbf16>
    %44 = vector.shape_cast %43 : vector<1x1x32x128xbf16> to vector<32x128xbf16>
    %cst_26 = arith.constant dense<0.000000e+00> : vector<16x32xf32>
    %45 = tpu.matmul %34, %44, %cst_26 {dimension_numbers = #tpu.dot_dimension_numbers<[1], [1], [0], [0], [0, 0, 1, 0], [], []>} : vector<16x128xbf16>, vector<32x128xbf16>, vector<16x32xf32> -> vector<16x32xf32>
    %c0_27 = arith.constant 0 : index
    %c0_28 = arith.constant 0 : index
    %c0_29 = arith.constant 0 : index
    %c0_30 = arith.constant 0 : index
    %46 = vector.load %arg8[%c0_27, %c0_28, %c0_29, %c0_30] : memref<1x4x1x32xf32, #tpu.memory_space<vmem>>, vector<1x1x1x32xf32>
    %47 = vector.shape_cast %46 : vector<1x1x1x32xf32> to vector<1x32xf32>
    %48 = vector.broadcast %47 : vector<1x32xf32> to vector<16x32xf32>
    %49 = arith.addf %45, %48 : vector<16x32xf32>
    %c0_31 = arith.constant 0 : index
    %c0_32 = arith.constant 0 : index
    %c0_33 = arith.constant 0 : index
    %c0_34 = arith.constant 0 : index
    %50 = vector.load %arg6[%c0_31, %c0_32, %c0_33, %c0_34] : memref<1x4x32x128xbf16, #tpu.memory_space<vmem>>, vector<1x1x32x128xbf16>
    %51 = vector.shape_cast %50 : vector<1x1x32x128xbf16> to vector<32x128xbf16>
    %cst_35 = arith.constant dense<0.000000e+00> : vector<16x32xf32>
    %52 = tpu.matmul %34, %51, %cst_35 {dimension_numbers = #tpu.dot_dimension_numbers<[1], [1], [0], [0], [0, 0, 1, 0], [], []>} : vector<16x128xbf16>, vector<32x128xbf16>, vector<16x32xf32> -> vector<16x32xf32>
    %c0_36 = arith.constant 0 : index
    %c0_37 = arith.constant 0 : index
    %c0_38 = arith.constant 0 : index
    %c0_39 = arith.constant 0 : index
    %53 = vector.load %arg9[%c0_36, %c0_37, %c0_38, %c0_39] : memref<1x4x1x32xf32, #tpu.memory_space<vmem>>, vector<1x1x1x32xf32>
    %54 = vector.shape_cast %53 : vector<1x1x1x32xf32> to vector<1x32xf32>
    %55 = vector.broadcast %54 : vector<1x32xf32> to vector<16x32xf32>
    %56 = arith.addf %52, %55 : vector<16x32xf32>
    %57 = vector.shape_cast %42 : vector<16x32xf32> to vector<2x8x32xf32>
    %58 = vector.shape_cast %49 : vector<16x32xf32> to vector<2x8x32xf32>
    %59 = vector.shape_cast %56 : vector<16x32xf32> to vector<2x8x32xf32>
    "tpu.trace_start"() <{level = 10 : i32, message = "bqd,bkd->bqk"}> : () -> ()
    %cst_40 = arith.constant dense<0.000000e+00> : vector<2x8x8xf32>
    %60 = tpu.matmul %57, %58, %cst_40 {dimension_numbers = #tpu.dot_dimension_numbers<[2], [2], [1], [1], [0, 0, 0, 1, 1, 1], [0], [0]>} : vector<2x8x32xf32>, vector<2x8x32xf32>, vector<2x8x8xf32> -> vector<2x8x8xf32>
    "tpu.trace_stop"() : () -> ()
    %cst_41 = arith.constant 0.176776692 : f32
    %61 = vector.broadcast %cst_41 : f32 to vector<2x8x8xf32>
    %62 = arith.mulf %60, %61 : vector<2x8x8xf32>
    %cst_42 = arith.constant -3.40282347E+38 : f32
    %63 = vector.shape_cast %7 : vector<1x8x8xi1> to vector<1x8x8xi1>
    %64 = vector.broadcast %63 : vector<1x8x8xi1> to vector<2x8x8xi1>
    %65 = vector.broadcast %cst_42 : f32 to vector<2x8x8xf32>
    %66 = arith.select %64, %62, %65 : vector<2x8x8xi1>, vector<2x8x8xf32>
    %cst_43 = arith.constant dense<0xFF800000> : vector<2x8xf32>
    %67 = vector.multi_reduction <maximumf>, %66, %cst_43 [2] : vector<2x8x8xf32> to vector<2x8xf32>
    %68 = vector.shape_cast %67 : vector<2x8xf32> to vector<2x8x1xf32>
    %69 = vector.broadcast %68 : vector<2x8x1xf32> to vector<2x8x8xf32>
    %70 = arith.subf %66, %69 : vector<2x8x8xf32>
    %71 = math.exp %70 : vector<2x8x8xf32>
    %cst_44 = arith.constant dense<0.000000e+00> : vector<2x8xf32>
    %72 = vector.multi_reduction <add>, %71, %cst_44 [2] : vector<2x8x8xf32> to vector<2x8xf32>
    %73 = vector.shape_cast %72 : vector<2x8xf32> to vector<2x8x1xf32>
    %74 = tpu.reciprocal %73 {approx = true} : vector<2x8x1xf32> -> vector<2x8x1xf32>
    %75 = vector.broadcast %74 : vector<2x8x1xf32> to vector<2x8x8xf32>
    %76 = arith.mulf %71, %75 : vector<2x8x8xf32>
    "tpu.trace_start"() <{level = 10 : i32, message = "bqk,bkd->bqd"}> : () -> ()
    %cst_45 = arith.constant dense<0.000000e+00> : vector<2x8x32xf32>
    %77 = tpu.matmul %76, %59, %cst_45 {dimension_numbers = #tpu.dot_dimension_numbers<[2], [1], [1], [2], [0, 0, 0, 1, 1, 2], [0], [0]>} : vector<2x8x8xf32>, vector<2x8x32xf32>, vector<2x8x32xf32> -> vector<2x8x32xf32>
    "tpu.trace_stop"() : () -> ()
    %78 = vector.shape_cast %77 : vector<2x8x32xf32> to vector<16x32xf32>
    %79 = arith.truncf %78 : vector<16x32xf32> to vector<16x32xbf16>
    %c0_46 = arith.constant 0 : index
    %c0_47 = arith.constant 0 : index
    %c0_48 = arith.constant 0 : index
    %c0_49 = arith.constant 0 : index
    %80 = vector.load %arg10[%c0_46, %c0_47, %c0_48, %c0_49] : memref<1x4x32x128xbf16, #tpu.memory_space<vmem>>, vector<1x1x32x128xbf16>
    %81 = vector.shape_cast %80 : vector<1x1x32x128xbf16> to vector<32x128xbf16>
    %cst_50 = arith.constant dense<0.000000e+00> : vector<16x128xf32>
    %82 = tpu.matmul %79, %81, %cst_50 {dimension_numbers = #tpu.dot_dimension_numbers<[1], [0], [0], [1], [0, 0, 1, 1], [], []>} : vector<16x32xbf16>, vector<32x128xbf16>, vector<16x128xf32> -> vector<16x128xf32>
    %83 = arith.addf %35, %82 : vector<16x128xf32>
    %c0_51 = arith.constant 0 : index
    %c1 = arith.constant 1 : index
    %c0_52 = arith.constant 0 : index
    %c0_53 = arith.constant 0 : index
    %84 = vector.load %arg4[%c0_51, %c1, %c0_52, %c0_53] : memref<1x4x32x128xbf16, #tpu.memory_space<vmem>>, vector<1x1x32x128xbf16>
    %85 = vector.shape_cast %84 : vector<1x1x32x128xbf16> to vector<32x128xbf16>
    %cst_54 = arith.constant dense<0.000000e+00> : vector<16x32xf32>
    %86 = tpu.matmul %34, %85, %cst_54 {dimension_numbers = #tpu.dot_dimension_numbers<[1], [1], [0], [0], [0, 0, 1, 0], [], []>} : vector<16x128xbf16>, vector<32x128xbf16>, vector<16x32xf32> -> vector<16x32xf32>
    %c0_55 = arith.constant 0 : index
    %c1_56 = arith.constant 1 : index
    %c0_57 = arith.constant 0 : index
    %c0_58 = arith.constant 0 : index
    %87 = vector.load %arg7[%c0_55, %c1_56, %c0_57, %c0_58] : memref<1x4x1x32xf32, #tpu.memory_space<vmem>>, vector<1x1x1x32xf32>
    %88 = vector.shape_cast %87 : vector<1x1x1x32xf32> to vector<1x32xf32>
    %89 = vector.broadcast %88 : vector<1x32xf32> to vector<16x32xf32>
    %90 = arith.addf %86, %89 : vector<16x32xf32>
    %c0_59 = arith.constant 0 : index
    %c1_60 = arith.constant 1 : index
    %c0_61 = arith.constant 0 : index
    %c0_62 = arith.constant 0 : index
    %91 = vector.load %arg5[%c0_59, %c1_60, %c0_61, %c0_62] : memref<1x4x32x128xbf16, #tpu.memory_space<vmem>>, vector<1x1x32x128xbf16>
    %92 = vector.shape_cast %91 : vector<1x1x32x128xbf16> to vector<32x128xbf16>
    %cst_63 = arith.constant dense<0.000000e+00> : vector<16x32xf32>
    %93 = tpu.matmul %34, %92, %cst_63 {dimension_numbers = #tpu.dot_dimension_numbers<[1], [1], [0], [0], [0, 0, 1, 0], [], []>} : vector<16x128xbf16>, vector<32x128xbf16>, vector<16x32xf32> -> vector<16x32xf32>
    %c0_64 = arith.constant 0 : index
    %c1_65 = arith.constant 1 : index
    %c0_66 = arith.constant 0 : index
    %c0_67 = arith.constant 0 : index
    %94 = vector.load %arg8[%c0_64, %c1_65, %c0_66, %c0_67] : memref<1x4x1x32xf32, #tpu.memory_space<vmem>>, vector<1x1x1x32xf32>
    %95 = vector.shape_cast %94 : vector<1x1x1x32xf32> to vector<1x32xf32>
    %96 = vector.broadcast %95 : vector<1x32xf32> to vector<16x32xf32>
    %97 = arith.addf %93, %96 : vector<16x32xf32>
    %c0_68 = arith.constant 0 : index
    %c1_69 = arith.constant 1 : index
    %c0_70 = arith.constant 0 : index
    %c0_71 = arith.constant 0 : index
    %98 = vector.load %arg6[%c0_68, %c1_69, %c0_70, %c0_71] : memref<1x4x32x128xbf16, #tpu.memory_space<vmem>>, vector<1x1x32x128xbf16>
    %99 = vector.shape_cast %98 : vector<1x1x32x128xbf16> to vector<32x128xbf16>
    %cst_72 = arith.constant dense<0.000000e+00> : vector<16x32xf32>
    %100 = tpu.matmul %34, %99, %cst_72 {dimension_numbers = #tpu.dot_dimension_numbers<[1], [1], [0], [0], [0, 0, 1, 0], [], []>} : vector<16x128xbf16>, vector<32x128xbf16>, vector<16x32xf32> -> vector<16x32xf32>
    %c0_73 = arith.constant 0 : index
    %c1_74 = arith.constant 1 : index
    %c0_75 = arith.constant 0 : index
    %c0_76 = arith.constant 0 : index
    %101 = vector.load %arg9[%c0_73, %c1_74, %c0_75, %c0_76] : memref<1x4x1x32xf32, #tpu.memory_space<vmem>>, vector<1x1x1x32xf32>
    %102 = vector.shape_cast %101 : vector<1x1x1x32xf32> to vector<1x32xf32>
    %103 = vector.broadcast %102 : vector<1x32xf32> to vector<16x32xf32>
    %104 = arith.addf %100, %103 : vector<16x32xf32>
    %105 = vector.shape_cast %90 : vector<16x32xf32> to vector<2x8x32xf32>
    %106 = vector.shape_cast %97 : vector<16x32xf32> to vector<2x8x32xf32>
    %107 = vector.shape_cast %104 : vector<16x32xf32> to vector<2x8x32xf32>
    "tpu.trace_start"() <{level = 10 : i32, message = "bqd,bkd->bqk"}> : () -> ()
    %cst_77 = arith.constant dense<0.000000e+00> : vector<2x8x8xf32>
    %108 = tpu.matmul %105, %106, %cst_77 {dimension_numbers = #tpu.dot_dimension_numbers<[2], [2], [1], [1], [0, 0, 0, 1, 1, 1], [0], [0]>} : vector<2x8x32xf32>, vector<2x8x32xf32>, vector<2x8x8xf32> -> vector<2x8x8xf32>
    "tpu.trace_stop"() : () -> ()
    %cst_78 = arith.constant 0.176776692 : f32
    %109 = vector.broadcast %cst_78 : f32 to vector<2x8x8xf32>
    %110 = arith.mulf %108, %109 : vector<2x8x8xf32>
    %cst_79 = arith.constant -3.40282347E+38 : f32
    %111 = vector.shape_cast %7 : vector<1x8x8xi1> to vector<1x8x8xi1>
    %112 = vector.broadcast %111 : vector<1x8x8xi1> to vector<2x8x8xi1>
    %113 = vector.broadcast %cst_79 : f32 to vector<2x8x8xf32>
    %114 = arith.select %112, %110, %113 : vector<2x8x8xi1>, vector<2x8x8xf32>
    %cst_80 = arith.constant dense<0xFF800000> : vector<2x8xf32>
    %115 = vector.multi_reduction <maximumf>, %114, %cst_80 [2] : vector<2x8x8xf32> to vector<2x8xf32>
    %116 = vector.shape_cast %115 : vector<2x8xf32> to vector<2x8x1xf32>
    %117 = vector.broadcast %116 : vector<2x8x1xf32> to vector<2x8x8xf32>
    %118 = arith.subf %114, %117 : vector<2x8x8xf32>
    %119 = math.exp %118 : vector<2x8x8xf32>
    %cst_81 = arith.constant dense<0.000000e+00> : vector<2x8xf32>
    %120 = vector.multi_reduction <add>, %119, %cst_81 [2] : vector<2x8x8xf32> to vector<2x8xf32>
    %121 = vector.shape_cast %120 : vector<2x8xf32> to vector<2x8x1xf32>
    %122 = tpu.reciprocal %121 {approx = true} : vector<2x8x1xf32> -> vector<2x8x1xf32>
    %123 = vector.broadcast %122 : vector<2x8x1xf32> to vector<2x8x8xf32>
    %124 = arith.mulf %119, %123 : vector<2x8x8xf32>
    "tpu.trace_start"() <{level = 10 : i32, message = "bqk,bkd->bqd"}> : () -> ()
    %cst_82 = arith.constant dense<0.000000e+00> : vector<2x8x32xf32>
    %125 = tpu.matmul %124, %107, %cst_82 {dimension_numbers = #tpu.dot_dimension_numbers<[2], [1], [1], [2], [0, 0, 0, 1, 1, 2], [0], [0]>} : vector<2x8x8xf32>, vector<2x8x32xf32>, vector<2x8x32xf32> -> vector<2x8x32xf32>
    "tpu.trace_stop"() : () -> ()
    %126 = vector.shape_cast %125 : vector<2x8x32xf32> to vector<16x32xf32>
    %127 = arith.truncf %126 : vector<16x32xf32> to vector<16x32xbf16>
    %c0_83 = arith.constant 0 : index
    %c1_84 = arith.constant 1 : index
    %c0_85 = arith.constant 0 : index
    %c0_86 = arith.constant 0 : index
    %128 = vector.load %arg10[%c0_83, %c1_84, %c0_85, %c0_86] : memref<1x4x32x128xbf16, #tpu.memory_space<vmem>>, vector<1x1x32x128xbf16>
    %129 = vector.shape_cast %128 : vector<1x1x32x128xbf16> to vector<32x128xbf16>
    %cst_87 = arith.constant dense<0.000000e+00> : vector<16x128xf32>
    %130 = tpu.matmul %127, %129, %cst_87 {dimension_numbers = #tpu.dot_dimension_numbers<[1], [0], [0], [1], [0, 0, 1, 1], [], []>} : vector<16x32xbf16>, vector<32x128xbf16>, vector<16x128xf32> -> vector<16x128xf32>
    %131 = arith.addf %83, %130 : vector<16x128xf32>
    %c0_88 = arith.constant 0 : index
    %c2 = arith.constant 2 : index
    %c0_89 = arith.constant 0 : index
    %c0_90 = arith.constant 0 : index
    %132 = vector.load %arg4[%c0_88, %c2, %c0_89, %c0_90] : memref<1x4x32x128xbf16, #tpu.memory_space<vmem>>, vector<1x1x32x128xbf16>
    %133 = vector.shape_cast %132 : vector<1x1x32x128xbf16> to vector<32x128xbf16>
    %cst_91 = arith.constant dense<0.000000e+00> : vector<16x32xf32>
    %134 = tpu.matmul %34, %133, %cst_91 {dimension_numbers = #tpu.dot_dimension_numbers<[1], [1], [0], [0], [0, 0, 1, 0], [], []>} : vector<16x128xbf16>, vector<32x128xbf16>, vector<16x32xf32> -> vector<16x32xf32>
    %c0_92 = arith.constant 0 : index
    %c2_93 = arith.constant 2 : index
    %c0_94 = arith.constant 0 : index
    %c0_95 = arith.constant 0 : index
    %135 = vector.load %arg7[%c0_92, %c2_93, %c0_94, %c0_95] : memref<1x4x1x32xf32, #tpu.memory_space<vmem>>, vector<1x1x1x32xf32>
    %136 = vector.shape_cast %135 : vector<1x1x1x32xf32> to vector<1x32xf32>
    %137 = vector.broadcast %136 : vector<1x32xf32> to vector<16x32xf32>
    %138 = arith.addf %134, %137 : vector<16x32xf32>
    %c0_96 = arith.constant 0 : index
    %c2_97 = arith.constant 2 : index
    %c0_98 = arith.constant 0 : index
    %c0_99 = arith.constant 0 : index
    %139 = vector.load %arg5[%c0_96, %c2_97, %c0_98, %c0_99] : memref<1x4x32x128xbf16, #tpu.memory_space<vmem>>, vector<1x1x32x128xbf16>
    %140 = vector.shape_cast %139 : vector<1x1x32x128xbf16> to vector<32x128xbf16>
    %cst_100 = arith.constant dense<0.000000e+00> : vector<16x32xf32>
    %141 = tpu.matmul %34, %140, %cst_100 {dimension_numbers = #tpu.dot_dimension_numbers<[1], [1], [0], [0], [0, 0, 1, 0], [], []>} : vector<16x128xbf16>, vector<32x128xbf16>, vector<16x32xf32> -> vector<16x32xf32>
    %c0_101 = arith.constant 0 : index
    %c2_102 = arith.constant 2 : index
    %c0_103 = arith.constant 0 : index
    %c0_104 = arith.constant 0 : index
    %142 = vector.load %arg8[%c0_101, %c2_102, %c0_103, %c0_104] : memref<1x4x1x32xf32, #tpu.memory_space<vmem>>, vector<1x1x1x32xf32>
    %143 = vector.shape_cast %142 : vector<1x1x1x32xf32> to vector<1x32xf32>
    %144 = vector.broadcast %143 : vector<1x32xf32> to vector<16x32xf32>
    %145 = arith.addf %141, %144 : vector<16x32xf32>
    %c0_105 = arith.constant 0 : index
    %c2_106 = arith.constant 2 : index
    %c0_107 = arith.constant 0 : index
    %c0_108 = arith.constant 0 : index
    %146 = vector.load %arg6[%c0_105, %c2_106, %c0_107, %c0_108] : memref<1x4x32x128xbf16, #tpu.memory_space<vmem>>, vector<1x1x32x128xbf16>
    %147 = vector.shape_cast %146 : vector<1x1x32x128xbf16> to vector<32x128xbf16>
    %cst_109 = arith.constant dense<0.000000e+00> : vector<16x32xf32>
    %148 = tpu.matmul %34, %147, %cst_109 {dimension_numbers = #tpu.dot_dimension_numbers<[1], [1], [0], [0], [0, 0, 1, 0], [], []>} : vector<16x128xbf16>, vector<32x128xbf16>, vector<16x32xf32> -> vector<16x32xf32>
    %c0_110 = arith.constant 0 : index
    %c2_111 = arith.constant 2 : index
    %c0_112 = arith.constant 0 : index
    %c0_113 = arith.constant 0 : index
    %149 = vector.load %arg9[%c0_110, %c2_111, %c0_112, %c0_113] : memref<1x4x1x32xf32, #tpu.memory_space<vmem>>, vector<1x1x1x32xf32>
    %150 = vector.shape_cast %149 : vector<1x1x1x32xf32> to vector<1x32xf32>
    %151 = vector.broadcast %150 : vector<1x32xf32> to vector<16x32xf32>
    %152 = arith.addf %148, %151 : vector<16x32xf32>
    %153 = vector.shape_cast %138 : vector<16x32xf32> to vector<2x8x32xf32>
    %154 = vector.shape_cast %145 : vector<16x32xf32> to vector<2x8x32xf32>
    %155 = vector.shape_cast %152 : vector<16x32xf32> to vector<2x8x32xf32>
    "tpu.trace_start"() <{level = 10 : i32, message = "bqd,bkd->bqk"}> : () -> ()
    %cst_114 = arith.constant dense<0.000000e+00> : vector<2x8x8xf32>
    %156 = tpu.matmul %153, %154, %cst_114 {dimension_numbers = #tpu.dot_dimension_numbers<[2], [2], [1], [1], [0, 0, 0, 1, 1, 1], [0], [0]>} : vector<2x8x32xf32>, vector<2x8x32xf32>, vector<2x8x8xf32> -> vector<2x8x8xf32>
    "tpu.trace_stop"() : () -> ()
    %cst_115 = arith.constant 0.176776692 : f32
    %157 = vector.broadcast %cst_115 : f32 to vector<2x8x8xf32>
    %158 = arith.mulf %156, %157 : vector<2x8x8xf32>
    %cst_116 = arith.constant -3.40282347E+38 : f32
    %159 = vector.shape_cast %7 : vector<1x8x8xi1> to vector<1x8x8xi1>
    %160 = vector.broadcast %159 : vector<1x8x8xi1> to vector<2x8x8xi1>
    %161 = vector.broadcast %cst_116 : f32 to vector<2x8x8xf32>
    %162 = arith.select %160, %158, %161 : vector<2x8x8xi1>, vector<2x8x8xf32>
    %cst_117 = arith.constant dense<0xFF800000> : vector<2x8xf32>
    %163 = vector.multi_reduction <maximumf>, %162, %cst_117 [2] : vector<2x8x8xf32> to vector<2x8xf32>
    %164 = vector.shape_cast %163 : vector<2x8xf32> to vector<2x8x1xf32>
    %165 = vector.broadcast %164 : vector<2x8x1xf32> to vector<2x8x8xf32>
    %166 = arith.subf %162, %165 : vector<2x8x8xf32>
    %167 = math.exp %166 : vector<2x8x8xf32>
    %cst_118 = arith.constant dense<0.000000e+00> : vector<2x8xf32>
    %168 = vector.multi_reduction <add>, %167, %cst_118 [2] : vector<2x8x8xf32> to vector<2x8xf32>
    %169 = vector.shape_cast %168 : vector<2x8xf32> to vector<2x8x1xf32>
    %170 = tpu.reciprocal %169 {approx = true} : vector<2x8x1xf32> -> vector<2x8x1xf32>
    %171 = vector.broadcast %170 : vector<2x8x1xf32> to vector<2x8x8xf32>
    %172 = arith.mulf %167, %171 : vector<2x8x8xf32>
    "tpu.trace_start"() <{level = 10 : i32, message = "bqk,bkd->bqd"}> : () -> ()
    %cst_119 = arith.constant dense<0.000000e+00> : vector<2x8x32xf32>
    %173 = tpu.matmul %172, %155, %cst_119 {dimension_numbers = #tpu.dot_dimension_numbers<[2], [1], [1], [2], [0, 0, 0, 1, 1, 2], [0], [0]>} : vector<2x8x8xf32>, vector<2x8x32xf32>, vector<2x8x32xf32> -> vector<2x8x32xf32>
    "tpu.trace_stop"() : () -> ()
    %174 = vector.shape_cast %173 : vector<2x8x32xf32> to vector<16x32xf32>
    %175 = arith.truncf %174 : vector<16x32xf32> to vector<16x32xbf16>
    %c0_120 = arith.constant 0 : index
    %c2_121 = arith.constant 2 : index
    %c0_122 = arith.constant 0 : index
    %c0_123 = arith.constant 0 : index
    %176 = vector.load %arg10[%c0_120, %c2_121, %c0_122, %c0_123] : memref<1x4x32x128xbf16, #tpu.memory_space<vmem>>, vector<1x1x32x128xbf16>
    %177 = vector.shape_cast %176 : vector<1x1x32x128xbf16> to vector<32x128xbf16>
    %cst_124 = arith.constant dense<0.000000e+00> : vector<16x128xf32>
    %178 = tpu.matmul %175, %177, %cst_124 {dimension_numbers = #tpu.dot_dimension_numbers<[1], [0], [0], [1], [0, 0, 1, 1], [], []>} : vector<16x32xbf16>, vector<32x128xbf16>, vector<16x128xf32> -> vector<16x128xf32>
    %179 = arith.addf %131, %178 : vector<16x128xf32>
    %c0_125 = arith.constant 0 : index
    %c3 = arith.constant 3 : index
    %c0_126 = arith.constant 0 : index
    %c0_127 = arith.constant 0 : index
    %180 = vector.load %arg4[%c0_125, %c3, %c0_126, %c0_127] : memref<1x4x32x128xbf16, #tpu.memory_space<vmem>>, vector<1x1x32x128xbf16>
    %181 = vector.shape_cast %180 : vector<1x1x32x128xbf16> to vector<32x128xbf16>
    %cst_128 = arith.constant dense<0.000000e+00> : vector<16x32xf32>
    %182 = tpu.matmul %34, %181, %cst_128 {dimension_numbers = #tpu.dot_dimension_numbers<[1], [1], [0], [0], [0, 0, 1, 0], [], []>} : vector<16x128xbf16>, vector<32x128xbf16>, vector<16x32xf32> -> vector<16x32xf32>
    %c0_129 = arith.constant 0 : index
    %c3_130 = arith.constant 3 : index
    %c0_131 = arith.constant 0 : index
    %c0_132 = arith.constant 0 : index
    %183 = vector.load %arg7[%c0_129, %c3_130, %c0_131, %c0_132] : memref<1x4x1x32xf32, #tpu.memory_space<vmem>>, vector<1x1x1x32xf32>
    %184 = vector.shape_cast %183 : vector<1x1x1x32xf32> to vector<1x32xf32>
    %185 = vector.broadcast %184 : vector<1x32xf32> to vector<16x32xf32>
    %186 = arith.addf %182, %185 : vector<16x32xf32>
    %c0_133 = arith.constant 0 : index
    %c3_134 = arith.constant 3 : index
    %c0_135 = arith.constant 0 : index
    %c0_136 = arith.constant 0 : index
    %187 = vector.load %arg5[%c0_133, %c3_134, %c0_135, %c0_136] : memref<1x4x32x128xbf16, #tpu.memory_space<vmem>>, vector<1x1x32x128xbf16>
    %188 = vector.shape_cast %187 : vector<1x1x32x128xbf16> to vector<32x128xbf16>
    %cst_137 = arith.constant dense<0.000000e+00> : vector<16x32xf32>
    %189 = tpu.matmul %34, %188, %cst_137 {dimension_numbers = #tpu.dot_dimension_numbers<[1], [1], [0], [0], [0, 0, 1, 0], [], []>} : vector<16x128xbf16>, vector<32x128xbf16>, vector<16x32xf32> -> vector<16x32xf32>
    %c0_138 = arith.constant 0 : index
    %c3_139 = arith.constant 3 : index
    %c0_140 = arith.constant 0 : index
    %c0_141 = arith.constant 0 : index
    %190 = vector.load %arg8[%c0_138, %c3_139, %c0_140, %c0_141] : memref<1x4x1x32xf32, #tpu.memory_space<vmem>>, vector<1x1x1x32xf32>
    %191 = vector.shape_cast %190 : vector<1x1x1x32xf32> to vector<1x32xf32>
    %192 = vector.broadcast %191 : vector<1x32xf32> to vector<16x32xf32>
    %193 = arith.addf %189, %192 : vector<16x32xf32>
    %c0_142 = arith.constant 0 : index
    %c3_143 = arith.constant 3 : index
    %c0_144 = arith.constant 0 : index
    %c0_145 = arith.constant 0 : index
    %194 = vector.load %arg6[%c0_142, %c3_143, %c0_144, %c0_145] : memref<1x4x32x128xbf16, #tpu.memory_space<vmem>>, vector<1x1x32x128xbf16>
    %195 = vector.shape_cast %194 : vector<1x1x32x128xbf16> to vector<32x128xbf16>
    %cst_146 = arith.constant dense<0.000000e+00> : vector<16x32xf32>
    %196 = tpu.matmul %34, %195, %cst_146 {dimension_numbers = #tpu.dot_dimension_numbers<[1], [1], [0], [0], [0, 0, 1, 0], [], []>} : vector<16x128xbf16>, vector<32x128xbf16>, vector<16x32xf32> -> vector<16x32xf32>
    %c0_147 = arith.constant 0 : index
    %c3_148 = arith.constant 3 : index
    %c0_149 = arith.constant 0 : index
    %c0_150 = arith.constant 0 : index
    %197 = vector.load %arg9[%c0_147, %c3_148, %c0_149, %c0_150] : memref<1x4x1x32xf32, #tpu.memory_space<vmem>>, vector<1x1x1x32xf32>
    %198 = vector.shape_cast %197 : vector<1x1x1x32xf32> to vector<1x32xf32>
    %199 = vector.broadcast %198 : vector<1x32xf32> to vector<16x32xf32>
    %200 = arith.addf %196, %199 : vector<16x32xf32>
    %201 = vector.shape_cast %186 : vector<16x32xf32> to vector<2x8x32xf32>
    %202 = vector.shape_cast %193 : vector<16x32xf32> to vector<2x8x32xf32>
    %203 = vector.shape_cast %200 : vector<16x32xf32> to vector<2x8x32xf32>
    "tpu.trace_start"() <{level = 10 : i32, message = "bqd,bkd->bqk"}> : () -> ()
    %cst_151 = arith.constant dense<0.000000e+00> : vector<2x8x8xf32>
    %204 = tpu.matmul %201, %202, %cst_151 {dimension_numbers = #tpu.dot_dimension_numbers<[2], [2], [1], [1], [0, 0, 0, 1, 1, 1], [0], [0]>} : vector<2x8x32xf32>, vector<2x8x32xf32>, vector<2x8x8xf32> -> vector<2x8x8xf32>
    "tpu.trace_stop"() : () -> ()
    %cst_152 = arith.constant 0.176776692 : f32
    %205 = vector.broadcast %cst_152 : f32 to vector<2x8x8xf32>
    %206 = arith.mulf %204, %205 : vector<2x8x8xf32>
    %cst_153 = arith.constant -3.40282347E+38 : f32
    %207 = vector.shape_cast %7 : vector<1x8x8xi1> to vector<1x8x8xi1>
    %208 = vector.broadcast %207 : vector<1x8x8xi1> to vector<2x8x8xi1>
    %209 = vector.broadcast %cst_153 : f32 to vector<2x8x8xf32>
    %210 = arith.select %208, %206, %209 : vector<2x8x8xi1>, vector<2x8x8xf32>
    %cst_154 = arith.constant dense<0xFF800000> : vector<2x8xf32>
    %211 = vector.multi_reduction <maximumf>, %210, %cst_154 [2] : vector<2x8x8xf32> to vector<2x8xf32>
    %212 = vector.shape_cast %211 : vector<2x8xf32> to vector<2x8x1xf32>
    %213 = vector.broadcast %212 : vector<2x8x1xf32> to vector<2x8x8xf32>
    %214 = arith.subf %210, %213 : vector<2x8x8xf32>
    %215 = math.exp %214 : vector<2x8x8xf32>
    %cst_155 = arith.constant dense<0.000000e+00> : vector<2x8xf32>
    %216 = vector.multi_reduction <add>, %215, %cst_155 [2] : vector<2x8x8xf32> to vector<2x8xf32>
    %217 = vector.shape_cast %216 : vector<2x8xf32> to vector<2x8x1xf32>
    %218 = tpu.reciprocal %217 {approx = true} : vector<2x8x1xf32> -> vector<2x8x1xf32>
    %219 = vector.broadcast %218 : vector<2x8x1xf32> to vector<2x8x8xf32>
    %220 = arith.mulf %215, %219 : vector<2x8x8xf32>
    "tpu.trace_start"() <{level = 10 : i32, message = "bqk,bkd->bqd"}> : () -> ()
    %cst_156 = arith.constant dense<0.000000e+00> : vector<2x8x32xf32>
    %221 = tpu.matmul %220, %203, %cst_156 {dimension_numbers = #tpu.dot_dimension_numbers<[2], [1], [1], [2], [0, 0, 0, 1, 1, 2], [0], [0]>} : vector<2x8x8xf32>, vector<2x8x32xf32>, vector<2x8x32xf32> -> vector<2x8x32xf32>
    "tpu.trace_stop"() : () -> ()
    %222 = vector.shape_cast %221 : vector<2x8x32xf32> to vector<16x32xf32>
    %223 = arith.truncf %222 : vector<16x32xf32> to vector<16x32xbf16>
    %c0_157 = arith.constant 0 : index
    %c3_158 = arith.constant 3 : index
    %c0_159 = arith.constant 0 : index
    %c0_160 = arith.constant 0 : index
    %224 = vector.load %arg10[%c0_157, %c3_158, %c0_159, %c0_160] : memref<1x4x32x128xbf16, #tpu.memory_space<vmem>>, vector<1x1x32x128xbf16>
    %225 = vector.shape_cast %224 : vector<1x1x32x128xbf16> to vector<32x128xbf16>
    %cst_161 = arith.constant dense<0.000000e+00> : vector<16x128xf32>
    %226 = tpu.matmul %223, %225, %cst_161 {dimension_numbers = #tpu.dot_dimension_numbers<[1], [0], [0], [1], [0, 0, 1, 1], [], []>} : vector<16x32xbf16>, vector<32x128xbf16>, vector<16x128xf32> -> vector<16x128xf32>
    %227 = arith.addf %179, %226 : vector<16x128xf32>
    %228 = arith.addf %3, %227 : vector<16x128xf32>
    %c0_162 = arith.constant 0 : index
    %c0_163 = arith.constant 0 : index
    %c0_164 = arith.constant 0 : index
    %229 = vector.load %arg11[%c0_162, %c0_163, %c0_164] : memref<1x1x128xf32, #tpu.memory_space<vmem>>, vector<1x1x128xf32>
    %230 = vector.shape_cast %229 : vector<1x1x128xf32> to vector<1x128xf32>
    %231 = vector.broadcast %230 : vector<1x128xf32> to vector<16x128xf32>
    %232 = arith.addf %228, %231 : vector<16x128xf32>
    %c0_165 = arith.constant 0 : index
    %c0_166 = arith.constant 0 : index
    %c0_167 = arith.constant 0 : index
    %233 = vector.load %arg12[%c0_165, %c0_166, %c0_167] : memref<1x1x128xf32, #tpu.memory_space<vmem>>, vector<1x1x128xf32>
    %234 = vector.shape_cast %233 : vector<1x1x128xf32> to vector<1x128xf32>
    %c0_168 = arith.constant 0 : index
    %c0_169 = arith.constant 0 : index
    %c0_170 = arith.constant 0 : index
    %235 = vector.load %arg13[%c0_168, %c0_169, %c0_170] : memref<1x1x128xf32, #tpu.memory_space<vmem>>, vector<1x1x128xf32>
    %236 = vector.shape_cast %235 : vector<1x1x128xf32> to vector<1x128xf32>
    %cst_171 = arith.constant dense<0.000000e+00> : vector<16xf32>
    %237 = vector.multi_reduction <add>, %232, %cst_171 [1] : vector<16x128xf32> to vector<16xf32>
    %238 = vector.shape_cast %237 : vector<16xf32> to vector<16x1xf32>
    %cst_172 = arith.constant 1.280000e+02 : f32
    %239 = vector.broadcast %cst_172 : f32 to vector<16x1xf32>
    %240 = arith.divf %238, %239 : vector<16x1xf32>
    %241 = vector.broadcast %240 : vector<16x1xf32> to vector<16x128xf32>
    %242 = arith.subf %232, %241 : vector<16x128xf32>
    %243 = arith.mulf %242, %242 : vector<16x128xf32>
    %cst_173 = arith.constant dense<0.000000e+00> : vector<16xf32>
    %244 = vector.multi_reduction <add>, %243, %cst_173 [1] : vector<16x128xf32> to vector<16xf32>
    %245 = vector.shape_cast %244 : vector<16xf32> to vector<16x1xf32>
    %cst_174 = arith.constant 1.280000e+02 : f32
    %246 = vector.broadcast %cst_174 : f32 to vector<16x1xf32>
    %247 = arith.divf %245, %246 : vector<16x1xf32>
    %248 = vector.broadcast %240 : vector<16x1xf32> to vector<16x128xf32>
    %249 = arith.subf %232, %248 : vector<16x128xf32>
    %cst_175 = arith.constant 9.99999974E-6 : f32
    %250 = vector.broadcast %cst_175 : f32 to vector<16x1xf32>
    %251 = arith.addf %247, %250 : vector<16x1xf32>
    %252 = math.rsqrt %251 : vector<16x1xf32>
    %253 = vector.broadcast %252 : vector<16x1xf32> to vector<16x128xf32>
    %254 = arith.mulf %249, %253 : vector<16x128xf32>
    %255 = vector.broadcast %234 : vector<1x128xf32> to vector<16x128xf32>
    %256 = arith.mulf %254, %255 : vector<16x128xf32>
    %257 = vector.broadcast %236 : vector<1x128xf32> to vector<16x128xf32>
    %258 = arith.addf %256, %257 : vector<16x128xf32>
    %259 = arith.truncf %258 : vector<16x128xf32> to vector<16x128xbf16>
    %c0_176 = arith.constant 0 : index
    %c0_177 = arith.constant 0 : index
    %c0_178 = arith.constant 0 : index
    %260 = vector.load %arg14[%c0_176, %c0_177, %c0_178] : memref<1x128x512xbf16, #tpu.memory_space<vmem>>, vector<1x128x512xbf16>
    %261 = vector.shape_cast %260 : vector<1x128x512xbf16> to vector<128x512xbf16>
    %cst_179 = arith.constant dense<0.000000e+00> : vector<16x512xf32>
    %262 = tpu.matmul %259, %261, %cst_179 {dimension_numbers = #tpu.dot_dimension_numbers<[1], [0], [0], [1], [0, 0, 1, 1], [], []>} : vector<16x128xbf16>, vector<128x512xbf16>, vector<16x512xf32> -> vector<16x512xf32>
    %c0_180 = arith.constant 0 : index
    %c0_181 = arith.constant 0 : index
    %c0_182 = arith.constant 0 : index
    %263 = vector.load %arg15[%c0_180, %c0_181, %c0_182] : memref<1x1x512xf32, #tpu.memory_space<vmem>>, vector<1x1x512xf32>
    %264 = vector.shape_cast %263 : vector<1x1x512xf32> to vector<1x512xf32>
    %265 = vector.broadcast %264 : vector<1x512xf32> to vector<16x512xf32>
    %266 = arith.addf %262, %265 : vector<16x512xf32>
    %cst_183 = arith.constant 5.000000e-01 : f32
    %267 = vector.broadcast %cst_183 : f32 to vector<16x512xf32>
    %268 = arith.mulf %267, %266 : vector<16x512xf32>
    %cst_184 = arith.constant 4.471500e-02 : f32
    %269 = vector.broadcast %cst_184 : f32 to vector<16x512xf32>
    %270 = arith.mulf %269, %266 : vector<16x512xf32>
    %271 = arith.mulf %270, %266 : vector<16x512xf32>
    %272 = arith.mulf %271, %266 : vector<16x512xf32>
    %273 = arith.addf %266, %272 : vector<16x512xf32>
    %cst_185 = arith.constant 0.797884583 : f32
    %274 = vector.broadcast %cst_185 : f32 to vector<16x512xf32>
    %275 = arith.mulf %274, %273 : vector<16x512xf32>
    %276 = math.tanh %275 : vector<16x512xf32>
    %cst_186 = arith.constant 1.000000e+00 : f32
    %277 = vector.broadcast %cst_186 : f32 to vector<16x512xf32>
    %278 = arith.addf %277, %276 : vector<16x512xf32>
    %279 = arith.mulf %268, %278 : vector<16x512xf32>
    %280 = arith.truncf %279 : vector<16x512xf32> to vector<16x512xbf16>
    %c0_187 = arith.constant 0 : index
    %c0_188 = arith.constant 0 : index
    %c0_189 = arith.constant 0 : index
    %281 = vector.load %arg16[%c0_187, %c0_188, %c0_189] : memref<1x512x128xbf16, #tpu.memory_space<vmem>>, vector<1x512x128xbf16>
    %282 = vector.shape_cast %281 : vector<1x512x128xbf16> to vector<512x128xbf16>
    %cst_190 = arith.constant dense<0.000000e+00> : vector<16x128xf32>
    %283 = tpu.matmul %280, %282, %cst_190 {dimension_numbers = #tpu.dot_dimension_numbers<[1], [0], [0], [1], [0, 0, 1, 1], [], []>} : vector<16x512xbf16>, vector<512x128xbf16>, vector<16x128xf32> -> vector<16x128xf32>
    %284 = arith.addf %232, %283 : vector<16x128xf32>
    %c0_191 = arith.constant 0 : index
    %c0_192 = arith.constant 0 : index
    %c0_193 = arith.constant 0 : index
    %285 = vector.load %arg17[%c0_191, %c0_192, %c0_193] : memref<1x1x128xf32, #tpu.memory_space<vmem>>, vector<1x1x128xf32>
    %286 = vector.shape_cast %285 : vector<1x1x128xf32> to vector<1x128xf32>
    %287 = vector.broadcast %286 : vector<1x128xf32> to vector<16x128xf32>
    %288 = arith.addf %284, %287 : vector<16x128xf32>
    %c0_194 = arith.constant 0 : index
    %c0_195 = arith.constant 0 : index
    %289 = vector.load %arg21[%c0_194, %c0_195] : memref<16x128xf32, #tpu.memory_space<vmem>>, vector<16x128xf32>
    tpu.vector_store %arg21[%c0_194, %c0_195], %288 {strides = array<i32>} : memref<16x128xf32, #tpu.memory_space<vmem>>, vector<16x128xf32>,
    %c3_i32 = arith.constant 3 : i32
    %290 = arith.cmpi eq, %arg0, %c3_i32 : i32
    %291 = arith.extui %290 : i1 to i32
    %c0_i32_196 = arith.constant 0 : i32
    %292 = arith.cmpi ne, %291, %c0_i32_196 : i32
    scf.if %292 {
      %c0_197 = arith.constant 0 : index
      %c0_198 = arith.constant 0 : index
      %293 = vector.load %arg18[%c0_197, %c0_198] : memref<1x128xf32, #tpu.memory_space<vmem>>, vector<1x128xf32>
      %c0_199 = arith.constant 0 : index
      %c0_200 = arith.constant 0 : index
      %294 = vector.load %arg19[%c0_199, %c0_200] : memref<1x128xf32, #tpu.memory_space<vmem>>, vector<1x128xf32>
      %cst_201 = arith.constant dense<0.000000e+00> : vector<16xf32>
      %295 = vector.multi_reduction <add>, %288, %cst_201 [1] : vector<16x128xf32> to vector<16xf32>
      %296 = vector.shape_cast %295 : vector<16xf32> to vector<16x1xf32>
      %cst_202 = arith.constant 1.280000e+02 : f32
      %297 = vector.broadcast %cst_202 : f32 to vector<16x1xf32>
      %298 = arith.divf %296, %297 : vector<16x1xf32>
      %299 = vector.broadcast %298 : vector<16x1xf32> to vector<16x128xf32>
      %300 = arith.subf %288, %299 : vector<16x128xf32>
      %301 = arith.mulf %300, %300 : vector<16x128xf32>
      %cst_203 = arith.constant dense<0.000000e+00> : vector<16xf32>
      %302 = vector.multi_reduction <add>, %301, %cst_203 [1] : vector<16x128xf32> to vector<16xf32>
      %303 = vector.shape_cast %302 : vector<16xf32> to vector<16x1xf32>
      %cst_204 = arith.constant 1.280000e+02 : f32
      %304 = vector.broadcast %cst_204 : f32 to vector<16x1xf32>
      %305 = arith.divf %303, %304 : vector<16x1xf32>
      %306 = vector.broadcast %298 : vector<16x1xf32> to vector<16x128xf32>
      %307 = arith.subf %288, %306 : vector<16x128xf32>
      %cst_205 = arith.constant 9.99999974E-6 : f32
      %308 = vector.broadcast %cst_205 : f32 to vector<16x1xf32>
      %309 = arith.addf %305, %308 : vector<16x1xf32>
      %310 = math.rsqrt %309 : vector<16x1xf32>
      %311 = vector.broadcast %310 : vector<16x1xf32> to vector<16x128xf32>
      %312 = arith.mulf %307, %311 : vector<16x128xf32>
      %313 = vector.broadcast %293 : vector<1x128xf32> to vector<16x128xf32>
      %314 = arith.mulf %312, %313 : vector<16x128xf32>
      %315 = vector.broadcast %294 : vector<1x128xf32> to vector<16x128xf32>
      %316 = arith.addf %314, %315 : vector<16x128xf32>
      %317 = arith.truncf %316 : vector<16x128xf32> to vector<16x128xbf16>
      %c0_206 = arith.constant 0 : index
      %c0_207 = arith.constant 0 : index
      %318 = vector.load %arg20[%c0_206, %c0_207] : memref<16x128xbf16, #tpu.memory_space<vmem>>, vector<16x128xbf16>
      tpu.vector_store %arg20[%c0_206, %c0_207], %317 {strides = array<i32>} : memref<16x128xbf16, #tpu.memory_space<vmem>>, vector<16x128xbf16>,
    } else {
    }
    return
  }
  func.func @transform_0(%arg0: i32) -> (i32, i32) {
    %c0_i32 = arith.constant 0 : i32
    %c0_i32_0 = arith.constant 0 : i32
    %c0_i32_1 = arith.constant 0 : i32
    return %c0_i32, %c0_i32_0 : i32, i32
  }
  func.func @transform_1(%arg0: i32) -> (i32, i32, i32) {
    %c0_i32 = arith.constant 0 : i32
    %c0_i32_0 = arith.constant 0 : i32
    %c0_i32_1 = arith.constant 0 : i32
    return %arg0, %c0_i32, %c0_i32_0 : i32, i32, i32
  }
  func.func @transform_2(%arg0: i32) -> (i32, i32, i32) {
    %c0_i32 = arith.constant 0 : i32
    %c0_i32_0 = arith.constant 0 : i32
    %c0_i32_1 = arith.constant 0 : i32
    return %arg0, %c0_i32, %c0_i32_0 : i32, i32, i32
  }
  func.func @transform_3(%arg0: i32) -> (i32, i32, i32, i32) {
    %c0_i32 = arith.constant 0 : i32
    %c0_i32_0 = arith.constant 0 : i32
    %c0_i32_1 = arith.constant 0 : i32
    %c0_i32_2 = arith.constant 0 : i32
    return %arg0, %c0_i32, %c0_i32_0, %c0_i32_1 : i32, i32, i32, i32
  }
  func.func @transform_4(%arg0: i32) -> (i32, i32, i32, i32) {
    %c0_i32 = arith.constant 0 : i32
    %c0_i32_0 = arith.constant 0 : i32
    %c0_i32_1 = arith.constant 0 : i32
    %c0_i32_2 = arith.constant 0 : i32
    return %arg0, %c0_i32, %c0_i32_0, %c0_i32_1 : i32, i32, i32, i32
  }
  func.func @transform_5(%arg0: i32) -> (i32, i32, i32, i32) {
    %c0_i32 = arith.constant 0 : i32
    %c0_i32_0 = arith.constant 0 : i32
    %c0_i32_1 = arith.constant 0 : i32
    %c0_i32_2 = arith.constant 0 : i32
    return %arg0, %c0_i32, %c0_i32_0, %c0_i32_1 : i32, i32, i32, i32
  }
  func.func @transform_6(%arg0: i32) -> (i32, i32, i32, i32) {
    %c0_i32 = arith.constant 0 : i32
    %c0_i32_0 = arith.constant 0 : i32
    %c0_i32_1 = arith.constant 0 : i32
    %c0_i32_2 = arith.constant 0 : i32
    return %arg0, %c0_i32, %c0_i32_0, %c0_i32_1 : i32, i32, i32, i32
  }
  func.func @transform_7(%arg0: i32) -> (i32, i32, i32, i32) {
    %c0_i32 = arith.constant 0 : i32
    %c0_i32_0 = arith.constant 0 : i32
    %c0_i32_1 = arith.constant 0 : i32
    %c0_i32_2 = arith.constant 0 : i32
    return %arg0, %c0_i32, %c0_i32_0, %c0_i32_1 : i32, i32, i32, i32
  }
  func.func @transform_8(%arg0: i32) -> (i32, i32, i32, i32) {
    %c0_i32 = arith.constant 0 : i32
    %c0_i32_0 = arith.constant 0 : i32
    %c0_i32_1 = arith.constant 0 : i32
    %c0_i32_2 = arith.constant 0 : i32
    return %arg0, %c0_i32, %c0_i32_0, %c0_i32_1 : i32, i32, i32, i32
  }
  func.func @transform_9(%arg0: i32) -> (i32, i32, i32, i32) {
    %c0_i32 = arith.constant 0 : i32
    %c0_i32_0 = arith.constant 0 : i32
    %c0_i32_1 = arith.constant 0 : i32
    %c0_i32_2 = arith.constant 0 : i32
    return %arg0, %c0_i32, %c0_i32_0, %c0_i32_1 : i32, i32, i32, i32
  }
  func.func @transform_10(%arg0: i32) -> (i32, i32, i32) {
    %c0_i32 = arith.constant 0 : i32
    %c0_i32_0 = arith.constant 0 : i32
    %c0_i32_1 = arith.constant 0 : i32
    return %arg0, %c0_i32, %c0_i32_0 : i32, i32, i32
  }
  func.func @transform_11(%arg0: i32) -> (i32, i32, i32) {
    %c0_i32 = arith.constant 0 : i32
    %c0_i32_0 = arith.constant 0 : i32
    %c0_i32_1 = arith.constant 0 : i32
    return %arg0, %c0_i32, %c0_i32_0 : i32, i32, i32
  }
  func.func @transform_12(%arg0: i32) -> (i32, i32, i32) {
    %c0_i32 = arith.constant 0 : i32
    %c0_i32_0 = arith.constant 0 : i32
    %c0_i32_1 = arith.constant 0 : i32
    return %arg0, %c0_i32, %c0_i32_0 : i32, i32, i32
  }
  func.func @transform_13(%arg0: i32) -> (i32, i32, i32) {
    %c0_i32 = arith.constant 0 : i32
    %c0_i32_0 = arith.constant 0 : i32
    %c0_i32_1 = arith.constant 0 : i32
    return %arg0, %c0_i32, %c0_i32_0 : i32, i32, i32
  }
  func.func @transform_14(%arg0: i32) -> (i32, i32, i32) {
    %c0_i32 = arith.constant 0 : i32
    %c0_i32_0 = arith.constant 0 : i32
    %c0_i32_1 = arith.constant 0 : i32
    return %arg0, %c0_i32, %c0_i32_0 : i32, i32, i32
  }
  func.func @transform_15(%arg0: i32) -> (i32, i32, i32) {
    %c0_i32 = arith.constant 0 : i32
    %c0_i32_0 = arith.constant 0 : i32
    %c0_i32_1 = arith.constant 0 : i32
    return %arg0, %c0_i32, %c0_i32_0 : i32, i32, i32
  }
  func.func @transform_16(%arg0: i32) -> (i32, i32, i32) {
    %c0_i32 = arith.constant 0 : i32
    %c0_i32_0 = arith.constant 0 : i32
    %c0_i32_1 = arith.constant 0 : i32
    return %arg0, %c0_i32, %c0_i32_0 : i32, i32, i32
  }
  func.func @transform_17(%arg0: i32) -> (i32, i32) {
    %c0_i32 = arith.constant 0 : i32
    %c0_i32_0 = arith.constant 0 : i32
    %c0_i32_1 = arith.constant 0 : i32
    return %c0_i32, %c0_i32_0 : i32, i32
  }
  func.func @transform_18(%arg0: i32) -> (i32, i32) {
    %c0_i32 = arith.constant 0 : i32
    %c0_i32_0 = arith.constant 0 : i32
    %c0_i32_1 = arith.constant 0 : i32
    return %c0_i32, %c0_i32_0 : i32, i32
  }
  func.func @transform_19(%arg0: i32) -> (i32, i32) {
    %c0_i32 = arith.constant 0 : i32
    %c0_i32_0 = arith.constant 0 : i32
    %c0_i32_1 = arith.constant 0 : i32
    return %c0_i32, %c0_i32_0 : i32, i32
  }
}

</mosaic_0001>

<bundles_post_ra>
// kernel: child_transformer_forward.2
= control target key start
LH: loop header
LB: loop body
LE: loop exit
PB: predicated region body
PF: predicated region fallthrough
CT: control target
= control target key end

     0   :  { %s7523_s0 = inlined_call_operand.vmem [shape: f32[16,128], index: 0, kind: input, shape index: {}]   ;;  %s7524_s1 = inlined_call_operand.hbm [shape: f32[4,1,128], index: 1, kind: input, shape index: {}]   ;;  %s7525_s2 = inlined_call_operand.hbm [shape: f32[4,1,128], index: 2, kind: input, shape index: {}]   ;;  %s7526_s3 = inlined_call_operand.hbm [shape: bf16[4,4,32,128], index: 3, kind: input, shape index: {}]   ;;  %s7527_s4 = inlined_call_operand.hbm [shape: bf16[4,4,32,128], index: 4, kind: input, shape index: {}]   ;;  %s7528_s5 = inlined_call_operand.hbm [shape: bf16[4,4,32,128], index: 5, kind: input, shape index: {}]   ;;  %s7529_s6 = inlined_call_operand.hbm [shape: f32[4,4,1,32], index: 6, kind: input, shape index: {}]   ;;  %s7530_s7 = inlined_call_operand.hbm [shape: f32[4,4,1,32], index: 7, kind: input, shape index: {}]   ;;  %s7531_s8 = inlined_call_operand.hbm [shape: f32[4,4,1,32], index: 8, kind: input, shape index: {}]   ;;  %s7532_s9 = inlined_call_operand.hbm [shape: bf16[4,4,32,128], index: 9, kind: input, shape index: {}]   ;;  %s7533_s10 = inlined_call_operand.hbm [shape: f32[4,1,128], index: 10, kind: input, shape index: {}]   ;;  %s7534_s11 = inlined_call_operand.hbm [shape: f32[4,1,128], index: 11, kind: input, shape index: {}]   ;;  %s7535_s12 = inlined_call_operand.hbm [shape: f32[4,1,128], index: 12, kind: input, shape index: {}]   ;;  %s7536_s13 = inlined_call_operand.hbm [shape: bf16[4,128,512], index: 13, kind: input, shape index: {}]   ;;  %s7537_s14 = inlined_call_operand.hbm [shape: f32[4,1,512], index: 14, kind: input, shape index: {}]   ;;  %s7538_s15 = inlined_call_operand.hbm [shape: bf16[4,512,128], index: 15, kind: input, shape index: {}]   ;;  %s7539_s16 = inlined_call_operand.hbm [shape: f32[4,1,128], index: 16, kind: input, shape index: {}]   ;;  %s7540_s17 = inlined_call_operand.hbm [shape: f32[1,128], index: 17, kind: input, shape index: {}]   ;;  %s7541_s18 = inlined_call_operand.hbm [shape: f32[1,128], index: 18, kind: input, shape index: {}]   ;;  %s7542_s19 = inlined_call_operand.vmem [shape: bf16[16,128], index: 19, kind: output, shape index: {}]  }
   0x1   :  { %7577 = sst [smem:[#allocation49_spill]] %s7523_s0 }
   0x2   :  { %7578 = sst [smem:[#allocation50_spill]] %s7524_s1 }
   0x3   :  { %7579 = sst [smem:[#allocation51_spill]] %s7525_s2 }
   0x4   :  { %7580 = sst [smem:[#allocation52_spill]] %s7526_s3 }
   0x5   :  { %7581 = sst [smem:[#allocation53_spill]] %s7527_s4 }
   0x6   :  { %7582 = sst [smem:[#allocation54_spill]] %s7529_s6 }
   0x7   :  { %7583 = sst [smem:[#allocation55_spill]] %s7531_s8 }
   0x8   :  { %7584 = sst [smem:[#allocation56_spill]] %s7539_s16 }
   0x9   :  { %7585 = sst [smem:[#allocation57_spill]] %s7540_s17 }
   0xa   :  { %7586 = sst [smem:[#allocation58_spill]] %s7541_s18 }
   0xb   :  { %7587 = sst [smem:[#allocation59_spill]] %s7542_s19 }
   0xc   :  { %24 = vsyncpa [#allocation4], 0 }
   0xd   :  { %26 = vsyncpa [#allocation4 + $0x1], 0 }
   0xe   :  { %27 = vsyncpa [#allocation6], 0 }
   0xf   :  { %29 = vsyncpa [#allocation6 + $0x1], 0 }
  0x10   :  { %30 = vsyncpa [#allocation9], 0 }
  0x11   :  { %32 = vsyncpa [#allocation9 + $0x1], 0 }
  0x12   :  { %33 = vsyncpa [#allocation12], 0 }
  0x13   :  { %35 = vsyncpa [#allocation12 + $0x1], 0 }
  0x14   :  { %36 = vsyncpa [#allocation15], 0 }
  0x15   :  { %38 = vsyncpa [#allocation15 + $0x1], 0 }
  0x16   :  { %39 = vsyncpa [#allocation18], 0 }
  0x17   :  { %41 = vsyncpa [#allocation18 + $0x1], 0 }
  0x18   :  { %42 = vsyncpa [#allocation21], 0 }
  0x19   :  { %44 = vsyncpa [#allocation21 + $0x1], 0 }
  0x1a   :  { %45 = vsyncpa [#allocation24], 0 }
  0x1b   :  { %47 = vsyncpa [#allocation24 + $0x1], 0 }
  0x1c   :  { %48 = vsyncpa [#allocation27], 0 }
  0x1d   :  { %50 = vsyncpa [#allocation27 + $0x1], 0 }
  0x1e   :  { %51 = vsyncpa [#allocation30], 0  ;;  %s6349_s0 = smov 0   ;;  %s6351_s30 = smov 0  }
  0x1f   :  { %s6353_s20 = smov 0   ;;  %s6355_s21 = smov 0  }
  0x20 LB: > { %7588 = sst [smem:[#allocation42_spill]] %s6213_s30  ;;  %s6368_s1 = sadd.s32 4294967295, %s6221_s21   ;;  %s6221_s21 = sphi %s6355_s21, %s7641_s21   ;;  %s6217_s20 = sphi %s6353_s20, %s7644_s20   ;;  %s6213_s30 = sphi %s6351_s30, %s7643_s30   ;;  %s6209_s0 = sphi %s6349_s0, %s7642_s0  }
  0x21   : > { %7589 = sst [smem:[#allocation43_spill]] %s6217_s20  ;;  %s6371_s22 = sadd.s32 1, %s6221_s21  }
  0x22   : > { %7590 = sst [smem:[#allocation44_spill]] %s6368_s1  ;;  %s82_s2 = ssub.s32 %s6221_s21, %s6371_s22 }
  0x23   : > { %7591 = sst [smem:[#allocation45_spill]] %s6371_s22  ;;  %s85_s23 = sadd.s32 1, %s6217_s20 }
  0x24   : > { %p83_p0 = scmp.eq.s32.totalorder %s82_s2, 0  ;;  %p92_p1 = scmp.ne.s32.totalorder %s6217_s20, %s6213_s30 }
  0x25   : > { %p93_p2 = scmp.eq.s32.totalorder %s6221_s21, 0  ;;  %p98_p3 = scmp.ne.s32.totalorder %s6213_s30, %s6209_s0 }
  0x26   : > { %s6381_s24 = scalar_select %p83_p0, %s6217_s20, %s85_s23  }
  0x27   : > { %p6383_p4 = por %p93_p2, %p92_p1  ;;  %p7553_p5 = scmp.eq.s32.totalorder %s6368_s1, 0 }
  0x28   : > { %7592 = sst [smem:[#allocation46_spill]] %s6381_s24  ;;  %p4767_p6 = scmp.ge.s32.totalorder %s6221_s21, 1 }
  0x29   : > { %s7593_s25 = scalar_select %p6383_p4, 1, 0 }
  0x2a   : > { %p562_p7 = scmp.lt.s32.totalorder %s6221_s21, 5  ;;  %p6392_p8 = por %p7553_p5, %p98_p3 }
  0x2b   : > { %s6223_s27 = smov [#allocation28]   ;;  %s6224_s29 = smov [#allocation29]  }
  0x2c   : > { %s7594_s3 = scalar_select %p6392_p8, 1, 0 }
  0x2d   : > { %p6397_p10 = pnand %p4767_p6, %p562_p7  ;;  %s578_s28 = sshll.u32 %s6223_s27, 4  ;;  %s579_s28 = int_to_ptr.vmem [resolvable:$true] %s578_s28 }
  0x2e   : > { %7595 = sst [smem:[#allocation47_spill]] %s7594_s3  ;;  %s589_s0 = sshll.u32 %s6224_s29, 4  ;;  %s6409_s0 = int_to_ptr.vmem [resolvable:$true] %s589_s0 }
  0x2f   : > { %s7596_s26 = scalar_select %p6397_p10, 1, 0 }
  0x30   : > { %p5416_p11 = pneg %p6397_p10  ;;  %s7599_s17 = sld [smem:[#allocation57_spill]] }
  0x31   : > { %7597 = sst [smem:[#allocation48_spill]] %s7596_s26 }
  0x32   : > { %p6405_p12 = pnand %p5416_p11, %p7553_p5 }
  0x34   : > { %p5645_p0 = pneg %p6405_p12 }
  0x36   : > { %s5643_s22 = scalar_lea.hbm %s7599_s17, 16 }
  0x37   : > { %p5644_p13 = scmp.ne.s32.totalorder %s7599_s17, %s5643_s22  ;;  %p5650_p3 = scmp.lt.u32.totalorder %s5643_s22, %s7599_s17 }
  0x39   : > { %p5646_p1 = pnand %p5645_p0, %p5644_p13 }
  0x3b   : > { %p5647_p2 = pneg %p5646_p1 }
  0x3d   : > { %p5652_p6 = pnand %p5650_p3, %p5647_p2 }
  0x3f   : > { %5655 = shalt.err (!%p5652_p6)
}
  0x40   : > { %s5656_s3 = scalar_lea.vmem %s579_s28, 16  ;;  %s5663_s19 = scalar_lea.vmem %s579_s28, 32 }
  0x41   : > { %p5657_p7 = scmp.ne.s32.totalorder %s579_s28, %s5656_s3  ;;  %p5664_p5 = scmp.lt.s32.totalorder %s579_s28, %s579_s28 }
  0x42   : > { %p5665_p8 = scmp.lt.s32.totalorder %s5663_s19, %s5656_s3 }
  0x43   : > { %p5659_p11 = pnand %p5657_p7, %p5645_p0 }
  0x44   : > { %p5666_p10 = por %p5665_p8, %p5664_p5 }
  0x45   : > { %p5660_p9 = pneg %p5659_p11 }
  0x47   : > { %p5667_p4 = pnand %p5666_p10, %p5660_p9 }
  0x49   : > { %5670 = shalt.err (!%p5667_p4)
}
  0x4a   : > { %5419 = dma.hbm_to_vmem [thread:$0]  (!%p6405_p12), %s7599_s17, 16, %s579_s28, [#allocation27]  }
  0x4b   : > { %s7600_s18 = sld [smem:[#allocation58_spill]] }
  0x51   : > { %s5671_s27 = scalar_lea.hbm %s7600_s18, 16 }
  0x52   : > { %p5672_p13 = scmp.ne.s32.totalorder %s7600_s18, %s5671_s27  ;;  %p5678_p4 = scmp.lt.u32.totalorder %s5671_s27, %s7600_s18 }
  0x54   : > { %p5674_p5 = pnand %p5672_p13, %p5645_p0 }
  0x56   : > { %p5675_p8 = pneg %p5674_p5 }
  0x58   : > { %p5680_p9 = pnand %p5678_p4, %p5675_p8 }
  0x5a   : > { %5683 = shalt.err (!%p5680_p9)
}
  0x5b   : > { %s5684_s28 = scalar_lea.vmem %s6409_s0, 16  ;;  %s5691_s30 = scalar_lea.vmem %s6409_s0, 32 }
  0x5c   : > { %p5685_p10 = scmp.ne.s32.totalorder %s6409_s0, %s5684_s28  ;;  %p5692_p3 = scmp.lt.s32.totalorder %s6409_s0, %s6409_s0 }
  0x5d   : > { %p5693_p6 = scmp.lt.s32.totalorder %s5691_s30, %s5684_s28 }
  0x5e   : > { %p5687_p1 = pnand %p5685_p10, %p5645_p0 }
  0x5f   : > { %p5694_p7 = por %p5693_p6, %p5692_p3 }
  0x60   : > { %p5688_p2 = pneg %p5687_p1 }
  0x62   : > { %p5695_p11 = pnand %p5694_p7, %p5688_p2 }
  0x64   : > { %5698 = shalt.err (!%p5695_p11)
}
  0x65   : > { %5422 = dma.hbm_to_vmem [thread:$0]  (!%p6405_p12), %s7600_s18, 16, %s6409_s0, [#allocation30]  }
  0x66   : > { %p4770_p13 = scmp.ge.s32.totalorder %s6221_s21, 4 }
  0x67   : > { %s6461_s22 = sand.u32 (!%p4770_p13), 1, %s6217_s20   ;;  %s6464_s23 = sshll.u32 (!%p4770_p13), %s6221_s21, 4 }
  0x68   : > { %596 = sbr.rel (%p4770_p13) target bundleno = 522 (0x20a), region = 28  ;;  %s6467_s2 = sand.u32 (!%p4770_p13), 1, %s6221_s21  }
  0x69   : > { %s7601_s0 = sld [smem:[#allocation51_spill]] (!%p4770_p13)  ;;  %s620_s28 = scalar_lea.vmem (!%p4770_p13), [#allocation5], %s6461_s22 }
  0x6a   : > { %s627_s30 = sshll.u32 (!%p4770_p13), %s620_s28, 4  ;;  %s6477_s24 = sshll.u32 (!%p4770_p13), %s6461_s22, 6  ;;  %s6479_s30 = int_to_ptr.vmem [resolvable:$true] %s627_s30 }
  0x6b   : > { %s6482_s1 = sshll.u32 (!%p4770_p13), %s6221_s21, 10  ;;  %s7560_s17 = scalar_lea.sflag (!%p4770_p13), [#allocation6], %s6467_s2 }
  0x6c   : > { %p7603_p0 = scmp.ne.s32.totalorder (!%p4770_p13), %s7593_s25, 0 }
  0x6f   : > { %s7602_s3 = smov %s7601_s0  ;;  %s6473_s19 = scalar_lea.hbm %s7601_s0, %s6464_s23 }
  0x70   : > { %s5699_s18 = scalar_lea.hbm %s6473_s19, 16  ;;  %s5703_s0 = scalar_lea.hbm %s7602_s3, 64 }
  0x71   : > { %p5700_p12 = scmp.ne.s32.totalorder %s6473_s19, %s5699_s18  ;;  %p5704_p4 = scmp.lt.u32.totalorder %s6473_s19, %s7602_s3 }
  0x72   : > { %p5705_p9 = scmp.lt.u32.totalorder %s5703_s0, %s5699_s18  ;;  %p5707_p1 = scmp.lt.u32.totalorder %s5699_s18, %s6473_s19 }
  0x73   : > { %p5701_p5 = pnand %p5700_p12, %p7603_p0 }
  0x74   : > { %p5706_p10 = por %p5705_p9, %p5704_p4 }
  0x75   : > { %p5702_p8 = pneg %p5701_p5 }
  0x76   : > { %p5708_p2 = por %p5707_p1, %p5706_p10 }
  0x78   : > { %p5709_p3 = pnand %p5708_p2, %p5702_p8 }
  0x7a   : > { %5712 = shalt.err (!%p5709_p3)
}
  0x7b   : > { %s5713_s28 = scalar_lea.vmem %s6479_s30, 16  ;;  %s6225_s27 = smov [#allocation5]  }
  0x7c   : > { %p5714_p6 = scmp.ne.s32.totalorder %s6479_s30, %s5713_s28  ;;  %s5717_s29 = sshll.u32 %s6225_s27, 4  ;;  %s5718_s29 = int_to_ptr.vmem [resolvable:$false] %s5717_s29 }
  0x7d   : > { %s5719_s20 = scalar_lea.vmem %s5718_s29, 32  ;;  %p5720_p13 = scmp.lt.s32.totalorder %s6479_s30, %s5718_s29 }
  0x7e   : > { %p5715_p7 = pnand %p5714_p6, %p7603_p0  ;;  %p5721_p12 = scmp.lt.s32.totalorder %s5719_s20, %s5713_s28 }
  0x80   : > { %p5716_p11 = pneg %p5715_p7  ;;  %p5722_p5 = por %p5721_p12, %p5720_p13 }
  0x82   : > { %p5723_p4 = pnand %p5722_p5, %p5716_p11 }
  0x84   : > { %5726 = shalt.err (!%p5723_p4)
}
  0x85   : > { %5381 = dma.hbm_to_vmem [thread:$0]  (%p7603_p0), %s6473_s19, 16, %s6479_s30, %s7560_s17  }
  0x86   : > { %s7604_s4 = sld [smem:[#allocation53_spill]]  ;;  %s659_s28 = scalar_lea.vmem [#allocation8], %s6477_s24 }
  0x87   : > { %s666_s27 = sshll.u32 %s659_s28, 4  ;;  %s7562_s29 = scalar_lea.sflag [#allocation9], %s6467_s2  ;;  %s6515_s27 = int_to_ptr.vmem [resolvable:$true] %s666_s27 }
  0x8c   : > { %s6512_s0 = scalar_lea.hbm %s7604_s4, %s6482_s1  ;;  %s5731_s18 = scalar_lea.hbm %s7604_s4, 4096 }
  0x8d   : > { %s5727_s20 = scalar_lea.hbm %s6512_s0, 1024  ;;  %p5732_p1 = scmp.lt.u32.totalorder %s6512_s0, %s7604_s4 }
  0x8e   : > { %p5728_p8 = scmp.ne.s32.totalorder %s6512_s0, %s5727_s20  ;;  %p5733_p2 = scmp.lt.u32.totalorder %s5731_s18, %s5727_s20 }
  0x8f   : > { %p5735_p6 = scmp.lt.u32.totalorder %s5727_s20, %s6512_s0 }
  0x90   : > { %p5729_p9 = pnand %p5728_p8, %p7603_p0  ;;  %p5734_p3 = por %p5733_p2, %p5732_p1 }
  0x92   : > { %p5730_p10 = pneg %p5729_p9  ;;  %p5736_p7 = por %p5735_p6, %p5734_p3 }
  0x94   : > { %p5737_p11 = pnand %p5736_p7, %p5730_p10 }
  0x96   : > { %5740 = shalt.err (!%p5737_p11)
}
  0x97   : > { %s5741_s28 = scalar_lea.vmem %s6515_s27, 1024  ;;  %s6226_s19 = smov [#allocation8]  }
  0x98   : > { %p5742_p13 = scmp.ne.s32.totalorder %s6515_s27, %s5741_s28  ;;  %s5745_s30 = sshll.u32 %s6226_s19, 4  ;;  %s5746_s30 = int_to_ptr.vmem [resolvable:$false] %s5745_s30 }
  0x99   : > { %s5747_s17 = scalar_lea.vmem %s5746_s30, 2048  ;;  %p5748_p4 = scmp.lt.s32.totalorder %s6515_s27, %s5746_s30 }
  0x9a   : > { %p5743_p12 = pnand %p5742_p13, %p7603_p0  ;;  %p5749_p8 = scmp.lt.s32.totalorder %s5747_s17, %s5741_s28 }
  0x9c   : > { %p5744_p5 = pneg %p5743_p12  ;;  %p5750_p9 = por %p5749_p8, %p5748_p4 }
  0x9e   : > { %p5751_p1 = pnand %p5750_p9, %p5744_p5 }
  0xa0   : > { %5754 = shalt.err (!%p5751_p1)
}
  0xa1   : > { %s7563_s20 = smov 64   ;;  %s7565_s18 = smov 4  }
  0xa2   : > { %5383 = dma.hbm_to_vmem [thread:$0]  (%p7603_p0), %s6512_s0, 1024, %s6515_s27, %s7562_s29, %s7563_s20, %s7563_s20, %s7565_s18  }
  0xa3   : > { %s6545_s26 = sshll.u32 %s6461_s22, 2  ;;  %s6548_s28 = sshll.u32 %s6221_s21, 6 }
  0xa4   : > { %s7605_s6 = sld [smem:[#allocation54_spill]]  ;;  %s701_s3 = scalar_lea.vmem [#allocation11], %s6545_s26 }
  0xa5   : > { %s708_s4 = sshll.u32 %s701_s3, 4  ;;  %s7568_s0 = scalar_lea.sflag [#allocation12], %s6467_s2  ;;  %s6557_s4 = int_to_ptr.vmem [resolvable:$true] %s708_s4 }
  0xaa   : > { %s6554_s17 = scalar_lea.hbm %s7605_s6, %s6548_s28  ;;  %s5759_s19 = scalar_lea.hbm %s7605_s6, 256 }
  0xab   : > { %s5755_s27 = scalar_lea.hbm %s6554_s17, 64  ;;  %p5760_p6 = scmp.lt.u32.totalorder %s6554_s17, %s7605_s6 }
  0xac   : > { %p5756_p10 = scmp.ne.s32.totalorder %s6554_s17, %s5755_s27  ;;  %p5761_p7 = scmp.lt.u32.totalorder %s5759_s19, %s5755_s27 }
  0xad   : > { %p5763_p13 = scmp.lt.u32.totalorder %s5755_s27, %s6554_s17 }
  0xae   : > { %p5757_p2 = pnand %p5756_p10, %p7603_p0  ;;  %p5762_p11 = por %p5761_p7, %p5760_p6 }
  0xb0   : > { %p5758_p3 = pneg %p5757_p2  ;;  %p5764_p12 = por %p5763_p13, %p5762_p11 }
  0xb2   : > { %p5765_p5 = pnand %p5764_p12, %p5758_p3 }
  0xb4   : > { %5768 = shalt.err (!%p5765_p5)
}
  0xb5   : > { %s5769_s3 = scalar_lea.vmem %s6557_s4, 64  ;;  %s6229_s29 = smov [#allocation11]  }
  0xb6   : > { %p5770_p4 = scmp.ne.s32.totalorder %s6557_s4, %s5769_s3  ;;  %s5773_s20 = sshll.u32 %s6229_s29, 4  ;;  %s5774_s20 = int_to_ptr.vmem [resolvable:$false] %s5773_s20 }
  0xb7   : > { %s5775_s18 = scalar_lea.vmem %s5774_s20, 128  ;;  %p5776_p1 = scmp.lt.s32.totalorder %s6557_s4, %s5774_s20 }
  0xb8   : > { %p5771_p8 = pnand %p5770_p4, %p7603_p0  ;;  %p5777_p10 = scmp.lt.s32.totalorder %s5775_s18, %s5769_s3 }
  0xba   : > { %p5772_p9 = pneg %p5771_p8  ;;  %p5778_p2 = por %p5777_p10, %p5776_p1 }
  0xbc   : > { %p5779_p6 = pnand %p5778_p2, %p5772_p9 }
  0xbe   : > { %5782 = shalt.err (!%p5779_p6)
}
  0xbf   : > { %s7570_s27 = smov 16   ;;  %s7575_s19 = smov 1  }
  0xc0   : > { %5385 = dma.hbm_to_vmem [thread:$0]  (%p7603_p0), %s6554_s17, 64, %s6557_s4, %s7568_s0, %s7570_s27, %s7570_s27, %s7575_s19  }
  0xc1   : > { %s7606_s8 = sld [smem:[#allocation55_spill]]  ;;  %s743_s20 = scalar_lea.vmem [#allocation14], %s6545_s26 }
  0xc2   : > { %s750_s18 = sshll.u32 %s743_s20, 4  ;;  %s7569_s6 = scalar_lea.sflag [#allocation15], %s6467_s2  ;;  %s6593_s18 = int_to_ptr.vmem [resolvable:$true] %s750_s18 }
  0xc7   : > { %s6590_s29 = scalar_lea.hbm %s7606_s8, %s6548_s28  ;;  %s5787_s30 = scalar_lea.hbm %s7606_s8, 256 }
  0xc8   : > { %s5783_s16 = scalar_lea.hbm %s6590_s29, 64  ;;  %p5788_p13 = scmp.lt.u32.totalorder %s6590_s29, %s7606_s8 }
  0xc9   : > { %p5784_p3 = scmp.ne.s32.totalorder %s6590_s29, %s5783_s16  ;;  %p5789_p12 = scmp.lt.u32.totalorder %s5787_s30, %s5783_s16 }
  0xca   : > { %p5791_p4 = scmp.lt.u32.totalorder %s5783_s16, %s6590_s29 }
  0xcb   : > { %p5785_p7 = pnand %p5784_p3, %p7603_p0  ;;  %p5790_p5 = por %p5789_p12, %p5788_p13 }
  0xcd   : > { %p5786_p11 = pneg %p5785_p7  ;;  %p5792_p8 = por %p5791_p4, %p5790_p5 }
  0xcf   : > { %p5793_p9 = pnand %p5792_p8, %p5786_p11 }
  0xd1   : > { %5796 = shalt.err (!%p5793_p9)
}
  0xd2   : > { %s5797_s20 = scalar_lea.vmem %s6593_s18, 64  ;;  %s6232_s4 = smov [#allocation14]  }
  0xd3   : > { %p5798_p1 = scmp.ne.s32.totalorder %s6593_s18, %s5797_s20  ;;  %s5801_s17 = sshll.u32 %s6232_s4, 4  ;;  %s5802_s17 = int_to_ptr.vmem [resolvable:$false] %s5801_s17 }
  0xd4   : > { %s5803_s0 = scalar_lea.vmem %s5802_s17, 128  ;;  %p5804_p6 = scmp.lt.s32.totalorder %s6593_s18, %s5802_s17 }
  0xd5   : > { %p5799_p10 = pnand %p5798_p1, %p7603_p0  ;;  %p5805_p3 = scmp.lt.s32.totalorder %s5803_s0, %s5797_s20 }
  0xd7   : > { %p5800_p2 = pneg %p5799_p10  ;;  %p5806_p7 = por %p5805_p3, %p5804_p6 }
  0xd9   : > { %p5807_p13 = pnand %p5806_p7, %p5800_p2 }
  0xdb   : > { %5810 = shalt.err (!%p5807_p13)
}
  0xdc   : > { %5387 = dma.hbm_to_vmem [thread:$0]  (%p7603_p0), %s6590_s29, 64, %s6593_s18, %s7569_s6, %s7570_s27, %s7570_s27, %s7575_s19  }
  0xdd   : > { %s6626_s3 = scalar_lea.hbm %s7533_s10, %s6464_s23  ;;  %s784_s20 = scalar_lea.vmem [#allocation17], %s6461_s22 }
  0xde   : > { %s791_s4 = sshll.u32 %s784_s20, 4  ;;  %s7572_s17 = scalar_lea.sflag [#allocation18], %s6467_s2  ;;  %s792_s4 = int_to_ptr.vmem [resolvable:$true] %s791_s4 }
  0xdf   : > { %s5811_s0 = scalar_lea.hbm %s6626_s3, 16  ;;  %s5815_s18 = scalar_lea.hbm %s7533_s10, 64 }
  0xe0   : > { %p5812_p11 = scmp.ne.s32.totalorder %s6626_s3, %s5811_s0  ;;  %p5816_p4 = scmp.lt.u32.totalorder %s6626_s3, %s7533_s10 }
  0xe1   : > { %p5817_p8 = scmp.lt.u32.totalorder %s5815_s18, %s5811_s0  ;;  %p5819_p1 = scmp.lt.u32.totalorder %s5811_s0, %s6626_s3 }
  0xe2   : > { %p5813_p12 = pnand %p5812_p11, %p7603_p0 }
  0xe3   : > { %p5818_p9 = por %p5817_p8, %p5816_p4 }
  0xe4   : > { %p5814_p5 = pneg %p5813_p12 }
  0xe5   : > { %p5820_p10 = por %p5819_p1, %p5818_p9 }
  0xe7   : > { %p5821_p2 = pnand %p5820_p10, %p5814_p5 }
  0xe9   : > { %5824 = shalt.err (!%p5821_p2)
}
  0xea   : > { %s5825_s20 = scalar_lea.vmem %s792_s4, 16  ;;  %s6233_s6 = smov [#allocation17]  }
  0xeb   : > { %p5826_p6 = scmp.ne.s32.totalorder %s792_s4, %s5825_s20  ;;  %s5829_s27 = sshll.u32 %s6233_s6, 4  ;;  %s5830_s27 = int_to_ptr.vmem [resolvable:$false] %s5829_s27 }
  0xec   : > { %s5831_s8 = scalar_lea.vmem %s5830_s27, 32  ;;  %p5832_p13 = scmp.lt.s32.totalorder %s792_s4, %s5830_s27 }
  0xed   : > { %p5827_p3 = pnand %p5826_p6, %p7603_p0  ;;  %p5833_p11 = scmp.lt.s32.totalorder %s5831_s8, %s5825_s20 }
  0xef   : > { %p5828_p7 = pneg %p5827_p3  ;;  %p5834_p12 = por %p5833_p11, %p5832_p13 }
  0xf1   : > { %p5835_p4 = pnand %p5834_p12, %p5828_p7 }
  0xf3   : > { %5838 = shalt.err (!%p5835_p4)
}
  0xf4   : > { %5389 = dma.hbm_to_vmem [thread:$0]  (%p7603_p0), %s6626_s3, 16, %s792_s4, %s7572_s17  }
  0xf5   : > { %s6653_s6 = scalar_lea.hbm %s7535_s12, %s6464_s23  ;;  %s818_s27 = scalar_lea.vmem [#allocation20], %s6461_s22 }
  0xf6   : > { %s825_s18 = sshll.u32 %s818_s27, 4  ;;  %s7573_s16 = scalar_lea.sflag [#allocation21], %s6467_s2  ;;  %s826_s18 = int_to_ptr.vmem [resolvable:$true] %s825_s18 }
  0xf7   : > { %s5839_s30 = scalar_lea.hbm %s6653_s6, 16  ;;  %s5843_s4 = scalar_lea.hbm %s7535_s12, 64 }
  0xf8   : > { %p5840_p5 = scmp.ne.s32.totalorder %s6653_s6, %s5839_s30  ;;  %p5844_p1 = scmp.lt.u32.totalorder %s6653_s6, %s7535_s12 }
  0xf9   : > { %p5845_p10 = scmp.lt.u32.totalorder %s5843_s4, %s5839_s30  ;;  %p5847_p6 = scmp.lt.u32.totalorder %s5839_s30, %s6653_s6 }
  0xfa   : > { %p5841_p8 = pnand %p5840_p5, %p7603_p0 }
  0xfb   : > { %p5846_p2 = por %p5845_p10, %p5844_p1 }
  0xfc   : > { %p5842_p9 = pneg %p5841_p8 }
  0xfd   : > { %p5848_p3 = por %p5847_p6, %p5846_p2 }
  0xff   : > { %p5849_p7 = pnand %p5848_p3, %p5842_p9 }
 0x101   : > { %5852 = shalt.err (!%p5849_p7)
}
 0x102   : > { %s5853_s29 = scalar_lea.vmem %s826_s18, 16  ;;  %s6234_s27 = smov [#allocation20]  }
 0x103   : > { %p5854_p13 = scmp.ne.s32.totalorder %s826_s18, %s5853_s29  ;;  %s5857_s17 = sshll.u32 %s6234_s27, 4  ;;  %s5858_s17 = int_to_ptr.vmem [resolvable:$false] %s5857_s17 }
 0x104   : > { %s5859_s20 = scalar_lea.vmem %s5858_s17, 32  ;;  %p5860_p4 = scmp.lt.s32.totalorder %s826_s18, %s5858_s17 }
 0x105   : > { %p5855_p11 = pnand %p5854_p13, %p7603_p0  ;;  %p5861_p5 = scmp.lt.s32.totalorder %s5859_s20, %s5853_s29 }
 0x107   : > { %p5856_p12 = pneg %p5855_p11  ;;  %p5862_p8 = por %p5861_p5, %p5860_p4 }
 0x109   : > { %p5863_p1 = pnand %p5862_p8, %p5856_p12 }
 0x10b   : > { %5866 = shalt.err (!%p5863_p1)
}
 0x10c   : > { %5391 = dma.hbm_to_vmem [thread:$0]  (%p7603_p0), %s6653_s6, 16, %s826_s18, %s7573_s16  }
 0x10d   : > { %s6680_s4 = scalar_lea.hbm %s7537_s14, %s6548_s28  ;;  %s857_s17 = scalar_lea.vmem [#allocation23], %s6545_s26 }
 0x10e   : > { %s865_s8 = sshll.u32 %s857_s17, 4  ;;  %s7574_s0 = scalar_lea.sflag [#allocation24], %s6467_s2  ;;  %s866_s8 = int_to_ptr.vmem [resolvable:$true] %s865_s8 }
 0x10f   : > { %s5867_s29 = scalar_lea.hbm %s6680_s4, 64  ;;  %s5871_s18 = scalar_lea.hbm %s7537_s14, 256 }
 0x110   : > { %p5868_p9 = scmp.ne.s32.totalorder %s6680_s4, %s5867_s29  ;;  %p5872_p6 = scmp.lt.u32.totalorder %s6680_s4, %s7537_s14 }
 0x111   : > { %p5873_p3 = scmp.lt.u32.totalorder %s5871_s18, %s5867_s29  ;;  %p5875_p13 = scmp.lt.u32.totalorder %s5867_s29, %s6680_s4 }
 0x112   : > { %p5869_p10 = pnand %p5868_p9, %p7603_p0 }
 0x113   : > { %p5874_p7 = por %p5873_p3, %p5872_p6 }
 0x114   : > { %p5870_p2 = pneg %p5869_p10 }
 0x115   : > { %p5876_p11 = por %p5875_p13, %p5874_p7 }
 0x117   : > { %p5877_p12 = pnand %p5876_p11, %p5870_p2 }
 0x119   : > { %5880 = shalt.err (!%p5877_p12)
}
 0x11a   : > { %s5881_s3 = scalar_lea.vmem %s866_s8, 64  ;;  %s6235_s17 = smov [#allocation23]  }
 0x11b   : > { %p5882_p4 = scmp.ne.s32.totalorder %s866_s8, %s5881_s3  ;;  %s5885_s16 = sshll.u32 %s6235_s17, 4  ;;  %s5886_s16 = int_to_ptr.vmem [resolvable:$false] %s5885_s16 }
 0x11c   : > { %s5887_s27 = scalar_lea.vmem %s5886_s16, 128  ;;  %p5888_p1 = scmp.lt.s32.totalorder %s866_s8, %s5886_s16 }
 0x11d   : > { %p5883_p5 = pnand %p5882_p4, %p7603_p0  ;;  %p5889_p9 = scmp.lt.s32.totalorder %s5887_s27, %s5881_s3 }
 0x11f   : > { %p5884_p8 = pneg %p5883_p5  ;;  %p5890_p10 = por %p5889_p9, %p5888_p1 }
 0x121   : > { %p5891_p3 = pnand %p5890_p10, %p5884_p8 }
 0x123   : > { %5894 = shalt.err (!%p5891_p3)
}
 0x124   : > { %5393 = dma.hbm_to_vmem [thread:$0]  (%p7603_p0), %s6680_s4, 64, %s866_s8, %s7574_s0  }
 0x125   : > { %s7607_s18 = sld [smem:[#allocation50_spill]]  ;;  %s603_s16 = scalar_lea.vmem [#allocation3], %s6461_s22 }
 0x126   : > { %s610_s30 = sshll.u32 %s603_s16, 4  ;;  %s601_s3 = scalar_lea.sflag [#allocation4], %s6461_s22  ;;  %s611_s30 = int_to_ptr.vmem [resolvable:$true] %s610_s30 }
 0x12b   : > { %s6707_s20 = scalar_lea.hbm %s7607_s18, %s6464_s23  ;;  %s5899_s8 = scalar_lea.hbm %s7607_s18, 64 }
 0x12c   : > { %s5895_s17 = scalar_lea.hbm %s6707_s20, 16  ;;  %p5900_p13 = scmp.lt.u32.totalorder %s6707_s20, %s7607_s18 }
 0x12d   : > { %p5896_p2 = scmp.ne.s32.totalorder %s6707_s20, %s5895_s17  ;;  %p5901_p11 = scmp.lt.u32.totalorder %s5899_s8, %s5895_s17 }
 0x12e   : > { %p5903_p4 = scmp.lt.u32.totalorder %s5895_s17, %s6707_s20 }
 0x12f   : > { %p5897_p6 = pnand %p5896_p2, %p7603_p0  ;;  %p5902_p12 = por %p5901_p11, %p5900_p13 }
 0x131   : > { %p5898_p7 = pneg %p5897_p6  ;;  %p5904_p5 = por %p5903_p4, %p5902_p12 }
 0x133   : > { %p5905_p8 = pnand %p5904_p5, %p5898_p7 }
 0x135   : > { %5908 = shalt.err (!%p5905_p8)
}
 0x136   : > { %s5909_s16 = scalar_lea.vmem %s611_s30, 16  ;;  %s6236_s0 = smov [#allocation3]  }
 0x137   : > { %p5910_p1 = scmp.ne.s32.totalorder %s611_s30, %s5909_s16  ;;  %s5913_s19 = sshll.u32 %s6236_s0, 4  ;;  %s5914_s19 = int_to_ptr.vmem [resolvable:$false] %s5913_s19 }
 0x138   : > { %s5915_s27 = scalar_lea.vmem %s5914_s19, 32  ;;  %p5916_p3 = scmp.lt.s32.totalorder %s611_s30, %s5914_s19 }
 0x139   : > { %p5911_p9 = pnand %p5910_p1, %p7603_p0  ;;  %p5917_p2 = scmp.lt.s32.totalorder %s5915_s27, %s5909_s16 }
 0x13b   : > { %p5912_p10 = pneg %p5911_p9  ;;  %p5918_p6 = por %p5917_p2, %p5916_p3 }
 0x13d   : > { %p5919_p11 = pnand %p5918_p6, %p5912_p10 }
 0x13f   : > { %5922 = shalt.err (!%p5919_p11)
}
 0x140   : > { %5380 = dma.hbm_to_vmem [thread:$0]  (%p7603_p0), %s6707_s20, 16, %s611_s30, %s601_s3  }
 0x141   : > { %s7608_s8 = sld [smem:[#allocation52_spill]]  ;;  %s638_s19 = scalar_lea.vmem [#allocation7], %s6477_s24 }
 0x142   : > { %s645_s0 = sshll.u32 %s638_s19, 4  ;;  %s6735_s0 = int_to_ptr.vmem [resolvable:$true] %s645_s0 }
 0x147   : > { %s6732_s29 = scalar_lea.hbm %s7608_s8, %s6482_s1  ;;  %s5927_s30 = scalar_lea.hbm %s7608_s8, 4096 }
 0x148   : > { %s5923_s6 = scalar_lea.hbm %s6732_s29, 1024  ;;  %p5928_p4 = scmp.lt.u32.totalorder %s6732_s29, %s7608_s8 }
 0x149   : > { %p5924_p7 = scmp.ne.s32.totalorder %s6732_s29, %s5923_s6  ;;  %p5929_p5 = scmp.lt.u32.totalorder %s5927_s30, %s5923_s6 }
 0x14a   : > { %p5931_p1 = scmp.lt.u32.totalorder %s5923_s6, %s6732_s29 }
 0x14b   : > { %p5925_p13 = pnand %p5924_p7, %p7603_p0  ;;  %p5930_p8 = por %p5929_p5, %p5928_p4 }
 0x14d   : > { %p5926_p12 = pneg %p5925_p13  ;;  %p5932_p9 = por %p5931_p1, %p5930_p8 }
 0x14f   : > { %p5933_p10 = pnand %p5932_p9, %p5926_p12 }
 0x151   : > { %5936 = shalt.err (!%p5933_p10)
}
 0x152   : > { %s5937_s17 = scalar_lea.vmem %s6735_s0, 1024  ;;  %s6237_s4 = smov [#allocation7]  }
 0x153   : > { %p5938_p3 = scmp.ne.s32.totalorder %s6735_s0, %s5937_s17  ;;  %s5941_s19 = sshll.u32 %s6237_s4, 4  ;;  %s5942_s19 = int_to_ptr.vmem [resolvable:$false] %s5941_s19 }
 0x154   : > { %s5943_s16 = scalar_lea.vmem %s5942_s19, 2048  ;;  %p5944_p11 = scmp.lt.s32.totalorder %s6735_s0, %s5942_s19 }
 0x155   : > { %p5939_p2 = pnand %p5938_p3, %p7603_p0  ;;  %p5945_p7 = scmp.lt.s32.totalorder %s5943_s16, %s5937_s17 }
 0x157   : > { %p5940_p6 = pneg %p5939_p2  ;;  %p5946_p13 = por %p5945_p7, %p5944_p11 }
 0x159   : > { %p5947_p4 = pnand %p5946_p13, %p5940_p6 }
 0x15b   : > { %5950 = shalt.err (!%p5947_p4)
}
 0x15c   : > { %s7609_s6 = smov 4   ;;  %s7610_s20 = smov 64  }
 0x15d   : > { %s7611_s30 = scalar_lea.sflag [#allocation6], %s6467_s2  ;;  %s6767_s17 = scalar_lea.hbm %s7528_s5, %s6482_s1 }
 0x15e   : > { %5382 = dma.hbm_to_vmem [thread:$0]  (%p7603_p0), %s6732_s29, 1024, %s6735_s0, %s7611_s30, %s7610_s20, %s7610_s20, %s7609_s6  }
 0x15f   : > { %s680_s4 = scalar_lea.vmem [#allocation10], %s6477_s24  ;;  %s5951_s16 = scalar_lea.hbm %s6767_s17, 1024 }
 0x160   : > { %s687_s19 = sshll.u32 %s680_s4, 4  ;;  %p5952_p12 = scmp.ne.s32.totalorder %s6767_s17, %s5951_s16  ;;  %s6770_s19 = int_to_ptr.vmem [resolvable:$true] %s687_s19 }
 0x161   : > { %s5955_s0 = scalar_lea.hbm %s7528_s5, 4096  ;;  %p5956_p1 = scmp.lt.u32.totalorder %s6767_s17, %s7528_s5 }
 0x162   : > { %p5953_p5 = pnand %p5952_p12, %p7603_p0  ;;  %p5957_p9 = scmp.lt.u32.totalorder %s5955_s0, %s5951_s16 }
 0x163   : > { %p5959_p3 = scmp.lt.u32.totalorder %s5951_s16, %s6767_s17 }
 0x164   : > { %p5954_p8 = pneg %p5953_p5  ;;  %p5958_p10 = por %p5957_p9, %p5956_p1 }
 0x166   : > { %p5960_p2 = por %p5959_p3, %p5958_p10 }
 0x168   : > { %p5961_p6 = pnand %p5960_p2, %p5954_p8 }
 0x16a   : > { %5964 = shalt.err (!%p5961_p6)
}
 0x16b   : > { %s5965_s27 = scalar_lea.vmem %s6770_s19, 1024  ;;  %s6238_s8 = smov [#allocation10]  }
 0x16c   : > { %p5966_p11 = scmp.ne.s32.totalorder %s6770_s19, %s5965_s27  ;;  %s5969_s4 = sshll.u32 %s6238_s8, 4  ;;  %s5970_s4 = int_to_ptr.vmem [resolvable:$false] %s5969_s4 }
 0x16d   : > { %s5971_s29 = scalar_lea.vmem %s5970_s4, 2048  ;;  %p5972_p4 = scmp.lt.s32.totalorder %s6770_s19, %s5970_s4 }
 0x16e   : > { %p5967_p7 = pnand %p5966_p11, %p7603_p0  ;;  %p5973_p12 = scmp.lt.s32.totalorder %s5971_s29, %s5965_s27 }
 0x170   : > { %p5968_p13 = pneg %p5967_p7  ;;  %p5974_p5 = por %p5973_p12, %p5972_p4 }
 0x172   : > { %p5975_p1 = pnand %p5974_p5, %p5968_p13 }
 0x174   : > { %5978 = shalt.err (!%p5975_p1)
}
 0x175   : > { %s7612_s16 = scalar_lea.sflag [#allocation9], %s6467_s2  ;;  %s6802_s3 = scalar_lea.hbm %s7530_s7, %s6548_s28 }
 0x176   : > { %5384 = dma.hbm_to_vmem [thread:$0]  (%p7603_p0), %s6767_s17, 1024, %s6770_s19, %s7612_s16, %s7610_s20, %s7610_s20, %s7609_s6  }
 0x177   : > { %s722_s27 = scalar_lea.vmem [#allocation13], %s6545_s26  ;;  %s5979_s4 = scalar_lea.hbm %s6802_s3, 64 }
 0x178   : > { %s729_s8 = sshll.u32 %s722_s27, 4  ;;  %p5980_p8 = scmp.ne.s32.totalorder %s6802_s3, %s5979_s4  ;;  %s6805_s8 = int_to_ptr.vmem [resolvable:$true] %s729_s8 }
 0x179   : > { %s5983_s19 = scalar_lea.hbm %s7530_s7, 256  ;;  %p5984_p3 = scmp.lt.u32.totalorder %s6802_s3, %s7530_s7 }
 0x17a   : > { %p5981_p9 = pnand %p5980_p8, %p7603_p0  ;;  %p5985_p2 = scmp.lt.u32.totalorder %s5983_s19, %s5979_s4 }
 0x17b   : > { %p5987_p11 = scmp.lt.u32.totalorder %s5979_s4, %s6802_s3 }
 0x17c   : > { %p5982_p10 = pneg %p5981_p9  ;;  %p5986_p6 = por %p5985_p2, %p5984_p3 }
 0x17e   : > { %p5988_p7 = por %p5987_p11, %p5986_p6 }
 0x180   : > { %p5989_p13 = pnand %p5988_p7, %p5982_p10 }
 0x182   : > { %5992 = shalt.err (!%p5989_p13)
}
 0x183   : > { %s5993_s26 = scalar_lea.vmem %s6805_s8, 64  ;;  %s6239_s0 = smov [#allocation13]  }
 0x184   : > { %p5994_p4 = scmp.ne.s32.totalorder %s6805_s8, %s5993_s26  ;;  %s5997_s30 = sshll.u32 %s6239_s0, 4  ;;  %s5998_s30 = int_to_ptr.vmem [resolvable:$false] %s5997_s30 }
 0x185   : > { %s5999_s27 = scalar_lea.vmem %s5998_s30, 128  ;;  %p6000_p1 = scmp.lt.s32.totalorder %s6805_s8, %s5998_s30 }
 0x186   : > { %p5995_p12 = pnand %p5994_p4, %p7603_p0  ;;  %p6001_p8 = scmp.lt.s32.totalorder %s5999_s27, %s5993_s26 }
 0x188   : > { %p5996_p5 = pneg %p5995_p12  ;;  %p6002_p9 = por %p6001_p8, %p6000_p1 }
 0x18a   : > { %p6003_p3 = pnand %p6002_p9, %p5996_p5 }
 0x18c   : > { %6006 = shalt.err (!%p6003_p3)
}
 0x18d   : > { %s7613_s4 = smov 1   ;;  %s7614_s29 = smov 16  }
 0x18e   : > { %s7615_s17 = scalar_lea.sflag [#allocation12], %s6467_s2  ;;  %s6837_s28 = scalar_lea.hbm %s7532_s9, %s6482_s1 }
 0x18f   : > { %5386 = dma.hbm_to_vmem [thread:$0]  (%p7603_p0), %s6802_s3, 64, %s6805_s8, %s7615_s17, %s7614_s29, %s7614_s29, %s7613_s4  }
 0x190   : > { %s764_s26 = scalar_lea.vmem [#allocation16], %s6477_s24  ;;  %s6007_s30 = scalar_lea.hbm %s6837_s28, 1024 }
 0x191   : > { %s771_s0 = sshll.u32 %s764_s26, 4  ;;  %p6008_p10 = scmp.ne.s32.totalorder %s6837_s28, %s6007_s30  ;;  %s6840_s0 = int_to_ptr.vmem [resolvable:$true] %s771_s0 }
 0x192   : > { %s6011_s8 = scalar_lea.hbm %s7532_s9, 4096  ;;  %p6012_p11 = scmp.lt.u32.totalorder %s6837_s28, %s7532_s9 }
 0x193   : > { %p6009_p2 = pnand %p6008_p10, %p7603_p0  ;;  %p6013_p7 = scmp.lt.u32.totalorder %s6011_s8, %s6007_s30 }
 0x194   : > { %p6015_p4 = scmp.lt.u32.totalorder %s6007_s30, %s6837_s28 }
 0x195   : > { %p6010_p6 = pneg %p6009_p2  ;;  %p6014_p13 = por %p6013_p7, %p6012_p11 }
 0x197   : > { %p6016_p12 = por %p6015_p4, %p6014_p13 }
 0x199   : > { %p6017_p5 = pnand %p6016_p12, %p6010_p6 }
 0x19b   : > { %6020 = shalt.err (!%p6017_p5)
}
 0x19c   : > { %s6021_s24 = scalar_lea.vmem %s6840_s0, 1024  ;;  %s6240_s17 = smov [#allocation16]  }
 0x19d   : > { %p6022_p1 = scmp.ne.s32.totalorder %s6840_s0, %s6021_s24  ;;  %s6025_s19 = sshll.u32 %s6240_s17, 4  ;;  %s6026_s19 = int_to_ptr.vmem [resolvable:$false] %s6025_s19 }
 0x19e   : > { %s6027_s16 = scalar_lea.vmem %s6026_s19, 2048  ;;  %p6028_p3 = scmp.lt.s32.totalorder %s6840_s0, %s6026_s19 }
 0x19f   : > { %p6023_p8 = pnand %p6022_p1, %p7603_p0  ;;  %p6029_p10 = scmp.lt.s32.totalorder %s6027_s16, %s6021_s24 }
 0x1a1   : > { %p6024_p9 = pneg %p6023_p8  ;;  %p6030_p2 = por %p6029_p10, %p6028_p3 }
 0x1a3   : > { %p6031_p11 = pnand %p6030_p2, %p6024_p9 }
 0x1a5   : > { %6034 = shalt.err (!%p6031_p11)
}
 0x1a6   : > { %s7616_s26 = scalar_lea.sflag [#allocation15], %s6467_s2  ;;  %s6872_s3 = scalar_lea.hbm %s7534_s11, %s6464_s23 }
 0x1a7   : > { %5388 = dma.hbm_to_vmem [thread:$0]  (%p7603_p0), %s6837_s28, 1024, %s6840_s0, %s7616_s26, %s7610_s20, %s7610_s20, %s7609_s6  }
 0x1a8   : > { %s801_s8 = scalar_lea.vmem [#allocation19], %s6461_s22  ;;  %s4797_s1 = sshll.u32 %s6461_s22, 8 }
 0x1a9   : > { %s808_s4 = sshll.u32 %s801_s8, 4  ;;  %s6035_s24 = scalar_lea.hbm %s6872_s3, 16  ;;  %s809_s4 = int_to_ptr.vmem [resolvable:$true] %s808_s4 }
 0x1aa   : > { %p6036_p6 = scmp.ne.s32.totalorder %s6872_s3, %s6035_s24  ;;  %s6039_s0 = scalar_lea.hbm %s7534_s11, 64 }
 0x1ab   : > { %p6040_p4 = scmp.lt.u32.totalorder %s6872_s3, %s7534_s11  ;;  %p6041_p12 = scmp.lt.u32.totalorder %s6039_s0, %s6035_s24 }
 0x1ac   : > { %p6037_p7 = pnand %p6036_p6, %p7603_p0  ;;  %p6043_p1 = scmp.lt.u32.totalorder %s6035_s24, %s6872_s3 }
 0x1ad   : > { %p6042_p5 = por %p6041_p12, %p6040_p4 }
 0x1ae   : > { %p6038_p13 = pneg %p6037_p7 }
 0x1af   : > { %p6044_p8 = por %p6043_p1, %p6042_p5 }
 0x1b1   : > { %p6045_p9 = pnand %p6044_p8, %p6038_p13 }
 0x1b3   : > { %6048 = shalt.err (!%p6045_p9)
}
 0x1b4   : > { %s6049_s26 = scalar_lea.vmem %s809_s4, 16  ;;  %s6241_s30 = smov [#allocation19]  }
 0x1b5   : > { %p6050_p3 = scmp.ne.s32.totalorder %s809_s4, %s6049_s26  ;;  %s6053_s27 = sshll.u32 %s6241_s30, 4  ;;  %s6054_s27 = int_to_ptr.vmem [resolvable:$false] %s6053_s27 }
 0x1b6   : > { %s6055_s8 = scalar_lea.vmem %s6054_s27, 32  ;;  %p6056_p11 = scmp.lt.s32.totalorder %s809_s4, %s6054_s27 }
 0x1b7   : > { %p6051_p10 = pnand %p6050_p3, %p7603_p0  ;;  %p6057_p6 = scmp.lt.s32.totalorder %s6055_s8, %s6049_s26 }
 0x1b9   : > { %p6052_p2 = pneg %p6051_p10  ;;  %p6058_p7 = por %p6057_p6, %p6056_p11 }
 0x1bb   : > { %p6059_p4 = pnand %p6058_p7, %p6052_p2 }
 0x1bd   : > { %6062 = shalt.err (!%p6059_p4)
}
 0x1be   : > { %s7617_s24 = scalar_lea.sflag [#allocation18], %s6467_s2  ;;  %s5034_s17 = sshll.u32 %s6221_s21, 12 }
 0x1bf   : > { %5390 = dma.hbm_to_vmem [thread:$0]  (%p7603_p0), %s6872_s3, 16, %s809_s4, %s7617_s24  }
 0x1c0   : > { %s6901_s19 = scalar_lea.hbm %s7536_s13, %s5034_s17  ;;  %s836_s16 = scalar_lea.vmem [#allocation22], %s4797_s1 }
 0x1c1   : > { %s843_s26 = sshll.u32 %s836_s16, 4  ;;  %s6063_s30 = scalar_lea.hbm %s6901_s19, 4096  ;;  %s6905_s26 = int_to_ptr.vmem [resolvable:$true] %s843_s26 }
 0x1c2   : > { %p6064_p13 = scmp.ne.s32.totalorder %s6901_s19, %s6063_s30  ;;  %s6067_s27 = scalar_lea.hbm %s7536_s13, 16384 }
 0x1c3   : > { %p6068_p1 = scmp.lt.u32.totalorder %s6901_s19, %s7536_s13  ;;  %p6069_p8 = scmp.lt.u32.totalorder %s6067_s27, %s6063_s30 }
 0x1c4   : > { %p6065_p12 = pnand %p6064_p13, %p7603_p0  ;;  %p6071_p3 = scmp.lt.u32.totalorder %s6063_s30, %s6901_s19 }
 0x1c5   : > { %p6070_p9 = por %p6069_p8, %p6068_p1 }
 0x1c6   : > { %p6066_p5 = pneg %p6065_p12 }
 0x1c7   : > { %p6072_p10 = por %p6071_p3, %p6070_p9 }
 0x1c9   : > { %p6073_p2 = pnand %p6072_p10, %p6066_p5 }
 0x1cb   : > { %6076 = shalt.err (!%p6073_p2)
}
 0x1cc   : > { %s6077_s28 = scalar_lea.vmem %s6905_s26, 4096  ;;  %s6242_s0 = smov [#allocation22]  }
 0x1cd   : > { %p6078_p11 = scmp.ne.s32.totalorder %s6905_s26, %s6077_s28  ;;  %s6081_s16 = sshll.u32 %s6242_s0, 4  ;;  %s6082_s16 = int_to_ptr.vmem [resolvable:$false] %s6081_s16 }
 0x1ce   : > { %s6083_s3 = scalar_lea.vmem %s6082_s16, 8192  ;;  %p6084_p4 = scmp.lt.s32.totalorder %s6905_s26, %s6082_s16 }
 0x1cf   : > { %p6079_p6 = pnand %p6078_p11, %p7603_p0  ;;  %p6085_p13 = scmp.lt.s32.totalorder %s6083_s3, %s6077_s28 }
 0x1d1   : > { %p6080_p7 = pneg %p6079_p6  ;;  %p6086_p12 = por %p6085_p13, %p6084_p4 }
 0x1d3   : > { %p6087_p1 = pnand %p6086_p12, %p6080_p7 }
 0x1d5   : > { %6090 = shalt.err (!%p6087_p1)
}
 0x1d6   : > { %s6243_s30 = smov 256   ;;  %s7618_s4 = scalar_lea.sflag [#allocation21], %s6467_s2 }
 0x1d7   : > { %5392 = dma.hbm_to_vmem [thread:$0]  (%p7603_p0), %s6901_s19, 4096, %s6905_s26, %s7618_s4, %s6243_s30, %s6243_s30, %s7614_s29  }
 0x1d8   : > { %s6936_s24 = scalar_lea.hbm %s7538_s15, %s5034_s17  ;;  %s876_s28 = scalar_lea.vmem [#allocation25], %s4797_s1 }
 0x1d9   : > { %s883_s0 = sshll.u32 %s876_s28, 4  ;;  %s6091_s16 = scalar_lea.hbm %s6936_s24, 4096  ;;  %s6940_s0 = int_to_ptr.vmem [resolvable:$true] %s883_s0 }
 0x1da   : > { %p6092_p5 = scmp.ne.s32.totalorder %s6936_s24, %s6091_s16  ;;  %s6095_s19 = scalar_lea.hbm %s7538_s15, 16384 }
 0x1db   : > { %p6096_p3 = scmp.lt.u32.totalorder %s6936_s24, %s7538_s15  ;;  %p6097_p10 = scmp.lt.u32.totalorder %s6095_s19, %s6091_s16 }
 0x1dc   : > { %p6093_p8 = pnand %p6092_p5, %p7603_p0  ;;  %p6099_p11 = scmp.lt.u32.totalorder %s6091_s16, %s6936_s24 }
 0x1dd   : > { %p6098_p2 = por %p6097_p10, %p6096_p3 }
 0x1de   : > { %p6094_p9 = pneg %p6093_p8 }
 0x1df   : > { %p6100_p6 = por %p6099_p11, %p6098_p2 }
 0x1e1   : > { %p6101_p7 = pnand %p6100_p6, %p6094_p9 }
 0x1e3   : > { %6104 = shalt.err (!%p6101_p7)
}
 0x1e4   : > { %s6105_s1 = scalar_lea.vmem %s6940_s0, 4096  ;;  %s6244_s3 = smov [#allocation25]  }
 0x1e5   : > { %p6106_p4 = scmp.ne.s32.totalorder %s6940_s0, %s6105_s1  ;;  %s6109_s30 = sshll.u32 %s6244_s3, 4  ;;  %s6110_s30 = int_to_ptr.vmem [resolvable:$false] %s6109_s30 }
 0x1e6   : > { %s6111_s4 = scalar_lea.vmem %s6110_s30, 8192  ;;  %p6112_p1 = scmp.lt.s32.totalorder %s6940_s0, %s6110_s30 }
 0x1e7   : > { %p6107_p13 = pnand %p6106_p4, %p7603_p0  ;;  %p6113_p5 = scmp.lt.s32.totalorder %s6111_s4, %s6105_s1 }
 0x1e9   : > { %p6108_p12 = pneg %p6107_p13  ;;  %p6114_p8 = por %p6113_p5, %p6112_p1 }
 0x1eb   : > { %p6115_p3 = pnand %p6114_p8, %p6108_p12 }
 0x1ed   : > { %6118 = shalt.err (!%p6115_p3)
}
 0x1ee   : > { %s7619_s27 = scalar_lea.sflag [#allocation24], %s6467_s2  ;;  %s7620_s16 = sld [smem:[#allocation56_spill]] }
 0x1ef   : > { %5394 = dma.hbm_to_vmem [thread:$0]  (%p7603_p0), %s6936_s24, 4096, %s6940_s0, %s7619_s27, %s7610_s20, %s7610_s20, %s7609_s6  }
 0x1f0   : > { %s896_s29 = scalar_lea.vmem [#allocation26], %s6461_s22  ;;  %s894_s17 = scalar_lea.sflag [#allocation27], %s6467_s2 }
 0x1f1   : > { %s903_s19 = sshll.u32 %s896_s29, 4  ;;  %s904_s19 = int_to_ptr.vmem [resolvable:$true] %s903_s19 }
 0x1f4   : > { %s6972_s21 = scalar_lea.hbm %s7620_s16, %s6464_s23  ;;  %s6123_s20 = scalar_lea.hbm %s7620_s16, 64 }
 0x1f5   : > { %s6119_s26 = scalar_lea.hbm %s6972_s21, 16  ;;  %p6124_p11 = scmp.lt.u32.totalorder %s6972_s21, %s7620_s16 }
 0x1f6   : > { %p6120_p9 = scmp.ne.s32.totalorder %s6972_s21, %s6119_s26  ;;  %p6125_p6 = scmp.lt.u32.totalorder %s6123_s20, %s6119_s26 }
 0x1f7   : > { %p6127_p4 = scmp.lt.u32.totalorder %s6119_s26, %s6972_s21 }
 0x1f8   : > { %p6121_p10 = pnand %p6120_p9, %p7603_p0  ;;  %p6126_p7 = por %p6125_p6, %p6124_p11 }
 0x1fa   : > { %p6122_p2 = pneg %p6121_p10  ;;  %p6128_p13 = por %p6127_p4, %p6126_p7 }
 0x1fc   : > { %p6129_p12 = pnand %p6128_p13, %p6122_p2 }
 0x1fe   : > { %6132 = shalt.err (!%p6129_p12)
}
 0x1ff   : > { %s6133_s22 = scalar_lea.vmem %s904_s19, 16  ;;  %s6245_s2 = smov [#allocation26]  }
 0x200   : > { %p6134_p1 = scmp.ne.s32.totalorder %s904_s19, %s6133_s22  ;;  %s6137_s0 = sshll.u32 %s6245_s2, 4  ;;  %s6138_s0 = int_to_ptr.vmem [resolvable:$false] %s6137_s0 }
 0x201   : > { %s6139_s3 = scalar_lea.vmem %s6138_s0, 32  ;;  %p6140_p3 = scmp.lt.s32.totalorder %s904_s19, %s6138_s0 }
 0x202   : > { %p6135_p5 = pnand %p6134_p1, %p7603_p0  ;;  %p6141_p9 = scmp.lt.s32.totalorder %s6139_s3, %s6133_s22 }
 0x204   : > { %p6136_p8 = pneg %p6135_p5  ;;  %p6142_p10 = por %p6141_p9, %p6140_p3 }
 0x206   : > { %p6143_p6 = pnand %p6142_p10, %p6136_p8 }
 0x208   : > { %6146 = shalt.err (!%p6143_p6)
}
 0x209   : > { %5395 = dma.hbm_to_vmem [thread:$0]  (%p7603_p0), %s6972_s21, 16, %s904_s19, %s894_s17  }
 0x20a PF: > { %s7621_s30 = sld [smem:[#allocation48_spill]] }
 0x210   : > { %p7622_p2 = scmp.ne.s32.totalorder %s7621_s30, 0 }
 0x211   : > { %s7623_s4 = sld [smem:[#allocation42_spill]] (!%p7622_p2)  ;;  %s7624_s27 = sld [smem:[#allocation47_spill]] (!%p7622_p2) }
 0x212   : > { %912 = sbr.rel (%p7622_p2) target bundleno = 5916 (0x171c), region = 96 }
 0x217   : > { %s6996_s8 = sand.u32 (!%p7622_p2), 1, %s7623_s4   ;;  %p7625_p11 = scmp.ne.s32.totalorder (!%p7622_p2), %s7624_s27, 0 }
 0x218   : > { %s915_s28 = scalar_lea.sflag (!%p7622_p2), [#allocation4], %s6996_s8  ;;  %s917_s29 = scalar_lea.vmem (!%p7622_p2), [#allocation3], %s6996_s8 }
 0x219   : > { %6164 = dma.done.wait (%p7625_p11), %s915_s28, 16  }
 0x21a   : > { %6166 = vsyncadd (%p7625_p11), %s915_s28, 4294967280  ;;  %s7626_s25 = sld [smem:[#allocation44_spill]] }
 0x220   : > { %s7005_s21 = sand.u32 1, %s7626_s25  }
 0x221   : > { %s923_s19 = scalar_lea.sflag [#allocation6], %s7005_s21 }
 0x222   : > { %6168 = dma.done.wait (%p7625_p11), %s923_s19, 1040  }
 0x223   : > { %6170 = vsyncadd (%p7625_p11), %s923_s19, 4294966256  ;;  %s4808_s26 = sshll.u32 %s6996_s8, 6  ;;  %s940_s6 = scalar_lea.sflag [#allocation9], %s7005_s21 }
 0x224   : > { %s7014_s1 = scalar_lea.vmem [#allocation7], %s4808_s26  ;;  %s7017_s20 = scalar_lea.vmem [#allocation8], %s4808_s26 }
 0x225   : > { %6172 = dma.done.wait (%p7625_p11), %s940_s6, 2048  }
 0x226   : > { %6174 = vsyncadd (%p7625_p11), %s940_s6, 4294965248  ;;  %s7024_s24 = sshll.u32 %s6996_s8, 2  ;;  %s7026_s23 = scalar_lea.vmem [#allocation10], %s4808_s26 }
 0x227   : > { %s958_s22 = scalar_lea.sflag [#allocation12], %s7005_s21  ;;  %s7030_s2 = scalar_lea.vmem [#allocation11], %s7024_s24 }
 0x228   : > { %6176 = dma.done.wait (%p7625_p11), %s958_s22, 128  }
 0x229   : > { %6178 = vsyncadd (%p7625_p11), %s958_s22, 4294967168  ;;  %s7037_s0 = scalar_lea.vmem [#allocation13], %s7024_s24  ;;  %s976_s3 = scalar_lea.sflag [#allocation15], %s7005_s21 }
 0x22a   : > { %s7041_s30 = scalar_lea.vmem [#allocation14], %s7024_s24 }
 0x22b   : > { %6180 = dma.done.wait (%p7625_p11), %s976_s3, 1088  }
 0x22c   : > { %6182 = vsyncadd (%p7625_p11), %s976_s3, 4294966208  ;;  %s7047_s4 = scalar_lea.vmem [#allocation16], %s4808_s26  ;;  %s994_s28 = scalar_lea.sflag [#allocation18], %s7005_s21 }
 0x22d   : > { %6184 = dma.done.wait (%p7625_p11), %s994_s28, 32  }
 0x22e   : > { %6186 = vsyncadd (%p7625_p11), %s994_s28, 4294967264  ;;  %s1010_s22 = scalar_lea.sflag [#allocation21], %s7005_s21 }
 0x22f   : > { %6188 = dma.done.wait (%p7625_p11), %s1010_s22, 4112  }
 0x230   : > { %6190 = vsyncadd (%p7625_p11), %s1010_s22, 4294963184  ;;  %s4815_s26 = sshll.u32 %s6996_s8, 8  ;;  %s1027_s28 = scalar_lea.sflag [#allocation24], %s7005_s21 }
 0x231   : > { %s7063_s3 = scalar_lea.vmem [#allocation22], %s4815_s26  ;;  %s1030_s19 = scalar_lea.vmem [#allocation23], %s7024_s24 }
 0x232   : > { %6192 = dma.done.wait (%p7625_p11), %s1027_s28, 4160  }
 0x233   : > { %6194 = vsyncadd (%p7625_p11), %s1027_s28, 4294963136  ;;  %s7071_s17 = scalar_lea.vmem [#allocation25], %s4815_s26  ;;  %s1045_s22 = scalar_lea.sflag [#allocation27], %s7005_s21 }
 0x234   : > { %s1047_s6 = scalar_lea.vmem [#allocation26], %s6996_s8 }
 0x235   : > { %6196 = dma.done.wait (%p7625_p11), %s1045_s22, 16  }
 0x236   : > { %6198 = vsyncadd (%p7625_p11), %s1045_s22, 4294967280  ;;  %p7627_p0 = scmp.eq.s32.totalorder %s7626_s25, 0 }
 0x238   : > { %6200 = dma.done.wait (%p7627_p0), [#allocation27], 16   ;;  %p7628_p7 = pmov %p7627_p0 }
 0x239   : > { %p7629_p4 = pmov %p7627_p0 }
 0x23a   : > { %6202 = vsyncadd (%p7628_p7), [#allocation27], 4294967280 }
 0x23b   : > { %6204 = dma.done.wait (%p7629_p4), [#allocation30], 16   ;;  %p7630_p13 = pmov %p7627_p0 }
 0x23c   : > { %p7631_p12 = scmp.ne.s32.totalorder %s7626_s25, 0 }
 0x23d   : > { %6206 = vsyncadd (%p7630_p13), [#allocation30], 4294967280  ;;  %s7632_s28 = sld [smem:[#allocation49_spill]] (!%p7631_p12) }
 0x23e   : > { %1178 = sbr.rel (%p7631_p12) target bundleno = 581 (0x245), region = 172 }
 0x243   : > { %v1179_v0 = vld [vmem:[%s7632_s28] sm:$0xff] (!%p7631_p12)  ;;  %v1180_v1 = vld [vmem:[%s7632_s28 + $0x8] sm:$0xff] (!%p7631_p12) }
 0x244   : > { %1181 = vst [vmem:[#allocation2] sm:$0xff] (!%p7631_p12), %v1179_v0  ;;  %1182 = vst [vmem:[#allocation2 + $0x8] sm:$0xff] (!%p7631_p12), %v1180_v1 }
 0x245 PF: > { %v5469_v12 = vld [vmem:[%s7014_s1] sm:$0xff]   ;;  %v6246_v13 = vmov 0.0   ;;  %v5471_v15 = vld [vmem:[%s7014_s1 + $0x8] sm:$0xff]   ;;  %vm6247_vm0 = vmmov 0   ;;  %v4821_v25 = vld [vmem:[%s917_s29] ss:$0 sm:$0xff] }
 0x246   : > { %5168 = vmatprep.subr.bf16.mxu0 %v6246_v13  ;;  %5176 = vmatprep.subr.bf16.mxu1 %v6246_v13  ;;  %v5470_v14 = vld [vmem:[%s7017_s20] sm:$0xff]   ;;  %v5472_v16 = vld [vmem:[%s7017_s20 + $0x8] sm:$0xff]   ;;  %s7633_s25 = scalar_lea.vmem [#allocation5], %s6996_s8  ;;  %v5475_v36 = vld [vmem:[%s7014_s1 + $0x10] sm:$0xff]   ;;  %vm1424_vm1 = vcmask 261120   ;;  %vm1583_vm3 = vcmask 64512  }
 0x247   : > { %5169 = vmatpush3.bf16.xpose.msra.mxu0 %v5469_v12  ;;  %5177 = vmatpush3.bf16.xpose.msra.mxu1 %v5470_v14  ;;  %v4822_v29 = vld [vmem:[%s7633_s25] ss:$0 sm:$0xff]  ;;  %v5473_v33 = vld [vmem:[%s7026_s23] sm:$0xff]   ;;  %v5474_v35 = vld [vmem:[%s7026_s23 + $0x8] sm:$0xff]   ;;  %s7636_s29 = scalar_lea.vmem [#allocation17], %s6996_s8 }
 0x248   : > { %5170 = vmatprep.subr.bf16.mxu0 %v6246_v13  ;;  %5178 = vmatprep.subr.bf16.mxu1 %v6246_v13  ;;  %v5476_v37 = vld [vmem:[%s7014_s1 + $0x18] sm:$0xff]   ;;  %v5477_v38 = vld [vmem:[%s7026_s23 + $0x10] sm:$0xff]   ;;  %v4826_v40 = vld [vmem:[%s7037_s0] ss:$0 sm:$0xff] }
 0x249   : > { %5172 = vmatprep.mubr.msk.bf16.mxu0 %vm6247_vm0, %v6246_v13  ;;  %5180 = vmatprep.mubr.msk.bf16.mxu1 %vm6247_vm0, %v6246_v13  ;;  %v5478_v39 = vld [vmem:[%s7026_s23 + $0x18] sm:$0xff]   ;;  %v4823_v43 = vld [vmem:[%s7030_s2] ss:$0 sm:$0xff]  ;;  %v4829_v54 = vld [vmem:[%s7041_s30] ss:$0 sm:$0xff] }
 0x24a   : > { %v4859_v1 = vld [vmem:[%s7041_s30 + $0x1] ss:$0 sm:$0xff] }
 0x24b   : > { %v1183_v2 = vld [vmem:[#allocation2] sm:$0xff]  ;;  %v1184_v3 = vld [vmem:[#allocation2 + $0x8] sm:$0xff] }
 0x24c   : > { %1192 = vadd.xlane.f32.xlu0 %v1183_v2 }
 0x24f   : > { %5171 = vmatpush3.bf16.xpose.msra.mxu0 %v5471_v15  ;;  %5179 = vmatpush3.bf16.xpose.msra.mxu1 %v5472_v16 }
 0x250   : > { %1194 = vadd.xlane.f32.xlu0 %v1184_v3  ;;  %5184 = vmatprep.subr.bf16.mxu0 %v6246_v13 }
 0x251   : > { %5192 = vmatprep.subr.mxu1 %v6246_v13 }
 0x2d9   : > { %v1193_v4 = vpop.xlane.xlu0 %1192 }
 0x2da   : > { %v1197_v5 = vmul.f32 0.0078125, %v1193_v4 }
 0x2dc   : > { %v1199_v6 = vsub.f32 %v1183_v2, %v1197_v5 }
 0x2dd   : > { %v1195_v7 = vpop.xlane.xlu0 %1194 }
 0x2de   : > { %v1198_v8 = vmul.f32 0.0078125, %v1195_v7  ;;  %v1201_v9 = vmul.f32 %v1199_v6, %v1199_v6 }
 0x2e0   : > { %v1200_v10 = vsub.f32 %v1184_v3, %v1198_v8  ;;  %1203 = vadd.xlane.f32.xlu1 %v1201_v9  ;;  %v1185_v8 = vlaneseq }
 0x2e2   : > { %v1202_v11 = vmul.f32 %v1200_v10, %v1200_v10  ;;  %v7164_v9 = vshrl.u32 %v1185_v8, 7 }
 0x2e4   : > { %1205 = vadd.xlane.f32.xlu1 %v1202_v11 }
 0x36d   : > { %v1204_v17 = vpop.xlane.xlu1 %1203 }
 0x36e   : > { %v1207_v18 = vmul.f32 0.0078125, %v1204_v17 }
 0x370   : > { %v1209_v19 = vadd.f32 1e-05, %v1207_v18 }
 0x371   : > { %v1206_v20 = vpop.xlane.xlu1 %1205 }
 0x372   : > { %5581 = vrsqrt.f32 %v1209_v19  ;;  %v1208_v21 = vmul.f32 0.0078125, %v1206_v20 }
 0x374   : > { %v1210_v22 = vadd.f32 1e-05, %v1208_v21 }
 0x376   : > { %5583 = vrsqrt.f32 %v1210_v22 }
 0x37c   : > { %v5582_v23 = vpop.eup %5581 }
 0x37d   : > { %v1213_v24 = vmul.f32 %v5582_v23, %v1199_v6 }
 0x37f   : > { %v1221_v27 = vmul.f32 %v4821_v25, %v1213_v24 }
 0x380   : > { %v5584_v26 = vpop.eup %5583 }
 0x381   : > { %v1214_v28 = vmul.f32 %v5584_v26, %v1200_v10  ;;  %v1229_v31 = vadd.f32 %v4822_v29, %v1221_v27  ;;  %v1188_v10 = vand.u32 127, %v1185_v8 }
 0x383   : > { %v1222_v30 = vmul.f32 %v4821_v25, %v1214_v28  ;;  %vm7167_vm2 = vcmp.le.s32.totalorder %v1188_v10, %v7164_v9 }
 0x385   : > { %v1230_v32 = vadd.f32 %v4822_v29, %v1222_v30 }
 0x387   : > { %v7114_v34 = vpack.c.bf16 %v1230_v32, %v1229_v31 }
 0x389   : > { %5173 = vmatmul.mubr.bf16.vlgmr.msra.gmra.mrb[0].mxu0 %v7114_v34  ;;  %5181 = vmatmul.mubr.bf16.vlgmr.msra.gmra.mrb[0].mxu1 %v7114_v34 }
 0x38a   : > { %5185 = vmatpush3.bf16.xpose.msra.mxu0 %v5473_v33  ;;  %5188 = vmatprep.mubr.msk.bf16.mxu0 %vm6247_vm0, %v6246_v13 }
 0x38b   : > { %5186 = vmatprep.subr.bf16.mxu0 %v6246_v13  ;;  %5194 = vmatprep.mubr.msk.f32.mxu1 %vm6247_vm0, %v6246_v13 }
 0x392   : > { %5187 = vmatpush3.bf16.xpose.msra.mxu0 %v5474_v35 }
 0x393   : > { %5212 = vmatprep.subr.bf16.mxu0 %v6246_v13 }
 0x399   : > { %5189 = vmatmul.mubr.bf16.vlgmr.msra.gmra.mrb[4].mxu0 %v7114_v34 }
 0x39a   : > { %5213 = vmatpush3.bf16.xpose.msra.mxu0 %v5475_v36  ;;  %5216 = vmatprep.mubr.msk.bf16.mxu0 %vm6247_vm0, %v6246_v13 }
 0x39b   : > { %5214 = vmatprep.subr.bf16.mxu0 %v6246_v13 }
 0x3a2   : > { %5215 = vmatpush3.bf16.xpose.msra.mxu0 %v5476_v37 }
 0x3a3   : > { %5228 = vmatprep.subr.bf16.mxu0 %v6246_v13 }
 0x3a9   : > { %5217 = vmatmul.mubr.bf16.vlgmr.msra.gmra.mrb[8].mxu0 %v7114_v34 }
 0x3aa   : > { %5229 = vmatpush3.bf16.xpose.msra.mxu0 %v5477_v38  ;;  %5232 = vmatprep.mubr.msk.bf16.mxu0 %vm6247_vm0, %v6246_v13 }
 0x3ab   : > { %5230 = vmatprep.subr.bf16.mxu0 %v6246_v13 }
 0x3b2   : > { %5231 = vmatpush3.bf16.xpose.msra.mxu0 %v5478_v39 }
 0x3b3   : > { %5251 = vmatprep.subr.mxu0 %v6246_v13 }
 0x3b9   : > { %5233 = vmatmul.mubr.bf16.vlgmr.msra.gmra.mrb[12].mxu0 %v7114_v34 }
 0x3ba   : > { %5253 = vmatprep.mubr.msk.f32.mxu0 %vm6247_vm0, %v6246_v13 }
 0x45c   : > { %v1289_v41 = vpop.f32.mrb[0].mxu0  ;;  %v1353_v42 = vpop.f32.mrb[0].mxu1 }
 0x45d   : > { %v1354_v44 = vadd.f32 %v4826_v40, %v1353_v42  ;;  %v5174_v45 = vpop.f32.mrb[1].mxu0  ;;  %v5182_v46 = vpop.f32.mrb[1].mxu1  ;;  %v1290_v51 = vadd.f32 %v4823_v43, %v1289_v41  ;;  %v5480_v41 = vld [vmem:[%s7017_s20 + $0x18] sm:$0xff]  }
 0x45e   : > { %v1292_v47 = vpop.f32.mrb[2].mxu0  ;;  %v1356_v48 = vpop.f32.mrb[2].mxu1 }
 0x45f   : > { %v5175_v49 = vpop.f32.mrb[3].mxu0  ;;  %v5183_v50 = vpop.f32.mrb[3].mxu1  ;;  %5193 = vmatpush3.xpose.msk.msra.mxu1 %vm1424_vm1, %v1354_v44  ;;  %v1357_v52 = vadd.f32 %v4826_v40, %v1356_v48  ;;  %v1293_v53 = vadd.f32 %v4823_v43, %v1292_v47  ;;  %v5479_v40 = vld [vmem:[%s7017_s20 + $0x10] sm:$0xff]   ;;  %v4851_v47 = vld [vmem:[%s7037_s0 + $0x1] ss:$0 sm:$0xff] }
 0x460   : > { %5197 = vmatprep.subr.mxu1 %v6246_v13  ;;  %v4843_v49 = vld [vmem:[%s7030_s2 + $0x1] ss:$0 sm:$0xff] }
 0x462   : > { %5195 = vmatmul.mubr.msk.f32.vlgmr.msra.gmra.mrb[4].mxu1 %vm1424_vm1, %v1290_v51 }
 0x463   : > { %5198 = vmatpush3.xpose.msk.msra.mxu1 %vm1424_vm1, %v1357_v52  ;;  %5199 = vmatprep.mubr.msk.f32.mxu1 %vm6247_vm0, %v6246_v13 }
 0x464   : > { %5202 = vmatprep.subr.mxu1 %v6246_v13 }
 0x466   : > { %5200 = vmatmul.mubr.msk.f32.vlgmr.msra.gmra.mrb[6].mxu1 %vm1424_vm1, %v1293_v53 }
 0x467   : > { %5204 = vmatprep.mubr.msk.f32.mxu1 %vm6247_vm0, %v6246_v13 }
 0x46c   : > { %v1417_v55 = vpop.f32.mrb[4].mxu0 }
 0x46d   : > { %v1418_v56 = vadd.f32 %v4829_v54, %v1417_v55  ;;  %v5190_v57 = vpop.f32.mrb[5].mxu0 }
 0x46e   : > { %v1420_v58 = vpop.f32.mrb[6].mxu0 }
 0x46f   : > { %v1421_v59 = vadd.f32 %v4829_v54, %v1420_v58  ;;  %v5191_v60 = vpop.f32.mrb[7].mxu0  ;;  %5203 = vmatpush3.msra.mxu1 %v1418_v56 }
 0x470   : > { %5207 = vmatprep.subr.mxu1 %v6246_v13 }
 0x47c   : > { %v7156_v61 = vpop.f32.mrb[8].mxu0 }
 0x47d   : > { %v5218_v62 = vpop.f32.mrb[9].mxu0  ;;  %v1817_v54 = vadd.f32 %v4843_v49, %v7156_v61 }
 0x47e   : > { %v7158_v63 = vpop.f32.mrb[10].mxu0 }
 0x47f   : > { %v5219_v0 = vpop.f32.mrb[11].mxu0  ;;  %v1820_v56 = vadd.f32 %v4843_v49, %v7158_v63 }
 0x48c   : > { %v1948_v2 = vpop.f32.mrb[12].mxu0 }
 0x48d   : > { %v7161_v3 = vadd.f32 %v4859_v1, %v1948_v2  ;;  %v5234_v4 = vpop.f32.mrb[13].mxu0 }
 0x48e   : > { %v1951_v5 = vpop.f32.mrb[14].mxu0 }
 0x48f   : > { %v1952_v6 = vadd.f32 %v4859_v1, %v1951_v5  ;;  %v5235_v7 = vpop.f32.mrb[15].mxu0 }
 0x491   : > { %5252 = vmatpush3.msra.mxu0 %v1952_v6 }
 0x492   : > { %5264 = vmatprep.subr.bf16.mxu0 %v6246_v13 }
 0x535   : > { %v1497_v11 = vpop.f32.mrb[4].mxu1 }
 0x536   : > { %v1577_v14 = vmul.f32 0.17677669, %v1497_v11  ;;  %v5196_v15 = vpop.f32.mrb[5].mxu1 }
 0x538   : > { %v1581_v16 = vsel %vm7167_vm2, %v1577_v14, -3.4028235e+38 }
 0x539   : > { %v1573_v17 = vpop.f32.mrb[6].mxu1  ;;  %v1584_v18 = vsel %vm1583_vm3, %v1581_v16, -inf }
 0x53a   : > { %v1578_v19 = vmul.f32 0.17677669, %v1573_v17  ;;  %1585 = vmax.xlane.f32.xlu0 %v1584_v18  ;;  %v5201_v20 = vpop.f32.mrb[7].mxu1 }
 0x53c   : > { %v1582_v21 = vsel %vm7167_vm2, %v1578_v19, -3.4028235e+38  ;;  %v5485_v19 = vld [vmem:[%s7047_s4 + $0x10] sm:$0xff]  }
 0x53d   : > { %v1587_v22 = vsel %vm1583_vm3, %v1582_v21, -inf }
 0x53e   : > { %1588 = vmax.xlane.f32.xlu1 %v1587_v22  ;;  %v5481_v22 = vld [vmem:[%s7047_s4] sm:$0xff]  }
 0x5c7   : > { %v1586_v23 = vpop.xlane.xlu0 %1585 }
 0x5c8   : > { %v1590_v24 = vsub.f32 %v1581_v16, %v1586_v23 }
 0x5ca   : > { %v1592_v25 = vmul.f32 1.442695, %v1590_v24  ;;  %v5486_v24 = vld [vmem:[%s7047_s4 + $0x18] sm:$0xff]  }
 0x5cb   : > { %v1589_v26 = vpop.xlane.xlu1 %1588 }
 0x5cc   : > { %5585 = vpow2.f32 %v1592_v25  ;;  %v1591_v27 = vsub.f32 %v1582_v21, %v1589_v26  ;;  %v5482_v25 = vld [vmem:[%s7047_s4 + $0x8] sm:$0xff]  }
 0x5cd   : > { %v5483_v26 = vld [vmem:[%s7017_s20 + $0x20] sm:$0xff]  }
 0x5ce   : > { %v1594_v28 = vmul.f32 1.442695, %v1591_v27  ;;  %v5484_v27 = vld [vmem:[%s7017_s20 + $0x28] sm:$0xff]  }
 0x5d0   : > { %5587 = vpow2.f32 %v1594_v28 }
 0x5d6   : > { %v5586_v29 = vpop.eup %5585 }
 0x5d7   : > { %v1596_v30 = vsel %vm1583_vm3, %v5586_v29, 0.0 }
 0x5d8   : > { %1597 = vadd.xlane.f32.xlu0 %v1596_v30 }
 0x5da   : > { %v5588_v31 = vpop.eup %5587 }
 0x5db   : > { %v1599_v32 = vsel %vm1583_vm3, %v5588_v31, 0.0 }
 0x5dc   : > { %1600 = vadd.xlane.f32.xlu1 %v1599_v32 }
 0x665   : > { %v1598_v33 = vpop.xlane.xlu0 %1597 }
 0x666   : > { %5589 = vrcp.f32 %v1598_v33 }
 0x669   : > { %v1601_v35 = vpop.xlane.xlu1 %1600 }
 0x66a   : > { %5591 = vrcp.f32 %v1601_v35 }
 0x670   : > { %v5590_v36 = vpop.eup %5589 }
 0x671   : > { %v1604_v37 = vmul.f32 %v5590_v36, %v5586_v29  ;;  %v5488_v36 = vld [vmem:[%s7014_s1 + $0x28] sm:$0xff]  }
 0x673   : > { %5205 = vmatmul.mubr.msk.f32.vlgmr.msra.gmra.mrb[8].mxu1 %vm1583_vm3, %v1604_v37 }
 0x674   : > { %v5592_v38 = vpop.eup %5591  ;;  %5208 = vmatpush3.msra.mxu1 %v1421_v59  ;;  %5209 = vmatprep.mubr.msk.f32.mxu1 %vm6247_vm0, %v6246_v13 }
 0x675   : > { %v1605_v39 = vmul.f32 %v5592_v38, %v5588_v31  ;;  %5220 = vmatprep.subr.bf16.mxu1 %v6246_v13  ;;  %v5487_v31 = vld [vmem:[%s7014_s1 + $0x20] sm:$0xff]  }
 0x677   : > { %5210 = vmatmul.mubr.msk.f32.vlgmr.msra.gmra.mrb[10].mxu1 %vm1583_vm3, %v1605_v39 }
 0x678   : > { %5224 = vmatprep.mubr.msk.bf16.mxu1 %vm6247_vm0, %v6246_v13 }
 0x67b   : > { %5221 = vmatpush3.bf16.xpose.msra.mxu1 %v5479_v40  ;;  %v5489_v40 = vld [vmem:[%s7026_s23 + $0x20] sm:$0xff]  }
 0x67c   : > { %5222 = vmatprep.subr.bf16.mxu1 %v6246_v13 }
 0x683   : > { %5223 = vmatpush3.bf16.xpose.msra.mxu1 %v5480_v41  ;;  %v5490_v41 = vld [vmem:[%s7026_s23 + $0x28] sm:$0xff]  }
 0x684   : > { %5236 = vmatprep.subr.mxu1 %v6246_v13 }
 0x68a   : > { %5225 = vmatmul.mubr.bf16.vlgmr.msra.gmra.mrb[12].mxu1 %v7114_v34 }
 0x68b   : > { %5238 = vmatprep.mubr.msk.f32.mxu1 %vm6247_vm0, %v6246_v13 }
 0x746   : > { %v7193_v42 = vpop.f32.mrb[8].mxu1 }
 0x747   : > { %v5206_v43 = vpop.f32.mrb[9].mxu1 }
 0x74a   : > { %v7195_v44 = vpop.f32.mrb[10].mxu1 }
 0x74b   : > { %v1752_v45 = vpack.c.bf16 %v7195_v44, %v7193_v42  ;;  %v5211_v46 = vpop.f32.mrb[11].mxu1  ;;  %v4891_v42 = vld [vmem:[%s7037_s0 + $0x2] ss:$0 sm:$0xff] }
 0x75d   : > { %v1882_v48 = vpop.f32.mrb[12].mxu1 }
 0x75e   : > { %v1883_v50 = vadd.f32 %v4851_v47, %v1882_v48  ;;  %v5226_v51 = vpop.f32.mrb[13].mxu1 }
 0x75f   : > { %v1885_v52 = vpop.f32.mrb[14].mxu1 }
 0x760   : > { %v5227_v53 = vpop.f32.mrb[15].mxu1  ;;  %5237 = vmatpush3.xpose.msk.msra.mxu1 %vm1424_vm1, %v1883_v50  ;;  %v1886_v55 = vadd.f32 %v4851_v47, %v1885_v52 }
 0x761   : > { %5241 = vmatprep.subr.mxu1 %v6246_v13 }
 0x763   : > { %5239 = vmatmul.mubr.msk.f32.vlgmr.msra.gmra.mrb[16].mxu1 %vm1424_vm1, %v1817_v54 }
 0x764   : > { %5242 = vmatpush3.xpose.msk.msra.mxu1 %vm1424_vm1, %v1886_v55  ;;  %5243 = vmatprep.mubr.msk.f32.mxu1 %vm6247_vm0, %v6246_v13  ;;  %v4883_v55 = vld [vmem:[%s7030_s2 + $0x2] ss:$0 sm:$0xff] }
 0x765   : > { %5246 = vmatprep.subr.mxu1 %v6246_v13 }
 0x767   : > { %5244 = vmatmul.mubr.msk.f32.vlgmr.msra.gmra.mrb[18].mxu1 %vm1424_vm1, %v1820_v56 }
 0x768   : > { %5247 = vmatpush3.msra.mxu1 %v7161_v3  ;;  %5248 = vmatprep.mubr.msk.f32.mxu1 %vm6247_vm0, %v6246_v13 }
 0x769   : > { %5256 = vmatprep.subr.bf16.mxu1 %v6246_v13 }
 0x836   : > { %v2027_v57 = vpop.f32.mrb[16].mxu1 }
 0x837   : > { %v2107_v58 = vmul.f32 0.17677669, %v2027_v57  ;;  %v5240_v59 = vpop.f32.mrb[17].mxu1 }
 0x839   : > { %v2109_v60 = vsel %vm7167_vm2, %v2107_v58, -3.4028235e+38 }
 0x83a   : > { %v2103_v61 = vpop.f32.mrb[18].mxu1  ;;  %v2111_v62 = vsel %vm1583_vm3, %v2109_v60, -inf }
 0x83b   : > { %v2108_v63 = vmul.f32 0.17677669, %v2103_v61  ;;  %2112 = vmax.xlane.f32.xlu0 %v2111_v62  ;;  %v5245_v0 = vpop.f32.mrb[19].mxu1  ;;  %v4899_v62 = vld [vmem:[%s7041_s30 + $0x2] ss:$0 sm:$0xff] }
 0x83d   : > { %v2110_v1 = vsel %vm7167_vm2, %v2108_v63, -3.4028235e+38 }
 0x83e   : > { %v2114_v2 = vsel %vm1583_vm3, %v2110_v1, -inf }
 0x83f   : > { %2115 = vmax.xlane.f32.xlu1 %v2114_v2 }
 0x8c8   : > { %v2113_v3 = vpop.xlane.xlu0 %2112 }
 0x8c9   : > { %v2117_v4 = vsub.f32 %v2109_v60, %v2113_v3 }
 0x8cb   : > { %v2119_v5 = vmul.f32 1.442695, %v2117_v4 }
 0x8cc   : > { %v2116_v6 = vpop.xlane.xlu1 %2115 }
 0x8cd   : > { %5593 = vpow2.f32 %v2119_v5  ;;  %v2118_v7 = vsub.f32 %v2110_v1, %v2116_v6 }
 0x8cf   : > { %v2121_v8 = vmul.f32 1.442695, %v2118_v7 }
 0x8d1   : > { %5595 = vpow2.f32 %v2121_v8 }
 0x8d7   : > { %v5594_v10 = vpop.eup %5593 }
 0x8d8   : > { %v2123_v11 = vsel %vm1583_vm3, %v5594_v10, 0.0 }
 0x8d9   : > { %2124 = vadd.xlane.f32.xlu0 %v2123_v11 }
 0x8db   : > { %v5596_v14 = vpop.eup %5595 }
 0x8dc   : > { %v2126_v15 = vsel %vm1583_vm3, %v5596_v14, 0.0 }
 0x8dd   : > { %2127 = vadd.xlane.f32.xlu1 %v2126_v15 }
 0x966   : > { %v2125_v16 = vpop.xlane.xlu0 %2124 }
 0x967   : > { %5597 = vrcp.f32 %v2125_v16 }
 0x96a   : > { %v2128_v17 = vpop.xlane.xlu1 %2127 }
 0x96b   : > { %5599 = vrcp.f32 %v2128_v17 }
 0x971   : > { %v5598_v18 = vpop.eup %5597 }
 0x972   : > { %v2131_v20 = vmul.f32 %v5598_v18, %v5594_v10 }
 0x974   : > { %5249 = vmatmul.mubr.msk.f32.vlgmr.msra.gmra.mrb[20].mxu1 %vm1583_vm3, %v2131_v20 }
 0x975   : > { %v5600_v21 = vpop.eup %5599  ;;  %5257 = vmatpush3.bf16.msra.mxu1 %v5485_v19  ;;  %5260 = vmatprep.mubr.msk.bf16.mxu1 %vm6247_vm0, %v6246_v13 }
 0x976   : > { %v2132_v23 = vmul.f32 %v5600_v21, %v5596_v14  ;;  %5258 = vmatprep.subr.bf16.mxu1 %v6246_v13 }
 0x978   : > { %5254 = vmatmul.mubr.msk.f32.vlgmr.msra.gmra.mrb[16].mxu0 %vm1583_vm3, %v2132_v23 }
 0x979   : > { %5265 = vmatpush3.bf16.msra.mxu0 %v5481_v22  ;;  %5268 = vmatprep.mubr.msk.bf16.mxu0 %vm6247_vm0, %v6246_v13 }
 0x97a   : > { %5266 = vmatprep.subr.bf16.mxu0 %v6246_v13  ;;  %5259 = vmatpush3.bf16.msra.mxu1 %v5486_v24 }
 0x97b   : > { %5272 = vmatprep.subr.bf16.mxu1 %v6246_v13 }
 0x97d   : > { %5267 = vmatpush3.bf16.msra.mxu0 %v5482_v25 }
 0x97e   : > { %5280 = vmatprep.subr.bf16.mxu0 %v6246_v13 }
 0x980   : > { %5269 = vmatmul.mubr.msk.bf16.vlgmr.msra.gmra.mrb[20].mxu0 %vm1424_vm1, %v1752_v45 }
 0x981   : > { %5284 = vmatprep.mubr.msk.bf16.mxu0 %vm6247_vm0, %v6246_v13 }
 0x986   : > { %5281 = vmatpush3.bf16.xpose.msra.mxu0 %v5483_v26 }
 0x987   : > { %5282 = vmatprep.subr.bf16.mxu0 %v6246_v13 }
 0x98e   : > { %5283 = vmatpush3.bf16.xpose.msra.mxu0 %v5484_v27 }
 0x98f   : > { %5296 = vmatprep.subr.mxu0 %v6246_v13 }
 0x995   : > { %5285 = vmatmul.mubr.bf16.vlgmr.msra.gmra.mrb[24].mxu0 %v7114_v34 }
 0x996   : > { %5298 = vmatprep.mubr.msk.f32.mxu0 %vm6247_vm0, %v6246_v13 }
 0xa47   : > { %v2202_v28 = vpop.f32.mrb[20].mxu1 }
 0xa48   : > { %v5250_v29 = vpop.f32.mrb[21].mxu1 }
 0xa49   : > { %v5496_v29 = vld [vmem:[%s7047_s4 + $0x28] sm:$0xff]  }
 0xa4b   : > { %v2275_v30 = vpop.f32.mrb[16].mxu0 }
 0xa4c   : > { %v2279_v32 = vpack.c.bf16 %v2275_v30, %v2202_v28  ;;  %v5255_v33 = vpop.f32.mrb[17].mxu0  ;;  %v5495_v28 = vld [vmem:[%s7047_s4 + $0x20] sm:$0xff]  }
 0xa4e   : > { %5261 = vmatmul.mubr.msk.bf16.vlgmr.msra.gmra.mrb[24].mxu1 %vm1424_vm1, %v2279_v32 }
 0xa4f   : > { %5273 = vmatpush3.bf16.xpose.msra.mxu1 %v5487_v31  ;;  %5276 = vmatprep.mubr.msk.bf16.mxu1 %vm6247_vm0, %v6246_v13 }
 0xa50   : > { %5274 = vmatprep.subr.bf16.mxu1 %v6246_v13 }
 0xa53   : > { %v2390_v35 = vpop.f32.mrb[20].mxu0 }
 0xa54   : > { %v5270_v37 = vpop.f32.mrb[21].mxu0 }
 0xa55   : > { %v2393_v38 = vpop.f32.mrb[22].mxu0  ;;  %v5491_v37 = vld [vmem:[%s7014_s1 + $0x30] sm:$0xff]  }
 0xa56   : > { %v5271_v39 = vpop.f32.mrb[23].mxu0 }
 0xa57   : > { %5275 = vmatpush3.bf16.xpose.msra.mxu1 %v5488_v36  ;;  %v5493_v39 = vld [vmem:[%s7026_s23 + $0x30] sm:$0xff]  }
 0xa58   : > { %5288 = vmatprep.subr.bf16.mxu1 %v6246_v13 }
 0xa5e   : > { %5277 = vmatmul.mubr.bf16.vlgmr.msra.gmra.mrb[28].mxu1 %v7114_v34 }
 0xa5f   : > { %5289 = vmatpush3.bf16.xpose.msra.mxu1 %v5489_v40  ;;  %5292 = vmatprep.mubr.msk.bf16.mxu1 %vm6247_vm0, %v6246_v13  ;;  %v5494_v40 = vld [vmem:[%s7026_s23 + $0x38] sm:$0xff]  }
 0xa60   : > { %5290 = vmatprep.subr.bf16.mxu1 %v6246_v13 }
 0xa67   : > { %5291 = vmatpush3.bf16.xpose.msra.mxu1 %v5490_v41 }
 0xa68   : > { %v2522_v43 = vpop.f32.mrb[24].mxu0  ;;  %5316 = vmatprep.subr.bf16.mxu1 %v6246_v13 }
 0xa69   : > { %v2523_v44 = vadd.f32 %v4891_v42, %v2522_v43  ;;  %v5286_v45 = vpop.f32.mrb[25].mxu0 }
 0xa6a   : > { %v2525_v46 = vpop.f32.mrb[26].mxu0 }
 0xa6b   : > { %v2526_v47 = vadd.f32 %v4891_v42, %v2525_v46  ;;  %v5287_v48 = vpop.f32.mrb[27].mxu0  ;;  %5297 = vmatpush3.xpose.msk.msra.mxu0 %vm1424_vm1, %v2523_v44  ;;  %v5497_v44 = vld [vmem:[%s7017_s20 + $0x30] sm:$0xff]  }
 0xa6c   : > { %5301 = vmatprep.subr.mxu0 %v6246_v13 }
 0xa6e   : > { %5293 = vmatmul.mubr.bf16.vlgmr.msra.gmra.mrb[32].mxu1 %v7114_v34 }
 0xa6f   : > { %5320 = vmatprep.mubr.msk.bf16.mxu1 %vm6247_vm0, %v6246_v13  ;;  %5317 = vmatpush3.bf16.msra.mxu1 %v5495_v28 }
 0xa70   : > { %5318 = vmatprep.subr.bf16.mxu1 %v6246_v13 }
 0xa73   : > { %5319 = vmatpush3.bf16.msra.mxu1 %v5496_v29 }
 0xa74   : > { %5332 = vmatprep.subr.bf16.mxu1 %v6246_v13 }
 0xb21   : > { %v2334_v49 = vpop.f32.mrb[24].mxu1 }
 0xb22   : > { %v7270_v50 = vadd.f32 %v2390_v35, %v2334_v49  ;;  %v5262_v51 = vpop.f32.mrb[25].mxu1 }
 0xb23   : > { %v2337_v52 = vpop.f32.mrb[26].mxu1 }
 0xb24   : > { %v7272_v53 = vadd.f32 %v2393_v38, %v2337_v52  ;;  %v5263_v54 = vpop.f32.mrb[27].mxu1  ;;  %v5492_v38 = vld [vmem:[%s7014_s1 + $0x38] sm:$0xff]   ;;  %s7637_s1 = scalar_lea.vmem [#allocation19], %s6996_s8 }
 0xb31   : > { %v2456_v56 = vpop.f32.mrb[28].mxu1 }
 0xb32   : > { %v2457_v57 = vadd.f32 %v4883_v55, %v2456_v56  ;;  %v5278_v58 = vpop.f32.mrb[29].mxu1  ;;  %v4936_v56 = vld [vmem:[%s7041_s30 + $0x3] ss:$0 sm:$0xff] }
 0xb33   : > { %v2459_v59 = vpop.f32.mrb[30].mxu1 }
 0xb34   : > { %v5279_v60 = vpop.f32.mrb[31].mxu1  ;;  %5299 = vmatmul.mubr.msk.f32.vlgmr.msra.gmra.mrb[18].mxu0 %vm1424_vm1, %v2457_v57  ;;  %v2460_v61 = vadd.f32 %v4883_v55, %v2459_v59 }
 0xb35   : > { %5302 = vmatpush3.xpose.msk.msra.mxu0 %vm1424_vm1, %v2526_v47  ;;  %5303 = vmatprep.mubr.msk.f32.mxu0 %vm6247_vm0, %v6246_v13  ;;  %v5498_v47 = vld [vmem:[%s7017_s20 + $0x38] sm:$0xff]   ;;  %s7638_s20 = scalar_lea.vmem [#allocation20], %s6996_s8 }
 0xb36   : > { %5306 = vmatprep.subr.mxu0 %v6246_v13 }
 0xb38   : > { %5304 = vmatmul.mubr.msk.f32.vlgmr.msra.gmra.mrb[28].mxu0 %vm1424_vm1, %v2460_v61 }
 0xb39   : > { %5308 = vmatprep.mubr.msk.f32.mxu0 %vm6247_vm0, %v6246_v13 }
 0xb41   : > { %v2588_v63 = vpop.f32.mrb[32].mxu1 }
 0xb42   : > { %v2589_v0 = vadd.f32 %v4899_v62, %v2588_v63  ;;  %v5294_v1 = vpop.f32.mrb[33].mxu1 }
 0xb43   : > { %v2591_v2 = vpop.f32.mrb[34].mxu1  ;;  %v4928_v1 = vld [vmem:[%s7037_s0 + $0x3] ss:$0 sm:$0xff] }
 0xb44   : > { %v2592_v3 = vadd.f32 %v4899_v62, %v2591_v2  ;;  %v5295_v4 = vpop.f32.mrb[35].mxu1  ;;  %5307 = vmatpush3.msra.mxu0 %v2589_v0 }
 0xb45   : > { %5311 = vmatprep.subr.mxu0 %v6246_v13 }
 0xc07   : > { %v2667_v5 = vpop.f32.mrb[18].mxu0 }
 0xc08   : > { %v2747_v6 = vmul.f32 0.17677669, %v2667_v5  ;;  %v5300_v7 = vpop.f32.mrb[19].mxu0 }
 0xc0a   : > { %v2749_v8 = vsel %vm7167_vm2, %v2747_v6, -3.4028235e+38 }
 0xc0b   : > { %v2743_v10 = vpop.f32.mrb[28].mxu0  ;;  %v2751_v11 = vsel %vm1583_vm3, %v2749_v8, -inf }
 0xc0c   : > { %v2748_v14 = vmul.f32 0.17677669, %v2743_v10  ;;  %2752 = vmax.xlane.f32.xlu0 %v2751_v11  ;;  %v5305_v15 = vpop.f32.mrb[29].mxu0 }
 0xc0e   : > { %v2750_v16 = vsel %vm7167_vm2, %v2748_v14, -3.4028235e+38 }
 0xc0f   : > { %v2754_v17 = vsel %vm1583_vm3, %v2750_v16, -inf }
 0xc10   : > { %2755 = vmax.xlane.f32.xlu1 %v2754_v17 }
 0xc99   : > { %v2753_v18 = vpop.xlane.xlu0 %2752 }
 0xc9a   : > { %v2757_v19 = vsub.f32 %v2749_v8, %v2753_v18 }
 0xc9c   : > { %v2759_v20 = vmul.f32 1.442695, %v2757_v19 }
 0xc9d   : > { %v2756_v21 = vpop.xlane.xlu1 %2755 }
 0xc9e   : > { %5601 = vpow2.f32 %v2759_v20  ;;  %v2758_v22 = vsub.f32 %v2750_v16, %v2756_v21 }
 0xca0   : > { %v2761_v23 = vmul.f32 1.442695, %v2758_v22 }
 0xca2   : > { %5603 = vpow2.f32 %v2761_v23 }
 0xca8   : > { %v5602_v24 = vpop.eup %5601 }
 0xca9   : > { %v2763_v25 = vsel %vm1583_vm3, %v5602_v24, 0.0 }
 0xcaa   : > { %2764 = vadd.xlane.f32.xlu0 %v2763_v25 }
 0xcac   : > { %v5604_v26 = vpop.eup %5603 }
 0xcad   : > { %v2766_v27 = vsel %vm1583_vm3, %v5604_v26, 0.0 }
 0xcae   : > { %2767 = vadd.xlane.f32.xlu1 %v2766_v27 }
 0xd37   : > { %v2765_v30 = vpop.xlane.xlu0 %2764 }
 0xd38   : > { %5605 = vrcp.f32 %v2765_v30 }
 0xd3b   : > { %v2768_v31 = vpop.xlane.xlu1 %2767 }
 0xd3c   : > { %5607 = vrcp.f32 %v2768_v31 }
 0xd42   : > { %v5606_v32 = vpop.eup %5605 }
 0xd43   : > { %v2771_v33 = vmul.f32 %v5606_v32, %v5602_v24 }
 0xd45   : > { %5309 = vmatmul.mubr.msk.f32.vlgmr.msra.gmra.mrb[30].mxu0 %vm1583_vm3, %v2771_v33 }
 0xd46   : > { %v5608_v35 = vpop.eup %5607  ;;  %5312 = vmatpush3.msra.mxu0 %v2592_v3  ;;  %5313 = vmatprep.mubr.msk.f32.mxu0 %vm6247_vm0, %v6246_v13  ;;  %v4920_v3 = vld [vmem:[%s7030_s2 + $0x3] ss:$0 sm:$0xff] }
 0xd47   : > { %v2772_v36 = vmul.f32 %v5608_v35, %v5604_v26  ;;  %5324 = vmatprep.subr.bf16.mxu0 %v6246_v13 }
 0xd49   : > { %5314 = vmatmul.mubr.msk.f32.vlgmr.msra.gmra.mrb[32].mxu0 %vm1583_vm3, %v2772_v36 }
 0xd4a   : > { %5328 = vmatprep.mubr.msk.bf16.mxu0 %vm6247_vm0, %v6246_v13 }
 0xd4d   : > { %5325 = vmatpush3.bf16.xpose.msra.mxu0 %v5491_v37 }
 0xd4e   : > { %5326 = vmatprep.subr.bf16.mxu0 %v6246_v13 }
 0xd55   : > { %5327 = vmatpush3.bf16.xpose.msra.mxu0 %v5492_v38 }
 0xd56   : > { %5340 = vmatprep.subr.bf16.mxu0 %v6246_v13 }
 0xd5c   : > { %5329 = vmatmul.mubr.bf16.vlgmr.msra.gmra.mrb[36].mxu0 %v7114_v34 }
 0xd5d   : > { %5341 = vmatpush3.bf16.xpose.msra.mxu0 %v5493_v39  ;;  %5344 = vmatprep.mubr.msk.bf16.mxu0 %vm6247_vm0, %v6246_v13  ;;  %v5499_v39 = vld [vmem:[%s7047_s4 + $0x30] sm:$0xff]  }
 0xd5e   : > { %5342 = vmatprep.subr.bf16.mxu0 %v6246_v13 }
 0xd65   : > { %5343 = vmatpush3.bf16.xpose.msra.mxu0 %v5494_v40  ;;  %v5500_v40 = vld [vmem:[%s7047_s4 + $0x38] sm:$0xff]  }
 0xd66   : > { %5368 = vmatprep.subr.bf16.mxu0 %v6246_v13 }
 0xd6c   : > { %5345 = vmatmul.mubr.bf16.vlgmr.msra.gmra.mrb[40].mxu0 %v7114_v34 }
 0xd6d   : > { %5372 = vmatprep.mubr.msk.bf16.mxu0 %vm6247_vm0, %v6246_v13  ;;  %5369 = vmatpush3.bf16.msra.mxu0 %v5499_v39 }
 0xd6e   : > { %5370 = vmatprep.subr.bf16.mxu0 %v6246_v13 }
 0xd71   : > { %5371 = vmatpush3.bf16.msra.mxu0 %v5500_v40 }
 0xe18   : > { %v2842_v41 = vpop.f32.mrb[30].mxu0 }
 0xe19   : > { %v5310_v42 = vpop.f32.mrb[31].mxu0 }
 0xe1c   : > { %v2915_v43 = vpop.f32.mrb[32].mxu0 }
 0xe1d   : > { %v2919_v45 = vpack.c.bf16 %v2915_v43, %v2842_v41  ;;  %v5315_v46 = vpop.f32.mrb[33].mxu0 }
 0xe1f   : > { %5321 = vmatmul.mubr.msk.bf16.vlgmr.msra.gmra.mrb[36].mxu1 %vm1424_vm1, %v2919_v45 }
 0xe20   : > { %5333 = vmatpush3.bf16.xpose.msra.mxu1 %v5497_v44  ;;  %5336 = vmatprep.mubr.msk.bf16.mxu1 %vm6247_vm0, %v6246_v13 }
 0xe21   : > { %5334 = vmatprep.subr.bf16.mxu1 %v6246_v13 }
 0xe28   : > { %5335 = vmatpush3.bf16.xpose.msra.mxu1 %v5498_v47 }
 0xe29   : > { %5348 = vmatprep.subr.mxu1 %v6246_v13 }
 0xe2f   : > { %v3042_v48 = vpop.f32.mrb[36].mxu0  ;;  %5337 = vmatmul.mubr.bf16.vlgmr.msra.gmra.mrb[40].mxu1 %v7114_v34 }
 0xe30   : > { %v5330_v49 = vpop.f32.mrb[37].mxu0  ;;  %5350 = vmatprep.mubr.msk.f32.mxu1 %vm6247_vm0, %v6246_v13  ;;  %v3043_v8 = vadd.f32 %v4920_v3, %v3042_v48 }
 0xe31   : > { %v3045_v51 = vpop.f32.mrb[38].mxu0 }
 0xe32   : > { %v5331_v52 = vpop.f32.mrb[39].mxu0 }
 0xe3f   : > { %v3174_v54 = vpop.f32.mrb[40].mxu0 }
 0xe40   : > { %v5346_v55 = vpop.f32.mrb[41].mxu0  ;;  %v3175_v10 = vadd.f32 %v4936_v56, %v3174_v54 }
 0xe41   : > { %v3177_v57 = vpop.f32.mrb[42].mxu0 }
 0xe42   : > { %v3178_v58 = vadd.f32 %v4936_v56, %v3177_v57  ;;  %v5347_v59 = vpop.f32.mrb[43].mxu0  ;;  %v5638_v56 = vld [vmem:[#allocation2 + $0x8] sm:$0xff] }
 0xef2   : > { %v2974_v60 = vpop.f32.mrb[36].mxu1 }
 0xef3   : > { %v7330_v61 = vadd.f32 %v2974_v60, %v7270_v50  ;;  %v5322_v62 = vpop.f32.mrb[37].mxu1  ;;  %v5501_v60 = vld [vmem:[%s7063_s3] ss:$16 sps:$4 sm:$0xff]  }
 0xef4   : > { %v2977_v34 = vpop.f32.mrb[38].mxu1  ;;  %v5504_v62 = vld [vmem:[%s7063_s3 + $0x8] ss:$16 sps:$4 sm:$0xff]  }
 0xef5   : > { %v7333_v63 = vadd.f32 %v2977_v34, %v7272_v53  ;;  %v5323_v0 = vpop.f32.mrb[39].mxu1  ;;  %v3046_v53 = vadd.f32 %v4920_v3, %v3045_v51  ;;  %v5637_v51 = vld [vmem:[#allocation2] sm:$0xff] }
 0xef6   : > { %v5506_v34 = vld [vmem:[%s7063_s3 + $0xc] ss:$16 sps:$4 sm:$0xff]   ;;  %v5509_v0 = vld [vmem:[%s7063_s3 + $0x24] ss:$16 sps:$4 sm:$0xff]  }
 0xef7   : > { %3878 = vmatprep.subr.bf16.mxu0 %v5506_v34  ;;  %v5555_v34 = vld [vmem:[%s7071_s17 + $0x8] sm:$0xff]  }
 0xf02   : > { %v3108_v2 = vpop.f32.mrb[40].mxu1 }
 0xf03   : > { %v3109_v4 = vadd.f32 %v4928_v1, %v3108_v2  ;;  %v5338_v5 = vpop.f32.mrb[41].mxu1  ;;  %v5510_v2 = vld [vmem:[%s7063_s3 + $0x28] ss:$16 sps:$4 sm:$0xff]  }
 0xf04   : > { %v3111_v6 = vpop.f32.mrb[42].mxu1 }
 0xf05   : > { %v5339_v7 = vpop.f32.mrb[43].mxu1  ;;  %5349 = vmatpush3.xpose.msk.msra.mxu1 %vm1424_vm1, %v3109_v4  ;;  %v3112_v50 = vadd.f32 %v4928_v1, %v3111_v6  ;;  %v5507_v1 = vld [vmem:[%s7063_s3 + $0x20] ss:$16 sps:$4 sm:$0xff]  }
 0xf06   : > { %5353 = vmatprep.subr.mxu1 %v6246_v13 }
 0xf08   : > { %5351 = vmatmul.mubr.msk.f32.vlgmr.msra.gmra.mrb[22].mxu1 %vm1424_vm1, %v3043_v8 }
 0xf09   : > { %5354 = vmatpush3.xpose.msk.msra.mxu1 %vm1424_vm1, %v3112_v50  ;;  %5355 = vmatprep.mubr.msk.f32.mxu1 %vm6247_vm0, %v6246_v13 }
 0xf0a   : > { %5358 = vmatprep.subr.mxu1 %v6246_v13 }
 0xf0c   : > { %5356 = vmatmul.mubr.msk.f32.vlgmr.msra.gmra.mrb[44].mxu1 %vm1424_vm1, %v3046_v53 }
 0xf0d   : > { %5359 = vmatpush3.msra.mxu1 %v3175_v10  ;;  %5360 = vmatprep.mubr.msk.f32.mxu1 %vm6247_vm0, %v6246_v13  ;;  %v5515_v10 = vld [vmem:[%s7063_s3 + $0x44] ss:$16 sps:$4 sm:$0xff]  }
 0xf0e   : > { %5363 = vmatprep.subr.mxu1 %v6246_v13 }
 0xfdb   : > { %v3253_v11 = vpop.f32.mrb[22].mxu1 }
 0xfdc   : > { %v3333_v14 = vmul.f32 0.17677669, %v3253_v11  ;;  %v5352_v15 = vpop.f32.mrb[23].mxu1  ;;  %v5518_v11 = vld [vmem:[%s7063_s3 + $0x4c] ss:$16 sps:$4 sm:$0xff]  }
 0xfdd   : > { %v5516_v15 = vld [vmem:[%s7063_s3 + $0x48] ss:$16 sps:$4 sm:$0xff]  }
 0xfde   : > { %v3335_v16 = vsel %vm7167_vm2, %v3333_v14, -3.4028235e+38  ;;  %v5513_v14 = vld [vmem:[%s7063_s3 + $0x40] ss:$16 sps:$4 sm:$0xff]  }
 0xfdf   : > { %v3329_v17 = vpop.f32.mrb[44].mxu1  ;;  %v3337_v18 = vsel %vm1583_vm3, %v3335_v16, -inf }
 0xfe0   : > { %v3334_v19 = vmul.f32 0.17677669, %v3329_v17  ;;  %3338 = vmax.xlane.f32.xlu0 %v3337_v18  ;;  %v5357_v20 = vpop.f32.mrb[45].mxu1  ;;  %v5524_v17 = vld [vmem:[%s7063_s3 + $0x6c] ss:$16 sps:$4 sm:$0xff]  }
 0xfe1   : > { %v5519_v18 = vld [vmem:[%s7063_s3 + $0x60] ss:$16 sps:$4 sm:$0xff]   ;;  %v5527_v20 = vld [vmem:[%s7063_s3 + $0x84] ss:$16 sps:$4 sm:$0xff]  }
 0xfe2   : > { %v3336_v21 = vsel %vm7167_vm2, %v3334_v19, -3.4028235e+38  ;;  %v5522_v19 = vld [vmem:[%s7063_s3 + $0x68] ss:$16 sps:$4 sm:$0xff]  }
 0xfe3   : > { %v3340_v22 = vsel %vm1583_vm3, %v3336_v21, -inf }
 0xfe4   : > { %3341 = vmax.xlane.f32.xlu1 %v3340_v22  ;;  %v5525_v22 = vld [vmem:[%s7063_s3 + $0x80] ss:$16 sps:$4 sm:$0xff]  }
0x106d   : > { %v3339_v23 = vpop.xlane.xlu0 %3338 }
0x106e   : > { %v3343_v24 = vsub.f32 %v3335_v16, %v3339_v23  ;;  %v5521_v16 = vld [vmem:[%s7063_s3 + $0x64] ss:$16 sps:$4 sm:$0xff]   ;;  %v5528_v23 = vld [vmem:[%s7063_s3 + $0x88] ss:$16 sps:$4 sm:$0xff]  }
0x1070   : > { %v3345_v25 = vmul.f32 1.442695, %v3343_v24  ;;  %v5533_v24 = vld [vmem:[%s7063_s3 + $0xa4] ss:$16 sps:$4 sm:$0xff]  }
0x1071   : > { %v3342_v26 = vpop.xlane.xlu1 %3341 }
0x1072   : > { %5609 = vpow2.f32 %v3345_v25  ;;  %v3344_v27 = vsub.f32 %v3336_v21, %v3342_v26  ;;  %v5530_v21 = vld [vmem:[%s7063_s3 + $0x8c] ss:$16 sps:$4 sm:$0xff]   ;;  %v5531_v26 = vld [vmem:[%s7063_s3 + $0xa0] ss:$16 sps:$4 sm:$0xff]  }
0x1073   : > { %v5536_v25 = vld [vmem:[%s7063_s3 + $0xac] ss:$16 sps:$4 sm:$0xff]  }
0x1074   : > { %v3347_v28 = vmul.f32 1.442695, %v3344_v27  ;;  %v5534_v27 = vld [vmem:[%s7063_s3 + $0xa8] ss:$16 sps:$4 sm:$0xff]  }
0x1076   : > { %5611 = vpow2.f32 %v3347_v28  ;;  %v5539_v28 = vld [vmem:[%s7063_s3 + $0xc4] ss:$16 sps:$4 sm:$0xff]  }
0x107c   : > { %v5610_v29 = vpop.eup %5609 }
0x107d   : > { %v3349_v30 = vsel %vm1583_vm3, %v5610_v29, 0.0 }
0x107e   : > { %3350 = vadd.xlane.f32.xlu0 %v3349_v30  ;;  %v5537_v30 = vld [vmem:[%s7063_s3 + $0xc0] ss:$16 sps:$4 sm:$0xff]  }
0x1080   : > { %v5612_v31 = vpop.eup %5611 }
0x1081   : > { %v3352_v12 = vsel %vm1583_vm3, %v5612_v31, 0.0 }
0x1082   : > { %3353 = vadd.xlane.f32.xlu1 %v3352_v12  ;;  %v5545_v12 = vld [vmem:[%s7063_s3 + $0xe4] ss:$16 sps:$4 sm:$0xff]  }
0x110b   : > { %v3351_v32 = vpop.xlane.xlu0 %3350 }
0x110c   : > { %5613 = vrcp.f32 %v3351_v32  ;;  %v5548_v32 = vld [vmem:[%s7063_s3 + $0xec] ss:$16 sps:$4 sm:$0xff]  }
0x110f   : > { %v3354_v33 = vpop.xlane.xlu1 %3353 }
0x1110   : > { %5615 = vrcp.f32 %v3354_v33  ;;  %v5543_v33 = vld [vmem:[%s7063_s3 + $0xe0] ss:$16 sps:$4 sm:$0xff]  }
0x1116   : > { %v5614_v35 = vpop.eup %5613 }
0x1117   : > { %v3357_v36 = vmul.f32 %v5614_v35, %v5610_v29  ;;  %v5542_v29 = vld [vmem:[%s7063_s3 + $0xcc] ss:$16 sps:$4 sm:$0xff]   ;;  %v5546_v35 = vld [vmem:[%s7063_s3 + $0xe8] ss:$16 sps:$4 sm:$0xff]  }
0x1119   : > { %5361 = vmatmul.mubr.msk.f32.vlgmr.msra.gmra.mrb[46].mxu1 %vm1583_vm3, %v3357_v36  ;;  %v6248_v36 = vmov 0  }
0x111a   : > { %v5616_v37 = vpop.eup %5615  ;;  %5364 = vmatpush3.msra.mxu1 %v3178_v58  ;;  %5365 = vmatprep.mubr.msk.f32.mxu1 %vm6247_vm0, %v6246_v13  ;;  %v4952_v13 = vld [vmem:[%s7636_s29] ss:$0 sm:$0xff] }
0x111b   : > { %v3358_v38 = vmul.f32 %v5616_v37, %v5612_v31  ;;  %v5540_v31 = vld [vmem:[%s7063_s3 + $0xc8] ss:$16 sps:$4 sm:$0xff]  }
0x111d   : > { %5366 = vmatmul.mubr.msk.f32.vlgmr.msra.gmra.mrb[48].mxu1 %vm1583_vm3, %v3358_v38 }
0x111e   : > { %3867 = vmatprep.mubr.bf16.mxu1 %v6248_v36 }
0x11ec   : > { %v3428_v41 = vpop.f32.mrb[46].mxu1 }
0x11ed   : > { %v5362_v42 = vpop.f32.mrb[47].mxu1 }
0x11f0   : > { %v3501_v43 = vpop.f32.mrb[48].mxu1 }
0x11f1   : > { %v3505_v44 = vpack.c.bf16 %v3501_v43, %v3428_v41  ;;  %v5367_v45 = vpop.f32.mrb[49].mxu1 }
0x11f3   : > { %5373 = vmatmul.mubr.msk.bf16.vlgmr.msra.gmra.mrb[44].mxu0 %vm1424_vm1, %v3505_v44  ;;  %v4953_v44 = vld [vmem:[%s7637_s1] ss:$0 sm:$0xff] }
0x11f4   : > { %3879 = vmatpush1.bf16.msra.mxu0 %v5504_v62  ;;  %3910 = vmatprep.mubr.bf16.mxu0 %v6248_v36  ;;  %v5554_v62 = vld [vmem:[%s7071_s17 + $0xc8] sm:$0xff]  }
0x12c6   : > { %v3560_v46 = vpop.f32.mrb[44].mxu0 }
0x12c7   : > { %v3567_v47 = vadd.f32 %v3560_v46, %v7330_v61  ;;  %v5374_v48 = vpop.f32.mrb[45].mxu0  ;;  %v5503_v61 = vld [vmem:[%s7063_s3 + $0x4] ss:$16 sps:$4 sm:$0xff]  }
0x12c8   : > { %v3563_v49 = vpop.f32.mrb[46].mxu0  ;;  %3835 = vmatprep.subr.bf16.mxu1 %v5503_v61  ;;  %v5553_v61 = vld [vmem:[%s7071_s17 + $0x48] sm:$0xff]  }
0x12c9   : > { %v3569_v52 = vadd.f32 %v5637_v51, %v3567_v47  ;;  %v3568_v54 = vadd.f32 %v3563_v49, %v7333_v63  ;;  %v5375_v55 = vpop.f32.mrb[47].mxu0  ;;  %v5512_v63 = vld [vmem:[%s7063_s3 + $0x2c] ss:$16 sps:$4 sm:$0xff]   ;;  %3836 = vmatpush1.bf16.msra.mxu1 %v5501_v60  ;;  %v4954_v49 = vld [vmem:[%s7638_s20] ss:$0 sm:$0xff] }
0x12ca   : > { %3837 = vmatprep.subr.bf16.mxu1 %v5509_v0  ;;  %3880 = vmatprep.subr.bf16.mxu0 %v5512_v63  ;;  %v5549_v55 = vld [vmem:[%s7071_s17 + $0x40] sm:$0xff]   ;;  %v5556_v0 = vld [vmem:[%s7071_s17 + $0x88] sm:$0xff]   ;;  %v5557_v63 = vld [vmem:[%s7071_s17 + $0x50] sm:$0xff]  }
0x12cb   : > { %v3570_v57 = vadd.f32 %v5638_v56, %v3568_v54  ;;  %v7368_v58 = vadd.f32 %v4952_v13, %v3569_v52  ;;  %3881 = vmatpush1.bf16.msra.mxu0 %v5510_v2  ;;  %v5550_v56 = vld [vmem:[%s7071_s17 + $0xc0] sm:$0xff]   ;;  %v5559_v2 = vld [vmem:[%s7071_s17 + $0x10] sm:$0xff]  }
0x12cc   : > { %3882 = vmatprep.subr.bf16.mxu0 %v5518_v11  ;;  %v5552_v60 = vld [vmem:[%s7071_s17 + $0x80] sm:$0xff]   ;;  %v5569_v11 = vld [vmem:[%s7071_s17 + $0x68] sm:$0xff]  }
0x12cd   : > { %3582 = vadd.xlane.f32.xlu0 %v7368_v58  ;;  %v7371_v59 = vadd.f32 %v4952_v13, %v3570_v57  ;;  %3838 = vmatpush1.bf16.msra.mxu1 %v5507_v1  ;;  %v5551_v57 = vld [vmem:[%s7071_s17] sm:$0xff]   ;;  %v5558_v1 = vld [vmem:[%s7071_s17 + $0xd0] sm:$0xff]  }
0x12ce   : > { %3839 = vmatprep.subr.bf16.mxu1 %v5515_v10  ;;  %v5568_v10 = vld [vmem:[%s7071_s17 + $0xa0] sm:$0xff]  }
0x12cf   : > { %3584 = vadd.xlane.f32.xlu1 %v7371_v59  ;;  %3883 = vmatpush1.bf16.msra.mxu0 %v5516_v15  ;;  %v5571_v15 = vld [vmem:[%s7071_s17 + $0x28] sm:$0xff]  }
0x12d0   : > { %3884 = vmatprep.subr.bf16.mxu0 %v5524_v17  ;;  %v5573_v17 = vld [vmem:[%s7071_s17 + $0x70] sm:$0xff]  }
0x12d1   : > { %3840 = vmatpush1.bf16.msra.mxu1 %v5513_v14  ;;  %v5570_v14 = vld [vmem:[%s7071_s17 + $0xe8] sm:$0xff]  }
0x12d2   : > { %3841 = vmatprep.subr.bf16.mxu1 %v5521_v16  ;;  %v5572_v16 = vld [vmem:[%s7071_s17 + $0xa8] sm:$0xff]  }
0x12d3   : > { %3885 = vmatpush1.bf16.msra.mxu0 %v5522_v19  ;;  %v5575_v19 = vld [vmem:[%s7071_s17 + $0x30] sm:$0xff]  }
0x12d4   : > { %3886 = vmatprep.subr.bf16.mxu0 %v5530_v21  ;;  %v5577_v21 = vld [vmem:[%s7071_s17 + $0x78] sm:$0xff]  }
0x12d5   : > { %3842 = vmatpush1.bf16.msra.mxu1 %v5519_v18  ;;  %v5574_v18 = vld [vmem:[%s7071_s17 + $0xf0] sm:$0xff]  }
0x12d6   : > { %3843 = vmatprep.subr.bf16.mxu1 %v5527_v20  ;;  %v5576_v20 = vld [vmem:[%s7071_s17 + $0xb0] sm:$0xff]  }
0x12d7   : > { %3887 = vmatpush1.bf16.msra.mxu0 %v5528_v23  ;;  %v5579_v23 = vld [vmem:[%s7071_s17 + $0x38] sm:$0xff]  }
0x12d8   : > { %3888 = vmatprep.subr.bf16.mxu0 %v5536_v25  ;;  %v3657_v25 = vsub.s32 0, %v7164_v9 }
0x12d9   : > { %3844 = vmatpush1.bf16.msra.mxu1 %v5525_v22  ;;  %v5578_v22 = vld [vmem:[%s7071_s17 + $0xf8] sm:$0xff]  }
0x12da   : > { %3845 = vmatprep.subr.bf16.mxu1 %v5533_v24  ;;  %v5580_v24 = vld [vmem:[%s7071_s17 + $0xb8] sm:$0xff]  }
0x12db   : > { %3889 = vmatpush1.bf16.msra.mxu0 %v5534_v27  ;;  %v3653_v27 = vld [vmem:[%s1030_s19] sm:$0xf] }
0x12dc   : > { %3890 = vmatprep.subr.bf16.mxu0 %v5542_v29  ;;  %v3669_v29 = vsub.s32 3, %v7164_v9 }
0x12dd   : > { %3846 = vmatpush1.bf16.msra.mxu1 %v5531_v26  ;;  %v3665_v26 = vsub.s32 2, %v7164_v9 }
0x12de   : > { %3847 = vmatprep.subr.bf16.mxu1 %v5539_v28  ;;  %v3661_v28 = vsub.s32 1, %v7164_v9 }
0x12df   : > { %3891 = vmatpush1.bf16.msra.mxu0 %v5540_v31  ;;  %v3666_v31 = vrot.slane %v3653_v27, %v3665_v26 }
0x12e0   : > { %3892 = vmatprep.subr.bf16.mxu0 %v5548_v32  ;;  %v3670_v32 = vrot.slane %v3653_v27, %v3669_v29 }
0x12e1   : > { %3848 = vmatpush1.bf16.msra.mxu1 %v5537_v30  ;;  %v3658_v30 = vrot.slane %v3653_v27, %v3657_v25 }
0x12e2   : > { %3849 = vmatprep.subr.bf16.mxu1 %v5545_v12  ;;  %v3662_v12 = vrot.slane %v3653_v27, %v3661_v28 }
0x12e3   : > { %3893 = vmatpush1.bf16.msra.mxu0 %v5546_v35 }
0x12e4   : > { %5146 = vmatprep.subr.bf16.mxu0 %v5550_v56 }
0x12e5   : > { %3850 = vmatpush1.bf16.msra.mxu1 %v5543_v33 }
0x12e6   : > { %5124 = vmatprep.subr.bf16.mxu1 %v5549_v55 }
0x135a   : > { %v3583_v3 = vpop.xlane.xlu0 %3582 }
0x135b   : > { %v3586_v4 = vmul.f32 0.0078125, %v3583_v3  ;;  %v5560_v3 = vld [vmem:[%s7071_s17 + $0x90] sm:$0xff]  }
0x135c   : > { %v3585_v5 = vpop.xlane.xlu1 %3584 }
0x135d   : > { %v7383_v6 = vsub.f32 %v7368_v58, %v3586_v4  ;;  %v3587_v7 = vmul.f32 0.0078125, %v3585_v5  ;;  %v5561_v4 = vld [vmem:[%s7071_s17 + $0x58] sm:$0xff]  }
0x135e   : > { %v5562_v5 = vld [vmem:[%s7071_s17 + $0xd8] sm:$0xff]  }
0x135f   : > { %v7386_v8 = vsub.f32 %v7371_v59, %v3587_v7  ;;  %v3590_v50 = vmul.f32 %v7383_v6, %v7383_v6  ;;  %v5564_v7 = vld [vmem:[%s7071_s17 + $0x98] sm:$0xff]  }
0x1361   : > { %3592 = vadd.xlane.f32.xlu0 %v3590_v50  ;;  %v3591_v53 = vmul.f32 %v7386_v8, %v7386_v8  ;;  %v5566_v50 = vld [vmem:[%s7071_s17 + $0xe0] sm:$0xff]  }
0x1363   : > { %3594 = vadd.xlane.f32.xlu1 %v3591_v53  ;;  %v5567_v53 = vld [vmem:[%s7071_s17 + $0x20] sm:$0xff]  }
0x13ee   : > { %v3593_v37 = vpop.xlane.xlu0 %3592 }
0x13ef   : > { %v3596_v38 = vmul.f32 0.0078125, %v3593_v37 }
0x13f0   : > { %v3595_v39 = vpop.xlane.xlu1 %3594 }
0x13f1   : > { %v3598_v40 = vadd.f32 1e-05, %v3596_v38  ;;  %v3597_v41 = vmul.f32 0.0078125, %v3595_v39 }
0x13f3   : > { %5617 = vrsqrt.f32 %v3598_v40  ;;  %v3599_v42 = vadd.f32 1e-05, %v3597_v41 }
0x13f5   : > { %5619 = vrsqrt.f32 %v3599_v42 }
0x13fd   : > { %v5618_v43 = vpop.eup %5617 }
0x13fe   : > { %v3602_v45 = vmul.f32 %v5618_v43, %v7383_v6  ;;  %v5563_v6 = vld [vmem:[%s7071_s17 + $0x18] sm:$0xff]  }
0x13ff   : > { %v5620_v46 = vpop.eup %5619 }
0x1400   : > { %v3603_v47 = vmul.f32 %v5620_v46, %v7386_v8  ;;  %v3610_v48 = vmul.f32 %v4953_v44, %v3602_v45  ;;  %v5565_v8 = vld [vmem:[%s7071_s17 + $0x60] sm:$0xff]   ;;  %s7639_s17 = sld [smem:[#allocation44_spill]] }
0x1402   : > { %v3611_v13 = vmul.f32 %v4953_v44, %v3603_v47  ;;  %v3618_v51 = vadd.f32 %v4954_v49, %v3610_v48 }
0x1404   : > { %v3619_v52 = vadd.f32 %v4954_v49, %v3611_v13 }
0x1406   : > { %v3620_v54 = vpack.c.bf16 %v3619_v52, %v3618_v51  ;;  %p5020_p1 = scmp.ne.s32.totalorder %s7639_s17, 3 }
0x1407   : > { %s7640_s23 = sld [smem:[#allocation59_spill]] (!%p5020_p1) }
0x1408   : > { %3868 = vmatmul.mubr.bf16.vlgmr.msra.gmra.mrb[52].mxu1 %v3620_v54  ;;  %3911 = vmatmul.mubr.bf16.vlgmr.msra.gmra.mrb[48].mxu0 %v3620_v54 }
0x1409   : > { %5125 = vmatpush3.bf16.msra.mxu1 %v5551_v57  ;;  %5147 = vmatpush3.bf16.msra.mxu0 %v5552_v60 }
0x140a   : > { %5126 = vmatprep.subr.bf16.mxu1 %v5553_v61  ;;  %5148 = vmatprep.subr.bf16.mxu0 %v5554_v62 }
0x140d   : > { %5127 = vmatpush3.bf16.msra.mxu1 %v5555_v34  ;;  %5149 = vmatpush3.bf16.msra.mxu0 %v5556_v0 }
0x140e   : > { %5128 = vmatprep.subr.bf16.mxu1 %v5557_v63  ;;  %5150 = vmatprep.subr.bf16.mxu0 %v5558_v1 }
0x1411   : > { %5129 = vmatpush3.bf16.msra.mxu1 %v5559_v2  ;;  %5151 = vmatpush3.bf16.msra.mxu0 %v5560_v3 }
0x1412   : > { %5130 = vmatprep.subr.bf16.mxu1 %v5561_v4  ;;  %5152 = vmatprep.subr.bf16.mxu0 %v5562_v5 }
0x1415   : > { %5131 = vmatpush3.bf16.msra.mxu1 %v5563_v6  ;;  %5153 = vmatpush3.bf16.msra.mxu0 %v5564_v7 }
0x1416   : > { %5132 = vmatprep.subr.bf16.mxu1 %v5565_v8  ;;  %5154 = vmatprep.subr.bf16.mxu0 %v5566_v50 }
0x1419   : > { %5133 = vmatpush3.bf16.msra.mxu1 %v5567_v53  ;;  %5155 = vmatpush3.bf16.msra.mxu0 %v5568_v10 }
0x141a   : > { %5134 = vmatprep.subr.bf16.mxu1 %v5569_v11  ;;  %5156 = vmatprep.subr.bf16.mxu0 %v5570_v14 }
0x141d   : > { %5135 = vmatpush3.bf16.msra.mxu1 %v5571_v15  ;;  %5157 = vmatpush3.bf16.msra.mxu0 %v5572_v16 }
0x141e   : > { %5136 = vmatprep.subr.bf16.mxu1 %v5573_v17  ;;  %5158 = vmatprep.subr.bf16.mxu0 %v5574_v18 }
0x1421   : > { %5137 = vmatpush3.bf16.msra.mxu1 %v5575_v19  ;;  %5159 = vmatpush3.bf16.msra.mxu0 %v5576_v20 }
0x1422   : > { %5138 = vmatprep.subr.bf16.mxu1 %v5577_v21  ;;  %5160 = vmatprep.subr.bf16.mxu0 %v5578_v22 }
0x1425   : > { %5139 = vmatpush3.bf16.msra.mxu1 %v5579_v23  ;;  %5161 = vmatpush3.bf16.msra.mxu0 %v5580_v24 }
0x14db   : > { %v3869_v33 = vpop.f32.mrb[52].mxu1  ;;  %v3912_v35 = vpop.f32.mrb[48].mxu0 }
0x14dc   : > { %v7460_v36 = vadd.f32 %v3869_v33, %v3658_v30  ;;  %v7462_v37 = vadd.f32 %v3912_v35, %v3666_v31  ;;  %v3871_v38 = vpop.f32.mrb[53].mxu1  ;;  %v3914_v39 = vpop.f32.mrb[49].mxu0 }
0x14dd   : > { %v7464_v40 = vadd.f32 %v3871_v38, %v3662_v12  ;;  %v7466_v41 = vadd.f32 %v3914_v39, %v3670_v32  ;;  %v3873_v42 = vpop.f32.mrb[54].mxu1  ;;  %v3916_v43 = vpop.f32.mrb[50].mxu0 }
0x14de   : > { %v3929_v9 = vmul.f32 0.044715, %v7460_v36  ;;  %v3931_v44 = vmul.f32 0.044715, %v7462_v37  ;;  %v3874_v45 = vadd.f32 %v3873_v42, %v3658_v30  ;;  %v3917_v46 = vadd.f32 %v3916_v43, %v3666_v31  ;;  %v3875_v47 = vpop.f32.mrb[55].mxu1  ;;  %v3918_v48 = vpop.f32.mrb[51].mxu0 }
0x14df   : > { %v3930_v49 = vmul.f32 0.044715, %v7464_v40  ;;  %v3932_v13 = vmul.f32 0.044715, %v7466_v41  ;;  %v7472_v51 = vadd.f32 %v3875_v47, %v3662_v12  ;;  %v7474_v52 = vadd.f32 %v3918_v48, %v3670_v32 }
0x14e0   : > { %v3937_v54 = vmul.f32 %v3929_v9, %v7460_v36  ;;  %v3939_v55 = vmul.f32 %v3931_v44, %v7462_v37  ;;  %v3933_v56 = vmul.f32 0.044715, %v3874_v45  ;;  %v3935_v57 = vmul.f32 0.044715, %v3917_v46 }
0x14e1   : > { %v3938_v60 = vmul.f32 %v3930_v49, %v7464_v40  ;;  %v3940_v61 = vmul.f32 %v3932_v13, %v7466_v41  ;;  %v3934_v62 = vmul.f32 0.044715, %v7472_v51  ;;  %v3936_v34 = vmul.f32 0.044715, %v7474_v52 }
0x14e2   : > { %v3945_v0 = vmul.f32 %v3937_v54, %v7460_v36  ;;  %v3947_v63 = vmul.f32 %v3939_v55, %v7462_v37  ;;  %v3941_v1 = vmul.f32 %v3933_v56, %v3874_v45  ;;  %v3943_v2 = vmul.f32 %v3935_v57, %v3917_v46 }
0x14e3   : > { %v3946_v3 = vmul.f32 %v3938_v60, %v7464_v40  ;;  %v3948_v4 = vmul.f32 %v3940_v61, %v7466_v41  ;;  %v3942_v5 = vmul.f32 %v3934_v62, %v7472_v51  ;;  %v3944_v6 = vmul.f32 %v3936_v34, %v7474_v52 }
0x14e4   : > { %v3953_v7 = vadd.f32 %v3945_v0, %v7460_v36  ;;  %v3955_v8 = vadd.f32 %v3947_v63, %v7462_v37  ;;  %v3949_v50 = vmul.f32 %v3941_v1, %v3874_v45  ;;  %v3951_v53 = vmul.f32 %v3943_v2, %v3917_v46 }
0x14e5   : > { %v3950_v10 = vmul.f32 %v3942_v5, %v7472_v51  ;;  %v3952_v11 = vmul.f32 %v3944_v6, %v7474_v52  ;;  %v3954_v18 = vadd.f32 %v3946_v3, %v7464_v40  ;;  %v3956_v22 = vadd.f32 %v3948_v4, %v7466_v41 }
0x14e6   : > { %v3961_v14 = vmul.f32 0.7978846, %v3953_v7  ;;  %v3963_v15 = vmul.f32 0.7978846, %v3955_v8  ;;  %v3957_v16 = vadd.f32 %v3949_v50, %v3874_v45  ;;  %v3959_v17 = vadd.f32 %v3951_v53, %v3917_v46 }
0x14e7   : > { %v3958_v19 = vadd.f32 %v3950_v10, %v7472_v51  ;;  %v3962_v23 = vmul.f32 0.7978846, %v3954_v18  ;;  %v3960_v25 = vadd.f32 %v3952_v11, %v7474_v52  ;;  %v3964_v26 = vmul.f32 0.7978846, %v3956_v22 }
0x14e8   : > { %5621 = vtanh.f32 %v3961_v14  ;;  %v3965_v20 = vmul.f32 0.7978846, %v3957_v16  ;;  %v3967_v21 = vmul.f32 0.7978846, %v3959_v17  ;;  %v3921_v33 = vmul.f32 0.5, %v7460_v36 }
0x14e9   : > { %5623 = vtanh.f32 %v3963_v15  ;;  %v3966_v24 = vmul.f32 0.7978846, %v3958_v19  ;;  %v3968_v27 = vmul.f32 0.7978846, %v3960_v25  ;;  %v3925_v35 = vmul.f32 0.5, %v3874_v45 }
0x14ea   : > { %5625 = vtanh.f32 %v3965_v20  ;;  %v3923_v42 = vmul.f32 0.5, %v7462_v37  ;;  %v3927_v43 = vmul.f32 0.5, %v3917_v46  ;;  %v3922_v47 = vmul.f32 0.5, %v7464_v40  ;;  %v5019_v15 = vld [vmem:[%s1047_s6] ss:$0 sm:$0xff] }
0x14eb   : > { %5627 = vtanh.f32 %v3967_v21  ;;  %v3926_v55 = vmul.f32 0.5, %v7472_v51  ;;  %v3924_v45 = vmul.f32 0.5, %v7466_v41  ;;  %v3928_v61 = vmul.f32 0.5, %v7474_v52 }
0x14ec   : > { %5629 = vtanh.f32 %v3962_v23 }
0x14ed   : > { %5631 = vtanh.f32 %v3966_v24 }
0x14ee   : > { %5633 = vtanh.f32 %v3964_v26 }
0x14ef   : > { %5635 = vtanh.f32 %v3968_v27 }
0x14f2   : > { %v5622_v28 = vpop.eup %5621 }
0x14f3   : > { %v5624_v29 = vpop.eup %5623  ;;  %v3977_v30 = vadd.f32 1.0, %v5622_v28 }
0x14f4   : > { %v5626_v31 = vpop.eup %5625  ;;  %v3979_v12 = vadd.f32 1.0, %v5624_v29 }
0x14f5   : > { %v5628_v32 = vpop.eup %5627  ;;  %v3981_v38 = vadd.f32 1.0, %v5626_v31  ;;  %v3985_v49 = vmul.f32 %v3977_v30, %v3921_v33 }
0x14f6   : > { %v5630_v39 = vpop.eup %5629  ;;  %v3983_v9 = vadd.f32 1.0, %v5628_v32  ;;  %v3987_v57 = vmul.f32 %v3979_v12, %v3923_v42 }
0x14f7   : > { %v5632_v44 = vpop.eup %5631  ;;  %v3978_v48 = vadd.f32 1.0, %v5630_v39  ;;  %v3989_v13 = vmul.f32 %v3981_v38, %v3925_v35  ;;  %v5021_v35 = vld [vmem:[#allocation28] ss:$0 sm:$0xff] (!%p5020_p1) }
0x14f8   : > { %v5634_v54 = vpop.eup %5633  ;;  %v3982_v56 = vadd.f32 1.0, %v5632_v44  ;;  %v3991_v60 = vmul.f32 %v3983_v9, %v3927_v43  ;;  %v5022_v43 = vld [vmem:[#allocation29] ss:$0 sm:$0xff] (!%p5020_p1) }
0x14f9   : > { %v5636_v36 = vpop.eup %5635  ;;  %v3980_v37 = vadd.f32 1.0, %v5634_v54  ;;  %v3993_v46 = vpack.c.bf16 %v3989_v13, %v3985_v49  ;;  %v3986_v62 = vmul.f32 %v3978_v48, %v3922_v47 }
0x14fa   : > { %v3990_v34 = vmul.f32 %v3982_v56, %v3926_v55  ;;  %v3984_v0 = vadd.f32 1.0, %v5636_v36  ;;  %v3995_v40 = vpack.c.bf16 %v3991_v60, %v3987_v57 }
0x14fb   : > { %v3988_v1 = vmul.f32 %v3980_v37, %v3924_v45 }
0x14fc   : > { %v3994_v63 = vpack.c.bf16 %v3990_v34, %v3986_v62  ;;  %v3992_v2 = vmul.f32 %v3984_v0, %v3928_v61 }
0x14fe   : > { %4285 = vmatprep.mubr.bf16.mxu1 %v3994_v63  ;;  %v3996_v3 = vpack.c.bf16 %v3992_v2, %v3988_v1 }
0x14ff   : > { %4286 = vmatmul.mubr.bf16.vlgmr.msra.gmra.mrb[56].mxu1 %v3993_v46 }
0x1500   : > { %4326 = vmatprep.mubr.bf16.mxu0 %v3996_v3 }
0x1501   : > { %4327 = vmatmul.mubr.bf16.vlgmr.msra.gmra.mrb[52].mxu0 %v3995_v40 }
0x15d2   : > { %v5140_v51 = vpop.f32.mrb[56].mxu1 }
0x15d3   : > { %v5141_v4 = vpop.f32.mrb[57].mxu1 }
0x15d4   : > { %v5162_v41 = vpop.f32.mrb[52].mxu0  ;;  %v5142_v5 = vadd.f32 %v5141_v4, %v5140_v51  ;;  %v5143_v52 = vpop.f32.mrb[58].mxu1 }
0x15d5   : > { %v5163_v6 = vpop.f32.mrb[53].mxu0  ;;  %v5144_v7 = vpop.f32.mrb[59].mxu1 }
0x15d6   : > { %v5164_v8 = vadd.f32 %v5163_v6, %v5162_v41  ;;  %v5165_v50 = vpop.f32.mrb[54].mxu0  ;;  %v5145_v53 = vadd.f32 %v5144_v7, %v5143_v52 }
0x15d7   : > { %v5166_v10 = vpop.f32.mrb[55].mxu0 }
0x15d8   : > { %v4329_v11 = vadd.f32 %v5164_v8, %v5142_v5  ;;  %v5167_v14 = vadd.f32 %v5166_v10, %v5165_v50 }
0x15da   : > { %v4335_v16 = vadd.f32 %v4329_v11, %v7368_v58  ;;  %v4332_v17 = vadd.f32 %v5167_v14, %v5145_v53  ;;  %4351 = sbr.rel (%p5020_p1) target bundleno = 5916 (0x171c), region = 176 }
0x15dc   : > { %v4344_v18 = vadd.f32 %v5019_v15, %v4335_v16  ;;  %v4336_v19 = vadd.f32 %v4332_v17, %v7371_v59 }
0x15de   : > { %4346 = vst [vmem:[#allocation2] sm:$0xff] %v4344_v18  ;;  %v4345_v20 = vadd.f32 %v5019_v15, %v4336_v19  ;;  %4354 = vadd.xlane.f32.xlu0 (!%p5020_p1), %v4344_v18 }
0x15e0   : > { %4347 = vst [vmem:[#allocation2 + $0x8] sm:$0xff] %v4345_v20 }
0x15e2   : > { %4356 = vadd.xlane.f32.xlu0 %v4345_v20 }
0x166b   : > { %v4355_v21 = vpop.xlane.xlu0 %4354 }
0x166c   : > { %v4358_v22 = vmul.f32 0.0078125, %v4355_v21 }
0x166e   : > { %v4360_v23 = vsub.f32 %v4344_v18, %v4358_v22 }
0x166f   : > { %v4357_v24 = vpop.xlane.xlu0 %4356 }
0x1670   : > { %v4359_v25 = vmul.f32 0.0078125, %v4357_v24  ;;  %v4362_v26 = vmul.f32 %v4360_v23, %v4360_v23 }
0x1672   : > { %v4361_v27 = vsub.f32 %v4345_v20, %v4359_v25  ;;  %4364 = vadd.xlane.f32.xlu1 %v4362_v26 }
0x1674   : > { %v4363_v58 = vmul.f32 %v4361_v27, %v4361_v27 }
0x1676   : > { %4366 = vadd.xlane.f32.xlu1 %v4363_v58 }
0x16ff   : > { %v4365_v28 = vpop.xlane.xlu1 %4364 }
0x1700   : > { %v4368_v59 = vmul.f32 0.0078125, %v4365_v28 }
0x1702   : > { %v4370_v29 = vadd.f32 1e-05, %v4368_v59 }
0x1703   : > { %v4367_v30 = vpop.xlane.xlu1 %4366 }
0x1704   : > { %5639 = vrsqrt.f32 %v4370_v29  ;;  %v4369_v31 = vmul.f32 0.0078125, %v4367_v30 }
0x1706   : > { %v4371_v12 = vadd.f32 1e-05, %v4369_v31 }
0x1708   : > { %5641 = vrsqrt.f32 %v4371_v12 }
0x170e   : > { %v5640_v32 = vpop.eup %5639 }
0x170f   : > { %v4374_v33 = vmul.f32 %v5640_v32, %v4360_v23 }
0x1711   : > { %v4382_v39 = vmul.f32 %v5021_v35, %v4374_v33 }
0x1712   : > { %v5642_v38 = vpop.eup %5641 }
0x1713   : > { %v4375_v42 = vmul.f32 %v5642_v38, %v4361_v27  ;;  %v4390_v44 = vadd.f32 %v5022_v43, %v4382_v39 }
0x1715   : > { %v4383_v9 = vmul.f32 %v5021_v35, %v4375_v42 }
0x1717   : > { %v4391_v47 = vadd.f32 %v5022_v43, %v4383_v9 }
0x1719   : > { %v5042_v48 = vpack.c.bf16 %v4391_v47, %v4390_v44 }
0x171b   : > { %5043 = vst [vmem:[%s7640_s23] sm:$0xff] %v5042_v48  }
0x171c PF: > { %s7641_s21 = sld [smem:[#allocation45_spill]]  ;;  %s7642_s0 = sld [smem:[#allocation42_spill]] }
0x171d   : > { %s7643_s30 = sld [smem:[#allocation43_spill]]  ;;  %s7644_s20 = sld [smem:[#allocation46_spill]] }
0x1722   : > { %p54_p5 = scmp.ge.s32.totalorder %s7641_s21, 6  }
0x1724   :  { %56 = sbr.rel (!%p54_p5) target bundleno = 32 (0x20), region = 350 }
0x172b   :  { %4413 = vsyncpa [#allocation4], 1 }
0x172c   :  { %4415 = vsyncpa [#allocation4 + $0x1], 1 }
0x172d   :  { %4416 = vsyncpa [#allocation6], 1 }
0x172e   :  { %4418 = vsyncpa [#allocation6 + $0x1], 1 }
0x172f   :  { %4419 = vsyncpa [#allocation9], 1 }
0x1730   :  { %4421 = vsyncpa [#allocation9 + $0x1], 1 }
0x1731   :  { %4422 = vsyncpa [#allocation12], 1 }
0x1732   :  { %4424 = vsyncpa [#allocation12 + $0x1], 1 }
0x1733   :  { %4425 = vsyncpa [#allocation15], 1 }
0x1734   :  { %4427 = vsyncpa [#allocation15 + $0x1], 1 }
0x1735   :  { %4428 = vsyncpa [#allocation18], 1 }
0x1736   :  { %4430 = vsyncpa [#allocation18 + $0x1], 1 }
0x1737   :  { %4431 = vsyncpa [#allocation21], 1 }
0x1738   :  { %4433 = vsyncpa [#allocation21 + $0x1], 1 }
0x1739   :  { %4434 = vsyncpa [#allocation24], 1 }
0x173a   :  { %4436 = vsyncpa [#allocation24 + $0x1], 1 }
0x173b   :  { %4437 = vsyncpa [#allocation27], 1 }
0x173c   :  { %4439 = vsyncpa [#allocation27 + $0x1], 1 }
0x173d   :  { %4440 = vsyncpa [#allocation30], 1 }

// kernel: child_transformer_forward.3
= control target key start
LH: loop header
LB: loop body
LE: loop exit
PB: predicated region body
PF: predicated region fallthrough
CT: control target
= control target key end

     0   :  { %7 = vsyncpa [#allocation3], 0  ;;  %s10924_s0 = inlined_call_operand.vmem [shape: bf16[16,128], index: 0, kind: input, shape index: {}]   ;;  %s10925_s1 = inlined_call_operand.hbm [shape: bf16[128,51200], index: 1, kind: input, shape index: {}]   ;;  %s10926_s2 = inlined_call_operand.hbm [shape: f32[16,50257], index: 2, kind: output, shape index: {}]  }
   0x1   :  { %9 = vsyncpa [#allocation3 + $0x1], 0 }
   0x2   :  { %10 = vsyncpa [#allocation4], 0 }
   0x3   :  { %12 = vsyncpa [#allocation4 + $0x1], 0  ;;  %s9619_s9 = smov 0   ;;  %s9621_s10 = smov 0  }
   0x4   :  { %s9623_s11 = smov 0   ;;  %s9625_s12 = smov 0  }
   0x5 LB: > { %s9640_s13 = sadd.s32 4294967295, %s9594_s12   ;;  %s7421_s14 = sadd.s32 4294967294, %s9594_s12   ;;  %s9594_s12 = sphi %s9625_s12, %s10937_s12   ;;  %s9590_s11 = sphi %s9623_s11, %s10936_s11   ;;  %s9586_s10 = sphi %s9621_s10, %s10935_s10   ;;  %s9582_s9 = sphi %s9619_s9, %s10934_s9  }
   0x6   : > { %s9644_s15 = sadd.s32 1, %s9594_s12   ;;  %s46_s16 = sadd.s32 1, %s9590_s11 }
   0x7   : > { %s43_s17 = ssub.s32 %s9594_s12, %s9644_s15  ;;  %p53_p0 = scmp.ne.s32.totalorder %s9590_s11, %s9586_s10 }
   0x8   : > { %p44_p1 = scmp.eq.s32.totalorder %s43_s17, 0  ;;  %p54_p2 = scmp.eq.s32.totalorder %s9594_s12, 0 }
   0x9   : > { %p59_p3 = scmp.ne.s32.totalorder %s9586_s10, %s9582_s9  ;;  %p60_p4 = scmp.eq.s32.totalorder %s9640_s13, 0 }
   0xa   : > { %s9656_s18 = scalar_select %p44_p1, %s9590_s11, %s46_s16  }
   0xb   : > { %p55_p5 = por %p54_p2, %p53_p0  ;;  %p9658_p6 = por %p60_p4, %p59_p3 }
   0xc   : > { %p83_p7 = scmp.eq.s32.totalorder %s9640_s13, 3  ;;  %p89_p8 = scmp.eq.s32.totalorder %s7421_s14, 3 }
   0xd   : > { %p8253_p9 = scmp.lt.s32.totalorder %s9594_s12, 4  ;;  %s112_s22 = sand.u32 1, %s9590_s11  }
   0xe   : > { %p9664_p10 = por %p83_p7, %p53_p0  ;;  %p9668_p11 = por %p89_p8, %p59_p3 }
   0xf   : > { %s8235_s23 = smul.u32 6400, %s9594_s12  ;;  %p9679_p12 = pnand %p8253_p9, %p55_p5 }
  0x10   : > { %s10928_s20 = scalar_select %p9664_p10, 1, 0 }
  0x11   : > { %s10929_s21 = scalar_select %p9668_p11, 1, 0 }
  0x12   : > { %s8239_s24 = smul.u32 6400, %s112_s22  ;;  %s9677_s27 = scalar_lea.hbm %s10925_s1, %s8235_s23 }
  0x13   : > { %s9686_s3 = scalar_lea.sflag [#allocation3], %s112_s22  ;;  %s9498_s4 = scalar_lea.hbm %s9677_s27, 102400 }
  0x14   : > { %s116_s29 = scalar_lea.vmem [#allocation2], %s8239_s24  ;;  %p9499_p0 = scmp.ne.s32.totalorder %s9677_s27, %s9498_s4 }
  0x15   : > { %s123_s30 = sshll.u32 %s116_s29, 4  ;;  %p9500_p1 = pneg %p9679_p12  ;;  %s9683_s30 = int_to_ptr.vmem [resolvable:$true] %s123_s30 }
  0x16   : > { %s9503_s7 = scalar_lea.hbm %s10925_s1, 409600  ;;  %p9504_p4 = scmp.lt.u32.totalorder %s9677_s27, %s10925_s1 }
  0x17   : > { %p9501_p2 = pnand %p9500_p1, %p9499_p0  ;;  %p9505_p5 = scmp.lt.u32.totalorder %s9503_s7, %s9498_s4 }
  0x18   : > { %p9507_p8 = scmp.lt.u32.totalorder %s9498_s4, %s9677_s27 }
  0x19   : > { %p9502_p3 = pneg %p9501_p2  ;;  %p9506_p7 = por %p9505_p5, %p9504_p4 }
  0x1b   : > { %p9508_p9 = por %p9507_p8, %p9506_p7 }
  0x1d   : > { %p9509_p13 = pnand %p9508_p9, %p9502_p3 }
  0x1f   : > { %9512 = shalt.err (!%p9509_p13)
}
  0x20   : > { %s9513_s16 = scalar_lea.vmem %s9683_s30, 102400  ;;  %s9596_s17 = smov [#allocation2]  }
  0x21   : > { %p9514_p0 = scmp.ne.s32.totalorder %s9683_s30, %s9513_s16  ;;  %s9518_s22 = sshll.u32 %s9596_s17, 4  ;;  %s9519_s22 = int_to_ptr.vmem [resolvable:$false] %s9518_s22 }
  0x22   : > { %s9520_s23 = scalar_lea.vmem %s9519_s22, 204800  ;;  %p9521_p10 = scmp.lt.s32.totalorder %s9683_s30, %s9519_s22 }
  0x23   : > { %p9516_p2 = pnand %p9514_p0, %p9500_p1  ;;  %p9522_p4 = scmp.lt.s32.totalorder %s9520_s23, %s9513_s16 }
  0x25   : > { %p9517_p11 = pneg %p9516_p2  ;;  %p9523_p5 = por %p9522_p4, %p9521_p10 }
  0x27   : > { %p9524_p7 = pnand %p9523_p5, %p9517_p11 }
  0x29   : > { %9527 = shalt.err (!%p9524_p7)
}
  0x2a   : > { %s9597_s24 = smov 25600   ;;  %s9598_s25 = smov 6400  }
  0x2b   : > { %s9599_s26 = smov 400   ;;  %p131_p13 = scmp.lt.s32.totalorder %s9594_s12, 5 }
  0x2c   : > { %8248 = dma.hbm_to_vmem [thread:$0]  (!%p9679_p12), %s9677_s27, 102400, %s9683_s30, %s9686_s3, %s9597_s24, %s9598_s25, %s9599_s26  }
  0x2d   : > { %p10931_p1 = scmp.ge.s32.totalorder %s9594_s12, 1 }
  0x2f   : > { %p132_p3 = pnand %p10931_p1, %p131_p13 }
  0x30   : > { %s9718_s29 = sand.u32 (!%p132_p3), 1, %s9586_s10  }
  0x31   : > { %135 = sbr.rel (%p132_p3) target bundleno = 1104 (0x450), region = 28  ;;  %s138_s5 = scalar_lea.sflag (!%p132_p3), [#allocation3], %s9718_s29 }
  0x32   : > { %s8240_s4 = smul.u32 (!%p132_p3), 6400, %s9718_s29 }
  0x34   : > { %s9722_s6 = scalar_lea.vmem (!%p132_p3), [#allocation2], %s8240_s4 }
  0x38   : > { %9573 = dma.done.wait (%p9658_p6), %s138_s5, 102400  }
  0x39   : > { %9575 = vsyncadd (%p9658_p6), %s138_s5, 4294864896  ;;  %v9600_v0 = vmov 0   ;;  %v8293_v1 = vld [vmem:[%s9722_s6 + $0x4] ss:$400 sps:$4 sm:$0xff]   ;;  %v8295_v2 = vld [vmem:[%s9722_s6 + $0xc] ss:$400 sps:$4 sm:$0xff]  }
  0x3a   : > { %5009 = vmatprep.mubr.bf16.mxu0 %v9600_v0  ;;  %5052 = vmatprep.mubr.bf16.mxu1 %v9600_v0  ;;  %v8297_v3 = vld [vmem:[%s9722_s6] ss:$400 sps:$4 sm:$0xff]   ;;  %v8298_v4 = vld [vmem:[%s9722_s6 + $0x8] ss:$400 sps:$4 sm:$0xff]   ;;  %v8299_v5 = vld [vmem:[%s9722_s6 + $0x324] ss:$400 sps:$4 sm:$0xff]  }
  0x3b   : > { %4977 = vmatprep.subr.bf16.mxu0 %v8293_v1  ;;  %5020 = vmatprep.subr.bf16.mxu1 %v8295_v2  ;;  %v8301_v6 = vld [vmem:[%s9722_s6 + $0x32c] ss:$400 sps:$4 sm:$0xff]   ;;  %v8303_v7 = vld [vmem:[%s9722_s6 + $0x320] ss:$400 sps:$4 sm:$0xff]   ;;  %v8304_v8 = vld [vmem:[%s9722_s6 + $0x328] ss:$400 sps:$4 sm:$0xff]  }
  0x3c   : > { %4978 = vmatpush1.bf16.msra.mxu0 %v8297_v3  ;;  %5021 = vmatpush1.bf16.msra.mxu1 %v8298_v4  ;;  %v8305_v9 = vld [vmem:[%s9722_s6 + $0x644] ss:$400 sps:$4 sm:$0xff]   ;;  %v8307_v10 = vld [vmem:[%s9722_s6 + $0x64c] ss:$400 sps:$4 sm:$0xff]   ;;  %v8309_v11 = vld [vmem:[%s9722_s6 + $0x640] ss:$400 sps:$4 sm:$0xff]  }
  0x3d   : > { %4979 = vmatprep.subr.bf16.mxu0 %v8299_v5  ;;  %5022 = vmatprep.subr.bf16.mxu1 %v8301_v6  ;;  %v8310_v12 = vld [vmem:[%s9722_s6 + $0x648] ss:$400 sps:$4 sm:$0xff]   ;;  %v8311_v13 = vld [vmem:[%s9722_s6 + $0x964] ss:$400 sps:$4 sm:$0xff]   ;;  %v8313_v14 = vld [vmem:[%s9722_s6 + $0x96c] ss:$400 sps:$4 sm:$0xff]  }
  0x3e   : > { %v8315_v15 = vld [vmem:[%s9722_s6 + $0x960] ss:$400 sps:$4 sm:$0xff]   ;;  %v8316_v16 = vld [vmem:[%s9722_s6 + $0x968] ss:$400 sps:$4 sm:$0xff]   ;;  %v8317_v17 = vld [vmem:[%s9722_s6 + $0xc84] ss:$400 sps:$4 sm:$0xff]  }
  0x3f   : > { %v8319_v18 = vld [vmem:[%s9722_s6 + $0xc8c] ss:$400 sps:$4 sm:$0xff]   ;;  %v8321_v19 = vld [vmem:[%s9722_s6 + $0xc80] ss:$400 sps:$4 sm:$0xff]   ;;  %v8322_v20 = vld [vmem:[%s9722_s6 + $0xc88] ss:$400 sps:$4 sm:$0xff]  }
  0x40   : > { %4980 = vmatpush1.bf16.msra.mxu0 %v8303_v7  ;;  %5023 = vmatpush1.bf16.msra.mxu1 %v8304_v8  ;;  %v8323_v21 = vld [vmem:[%s9722_s6 + $0xfa4] ss:$400 sps:$4 sm:$0xff]   ;;  %v8325_v22 = vld [vmem:[%s9722_s6 + $0xfac] ss:$400 sps:$4 sm:$0xff]   ;;  %v8327_v23 = vld [vmem:[%s9722_s6 + $0xfa0] ss:$400 sps:$4 sm:$0xff]  }
  0x41   : > { %4981 = vmatprep.subr.bf16.mxu0 %v8305_v9  ;;  %5024 = vmatprep.subr.bf16.mxu1 %v8307_v10  ;;  %v8328_v24 = vld [vmem:[%s9722_s6 + $0xfa8] ss:$400 sps:$4 sm:$0xff]   ;;  %v8329_v25 = vld [vmem:[%s9722_s6 + $0x12c4] ss:$400 sps:$4 sm:$0xff]   ;;  %v8331_v26 = vld [vmem:[%s9722_s6 + $0x12cc] ss:$400 sps:$4 sm:$0xff]  }
  0x42   : > { %v8333_v27 = vld [vmem:[%s9722_s6 + $0x12c0] ss:$400 sps:$4 sm:$0xff]   ;;  %v8334_v28 = vld [vmem:[%s9722_s6 + $0x12c8] ss:$400 sps:$4 sm:$0xff]   ;;  %v8335_v29 = vld [vmem:[%s9722_s6 + $0x15e4] ss:$400 sps:$4 sm:$0xff]  }
  0x43   : > { %v8337_v30 = vld [vmem:[%s9722_s6 + $0x15ec] ss:$400 sps:$4 sm:$0xff]   ;;  %v8339_v31 = vld [vmem:[%s9722_s6 + $0x15e0] ss:$400 sps:$4 sm:$0xff]   ;;  %v8340_v32 = vld [vmem:[%s9722_s6 + $0x15e8] ss:$400 sps:$4 sm:$0xff]  }
  0x44   : > { %4982 = vmatpush1.bf16.msra.mxu0 %v8309_v11  ;;  %5025 = vmatpush1.bf16.msra.mxu1 %v8310_v12  ;;  %v8344_v33 = vld [vmem:[%s9722_s6 + $0x14] ss:$400 sps:$4 sm:$0xff]   ;;  %v8347_v34 = vld [vmem:[%s9722_s6 + $0x1c] ss:$400 sps:$4 sm:$0xff]   ;;  %v8342_v36 = vld [vmem:[%s9722_s6 + $0x10] ss:$400 sps:$4 sm:$0xff]  }
  0x45   : > { %4983 = vmatprep.subr.bf16.mxu0 %v8311_v13  ;;  %5026 = vmatprep.subr.bf16.mxu1 %v8313_v14  ;;  %v9767_v35 = vld [vmem:[%s10924_s0] sm:$0xff]   ;;  %v8350_v38 = vld [vmem:[%s9722_s6 + $0x334] ss:$400 sps:$4 sm:$0xff]   ;;  %v8348_v40 = vld [vmem:[%s9722_s6 + $0x330] ss:$400 sps:$4 sm:$0xff]   ;;  %s8241_s3 = smul.u32 1600, %s9718_s29 }
  0x46   : > { %v8345_v37 = vld [vmem:[%s9722_s6 + $0x18] ss:$400 sps:$4 sm:$0xff]   ;;  %v8353_v39 = vld [vmem:[%s9722_s6 + $0x33c] ss:$400 sps:$4 sm:$0xff]   ;;  %v8356_v42 = vld [vmem:[%s9722_s6 + $0x654] ss:$400 sps:$4 sm:$0xff]  }
  0x47   : > { %v8351_v41 = vld [vmem:[%s9722_s6 + $0x338] ss:$400 sps:$4 sm:$0xff]   ;;  %v8359_v43 = vld [vmem:[%s9722_s6 + $0x65c] ss:$400 sps:$4 sm:$0xff]   ;;  %v8354_v44 = vld [vmem:[%s9722_s6 + $0x650] ss:$400 sps:$4 sm:$0xff]  }
  0x48   : > { %4984 = vmatpush1.bf16.msra.mxu0 %v8315_v15  ;;  %5027 = vmatpush1.bf16.msra.mxu1 %v8316_v16  ;;  %v8357_v45 = vld [vmem:[%s9722_s6 + $0x658] ss:$400 sps:$4 sm:$0xff]   ;;  %v8362_v46 = vld [vmem:[%s9722_s6 + $0x974] ss:$400 sps:$4 sm:$0xff]   ;;  %v8365_v47 = vld [vmem:[%s9722_s6 + $0x97c] ss:$400 sps:$4 sm:$0xff]  }
  0x49   : > { %4985 = vmatprep.subr.bf16.mxu0 %v8317_v17  ;;  %5028 = vmatprep.subr.bf16.mxu1 %v8319_v18  ;;  %v8360_v48 = vld [vmem:[%s9722_s6 + $0x970] ss:$400 sps:$4 sm:$0xff]   ;;  %v8363_v49 = vld [vmem:[%s9722_s6 + $0x978] ss:$400 sps:$4 sm:$0xff]   ;;  %v8368_v50 = vld [vmem:[%s9722_s6 + $0xc94] ss:$400 sps:$4 sm:$0xff]  }
  0x4a   : > { %v8371_v51 = vld [vmem:[%s9722_s6 + $0xc9c] ss:$400 sps:$4 sm:$0xff]   ;;  %v8366_v52 = vld [vmem:[%s9722_s6 + $0xc90] ss:$400 sps:$4 sm:$0xff]   ;;  %v8369_v53 = vld [vmem:[%s9722_s6 + $0xc98] ss:$400 sps:$4 sm:$0xff]  }
  0x4b   : > { %v8374_v54 = vld [vmem:[%s9722_s6 + $0xfb4] ss:$400 sps:$4 sm:$0xff]   ;;  %v8377_v55 = vld [vmem:[%s9722_s6 + $0xfbc] ss:$400 sps:$4 sm:$0xff]   ;;  %v8372_v56 = vld [vmem:[%s9722_s6 + $0xfb0] ss:$400 sps:$4 sm:$0xff]  }
  0x4c   : > { %4986 = vmatpush1.bf16.msra.mxu0 %v8321_v19  ;;  %5029 = vmatpush1.bf16.msra.mxu1 %v8322_v20  ;;  %v8375_v57 = vld [vmem:[%s9722_s6 + $0xfb8] ss:$400 sps:$4 sm:$0xff]   ;;  %v8380_v58 = vld [vmem:[%s9722_s6 + $0x12d4] ss:$400 sps:$4 sm:$0xff]   ;;  %v8383_v59 = vld [vmem:[%s9722_s6 + $0x12dc] ss:$400 sps:$4 sm:$0xff]  }
  0x4d   : > { %4987 = vmatprep.subr.bf16.mxu0 %v8323_v21  ;;  %5030 = vmatprep.subr.bf16.mxu1 %v8325_v22  ;;  %v8378_v60 = vld [vmem:[%s9722_s6 + $0x12d0] ss:$400 sps:$4 sm:$0xff]   ;;  %v8381_v61 = vld [vmem:[%s9722_s6 + $0x12d8] ss:$400 sps:$4 sm:$0xff]   ;;  %v8386_v62 = vld [vmem:[%s9722_s6 + $0x15f4] ss:$400 sps:$4 sm:$0xff]  }
  0x4e   : > { %v8389_v63 = vld [vmem:[%s9722_s6 + $0x15fc] ss:$400 sps:$4 sm:$0xff]   ;;  %v8384_v1 = vld [vmem:[%s9722_s6 + $0x15f0] ss:$400 sps:$4 sm:$0xff]   ;;  %v8387_v2 = vld [vmem:[%s9722_s6 + $0x15f8] ss:$400 sps:$4 sm:$0xff]  }
  0x4f   : > { %v8392_v3 = vld [vmem:[%s9722_s6 + $0x24] ss:$400 sps:$4 sm:$0xff]   ;;  %v8395_v4 = vld [vmem:[%s9722_s6 + $0x2c] ss:$400 sps:$4 sm:$0xff]   ;;  %v8390_v5 = vld [vmem:[%s9722_s6 + $0x20] ss:$400 sps:$4 sm:$0xff]  }
  0x50   : > { %4988 = vmatpush1.bf16.msra.mxu0 %v8327_v23  ;;  %5031 = vmatpush1.bf16.msra.mxu1 %v8328_v24  ;;  %v8393_v6 = vld [vmem:[%s9722_s6 + $0x28] ss:$400 sps:$4 sm:$0xff]   ;;  %v8398_v7 = vld [vmem:[%s9722_s6 + $0x344] ss:$400 sps:$4 sm:$0xff]   ;;  %v8401_v8 = vld [vmem:[%s9722_s6 + $0x34c] ss:$400 sps:$4 sm:$0xff]  }
  0x51   : > { %4989 = vmatprep.subr.bf16.mxu0 %v8329_v25  ;;  %5032 = vmatprep.subr.bf16.mxu1 %v8331_v26  ;;  %v8396_v9 = vld [vmem:[%s9722_s6 + $0x340] ss:$400 sps:$4 sm:$0xff]   ;;  %v8399_v10 = vld [vmem:[%s9722_s6 + $0x348] ss:$400 sps:$4 sm:$0xff]   ;;  %v8404_v11 = vld [vmem:[%s9722_s6 + $0x664] ss:$400 sps:$4 sm:$0xff]  }
  0x52   : > { %v8407_v12 = vld [vmem:[%s9722_s6 + $0x66c] ss:$400 sps:$4 sm:$0xff]   ;;  %v8402_v13 = vld [vmem:[%s9722_s6 + $0x660] ss:$400 sps:$4 sm:$0xff]   ;;  %v8405_v14 = vld [vmem:[%s9722_s6 + $0x668] ss:$400 sps:$4 sm:$0xff]  }
  0x53   : > { %v8410_v15 = vld [vmem:[%s9722_s6 + $0x984] ss:$400 sps:$4 sm:$0xff]   ;;  %v8413_v16 = vld [vmem:[%s9722_s6 + $0x98c] ss:$400 sps:$4 sm:$0xff]   ;;  %v8408_v17 = vld [vmem:[%s9722_s6 + $0x980] ss:$400 sps:$4 sm:$0xff]  }
  0x54   : > { %4990 = vmatpush1.bf16.msra.mxu0 %v8333_v27  ;;  %5033 = vmatpush1.bf16.msra.mxu1 %v8334_v28  ;;  %v8411_v18 = vld [vmem:[%s9722_s6 + $0x988] ss:$400 sps:$4 sm:$0xff]   ;;  %v8416_v19 = vld [vmem:[%s9722_s6 + $0xca4] ss:$400 sps:$4 sm:$0xff]   ;;  %v8419_v20 = vld [vmem:[%s9722_s6 + $0xcac] ss:$400 sps:$4 sm:$0xff]  }
  0x55   : > { %4991 = vmatprep.subr.bf16.mxu0 %v8335_v29  ;;  %5034 = vmatprep.subr.bf16.mxu1 %v8337_v30  ;;  %v8414_v21 = vld [vmem:[%s9722_s6 + $0xca0] ss:$400 sps:$4 sm:$0xff]   ;;  %v8417_v22 = vld [vmem:[%s9722_s6 + $0xca8] ss:$400 sps:$4 sm:$0xff]   ;;  %v8422_v23 = vld [vmem:[%s9722_s6 + $0xfc4] ss:$400 sps:$4 sm:$0xff]  }
  0x56   : > { %v8425_v24 = vld [vmem:[%s9722_s6 + $0xfcc] ss:$400 sps:$4 sm:$0xff]   ;;  %v8420_v25 = vld [vmem:[%s9722_s6 + $0xfc0] ss:$400 sps:$4 sm:$0xff]   ;;  %v8423_v26 = vld [vmem:[%s9722_s6 + $0xfc8] ss:$400 sps:$4 sm:$0xff]  }
  0x57   : > { %v8428_v27 = vld [vmem:[%s9722_s6 + $0x12e4] ss:$400 sps:$4 sm:$0xff]   ;;  %v8431_v28 = vld [vmem:[%s9722_s6 + $0x12ec] ss:$400 sps:$4 sm:$0xff]   ;;  %v8426_v29 = vld [vmem:[%s9722_s6 + $0x12e0] ss:$400 sps:$4 sm:$0xff]  }
  0x58   : > { %4992 = vmatpush1.bf16.msra.mxu0 %v8339_v31  ;;  %5035 = vmatpush1.bf16.msra.mxu1 %v8340_v32  ;;  %v8429_v30 = vld [vmem:[%s9722_s6 + $0x12e8] ss:$400 sps:$4 sm:$0xff]   ;;  %v8434_v31 = vld [vmem:[%s9722_s6 + $0x1604] ss:$400 sps:$4 sm:$0xff]   ;;  %v8437_v32 = vld [vmem:[%s9722_s6 + $0x160c] ss:$400 sps:$4 sm:$0xff]  }
  0x59   : > { %5063 = vmatprep.subr.bf16.mxu0 %v8344_v33  ;;  %5106 = vmatprep.subr.bf16.mxu1 %v8347_v34  ;;  %v8432_v33 = vld [vmem:[%s9722_s6 + $0x1600] ss:$400 sps:$4 sm:$0xff]   ;;  %v8435_v34 = vld [vmem:[%s9722_s6 + $0x1608] ss:$400 sps:$4 sm:$0xff]   ;;  %s10019_s7 = scalar_lea.vmem [#allocation5], %s8241_s3  ;;  %s7328_s24 = scalar_lea.sflag [#allocation4], %s9718_s29 }
  0x5a   : > { %p10932_p6 = scmp.ne.s32.totalorder %s10928_s20, 0 }
  0x5b   : > { %5010 = vmatmul.mubr.bf16.vlgmr.msra.gmra.mrb[0].mxu0 %v9767_v35  ;;  %5053 = vmatmul.mubr.bf16.vlgmr.msra.gmra.mrb[0].mxu1 %v9767_v35  ;;  %s7335_s25 = smul.u32 (%p10932_p6), 100, %s9640_s13 }
  0x5c   : > { %5064 = vmatpush1.bf16.msra.mxu0 %v8342_v36  ;;  %5107 = vmatpush1.bf16.msra.mxu1 %v8345_v37  ;;  %v8440_v36 = vld [vmem:[%s9722_s6 + $0x34] ss:$400 sps:$4 sm:$0xff]   ;;  %v8443_v37 = vld [vmem:[%s9722_s6 + $0x3c] ss:$400 sps:$4 sm:$0xff]  }
  0x5d   : > { %5065 = vmatprep.subr.bf16.mxu0 %v8350_v38  ;;  %5108 = vmatprep.subr.bf16.mxu1 %v8353_v39  ;;  %v8438_v38 = vld [vmem:[%s9722_s6 + $0x30] ss:$400 sps:$4 sm:$0xff]   ;;  %v8441_v39 = vld [vmem:[%s9722_s6 + $0x38] ss:$400 sps:$4 sm:$0xff]   ;;  %s7336_s26 = ssub.s32 (%p10932_p6), 393, %s7335_s25 }
  0x5e   : > { %5095 = vmatprep.mubr.bf16.mxu0 %v9600_v0  ;;  %5138 = vmatprep.mubr.bf16.mxu1 %v9600_v0  ;;  %p7337_p10 = scmp.lt.s32.totalorder (%p10932_p6), %s7336_s26, 100 }
  0x60   : > { %5066 = vmatpush1.bf16.msra.mxu0 %v8348_v40  ;;  %5109 = vmatpush1.bf16.msra.mxu1 %v8351_v41  ;;  %v8446_v40 = vld [vmem:[%s9722_s6 + $0x354] ss:$400 sps:$4 sm:$0xff]   ;;  %v8449_v41 = vld [vmem:[%s9722_s6 + $0x35c] ss:$400 sps:$4 sm:$0xff]  }
  0x61   : > { %5067 = vmatprep.subr.bf16.mxu0 %v8356_v42  ;;  %5110 = vmatprep.subr.bf16.mxu1 %v8359_v43  ;;  %v8444_v42 = vld [vmem:[%s9722_s6 + $0x350] ss:$400 sps:$4 sm:$0xff]   ;;  %v8447_v43 = vld [vmem:[%s9722_s6 + $0x358] ss:$400 sps:$4 sm:$0xff]  }
  0x64   : > { %5068 = vmatpush1.bf16.msra.mxu0 %v8354_v44  ;;  %5111 = vmatpush1.bf16.msra.mxu1 %v8357_v45  ;;  %v8452_v44 = vld [vmem:[%s9722_s6 + $0x674] ss:$400 sps:$4 sm:$0xff]   ;;  %v8455_v45 = vld [vmem:[%s9722_s6 + $0x67c] ss:$400 sps:$4 sm:$0xff]  }
  0x65   : > { %5069 = vmatprep.subr.bf16.mxu0 %v8362_v46  ;;  %5112 = vmatprep.subr.bf16.mxu1 %v8365_v47  ;;  %v8450_v46 = vld [vmem:[%s9722_s6 + $0x670] ss:$400 sps:$4 sm:$0xff]   ;;  %v8453_v47 = vld [vmem:[%s9722_s6 + $0x678] ss:$400 sps:$4 sm:$0xff]  }
  0x68   : > { %5070 = vmatpush1.bf16.msra.mxu0 %v8360_v48  ;;  %5113 = vmatpush1.bf16.msra.mxu1 %v8363_v49  ;;  %v8458_v48 = vld [vmem:[%s9722_s6 + $0x994] ss:$400 sps:$4 sm:$0xff]   ;;  %v8461_v49 = vld [vmem:[%s9722_s6 + $0x99c] ss:$400 sps:$4 sm:$0xff]  }
  0x69   : > { %5071 = vmatprep.subr.bf16.mxu0 %v8368_v50  ;;  %5114 = vmatprep.subr.bf16.mxu1 %v8371_v51  ;;  %v8456_v50 = vld [vmem:[%s9722_s6 + $0x990] ss:$400 sps:$4 sm:$0xff]   ;;  %v8459_v51 = vld [vmem:[%s9722_s6 + $0x998] ss:$400 sps:$4 sm:$0xff]  }
  0x6c   : > { %5072 = vmatpush1.bf16.msra.mxu0 %v8366_v52  ;;  %5115 = vmatpush1.bf16.msra.mxu1 %v8369_v53  ;;  %v8464_v52 = vld [vmem:[%s9722_s6 + $0xcb4] ss:$400 sps:$4 sm:$0xff]   ;;  %v8467_v53 = vld [vmem:[%s9722_s6 + $0xcbc] ss:$400 sps:$4 sm:$0xff]  }
  0x6d   : > { %5073 = vmatprep.subr.bf16.mxu0 %v8374_v54  ;;  %5116 = vmatprep.subr.bf16.mxu1 %v8377_v55  ;;  %v8462_v54 = vld [vmem:[%s9722_s6 + $0xcb0] ss:$400 sps:$4 sm:$0xff]   ;;  %v8465_v55 = vld [vmem:[%s9722_s6 + $0xcb8] ss:$400 sps:$4 sm:$0xff]  }
  0x70   : > { %5074 = vmatpush1.bf16.msra.mxu0 %v8372_v56  ;;  %5117 = vmatpush1.bf16.msra.mxu1 %v8375_v57  ;;  %v8470_v56 = vld [vmem:[%s9722_s6 + $0xfd4] ss:$400 sps:$4 sm:$0xff]   ;;  %v8473_v57 = vld [vmem:[%s9722_s6 + $0xfdc] ss:$400 sps:$4 sm:$0xff]  }
  0x71   : > { %5075 = vmatprep.subr.bf16.mxu0 %v8380_v58  ;;  %5118 = vmatprep.subr.bf16.mxu1 %v8383_v59  ;;  %v8468_v58 = vld [vmem:[%s9722_s6 + $0xfd0] ss:$400 sps:$4 sm:$0xff]   ;;  %v8471_v59 = vld [vmem:[%s9722_s6 + $0xfd8] ss:$400 sps:$4 sm:$0xff]  }
  0x74   : > { %5076 = vmatpush1.bf16.msra.mxu0 %v8378_v60  ;;  %5119 = vmatpush1.bf16.msra.mxu1 %v8381_v61  ;;  %v8476_v60 = vld [vmem:[%s9722_s6 + $0x12f4] ss:$400 sps:$4 sm:$0xff]   ;;  %v8479_v61 = vld [vmem:[%s9722_s6 + $0x12fc] ss:$400 sps:$4 sm:$0xff]  }
  0x75   : > { %5077 = vmatprep.subr.bf16.mxu0 %v8386_v62  ;;  %5120 = vmatprep.subr.bf16.mxu1 %v8389_v63  ;;  %v8474_v62 = vld [vmem:[%s9722_s6 + $0x12f0] ss:$400 sps:$4 sm:$0xff]   ;;  %v8477_v63 = vld [vmem:[%s9722_s6 + $0x12f8] ss:$400 sps:$4 sm:$0xff]  }
  0x78   : > { %5078 = vmatpush1.bf16.msra.mxu0 %v8384_v1  ;;  %5121 = vmatpush1.bf16.msra.mxu1 %v8387_v2  ;;  %v8482_v1 = vld [vmem:[%s9722_s6 + $0x1614] ss:$400 sps:$4 sm:$0xff]   ;;  %v8485_v2 = vld [vmem:[%s9722_s6 + $0x161c] ss:$400 sps:$4 sm:$0xff]  }
  0x79   : > { %5149 = vmatprep.subr.bf16.mxu0 %v8392_v3  ;;  %5192 = vmatprep.subr.bf16.mxu1 %v8395_v4  ;;  %v8480_v3 = vld [vmem:[%s9722_s6 + $0x1610] ss:$400 sps:$4 sm:$0xff]   ;;  %v8483_v4 = vld [vmem:[%s9722_s6 + $0x1618] ss:$400 sps:$4 sm:$0xff]  }
  0x7b   : > { %5096 = vmatmul.mubr.bf16.vlgmr.msra.gmra.mrb[4].mxu0 %v9767_v35  ;;  %5139 = vmatmul.mubr.bf16.vlgmr.msra.gmra.mrb[4].mxu1 %v9767_v35 }
  0x7c   : > { %5150 = vmatpush1.bf16.msra.mxu0 %v8390_v5  ;;  %5193 = vmatpush1.bf16.msra.mxu1 %v8393_v6  ;;  %v8488_v5 = vld [vmem:[%s9722_s6 + $0x44] ss:$400 sps:$4 sm:$0xff]   ;;  %v8491_v6 = vld [vmem:[%s9722_s6 + $0x4c] ss:$400 sps:$4 sm:$0xff]  }
  0x7d   : > { %5151 = vmatprep.subr.bf16.mxu0 %v8398_v7  ;;  %5194 = vmatprep.subr.bf16.mxu1 %v8401_v8  ;;  %v8486_v7 = vld [vmem:[%s9722_s6 + $0x40] ss:$400 sps:$4 sm:$0xff]   ;;  %v8489_v8 = vld [vmem:[%s9722_s6 + $0x48] ss:$400 sps:$4 sm:$0xff]  }
  0x7e   : > { %5181 = vmatprep.mubr.bf16.mxu0 %v9600_v0  ;;  %5224 = vmatprep.mubr.bf16.mxu1 %v9600_v0 }
  0x80   : > { %5152 = vmatpush1.bf16.msra.mxu0 %v8396_v9  ;;  %5195 = vmatpush1.bf16.msra.mxu1 %v8399_v10  ;;  %v8494_v9 = vld [vmem:[%s9722_s6 + $0x364] ss:$400 sps:$4 sm:$0xff]   ;;  %v8497_v10 = vld [vmem:[%s9722_s6 + $0x36c] ss:$400 sps:$4 sm:$0xff]  }
  0x81   : > { %5153 = vmatprep.subr.bf16.mxu0 %v8404_v11  ;;  %5196 = vmatprep.subr.bf16.mxu1 %v8407_v12  ;;  %v8492_v11 = vld [vmem:[%s9722_s6 + $0x360] ss:$400 sps:$4 sm:$0xff]   ;;  %v8495_v12 = vld [vmem:[%s9722_s6 + $0x368] ss:$400 sps:$4 sm:$0xff]  }
  0x84   : > { %5154 = vmatpush1.bf16.msra.mxu0 %v8402_v13  ;;  %5197 = vmatpush1.bf16.msra.mxu1 %v8405_v14  ;;  %v8500_v13 = vld [vmem:[%s9722_s6 + $0x684] ss:$400 sps:$4 sm:$0xff]   ;;  %v8503_v14 = vld [vmem:[%s9722_s6 + $0x68c] ss:$400 sps:$4 sm:$0xff]  }
  0x85   : > { %5155 = vmatprep.subr.bf16.mxu0 %v8410_v15  ;;  %5198 = vmatprep.subr.bf16.mxu1 %v8413_v16  ;;  %v8498_v15 = vld [vmem:[%s9722_s6 + $0x680] ss:$400 sps:$4 sm:$0xff]   ;;  %v8501_v16 = vld [vmem:[%s9722_s6 + $0x688] ss:$400 sps:$4 sm:$0xff]  }
  0x88   : > { %5156 = vmatpush1.bf16.msra.mxu0 %v8408_v17  ;;  %5199 = vmatpush1.bf16.msra.mxu1 %v8411_v18  ;;  %v8506_v17 = vld [vmem:[%s9722_s6 + $0x9a4] ss:$400 sps:$4 sm:$0xff]   ;;  %v8509_v18 = vld [vmem:[%s9722_s6 + $0x9ac] ss:$400 sps:$4 sm:$0xff]  }
  0x89   : > { %5157 = vmatprep.subr.bf16.mxu0 %v8416_v19  ;;  %5200 = vmatprep.subr.bf16.mxu1 %v8419_v20  ;;  %v8504_v19 = vld [vmem:[%s9722_s6 + $0x9a0] ss:$400 sps:$4 sm:$0xff]   ;;  %v8507_v20 = vld [vmem:[%s9722_s6 + $0x9a8] ss:$400 sps:$4 sm:$0xff]  }
  0x8c   : > { %5158 = vmatpush1.bf16.msra.mxu0 %v8414_v21  ;;  %5201 = vmatpush1.bf16.msra.mxu1 %v8417_v22  ;;  %v8512_v21 = vld [vmem:[%s9722_s6 + $0xcc4] ss:$400 sps:$4 sm:$0xff]   ;;  %v8515_v22 = vld [vmem:[%s9722_s6 + $0xccc] ss:$400 sps:$4 sm:$0xff]  }
  0x8d   : > { %5159 = vmatprep.subr.bf16.mxu0 %v8422_v23  ;;  %5202 = vmatprep.subr.bf16.mxu1 %v8425_v24  ;;  %v8510_v23 = vld [vmem:[%s9722_s6 + $0xcc0] ss:$400 sps:$4 sm:$0xff]   ;;  %v8513_v24 = vld [vmem:[%s9722_s6 + $0xcc8] ss:$400 sps:$4 sm:$0xff]  }
  0x90   : > { %5160 = vmatpush1.bf16.msra.mxu0 %v8420_v25  ;;  %5203 = vmatpush1.bf16.msra.mxu1 %v8423_v26  ;;  %v8518_v25 = vld [vmem:[%s9722_s6 + $0xfe4] ss:$400 sps:$4 sm:$0xff]   ;;  %v8521_v26 = vld [vmem:[%s9722_s6 + $0xfec] ss:$400 sps:$4 sm:$0xff]  }
  0x91   : > { %5161 = vmatprep.subr.bf16.mxu0 %v8428_v27  ;;  %5204 = vmatprep.subr.bf16.mxu1 %v8431_v28  ;;  %v8516_v27 = vld [vmem:[%s9722_s6 + $0xfe0] ss:$400 sps:$4 sm:$0xff]   ;;  %v8519_v28 = vld [vmem:[%s9722_s6 + $0xfe8] ss:$400 sps:$4 sm:$0xff]  }
  0x94   : > { %5162 = vmatpush1.bf16.msra.mxu0 %v8426_v29  ;;  %5205 = vmatpush1.bf16.msra.mxu1 %v8429_v30  ;;  %v8524_v29 = vld [vmem:[%s9722_s6 + $0x1304] ss:$400 sps:$4 sm:$0xff]   ;;  %v8527_v30 = vld [vmem:[%s9722_s6 + $0x130c] ss:$400 sps:$4 sm:$0xff]  }
  0x95   : > { %5163 = vmatprep.subr.bf16.mxu0 %v8434_v31  ;;  %5206 = vmatprep.subr.bf16.mxu1 %v8437_v32  ;;  %v8522_v31 = vld [vmem:[%s9722_s6 + $0x1300] ss:$400 sps:$4 sm:$0xff]   ;;  %v8525_v32 = vld [vmem:[%s9722_s6 + $0x1308] ss:$400 sps:$4 sm:$0xff]  }
  0x98   : > { %5164 = vmatpush1.bf16.msra.mxu0 %v8432_v33  ;;  %5207 = vmatpush1.bf16.msra.mxu1 %v8435_v34  ;;  %v8530_v33 = vld [vmem:[%s9722_s6 + $0x1624] ss:$400 sps:$4 sm:$0xff]   ;;  %v8533_v34 = vld [vmem:[%s9722_s6 + $0x162c] ss:$400 sps:$4 sm:$0xff]  }
  0x99   : > { %5235 = vmatprep.subr.bf16.mxu0 %v8440_v36  ;;  %5278 = vmatprep.subr.bf16.mxu1 %v8443_v37  ;;  %v8528_v36 = vld [vmem:[%s9722_s6 + $0x1620] ss:$400 sps:$4 sm:$0xff]   ;;  %v8531_v37 = vld [vmem:[%s9722_s6 + $0x1628] ss:$400 sps:$4 sm:$0xff]  }
  0x9b   : > { %5182 = vmatmul.mubr.bf16.vlgmr.msra.gmra.mrb[8].mxu0 %v9767_v35  ;;  %5225 = vmatmul.mubr.bf16.vlgmr.msra.gmra.mrb[8].mxu1 %v9767_v35 }
  0x9c   : > { %5236 = vmatpush1.bf16.msra.mxu0 %v8438_v38  ;;  %5279 = vmatpush1.bf16.msra.mxu1 %v8441_v39  ;;  %v8536_v38 = vld [vmem:[%s9722_s6 + $0x54] ss:$400 sps:$4 sm:$0xff]   ;;  %v8539_v39 = vld [vmem:[%s9722_s6 + $0x5c] ss:$400 sps:$4 sm:$0xff]  }
  0x9d   : > { %5237 = vmatprep.subr.bf16.mxu0 %v8446_v40  ;;  %5280 = vmatprep.subr.bf16.mxu1 %v8449_v41  ;;  %v8534_v40 = vld [vmem:[%s9722_s6 + $0x50] ss:$400 sps:$4 sm:$0xff]   ;;  %v8537_v41 = vld [vmem:[%s9722_s6 + $0x58] ss:$400 sps:$4 sm:$0xff]  }
  0x9e   : > { %5267 = vmatprep.mubr.bf16.mxu0 %v9600_v0  ;;  %5310 = vmatprep.mubr.bf16.mxu1 %v9600_v0 }
  0xa0   : > { %5238 = vmatpush1.bf16.msra.mxu0 %v8444_v42  ;;  %5281 = vmatpush1.bf16.msra.mxu1 %v8447_v43  ;;  %v8542_v42 = vld [vmem:[%s9722_s6 + $0x374] ss:$400 sps:$4 sm:$0xff]   ;;  %v8545_v43 = vld [vmem:[%s9722_s6 + $0x37c] ss:$400 sps:$4 sm:$0xff]  }
  0xa1   : > { %5239 = vmatprep.subr.bf16.mxu0 %v8452_v44  ;;  %5282 = vmatprep.subr.bf16.mxu1 %v8455_v45  ;;  %v8540_v44 = vld [vmem:[%s9722_s6 + $0x370] ss:$400 sps:$4 sm:$0xff]   ;;  %v8543_v45 = vld [vmem:[%s9722_s6 + $0x378] ss:$400 sps:$4 sm:$0xff]  }
  0xa4   : > { %5240 = vmatpush1.bf16.msra.mxu0 %v8450_v46  ;;  %5283 = vmatpush1.bf16.msra.mxu1 %v8453_v47  ;;  %v8548_v46 = vld [vmem:[%s9722_s6 + $0x694] ss:$400 sps:$4 sm:$0xff]   ;;  %v8551_v47 = vld [vmem:[%s9722_s6 + $0x69c] ss:$400 sps:$4 sm:$0xff]  }
  0xa5   : > { %5241 = vmatprep.subr.bf16.mxu0 %v8458_v48  ;;  %5284 = vmatprep.subr.bf16.mxu1 %v8461_v49  ;;  %v8546_v48 = vld [vmem:[%s9722_s6 + $0x690] ss:$400 sps:$4 sm:$0xff]   ;;  %v8554_v49 = vld [vmem:[%s9722_s6 + $0x9b4] ss:$400 sps:$4 sm:$0xff]  }
  0xa8   : > { %5242 = vmatpush1.bf16.msra.mxu0 %v8456_v50  ;;  %5285 = vmatpush1.bf16.msra.mxu1 %v8459_v51  ;;  %v8557_v50 = vld [vmem:[%s9722_s6 + $0x9bc] ss:$400 sps:$4 sm:$0xff]   ;;  %v8552_v51 = vld [vmem:[%s9722_s6 + $0x9b0] ss:$400 sps:$4 sm:$0xff]  }
  0xa9   : > { %5243 = vmatprep.subr.bf16.mxu0 %v8464_v52  ;;  %5286 = vmatprep.subr.bf16.mxu1 %v8467_v53  ;;  %v8555_v52 = vld [vmem:[%s9722_s6 + $0x9b8] ss:$400 sps:$4 sm:$0xff]   ;;  %v8560_v53 = vld [vmem:[%s9722_s6 + $0xcd4] ss:$400 sps:$4 sm:$0xff]  }
  0xac   : > { %5244 = vmatpush1.bf16.msra.mxu0 %v8462_v54  ;;  %5287 = vmatpush1.bf16.msra.mxu1 %v8465_v55  ;;  %v8563_v54 = vld [vmem:[%s9722_s6 + $0xcdc] ss:$400 sps:$4 sm:$0xff]   ;;  %v8558_v55 = vld [vmem:[%s9722_s6 + $0xcd0] ss:$400 sps:$4 sm:$0xff]  }
  0xad   : > { %5245 = vmatprep.subr.bf16.mxu0 %v8470_v56  ;;  %5288 = vmatprep.subr.bf16.mxu1 %v8473_v57  ;;  %v8561_v56 = vld [vmem:[%s9722_s6 + $0xcd8] ss:$400 sps:$4 sm:$0xff]   ;;  %v8566_v57 = vld [vmem:[%s9722_s6 + $0xff4] ss:$400 sps:$4 sm:$0xff]  }
  0xb0   : > { %5246 = vmatpush1.bf16.msra.mxu0 %v8468_v58  ;;  %5289 = vmatpush1.bf16.msra.mxu1 %v8471_v59  ;;  %v8569_v58 = vld [vmem:[%s9722_s6 + $0xffc] ss:$400 sps:$4 sm:$0xff]   ;;  %v8564_v59 = vld [vmem:[%s9722_s6 + $0xff0] ss:$400 sps:$4 sm:$0xff]  }
  0xb1   : > { %5247 = vmatprep.subr.bf16.mxu0 %v8476_v60  ;;  %5290 = vmatprep.subr.bf16.mxu1 %v8479_v61  ;;  %v8567_v60 = vld [vmem:[%s9722_s6 + $0xff8] ss:$400 sps:$4 sm:$0xff]   ;;  %v8572_v61 = vld [vmem:[%s9722_s6 + $0x1314] ss:$400 sps:$4 sm:$0xff]  }
  0xb4   : > { %5248 = vmatpush1.bf16.msra.mxu0 %v8474_v62  ;;  %5291 = vmatpush1.bf16.msra.mxu1 %v8477_v63  ;;  %v8575_v62 = vld [vmem:[%s9722_s6 + $0x131c] ss:$400 sps:$4 sm:$0xff]   ;;  %v8570_v63 = vld [vmem:[%s9722_s6 + $0x1310] ss:$400 sps:$4 sm:$0xff]  }
  0xb5   : > { %5249 = vmatprep.subr.bf16.mxu0 %v8482_v1  ;;  %5292 = vmatprep.subr.bf16.mxu1 %v8485_v2  ;;  %v8573_v1 = vld [vmem:[%s9722_s6 + $0x1318] ss:$400 sps:$4 sm:$0xff]   ;;  %v8578_v2 = vld [vmem:[%s9722_s6 + $0x1634] ss:$400 sps:$4 sm:$0xff]  }
  0xb8   : > { %5250 = vmatpush1.bf16.msra.mxu0 %v8480_v3  ;;  %5293 = vmatpush1.bf16.msra.mxu1 %v8483_v4  ;;  %v8581_v3 = vld [vmem:[%s9722_s6 + $0x163c] ss:$400 sps:$4 sm:$0xff]   ;;  %v8576_v4 = vld [vmem:[%s9722_s6 + $0x1630] ss:$400 sps:$4 sm:$0xff]  }
  0xb9   : > { %5321 = vmatprep.subr.bf16.mxu0 %v8488_v5  ;;  %5364 = vmatprep.subr.bf16.mxu1 %v8491_v6  ;;  %v8579_v5 = vld [vmem:[%s9722_s6 + $0x1638] ss:$400 sps:$4 sm:$0xff]   ;;  %v8584_v6 = vld [vmem:[%s9722_s6 + $0x64] ss:$400 sps:$4 sm:$0xff]  }
  0xbb   : > { %5268 = vmatmul.mubr.bf16.vlgmr.msra.gmra.mrb[12].mxu0 %v9767_v35  ;;  %5311 = vmatmul.mubr.bf16.vlgmr.msra.gmra.mrb[12].mxu1 %v9767_v35 }
  0xbc   : > { %5322 = vmatpush1.bf16.msra.mxu0 %v8486_v7  ;;  %5365 = vmatpush1.bf16.msra.mxu1 %v8489_v8  ;;  %v8587_v7 = vld [vmem:[%s9722_s6 + $0x6c] ss:$400 sps:$4 sm:$0xff]   ;;  %v8582_v8 = vld [vmem:[%s9722_s6 + $0x60] ss:$400 sps:$4 sm:$0xff]  }
  0xbd   : > { %5323 = vmatprep.subr.bf16.mxu0 %v8494_v9  ;;  %5366 = vmatprep.subr.bf16.mxu1 %v8497_v10  ;;  %v8585_v9 = vld [vmem:[%s9722_s6 + $0x68] ss:$400 sps:$4 sm:$0xff]   ;;  %v8590_v10 = vld [vmem:[%s9722_s6 + $0x384] ss:$400 sps:$4 sm:$0xff]  }
  0xbe   : > { %5353 = vmatprep.mubr.bf16.mxu0 %v9600_v0  ;;  %5396 = vmatprep.mubr.bf16.mxu1 %v9600_v0 }
  0xc0   : > { %5324 = vmatpush1.bf16.msra.mxu0 %v8492_v11  ;;  %5367 = vmatpush1.bf16.msra.mxu1 %v8495_v12  ;;  %v8593_v11 = vld [vmem:[%s9722_s6 + $0x38c] ss:$400 sps:$4 sm:$0xff]  }
  0xc1   : > { %5325 = vmatprep.subr.bf16.mxu0 %v8500_v13  ;;  %5368 = vmatprep.subr.bf16.mxu1 %v8503_v14  ;;  %v9956_v12 = vld [vmem:[%s10924_s0] sm:$0xff]   ;;  %v8588_v13 = vld [vmem:[%s9722_s6 + $0x380] ss:$400 sps:$4 sm:$0xff]  }
  0xc2   : > { %v8591_v14 = vld [vmem:[%s9722_s6 + $0x388] ss:$400 sps:$4 sm:$0xff]  }
  0xc4   : > { %5326 = vmatpush1.bf16.msra.mxu0 %v8498_v15  ;;  %5369 = vmatpush1.bf16.msra.mxu1 %v8501_v16  ;;  %v8596_v15 = vld [vmem:[%s9722_s6 + $0x6a4] ss:$400 sps:$4 sm:$0xff]   ;;  %v8599_v16 = vld [vmem:[%s9722_s6 + $0x6ac] ss:$400 sps:$4 sm:$0xff]  }
  0xc5   : > { %5327 = vmatprep.subr.bf16.mxu0 %v8506_v17  ;;  %5370 = vmatprep.subr.bf16.mxu1 %v8509_v18  ;;  %v8594_v17 = vld [vmem:[%s9722_s6 + $0x6a0] ss:$400 sps:$4 sm:$0xff]   ;;  %v8597_v18 = vld [vmem:[%s9722_s6 + $0x6a8] ss:$400 sps:$4 sm:$0xff]  }
  0xc8   : > { %5328 = vmatpush1.bf16.msra.mxu0 %v8504_v19  ;;  %5371 = vmatpush1.bf16.msra.mxu1 %v8507_v20  ;;  %v8602_v19 = vld [vmem:[%s9722_s6 + $0x9c4] ss:$400 sps:$4 sm:$0xff]   ;;  %v8605_v20 = vld [vmem:[%s9722_s6 + $0x9cc] ss:$400 sps:$4 sm:$0xff]  }
  0xc9   : > { %5329 = vmatprep.subr.bf16.mxu0 %v8512_v21  ;;  %5372 = vmatprep.subr.bf16.mxu1 %v8515_v22  ;;  %v8600_v21 = vld [vmem:[%s9722_s6 + $0x9c0] ss:$400 sps:$4 sm:$0xff]   ;;  %v8603_v22 = vld [vmem:[%s9722_s6 + $0x9c8] ss:$400 sps:$4 sm:$0xff]  }
  0xcc   : > { %5330 = vmatpush1.bf16.msra.mxu0 %v8510_v23  ;;  %5373 = vmatpush1.bf16.msra.mxu1 %v8513_v24  ;;  %v8608_v23 = vld [vmem:[%s9722_s6 + $0xce4] ss:$400 sps:$4 sm:$0xff]   ;;  %v8611_v24 = vld [vmem:[%s9722_s6 + $0xcec] ss:$400 sps:$4 sm:$0xff]  }
  0xcd   : > { %5331 = vmatprep.subr.bf16.mxu0 %v8518_v25  ;;  %5374 = vmatprep.subr.bf16.mxu1 %v8521_v26  ;;  %v8606_v25 = vld [vmem:[%s9722_s6 + $0xce0] ss:$400 sps:$4 sm:$0xff]   ;;  %v8609_v26 = vld [vmem:[%s9722_s6 + $0xce8] ss:$400 sps:$4 sm:$0xff]  }
  0xd0   : > { %5332 = vmatpush1.bf16.msra.mxu0 %v8516_v27  ;;  %5375 = vmatpush1.bf16.msra.mxu1 %v8519_v28  ;;  %v8614_v27 = vld [vmem:[%s9722_s6 + $0x1004] ss:$400 sps:$4 sm:$0xff]   ;;  %v8617_v28 = vld [vmem:[%s9722_s6 + $0x100c] ss:$400 sps:$4 sm:$0xff]  }
  0xd1   : > { %5333 = vmatprep.subr.bf16.mxu0 %v8524_v29  ;;  %5376 = vmatprep.subr.bf16.mxu1 %v8527_v30  ;;  %v8612_v29 = vld [vmem:[%s9722_s6 + $0x1000] ss:$400 sps:$4 sm:$0xff]   ;;  %v8615_v30 = vld [vmem:[%s9722_s6 + $0x1008] ss:$400 sps:$4 sm:$0xff]  }
  0xd4   : > { %5334 = vmatpush1.bf16.msra.mxu0 %v8522_v31  ;;  %5377 = vmatpush1.bf16.msra.mxu1 %v8525_v32  ;;  %v8620_v31 = vld [vmem:[%s9722_s6 + $0x1324] ss:$400 sps:$4 sm:$0xff]   ;;  %v8623_v32 = vld [vmem:[%s9722_s6 + $0x132c] ss:$400 sps:$4 sm:$0xff]  }
  0xd5   : > { %5335 = vmatprep.subr.bf16.mxu0 %v8530_v33  ;;  %5378 = vmatprep.subr.bf16.mxu1 %v8533_v34  ;;  %v8618_v33 = vld [vmem:[%s9722_s6 + $0x1320] ss:$400 sps:$4 sm:$0xff]   ;;  %v8621_v34 = vld [vmem:[%s9722_s6 + $0x1328] ss:$400 sps:$4 sm:$0xff]  }
  0xd8   : > { %5336 = vmatpush1.bf16.msra.mxu0 %v8528_v36  ;;  %5379 = vmatpush1.bf16.msra.mxu1 %v8531_v37  ;;  %v8626_v36 = vld [vmem:[%s9722_s6 + $0x1644] ss:$400 sps:$4 sm:$0xff]   ;;  %v8629_v37 = vld [vmem:[%s9722_s6 + $0x164c] ss:$400 sps:$4 sm:$0xff]  }
  0xd9   : > { %5407 = vmatprep.subr.bf16.mxu0 %v8536_v38  ;;  %5450 = vmatprep.subr.bf16.mxu1 %v8539_v39  ;;  %v8624_v38 = vld [vmem:[%s9722_s6 + $0x1640] ss:$400 sps:$4 sm:$0xff]   ;;  %v8627_v39 = vld [vmem:[%s9722_s6 + $0x1648] ss:$400 sps:$4 sm:$0xff]  }
  0xdb   : > { %5354 = vmatmul.mubr.bf16.vlgmr.msra.gmra.mrb[16].mxu0 %v9767_v35  ;;  %5397 = vmatmul.mubr.bf16.vlgmr.msra.gmra.mrb[16].mxu1 %v9767_v35  ;;  %v8549_v35 = vld [vmem:[%s9722_s6 + $0x698] ss:$400 sps:$4 sm:$0xff]  }
  0xdc   : > { %5408 = vmatpush1.bf16.msra.mxu0 %v8534_v40  ;;  %5451 = vmatpush1.bf16.msra.mxu1 %v8537_v41  ;;  %v8632_v40 = vld [vmem:[%s9722_s6 + $0x74] ss:$400 sps:$4 sm:$0xff]   ;;  %v8635_v41 = vld [vmem:[%s9722_s6 + $0x7c] ss:$400 sps:$4 sm:$0xff]  }
  0xdd   : > { %5409 = vmatprep.subr.bf16.mxu0 %v8542_v42  ;;  %5452 = vmatprep.subr.bf16.mxu1 %v8545_v43  ;;  %v8630_v42 = vld [vmem:[%s9722_s6 + $0x70] ss:$400 sps:$4 sm:$0xff]   ;;  %v8633_v43 = vld [vmem:[%s9722_s6 + $0x78] ss:$400 sps:$4 sm:$0xff]  }
  0xde   : > { %5439 = vmatprep.mubr.bf16.mxu0 %v9600_v0  ;;  %5482 = vmatprep.mubr.bf16.mxu1 %v9600_v0 }
  0xe0   : > { %5410 = vmatpush1.bf16.msra.mxu0 %v8540_v44  ;;  %5453 = vmatpush1.bf16.msra.mxu1 %v8543_v45  ;;  %v8638_v44 = vld [vmem:[%s9722_s6 + $0x394] ss:$400 sps:$4 sm:$0xff]   ;;  %v8641_v45 = vld [vmem:[%s9722_s6 + $0x39c] ss:$400 sps:$4 sm:$0xff]  }
  0xe1   : > { %5411 = vmatprep.subr.bf16.mxu0 %v8548_v46  ;;  %5454 = vmatprep.subr.bf16.mxu1 %v8551_v47  ;;  %v8636_v46 = vld [vmem:[%s9722_s6 + $0x390] ss:$400 sps:$4 sm:$0xff]   ;;  %v8639_v47 = vld [vmem:[%s9722_s6 + $0x398] ss:$400 sps:$4 sm:$0xff]  }
  0xe4   : > { %5412 = vmatpush1.bf16.msra.mxu0 %v8546_v48  ;;  %5455 = vmatpush1.bf16.msra.mxu1 %v8549_v35  ;;  %v8644_v48 = vld [vmem:[%s9722_s6 + $0x6b4] ss:$400 sps:$4 sm:$0xff]   ;;  %v8647_v35 = vld [vmem:[%s9722_s6 + $0x6bc] ss:$400 sps:$4 sm:$0xff]  }
  0xe5   : > { %5413 = vmatprep.subr.bf16.mxu0 %v8554_v49  ;;  %5456 = vmatprep.subr.bf16.mxu1 %v8557_v50  ;;  %v8642_v49 = vld [vmem:[%s9722_s6 + $0x6b0] ss:$400 sps:$4 sm:$0xff]   ;;  %v8645_v50 = vld [vmem:[%s9722_s6 + $0x6b8] ss:$400 sps:$4 sm:$0xff]  }
  0xe8   : > { %5414 = vmatpush1.bf16.msra.mxu0 %v8552_v51  ;;  %5457 = vmatpush1.bf16.msra.mxu1 %v8555_v52  ;;  %v8650_v51 = vld [vmem:[%s9722_s6 + $0x9d4] ss:$400 sps:$4 sm:$0xff]   ;;  %v8653_v52 = vld [vmem:[%s9722_s6 + $0x9dc] ss:$400 sps:$4 sm:$0xff]  }
  0xe9   : > { %5415 = vmatprep.subr.bf16.mxu0 %v8560_v53  ;;  %5458 = vmatprep.subr.bf16.mxu1 %v8563_v54  ;;  %v8648_v53 = vld [vmem:[%s9722_s6 + $0x9d0] ss:$400 sps:$4 sm:$0xff]   ;;  %v8651_v54 = vld [vmem:[%s9722_s6 + $0x9d8] ss:$400 sps:$4 sm:$0xff]  }
  0xec   : > { %5416 = vmatpush1.bf16.msra.mxu0 %v8558_v55  ;;  %5459 = vmatpush1.bf16.msra.mxu1 %v8561_v56  ;;  %v8656_v55 = vld [vmem:[%s9722_s6 + $0xcf4] ss:$400 sps:$4 sm:$0xff]   ;;  %v8659_v56 = vld [vmem:[%s9722_s6 + $0xcfc] ss:$400 sps:$4 sm:$0xff]  }
  0xed   : > { %5417 = vmatprep.subr.bf16.mxu0 %v8566_v57  ;;  %5460 = vmatprep.subr.bf16.mxu1 %v8569_v58  ;;  %v8654_v57 = vld [vmem:[%s9722_s6 + $0xcf0] ss:$400 sps:$4 sm:$0xff]   ;;  %v8657_v58 = vld [vmem:[%s9722_s6 + $0xcf8] ss:$400 sps:$4 sm:$0xff]  }
  0xf0   : > { %5418 = vmatpush1.bf16.msra.mxu0 %v8564_v59  ;;  %5461 = vmatpush1.bf16.msra.mxu1 %v8567_v60  ;;  %v8662_v59 = vld [vmem:[%s9722_s6 + $0x1014] ss:$400 sps:$4 sm:$0xff]   ;;  %v8665_v60 = vld [vmem:[%s9722_s6 + $0x101c] ss:$400 sps:$4 sm:$0xff]  }
  0xf1   : > { %5419 = vmatprep.subr.bf16.mxu0 %v8572_v61  ;;  %5462 = vmatprep.subr.bf16.mxu1 %v8575_v62  ;;  %v8660_v61 = vld [vmem:[%s9722_s6 + $0x1010] ss:$400 sps:$4 sm:$0xff]   ;;  %v8663_v62 = vld [vmem:[%s9722_s6 + $0x1018] ss:$400 sps:$4 sm:$0xff]  }
  0xf4   : > { %5420 = vmatpush1.bf16.msra.mxu0 %v8570_v63  ;;  %5463 = vmatpush1.bf16.msra.mxu1 %v8573_v1  ;;  %v8668_v63 = vld [vmem:[%s9722_s6 + $0x1334] ss:$400 sps:$4 sm:$0xff]   ;;  %v8671_v1 = vld [vmem:[%s9722_s6 + $0x133c] ss:$400 sps:$4 sm:$0xff]  }
  0xf5   : > { %5421 = vmatprep.subr.bf16.mxu0 %v8578_v2  ;;  %5464 = vmatprep.subr.bf16.mxu1 %v8581_v3 }
  0xf8   : > { %5422 = vmatpush1.bf16.msra.mxu0 %v8576_v4  ;;  %5465 = vmatpush1.bf16.msra.mxu1 %v8579_v5 }
  0xf9   : > { %5493 = vmatprep.subr.bf16.mxu0 %v8584_v6  ;;  %5536 = vmatprep.subr.bf16.mxu1 %v8587_v7  ;;  %v8666_v6 = vld [vmem:[%s9722_s6 + $0x1330] ss:$400 sps:$4 sm:$0xff]   ;;  %v8669_v7 = vld [vmem:[%s9722_s6 + $0x1338] ss:$400 sps:$4 sm:$0xff]  }
  0xfb   : > { %5440 = vmatmul.mubr.bf16.vlgmr.msra.gmra.mrb[20].mxu0 %v9956_v12  ;;  %5483 = vmatmul.mubr.bf16.vlgmr.msra.gmra.mrb[20].mxu1 %v9956_v12 }
  0xfc   : > { %5494 = vmatpush1.bf16.msra.mxu0 %v8582_v8  ;;  %5537 = vmatpush1.bf16.msra.mxu1 %v8585_v9 }
  0xfd   : > { %5495 = vmatprep.subr.bf16.mxu0 %v8590_v10  ;;  %5538 = vmatprep.subr.bf16.mxu1 %v8593_v11  ;;  %v8674_v10 = vld [vmem:[%s9722_s6 + $0x1654] ss:$400 sps:$4 sm:$0xff]  }
  0xfe   : > { %5525 = vmatprep.mubr.bf16.mxu0 %v9600_v0  ;;  %5568 = vmatprep.mubr.bf16.mxu1 %v9600_v0 }
 0x100   : > { %5496 = vmatpush1.bf16.msra.mxu0 %v8588_v13  ;;  %5539 = vmatpush1.bf16.msra.mxu1 %v8591_v14  ;;  %v8677_v14 = vld [vmem:[%s9722_s6 + $0x165c] ss:$400 sps:$4 sm:$0xff]  }
 0x101   : > { %5497 = vmatprep.subr.bf16.mxu0 %v8596_v15  ;;  %5540 = vmatprep.subr.bf16.mxu1 %v8599_v16  ;;  %v8672_v15 = vld [vmem:[%s9722_s6 + $0x1650] ss:$400 sps:$4 sm:$0xff]   ;;  %v8675_v16 = vld [vmem:[%s9722_s6 + $0x1658] ss:$400 sps:$4 sm:$0xff]  }
 0x104   : > { %5498 = vmatpush1.bf16.msra.mxu0 %v8594_v17  ;;  %5541 = vmatpush1.bf16.msra.mxu1 %v8597_v18  ;;  %v8680_v17 = vld [vmem:[%s9722_s6 + $0x84] ss:$400 sps:$4 sm:$0xff]   ;;  %v8683_v18 = vld [vmem:[%s9722_s6 + $0x8c] ss:$400 sps:$4 sm:$0xff]  }
 0x105   : > { %5499 = vmatprep.subr.bf16.mxu0 %v8602_v19  ;;  %5542 = vmatprep.subr.bf16.mxu1 %v8605_v20  ;;  %v8678_v19 = vld [vmem:[%s9722_s6 + $0x80] ss:$400 sps:$4 sm:$0xff]   ;;  %v8681_v20 = vld [vmem:[%s9722_s6 + $0x88] ss:$400 sps:$4 sm:$0xff]  }
 0x108   : > { %5500 = vmatpush1.bf16.msra.mxu0 %v8600_v21  ;;  %5543 = vmatpush1.bf16.msra.mxu1 %v8603_v22  ;;  %v8686_v21 = vld [vmem:[%s9722_s6 + $0x3a4] ss:$400 sps:$4 sm:$0xff]   ;;  %v8689_v22 = vld [vmem:[%s9722_s6 + $0x3ac] ss:$400 sps:$4 sm:$0xff]  }
 0x109   : > { %5501 = vmatprep.subr.bf16.mxu0 %v8608_v23  ;;  %5544 = vmatprep.subr.bf16.mxu1 %v8611_v24  ;;  %v8684_v23 = vld [vmem:[%s9722_s6 + $0x3a0] ss:$400 sps:$4 sm:$0xff]   ;;  %v8687_v24 = vld [vmem:[%s9722_s6 + $0x3a8] ss:$400 sps:$4 sm:$0xff]  }
 0x10c   : > { %5502 = vmatpush1.bf16.msra.mxu0 %v8606_v25  ;;  %5545 = vmatpush1.bf16.msra.mxu1 %v8609_v26  ;;  %v8692_v25 = vld [vmem:[%s9722_s6 + $0x6c4] ss:$400 sps:$4 sm:$0xff]   ;;  %v8695_v26 = vld [vmem:[%s9722_s6 + $0x6cc] ss:$400 sps:$4 sm:$0xff]  }
 0x10d   : > { %5503 = vmatprep.subr.bf16.mxu0 %v8614_v27  ;;  %5546 = vmatprep.subr.bf16.mxu1 %v8617_v28  ;;  %v8690_v27 = vld [vmem:[%s9722_s6 + $0x6c0] ss:$400 sps:$4 sm:$0xff]   ;;  %v8693_v28 = vld [vmem:[%s9722_s6 + $0x6c8] ss:$400 sps:$4 sm:$0xff]  }
 0x110   : > { %5504 = vmatpush1.bf16.msra.mxu0 %v8612_v29  ;;  %5547 = vmatpush1.bf16.msra.mxu1 %v8615_v30  ;;  %v8698_v29 = vld [vmem:[%s9722_s6 + $0x9e4] ss:$400 sps:$4 sm:$0xff]   ;;  %v8701_v30 = vld [vmem:[%s9722_s6 + $0x9ec] ss:$400 sps:$4 sm:$0xff]  }
 0x111   : > { %5505 = vmatprep.subr.bf16.mxu0 %v8620_v31  ;;  %5548 = vmatprep.subr.bf16.mxu1 %v8623_v32  ;;  %v8696_v31 = vld [vmem:[%s9722_s6 + $0x9e0] ss:$400 sps:$4 sm:$0xff]   ;;  %v8699_v32 = vld [vmem:[%s9722_s6 + $0x9e8] ss:$400 sps:$4 sm:$0xff]  }
 0x114   : > { %5506 = vmatpush1.bf16.msra.mxu0 %v8618_v33  ;;  %5549 = vmatpush1.bf16.msra.mxu1 %v8621_v34  ;;  %v8704_v33 = vld [vmem:[%s9722_s6 + $0xd04] ss:$400 sps:$4 sm:$0xff]   ;;  %v8707_v34 = vld [vmem:[%s9722_s6 + $0xd0c] ss:$400 sps:$4 sm:$0xff]  }
 0x115   : > { %5507 = vmatprep.subr.bf16.mxu0 %v8626_v36  ;;  %5550 = vmatprep.subr.bf16.mxu1 %v8629_v37  ;;  %v8702_v36 = vld [vmem:[%s9722_s6 + $0xd00] ss:$400 sps:$4 sm:$0xff]   ;;  %v8705_v37 = vld [vmem:[%s9722_s6 + $0xd08] ss:$400 sps:$4 sm:$0xff]  }
 0x118   : > { %5508 = vmatpush1.bf16.msra.mxu0 %v8624_v38  ;;  %5551 = vmatpush1.bf16.msra.mxu1 %v8627_v39  ;;  %v8710_v38 = vld [vmem:[%s9722_s6 + $0x1024] ss:$400 sps:$4 sm:$0xff]   ;;  %v8713_v39 = vld [vmem:[%s9722_s6 + $0x102c] ss:$400 sps:$4 sm:$0xff]  }
 0x119   : > { %5579 = vmatprep.subr.bf16.mxu0 %v8632_v40  ;;  %5622 = vmatprep.subr.bf16.mxu1 %v8635_v41  ;;  %v8708_v40 = vld [vmem:[%s9722_s6 + $0x1020] ss:$400 sps:$4 sm:$0xff]   ;;  %v8711_v41 = vld [vmem:[%s9722_s6 + $0x1028] ss:$400 sps:$4 sm:$0xff]  }
 0x11b   : > { %5526 = vmatmul.mubr.bf16.vlgmr.msra.gmra.mrb[24].mxu0 %v9956_v12  ;;  %5569 = vmatmul.mubr.bf16.vlgmr.msra.gmra.mrb[24].mxu1 %v9956_v12 }
 0x11c   : > { %5580 = vmatpush1.bf16.msra.mxu0 %v8630_v42  ;;  %5623 = vmatpush1.bf16.msra.mxu1 %v8633_v43  ;;  %v8716_v42 = vld [vmem:[%s9722_s6 + $0x1344] ss:$400 sps:$4 sm:$0xff]   ;;  %v8719_v43 = vld [vmem:[%s9722_s6 + $0x134c] ss:$400 sps:$4 sm:$0xff]  }
 0x11d   : > { %5581 = vmatprep.subr.bf16.mxu0 %v8638_v44  ;;  %5624 = vmatprep.subr.bf16.mxu1 %v8641_v45 }
 0x11e   : > { %5611 = vmatprep.mubr.bf16.mxu0 %v9600_v0  ;;  %5654 = vmatprep.mubr.bf16.mxu1 %v9600_v0 }
 0x120   : > { %5582 = vmatpush1.bf16.msra.mxu0 %v8636_v46  ;;  %5625 = vmatpush1.bf16.msra.mxu1 %v8639_v47  ;;  %v8714_v46 = vld [vmem:[%s9722_s6 + $0x1340] ss:$400 sps:$4 sm:$0xff]   ;;  %v8717_v47 = vld [vmem:[%s9722_s6 + $0x1348] ss:$400 sps:$4 sm:$0xff]  }
 0x121   : > { %5583 = vmatprep.subr.bf16.mxu0 %v8644_v48  ;;  %5626 = vmatprep.subr.bf16.mxu1 %v8647_v35 }
 0x124   : > { %5584 = vmatpush1.bf16.msra.mxu0 %v8642_v49  ;;  %5627 = vmatpush1.bf16.msra.mxu1 %v8645_v50 }
 0x125   : > { %5585 = vmatprep.subr.bf16.mxu0 %v8650_v51  ;;  %5628 = vmatprep.subr.bf16.mxu1 %v8653_v52 }
 0x128   : > { %5586 = vmatpush1.bf16.msra.mxu0 %v8648_v53  ;;  %5629 = vmatpush1.bf16.msra.mxu1 %v8651_v54  ;;  %v8722_v53 = vld [vmem:[%s9722_s6 + $0x1664] ss:$400 sps:$4 sm:$0xff]   ;;  %v8725_v54 = vld [vmem:[%s9722_s6 + $0x166c] ss:$400 sps:$4 sm:$0xff]  }
 0x129   : > { %5587 = vmatprep.subr.bf16.mxu0 %v8656_v55  ;;  %5630 = vmatprep.subr.bf16.mxu1 %v8659_v56  ;;  %v8720_v55 = vld [vmem:[%s9722_s6 + $0x1660] ss:$400 sps:$4 sm:$0xff]   ;;  %v8723_v56 = vld [vmem:[%s9722_s6 + $0x1668] ss:$400 sps:$4 sm:$0xff]  }
 0x12c   : > { %5588 = vmatpush1.bf16.msra.mxu0 %v8654_v57  ;;  %5631 = vmatpush1.bf16.msra.mxu1 %v8657_v58  ;;  %v8728_v57 = vld [vmem:[%s9722_s6 + $0x94] ss:$400 sps:$4 sm:$0xff]   ;;  %v8731_v58 = vld [vmem:[%s9722_s6 + $0x9c] ss:$400 sps:$4 sm:$0xff]  }
 0x12d   : > { %5589 = vmatprep.subr.bf16.mxu0 %v8662_v59  ;;  %5632 = vmatprep.subr.bf16.mxu1 %v8665_v60  ;;  %v8726_v59 = vld [vmem:[%s9722_s6 + $0x90] ss:$400 sps:$4 sm:$0xff]   ;;  %v8729_v60 = vld [vmem:[%s9722_s6 + $0x98] ss:$400 sps:$4 sm:$0xff]  }
 0x12e   : > { %v5011_v2 = vpop.f32.mrb[0].mxu0  ;;  %v5054_v3 = vpop.f32.mrb[0].mxu1 }
 0x12f   : > { %7127 = vst [vmem:[%s10019_s7] sm:$0xff] %v5011_v2  ;;  %7129 = vst [vmem:[%s10019_s7 + $0x10] sm:$0xff] %v5054_v3  ;;  %v5013_v4 = vpop.f32.mrb[1].mxu0  ;;  %v5056_v5 = vpop.f32.mrb[1].mxu1  ;;  %v8740_v2 = vld [vmem:[%s9722_s6 + $0x6d4] ss:$400 sps:$4 sm:$0xff]  }
 0x130   : > { %7128 = vst [vmem:[%s10019_s7 + $0x8] sm:$0xff] %v5013_v4  ;;  %7130 = vst [vmem:[%s10019_s7 + $0x18] sm:$0xff] %v5056_v5  ;;  %v5015_v8 = vpop.f32.mrb[2].mxu0  ;;  %v5058_v9 = vpop.f32.mrb[2].mxu1  ;;  %5590 = vmatpush1.bf16.msra.mxu0 %v8660_v61  ;;  %5633 = vmatpush1.bf16.msra.mxu1 %v8663_v62  ;;  %v8734_v61 = vld [vmem:[%s9722_s6 + $0x3b4] ss:$400 sps:$4 sm:$0xff]  }
 0x131   : > { %7227 = vst [vmem:[%s10019_s7 + $0x320] sm:$0xff] %v5015_v8  ;;  %7229 = vst [vmem:[%s10019_s7 + $0x330] sm:$0xff] %v5058_v9  ;;  %v5017_v11 = vpop.f32.mrb[3].mxu0  ;;  %v5060_v13 = vpop.f32.mrb[3].mxu1  ;;  %5591 = vmatprep.subr.bf16.mxu0 %v8668_v63  ;;  %5634 = vmatprep.subr.bf16.mxu1 %v8671_v1  ;;  %v8737_v62 = vld [vmem:[%s9722_s6 + $0x3bc] ss:$400 sps:$4 sm:$0xff]  }
 0x132   : > { %7228 = vst [vmem:[%s10019_s7 + $0x328] sm:$0xff] %v5017_v11  ;;  %7230 = vst [vmem:[%s10019_s7 + $0x338] sm:$0xff] %v5060_v13  ;;  %v8732_v63 = vld [vmem:[%s9722_s6 + $0x3b0] ss:$400 sps:$4 sm:$0xff]   ;;  %v8735_v1 = vld [vmem:[%s9722_s6 + $0x3b8] ss:$400 sps:$4 sm:$0xff]  }
 0x133   : > { %v8743_v3 = vld [vmem:[%s9722_s6 + $0x6dc] ss:$400 sps:$4 sm:$0xff]   ;;  %v8741_v4 = vld [vmem:[%s9722_s6 + $0x6d8] ss:$400 sps:$4 sm:$0xff]   ;;  %v8746_v5 = vld [vmem:[%s9722_s6 + $0x9f4] ss:$400 sps:$4 sm:$0xff]  }
 0x134   : > { %5592 = vmatpush1.bf16.msra.mxu0 %v8666_v6  ;;  %5635 = vmatpush1.bf16.msra.mxu1 %v8669_v7  ;;  %v8749_v6 = vld [vmem:[%s9722_s6 + $0x9fc] ss:$400 sps:$4 sm:$0xff]   ;;  %v8744_v7 = vld [vmem:[%s9722_s6 + $0x9f0] ss:$400 sps:$4 sm:$0xff]   ;;  %v8747_v8 = vld [vmem:[%s9722_s6 + $0x9f8] ss:$400 sps:$4 sm:$0xff]  }
 0x135   : > { %5593 = vmatprep.subr.bf16.mxu0 %v8674_v10  ;;  %5636 = vmatprep.subr.bf16.mxu1 %v8677_v14  ;;  %v8752_v9 = vld [vmem:[%s9722_s6 + $0xd14] ss:$400 sps:$4 sm:$0xff]   ;;  %v8755_v10 = vld [vmem:[%s9722_s6 + $0xd1c] ss:$400 sps:$4 sm:$0xff]   ;;  %v8750_v11 = vld [vmem:[%s9722_s6 + $0xd10] ss:$400 sps:$4 sm:$0xff]  }
 0x136   : > { %v8753_v13 = vld [vmem:[%s9722_s6 + $0xd18] ss:$400 sps:$4 sm:$0xff]   ;;  %v8758_v14 = vld [vmem:[%s9722_s6 + $0x1034] ss:$400 sps:$4 sm:$0xff]  }
 0x138   : > { %5594 = vmatpush1.bf16.msra.mxu0 %v8672_v15  ;;  %5637 = vmatpush1.bf16.msra.mxu1 %v8675_v16  ;;  %v8761_v15 = vld [vmem:[%s9722_s6 + $0x103c] ss:$400 sps:$4 sm:$0xff]   ;;  %v8756_v16 = vld [vmem:[%s9722_s6 + $0x1030] ss:$400 sps:$4 sm:$0xff]  }
 0x139   : > { %5665 = vmatprep.subr.bf16.mxu0 %v8680_v17  ;;  %5708 = vmatprep.subr.bf16.mxu1 %v8683_v18  ;;  %v8759_v17 = vld [vmem:[%s9722_s6 + $0x1038] ss:$400 sps:$4 sm:$0xff]   ;;  %v8764_v18 = vld [vmem:[%s9722_s6 + $0x1354] ss:$400 sps:$4 sm:$0xff]  }
 0x13b   : > { %5612 = vmatmul.mubr.bf16.vlgmr.msra.gmra.mrb[28].mxu0 %v9956_v12  ;;  %5655 = vmatmul.mubr.bf16.vlgmr.msra.gmra.mrb[28].mxu1 %v9956_v12 }
 0x13c   : > { %5666 = vmatpush1.bf16.msra.mxu0 %v8678_v19  ;;  %5709 = vmatpush1.bf16.msra.mxu1 %v8681_v20  ;;  %v8767_v19 = vld [vmem:[%s9722_s6 + $0x135c] ss:$400 sps:$4 sm:$0xff]  }
 0x13d   : > { %5667 = vmatprep.subr.bf16.mxu0 %v8686_v21  ;;  %5710 = vmatprep.subr.bf16.mxu1 %v8689_v22  ;;  %v8762_v22 = vld [vmem:[%s9722_s6 + $0x1350] ss:$400 sps:$4 sm:$0xff]  }
 0x13e   : > { %5697 = vmatprep.mubr.bf16.mxu0 %v9600_v0  ;;  %5740 = vmatprep.mubr.bf16.mxu1 %v9600_v0 }
 0x140   : > { %5668 = vmatpush1.bf16.msra.mxu0 %v8684_v23  ;;  %5711 = vmatpush1.bf16.msra.mxu1 %v8687_v24  ;;  %v8765_v23 = vld [vmem:[%s9722_s6 + $0x1358] ss:$400 sps:$4 sm:$0xff]  }
 0x141   : > { %5669 = vmatprep.subr.bf16.mxu0 %v8692_v25  ;;  %5712 = vmatprep.subr.bf16.mxu1 %v8695_v26 }
 0x144   : > { %5670 = vmatpush1.bf16.msra.mxu0 %v8690_v27  ;;  %5713 = vmatpush1.bf16.msra.mxu1 %v8693_v28 }
 0x145   : > { %5671 = vmatprep.subr.bf16.mxu0 %v8698_v29  ;;  %5714 = vmatprep.subr.bf16.mxu1 %v8701_v30  ;;  %v8770_v30 = vld [vmem:[%s9722_s6 + $0x1674] ss:$400 sps:$4 sm:$0xff]  }
 0x148   : > { %5672 = vmatpush1.bf16.msra.mxu0 %v8696_v31  ;;  %5715 = vmatpush1.bf16.msra.mxu1 %v8699_v32  ;;  %v8773_v31 = vld [vmem:[%s9722_s6 + $0x167c] ss:$400 sps:$4 sm:$0xff]   ;;  %v8768_v32 = vld [vmem:[%s9722_s6 + $0x1670] ss:$400 sps:$4 sm:$0xff]  }
 0x149   : > { %5673 = vmatprep.subr.bf16.mxu0 %v8704_v33  ;;  %5716 = vmatprep.subr.bf16.mxu1 %v8707_v34  ;;  %v8771_v33 = vld [vmem:[%s9722_s6 + $0x1678] ss:$400 sps:$4 sm:$0xff]   ;;  %v8776_v34 = vld [vmem:[%s9722_s6 + $0xa4] ss:$400 sps:$4 sm:$0xff]  }
 0x14c   : > { %5674 = vmatpush1.bf16.msra.mxu0 %v8702_v36  ;;  %5717 = vmatpush1.bf16.msra.mxu1 %v8705_v37  ;;  %v8779_v36 = vld [vmem:[%s9722_s6 + $0xac] ss:$400 sps:$4 sm:$0xff]   ;;  %v8774_v37 = vld [vmem:[%s9722_s6 + $0xa0] ss:$400 sps:$4 sm:$0xff]  }
 0x14d   : > { %5675 = vmatprep.subr.bf16.mxu0 %v8710_v38  ;;  %5718 = vmatprep.subr.bf16.mxu1 %v8713_v39  ;;  %v8777_v38 = vld [vmem:[%s9722_s6 + $0xa8] ss:$400 sps:$4 sm:$0xff]   ;;  %v8782_v39 = vld [vmem:[%s9722_s6 + $0x3c4] ss:$400 sps:$4 sm:$0xff]  }
 0x14e   : > { %v5097_v44 = vpop.f32.mrb[4].mxu0  ;;  %v5140_v45 = vpop.f32.mrb[4].mxu1 }
 0x14f   : > { %7131 = vst [vmem:[%s10019_s7 + $0x20] sm:$0xff] %v5097_v44  ;;  %7133 = vst [vmem:[%s10019_s7 + $0x30] sm:$0xff] %v5140_v45  ;;  %v5099_v48 = vpop.f32.mrb[5].mxu0  ;;  %v5142_v35 = vpop.f32.mrb[5].mxu1  ;;  %v8788_v44 = vld [vmem:[%s9722_s6 + $0x6e4] ss:$400 sps:$4 sm:$0xff]  }
 0x150   : > { %7132 = vst [vmem:[%s10019_s7 + $0x28] sm:$0xff] %v5099_v48  ;;  %7134 = vst [vmem:[%s10019_s7 + $0x38] sm:$0xff] %v5142_v35  ;;  %v5101_v49 = vpop.f32.mrb[6].mxu0  ;;  %v5144_v50 = vpop.f32.mrb[6].mxu1  ;;  %5676 = vmatpush1.bf16.msra.mxu0 %v8708_v40  ;;  %5719 = vmatpush1.bf16.msra.mxu1 %v8711_v41  ;;  %v8785_v40 = vld [vmem:[%s9722_s6 + $0x3cc] ss:$400 sps:$4 sm:$0xff]  }
 0x151   : > { %7231 = vst [vmem:[%s10019_s7 + $0x340] sm:$0xff] %v5101_v49  ;;  %7233 = vst [vmem:[%s10019_s7 + $0x350] sm:$0xff] %v5144_v50  ;;  %v5103_v51 = vpop.f32.mrb[7].mxu0  ;;  %v5146_v52 = vpop.f32.mrb[7].mxu1  ;;  %5677 = vmatprep.subr.bf16.mxu0 %v8716_v42  ;;  %5720 = vmatprep.subr.bf16.mxu1 %v8719_v43  ;;  %v10132_v41 = vld [vmem:[%s10924_s0] sm:$0xff]  }
 0x152   : > { %7232 = vst [vmem:[%s10019_s7 + $0x348] sm:$0xff] %v5103_v51  ;;  %7234 = vst [vmem:[%s10019_s7 + $0x358] sm:$0xff] %v5146_v52  ;;  %v8780_v42 = vld [vmem:[%s9722_s6 + $0x3c0] ss:$400 sps:$4 sm:$0xff]   ;;  %v8783_v43 = vld [vmem:[%s9722_s6 + $0x3c8] ss:$400 sps:$4 sm:$0xff]  }
 0x153   : > { %v8791_v45 = vld [vmem:[%s9722_s6 + $0x6ec] ss:$400 sps:$4 sm:$0xff]   ;;  %v8794_v48 = vld [vmem:[%s9722_s6 + $0xa04] ss:$400 sps:$4 sm:$0xff]   ;;  %v8792_v49 = vld [vmem:[%s9722_s6 + $0xa00] ss:$400 sps:$4 sm:$0xff]  }
 0x154   : > { %5678 = vmatpush1.bf16.msra.mxu0 %v8714_v46  ;;  %5721 = vmatpush1.bf16.msra.mxu1 %v8717_v47  ;;  %v8786_v46 = vld [vmem:[%s9722_s6 + $0x6e0] ss:$400 sps:$4 sm:$0xff]   ;;  %v8789_v47 = vld [vmem:[%s9722_s6 + $0x6e8] ss:$400 sps:$4 sm:$0xff]   ;;  %v8797_v35 = vld [vmem:[%s9722_s6 + $0xa0c] ss:$400 sps:$4 sm:$0xff]  }
 0x155   : > { %5679 = vmatprep.subr.bf16.mxu0 %v8722_v53  ;;  %5722 = vmatprep.subr.bf16.mxu1 %v8725_v54  ;;  %v8795_v50 = vld [vmem:[%s9722_s6 + $0xa08] ss:$400 sps:$4 sm:$0xff]   ;;  %v8800_v51 = vld [vmem:[%s9722_s6 + $0xd24] ss:$400 sps:$4 sm:$0xff]   ;;  %v8803_v52 = vld [vmem:[%s9722_s6 + $0xd2c] ss:$400 sps:$4 sm:$0xff]  }
 0x156   : > { %v8798_v53 = vld [vmem:[%s9722_s6 + $0xd20] ss:$400 sps:$4 sm:$0xff]   ;;  %v8801_v54 = vld [vmem:[%s9722_s6 + $0xd28] ss:$400 sps:$4 sm:$0xff]  }
 0x158   : > { %5680 = vmatpush1.bf16.msra.mxu0 %v8720_v55  ;;  %5723 = vmatpush1.bf16.msra.mxu1 %v8723_v56  ;;  %v8806_v55 = vld [vmem:[%s9722_s6 + $0x1044] ss:$400 sps:$4 sm:$0xff]   ;;  %v8809_v56 = vld [vmem:[%s9722_s6 + $0x104c] ss:$400 sps:$4 sm:$0xff]  }
 0x159   : > { %5751 = vmatprep.subr.bf16.mxu0 %v8728_v57  ;;  %5794 = vmatprep.subr.bf16.mxu1 %v8731_v58  ;;  %v8804_v57 = vld [vmem:[%s9722_s6 + $0x1040] ss:$400 sps:$4 sm:$0xff]   ;;  %v8807_v58 = vld [vmem:[%s9722_s6 + $0x1048] ss:$400 sps:$4 sm:$0xff]  }
 0x15b   : > { %5698 = vmatmul.mubr.bf16.vlgmr.msra.gmra.mrb[32].mxu0 %v9956_v12  ;;  %5741 = vmatmul.mubr.bf16.vlgmr.msra.gmra.mrb[32].mxu1 %v9956_v12  ;;  %v8738_v12 = vld [vmem:[%s9722_s6 + $0x6d0] ss:$400 sps:$4 sm:$0xff]  }
 0x15c   : > { %5752 = vmatpush1.bf16.msra.mxu0 %v8726_v59  ;;  %5795 = vmatpush1.bf16.msra.mxu1 %v8729_v60  ;;  %v8812_v59 = vld [vmem:[%s9722_s6 + $0x1364] ss:$400 sps:$4 sm:$0xff]   ;;  %v8815_v60 = vld [vmem:[%s9722_s6 + $0x136c] ss:$400 sps:$4 sm:$0xff]  }
 0x15d   : > { %5753 = vmatprep.subr.bf16.mxu0 %v8734_v61  ;;  %5796 = vmatprep.subr.bf16.mxu1 %v8737_v62 }
 0x15e   : > { %5783 = vmatprep.mubr.bf16.mxu0 %v9600_v0  ;;  %5826 = vmatprep.mubr.bf16.mxu1 %v9600_v0 }
 0x160   : > { %5754 = vmatpush1.bf16.msra.mxu0 %v8732_v63  ;;  %5797 = vmatpush1.bf16.msra.mxu1 %v8735_v1  ;;  %v8810_v63 = vld [vmem:[%s9722_s6 + $0x1360] ss:$400 sps:$4 sm:$0xff]   ;;  %v8813_v1 = vld [vmem:[%s9722_s6 + $0x1368] ss:$400 sps:$4 sm:$0xff]  }
 0x161   : > { %5755 = vmatprep.subr.bf16.mxu0 %v8740_v2  ;;  %5798 = vmatprep.subr.bf16.mxu1 %v8743_v3 }
 0x164   : > { %5756 = vmatpush1.bf16.msra.mxu0 %v8738_v12  ;;  %5799 = vmatpush1.bf16.msra.mxu1 %v8741_v4 }
 0x165   : > { %5757 = vmatprep.subr.bf16.mxu0 %v8746_v5  ;;  %5800 = vmatprep.subr.bf16.mxu1 %v8749_v6 }
 0x168   : > { %5758 = vmatpush1.bf16.msra.mxu0 %v8744_v7  ;;  %5801 = vmatpush1.bf16.msra.mxu1 %v8747_v8  ;;  %v8818_v7 = vld [vmem:[%s9722_s6 + $0x1684] ss:$400 sps:$4 sm:$0xff]   ;;  %v8821_v8 = vld [vmem:[%s9722_s6 + $0x168c] ss:$400 sps:$4 sm:$0xff]  }
 0x169   : > { %5759 = vmatprep.subr.bf16.mxu0 %v8752_v9  ;;  %5802 = vmatprep.subr.bf16.mxu1 %v8755_v10  ;;  %v8816_v9 = vld [vmem:[%s9722_s6 + $0x1680] ss:$400 sps:$4 sm:$0xff]   ;;  %v8819_v10 = vld [vmem:[%s9722_s6 + $0x1688] ss:$400 sps:$4 sm:$0xff]  }
 0x16c   : > { %5760 = vmatpush1.bf16.msra.mxu0 %v8750_v11  ;;  %5803 = vmatpush1.bf16.msra.mxu1 %v8753_v13  ;;  %v8824_v11 = vld [vmem:[%s9722_s6 + $0xb4] ss:$400 sps:$4 sm:$0xff]   ;;  %v8827_v13 = vld [vmem:[%s9722_s6 + $0xbc] ss:$400 sps:$4 sm:$0xff]  }
 0x16d   : > { %5761 = vmatprep.subr.bf16.mxu0 %v8758_v14  ;;  %5804 = vmatprep.subr.bf16.mxu1 %v8761_v15  ;;  %v8822_v14 = vld [vmem:[%s9722_s6 + $0xb0] ss:$400 sps:$4 sm:$0xff]   ;;  %v8825_v15 = vld [vmem:[%s9722_s6 + $0xb8] ss:$400 sps:$4 sm:$0xff]  }
 0x16e   : > { %v5183_v20 = vpop.f32.mrb[8].mxu0  ;;  %v5226_v21 = vpop.f32.mrb[8].mxu1 }
 0x16f   : > { %7135 = vst [vmem:[%s10019_s7 + $0x40] sm:$0xff] %v5183_v20  ;;  %7137 = vst [vmem:[%s10019_s7 + $0x50] sm:$0xff] %v5226_v21  ;;  %v5185_v24 = vpop.f32.mrb[9].mxu0  ;;  %v5228_v25 = vpop.f32.mrb[9].mxu1  ;;  %v8836_v20 = vld [vmem:[%s9722_s6 + $0x6f4] ss:$400 sps:$4 sm:$0xff]  }
 0x170   : > { %7136 = vst [vmem:[%s10019_s7 + $0x48] sm:$0xff] %v5185_v24  ;;  %7138 = vst [vmem:[%s10019_s7 + $0x58] sm:$0xff] %v5228_v25  ;;  %v5187_v26 = vpop.f32.mrb[10].mxu0  ;;  %v5230_v27 = vpop.f32.mrb[10].mxu1  ;;  %5762 = vmatpush1.bf16.msra.mxu0 %v8756_v16  ;;  %5805 = vmatpush1.bf16.msra.mxu1 %v8759_v17  ;;  %v8830_v16 = vld [vmem:[%s9722_s6 + $0x3d4] ss:$400 sps:$4 sm:$0xff]  }
 0x171   : > { %7235 = vst [vmem:[%s10019_s7 + $0x360] sm:$0xff] %v5187_v26  ;;  %7237 = vst [vmem:[%s10019_s7 + $0x370] sm:$0xff] %v5230_v27  ;;  %v5189_v28 = vpop.f32.mrb[11].mxu0  ;;  %v5232_v29 = vpop.f32.mrb[11].mxu1  ;;  %5763 = vmatprep.subr.bf16.mxu0 %v8764_v18  ;;  %5806 = vmatprep.subr.bf16.mxu1 %v8767_v19  ;;  %v8833_v17 = vld [vmem:[%s9722_s6 + $0x3dc] ss:$400 sps:$4 sm:$0xff]  }
 0x172   : > { %7236 = vst [vmem:[%s10019_s7 + $0x368] sm:$0xff] %v5189_v28  ;;  %7238 = vst [vmem:[%s10019_s7 + $0x378] sm:$0xff] %v5232_v29  ;;  %v8828_v18 = vld [vmem:[%s9722_s6 + $0x3d0] ss:$400 sps:$4 sm:$0xff]   ;;  %v8831_v19 = vld [vmem:[%s9722_s6 + $0x3d8] ss:$400 sps:$4 sm:$0xff]  }
 0x173   : > { %v8839_v21 = vld [vmem:[%s9722_s6 + $0x6fc] ss:$400 sps:$4 sm:$0xff]   ;;  %v8842_v24 = vld [vmem:[%s9722_s6 + $0xa14] ss:$400 sps:$4 sm:$0xff]   ;;  %v8840_v26 = vld [vmem:[%s9722_s6 + $0xa10] ss:$400 sps:$4 sm:$0xff]  }
 0x174   : > { %5764 = vmatpush1.bf16.msra.mxu0 %v8762_v22  ;;  %5807 = vmatpush1.bf16.msra.mxu1 %v8765_v23  ;;  %v8834_v22 = vld [vmem:[%s9722_s6 + $0x6f0] ss:$400 sps:$4 sm:$0xff]   ;;  %v8837_v23 = vld [vmem:[%s9722_s6 + $0x6f8] ss:$400 sps:$4 sm:$0xff]   ;;  %v8845_v25 = vld [vmem:[%s9722_s6 + $0xa1c] ss:$400 sps:$4 sm:$0xff]  }
 0x175   : > { %5765 = vmatprep.subr.bf16.mxu0 %v8770_v30  ;;  %5808 = vmatprep.subr.bf16.mxu1 %v8773_v31  ;;  %v8843_v27 = vld [vmem:[%s9722_s6 + $0xa18] ss:$400 sps:$4 sm:$0xff]   ;;  %v8848_v28 = vld [vmem:[%s9722_s6 + $0xd34] ss:$400 sps:$4 sm:$0xff]   ;;  %v8851_v29 = vld [vmem:[%s9722_s6 + $0xd3c] ss:$400 sps:$4 sm:$0xff]  }
 0x176   : > { %v8846_v30 = vld [vmem:[%s9722_s6 + $0xd30] ss:$400 sps:$4 sm:$0xff]   ;;  %v8849_v31 = vld [vmem:[%s9722_s6 + $0xd38] ss:$400 sps:$4 sm:$0xff]  }
 0x178   : > { %5766 = vmatpush1.bf16.msra.mxu0 %v8768_v32  ;;  %5809 = vmatpush1.bf16.msra.mxu1 %v8771_v33  ;;  %v8854_v32 = vld [vmem:[%s9722_s6 + $0x1054] ss:$400 sps:$4 sm:$0xff]   ;;  %v8857_v33 = vld [vmem:[%s9722_s6 + $0x105c] ss:$400 sps:$4 sm:$0xff]  }
 0x179   : > { %5837 = vmatprep.subr.bf16.mxu0 %v8776_v34  ;;  %5880 = vmatprep.subr.bf16.mxu1 %v8779_v36  ;;  %v8852_v34 = vld [vmem:[%s9722_s6 + $0x1050] ss:$400 sps:$4 sm:$0xff]   ;;  %v8855_v36 = vld [vmem:[%s9722_s6 + $0x1058] ss:$400 sps:$4 sm:$0xff]  }
 0x17b   : > { %5784 = vmatmul.mubr.bf16.vlgmr.msra.gmra.mrb[36].mxu0 %v10132_v41  ;;  %5827 = vmatmul.mubr.bf16.vlgmr.msra.gmra.mrb[36].mxu1 %v10132_v41 }
 0x17c   : > { %5838 = vmatpush1.bf16.msra.mxu0 %v8774_v37  ;;  %5881 = vmatpush1.bf16.msra.mxu1 %v8777_v38  ;;  %v8860_v37 = vld [vmem:[%s9722_s6 + $0x1374] ss:$400 sps:$4 sm:$0xff]   ;;  %v8863_v38 = vld [vmem:[%s9722_s6 + $0x137c] ss:$400 sps:$4 sm:$0xff]  }
 0x17d   : > { %5839 = vmatprep.subr.bf16.mxu0 %v8782_v39  ;;  %5882 = vmatprep.subr.bf16.mxu1 %v8785_v40 }
 0x17e   : > { %5869 = vmatprep.mubr.bf16.mxu0 %v9600_v0  ;;  %5912 = vmatprep.mubr.bf16.mxu1 %v9600_v0 }
 0x180   : > { %5840 = vmatpush1.bf16.msra.mxu0 %v8780_v42  ;;  %5883 = vmatpush1.bf16.msra.mxu1 %v8783_v43  ;;  %v8858_v42 = vld [vmem:[%s9722_s6 + $0x1370] ss:$400 sps:$4 sm:$0xff]   ;;  %v8861_v43 = vld [vmem:[%s9722_s6 + $0x1378] ss:$400 sps:$4 sm:$0xff]  }
 0x181   : > { %5841 = vmatprep.subr.bf16.mxu0 %v8788_v44  ;;  %5884 = vmatprep.subr.bf16.mxu1 %v8791_v45 }
 0x184   : > { %5842 = vmatpush1.bf16.msra.mxu0 %v8786_v46  ;;  %5885 = vmatpush1.bf16.msra.mxu1 %v8789_v47 }
 0x185   : > { %5843 = vmatprep.subr.bf16.mxu0 %v8794_v48  ;;  %5886 = vmatprep.subr.bf16.mxu1 %v8797_v35 }
 0x188   : > { %5844 = vmatpush1.bf16.msra.mxu0 %v8792_v49  ;;  %5887 = vmatpush1.bf16.msra.mxu1 %v8795_v50  ;;  %v8866_v49 = vld [vmem:[%s9722_s6 + $0x1694] ss:$400 sps:$4 sm:$0xff]   ;;  %v8869_v50 = vld [vmem:[%s9722_s6 + $0x169c] ss:$400 sps:$4 sm:$0xff]  }
 0x189   : > { %5845 = vmatprep.subr.bf16.mxu0 %v8800_v51  ;;  %5888 = vmatprep.subr.bf16.mxu1 %v8803_v52  ;;  %v8864_v51 = vld [vmem:[%s9722_s6 + $0x1690] ss:$400 sps:$4 sm:$0xff]   ;;  %v8867_v52 = vld [vmem:[%s9722_s6 + $0x1698] ss:$400 sps:$4 sm:$0xff]  }
 0x18c   : > { %5846 = vmatpush1.bf16.msra.mxu0 %v8798_v53  ;;  %5889 = vmatpush1.bf16.msra.mxu1 %v8801_v54  ;;  %v8872_v53 = vld [vmem:[%s9722_s6 + $0xc4] ss:$400 sps:$4 sm:$0xff]   ;;  %v8875_v54 = vld [vmem:[%s9722_s6 + $0xcc] ss:$400 sps:$4 sm:$0xff]  }
 0x18d   : > { %5847 = vmatprep.subr.bf16.mxu0 %v8806_v55  ;;  %5890 = vmatprep.subr.bf16.mxu1 %v8809_v56  ;;  %v8870_v55 = vld [vmem:[%s9722_s6 + $0xc0] ss:$400 sps:$4 sm:$0xff]   ;;  %v8873_v56 = vld [vmem:[%s9722_s6 + $0xc8] ss:$400 sps:$4 sm:$0xff]  }
 0x18e   : > { %v5269_v61 = vpop.f32.mrb[12].mxu0  ;;  %v5312_v62 = vpop.f32.mrb[12].mxu1 }
 0x18f   : > { %7139 = vst [vmem:[%s10019_s7 + $0x60] sm:$0xff] %v5269_v61  ;;  %7141 = vst [vmem:[%s10019_s7 + $0x70] sm:$0xff] %v5312_v62  ;;  %v5271_v2 = vpop.f32.mrb[13].mxu0  ;;  %v5314_v3 = vpop.f32.mrb[13].mxu1  ;;  %v8884_v61 = vld [vmem:[%s9722_s6 + $0x704] ss:$400 sps:$4 sm:$0xff]  }
 0x190   : > { %7140 = vst [vmem:[%s10019_s7 + $0x68] sm:$0xff] %v5271_v2  ;;  %7142 = vst [vmem:[%s10019_s7 + $0x78] sm:$0xff] %v5314_v3  ;;  %v5273_v12 = vpop.f32.mrb[14].mxu0  ;;  %v5316_v4 = vpop.f32.mrb[14].mxu1  ;;  %5848 = vmatpush1.bf16.msra.mxu0 %v8804_v57  ;;  %5891 = vmatpush1.bf16.msra.mxu1 %v8807_v58  ;;  %v8878_v57 = vld [vmem:[%s9722_s6 + $0x3e4] ss:$400 sps:$4 sm:$0xff]  }
 0x191   : > { %7239 = vst [vmem:[%s10019_s7 + $0x380] sm:$0xff] %v5273_v12  ;;  %7241 = vst [vmem:[%s10019_s7 + $0x390] sm:$0xff] %v5316_v4  ;;  %v5275_v5 = vpop.f32.mrb[15].mxu0  ;;  %v5318_v6 = vpop.f32.mrb[15].mxu1  ;;  %5849 = vmatprep.subr.bf16.mxu0 %v8812_v59  ;;  %5892 = vmatprep.subr.bf16.mxu1 %v8815_v60  ;;  %v8881_v58 = vld [vmem:[%s9722_s6 + $0x3ec] ss:$400 sps:$4 sm:$0xff]  }
 0x192   : > { %7240 = vst [vmem:[%s10019_s7 + $0x388] sm:$0xff] %v5275_v5  ;;  %7242 = vst [vmem:[%s10019_s7 + $0x398] sm:$0xff] %v5318_v6  ;;  %v8876_v59 = vld [vmem:[%s9722_s6 + $0x3e0] ss:$400 sps:$4 sm:$0xff]   ;;  %v8879_v60 = vld [vmem:[%s9722_s6 + $0x3e8] ss:$400 sps:$4 sm:$0xff]  }
 0x193   : > { %v8887_v62 = vld [vmem:[%s9722_s6 + $0x70c] ss:$400 sps:$4 sm:$0xff]   ;;  %v8890_v2 = vld [vmem:[%s9722_s6 + $0xa24] ss:$400 sps:$4 sm:$0xff]   ;;  %v8888_v12 = vld [vmem:[%s9722_s6 + $0xa20] ss:$400 sps:$4 sm:$0xff]  }
 0x194   : > { %5850 = vmatpush1.bf16.msra.mxu0 %v8810_v63  ;;  %5893 = vmatpush1.bf16.msra.mxu1 %v8813_v1  ;;  %v8882_v63 = vld [vmem:[%s9722_s6 + $0x700] ss:$400 sps:$4 sm:$0xff]   ;;  %v8885_v1 = vld [vmem:[%s9722_s6 + $0x708] ss:$400 sps:$4 sm:$0xff]   ;;  %v8893_v3 = vld [vmem:[%s9722_s6 + $0xa2c] ss:$400 sps:$4 sm:$0xff]  }
 0x195   : > { %5851 = vmatprep.subr.bf16.mxu0 %v8818_v7  ;;  %5894 = vmatprep.subr.bf16.mxu1 %v8821_v8  ;;  %v8891_v4 = vld [vmem:[%s9722_s6 + $0xa28] ss:$400 sps:$4 sm:$0xff]   ;;  %v8896_v5 = vld [vmem:[%s9722_s6 + $0xd44] ss:$400 sps:$4 sm:$0xff]   ;;  %v8899_v6 = vld [vmem:[%s9722_s6 + $0xd4c] ss:$400 sps:$4 sm:$0xff]  }
 0x196   : > { %v8894_v7 = vld [vmem:[%s9722_s6 + $0xd40] ss:$400 sps:$4 sm:$0xff]   ;;  %v8897_v8 = vld [vmem:[%s9722_s6 + $0xd48] ss:$400 sps:$4 sm:$0xff]  }
 0x198   : > { %5852 = vmatpush1.bf16.msra.mxu0 %v8816_v9  ;;  %5895 = vmatpush1.bf16.msra.mxu1 %v8819_v10  ;;  %v8902_v9 = vld [vmem:[%s9722_s6 + $0x1064] ss:$400 sps:$4 sm:$0xff]   ;;  %v8905_v10 = vld [vmem:[%s9722_s6 + $0x106c] ss:$400 sps:$4 sm:$0xff]  }
 0x199   : > { %5923 = vmatprep.subr.bf16.mxu0 %v8824_v11  ;;  %5966 = vmatprep.subr.bf16.mxu1 %v8827_v13  ;;  %v8900_v11 = vld [vmem:[%s9722_s6 + $0x1060] ss:$400 sps:$4 sm:$0xff]   ;;  %v8903_v13 = vld [vmem:[%s9722_s6 + $0x1068] ss:$400 sps:$4 sm:$0xff]  }
 0x19b   : > { %5870 = vmatmul.mubr.bf16.vlgmr.msra.gmra.mrb[40].mxu0 %v10132_v41  ;;  %5913 = vmatmul.mubr.bf16.vlgmr.msra.gmra.mrb[40].mxu1 %v10132_v41 }
 0x19c   : > { %5924 = vmatpush1.bf16.msra.mxu0 %v8822_v14  ;;  %5967 = vmatpush1.bf16.msra.mxu1 %v8825_v15  ;;  %v8908_v14 = vld [vmem:[%s9722_s6 + $0x1384] ss:$400 sps:$4 sm:$0xff]   ;;  %v8911_v15 = vld [vmem:[%s9722_s6 + $0x138c] ss:$400 sps:$4 sm:$0xff]  }
 0x19d   : > { %5925 = vmatprep.subr.bf16.mxu0 %v8830_v16  ;;  %5968 = vmatprep.subr.bf16.mxu1 %v8833_v17 }
 0x19e   : > { %5955 = vmatprep.mubr.bf16.mxu0 %v9600_v0  ;;  %5998 = vmatprep.mubr.bf16.mxu1 %v9600_v0 }
 0x1a0   : > { %5926 = vmatpush1.bf16.msra.mxu0 %v8828_v18  ;;  %5969 = vmatpush1.bf16.msra.mxu1 %v8831_v19  ;;  %v8906_v18 = vld [vmem:[%s9722_s6 + $0x1380] ss:$400 sps:$4 sm:$0xff]   ;;  %v8909_v19 = vld [vmem:[%s9722_s6 + $0x1388] ss:$400 sps:$4 sm:$0xff]  }
 0x1a1   : > { %5927 = vmatprep.subr.bf16.mxu0 %v8836_v20  ;;  %5970 = vmatprep.subr.bf16.mxu1 %v8839_v21 }
 0x1a4   : > { %5928 = vmatpush1.bf16.msra.mxu0 %v8834_v22  ;;  %5971 = vmatpush1.bf16.msra.mxu1 %v8837_v23 }
 0x1a5   : > { %5929 = vmatprep.subr.bf16.mxu0 %v8842_v24  ;;  %5972 = vmatprep.subr.bf16.mxu1 %v8845_v25 }
 0x1a8   : > { %5930 = vmatpush1.bf16.msra.mxu0 %v8840_v26  ;;  %5973 = vmatpush1.bf16.msra.mxu1 %v8843_v27  ;;  %v8914_v26 = vld [vmem:[%s9722_s6 + $0x16a4] ss:$400 sps:$4 sm:$0xff]   ;;  %v8917_v27 = vld [vmem:[%s9722_s6 + $0x16ac] ss:$400 sps:$4 sm:$0xff]  }
 0x1a9   : > { %5931 = vmatprep.subr.bf16.mxu0 %v8848_v28  ;;  %5974 = vmatprep.subr.bf16.mxu1 %v8851_v29  ;;  %v8912_v28 = vld [vmem:[%s9722_s6 + $0x16a0] ss:$400 sps:$4 sm:$0xff]   ;;  %v8915_v29 = vld [vmem:[%s9722_s6 + $0x16a8] ss:$400 sps:$4 sm:$0xff]  }
 0x1ac   : > { %5932 = vmatpush1.bf16.msra.mxu0 %v8846_v30  ;;  %5975 = vmatpush1.bf16.msra.mxu1 %v8849_v31  ;;  %v8920_v30 = vld [vmem:[%s9722_s6 + $0xd4] ss:$400 sps:$4 sm:$0xff]   ;;  %v8923_v31 = vld [vmem:[%s9722_s6 + $0xdc] ss:$400 sps:$4 sm:$0xff]  }
 0x1ad   : > { %5933 = vmatprep.subr.bf16.mxu0 %v8854_v32  ;;  %5976 = vmatprep.subr.bf16.mxu1 %v8857_v33  ;;  %v8918_v32 = vld [vmem:[%s9722_s6 + $0xd0] ss:$400 sps:$4 sm:$0xff]   ;;  %v8921_v33 = vld [vmem:[%s9722_s6 + $0xd8] ss:$400 sps:$4 sm:$0xff]  }
 0x1ae   : > { %v5355_v39 = vpop.f32.mrb[16].mxu0  ;;  %v5398_v40 = vpop.f32.mrb[16].mxu1 }
 0x1af   : > { %7143 = vst [vmem:[%s10019_s7 + $0x80] sm:$0xff] %v5355_v39  ;;  %7145 = vst [vmem:[%s10019_s7 + $0x90] sm:$0xff] %v5398_v40  ;;  %v5357_v44 = vpop.f32.mrb[17].mxu0  ;;  %v5400_v45 = vpop.f32.mrb[17].mxu1  ;;  %v8932_v39 = vld [vmem:[%s9722_s6 + $0x714] ss:$400 sps:$4 sm:$0xff]  }
 0x1b0   : > { %7144 = vst [vmem:[%s10019_s7 + $0x88] sm:$0xff] %v5357_v44  ;;  %7146 = vst [vmem:[%s10019_s7 + $0x98] sm:$0xff] %v5400_v45  ;;  %v5359_v46 = vpop.f32.mrb[18].mxu0  ;;  %v5402_v47 = vpop.f32.mrb[18].mxu1  ;;  %5934 = vmatpush1.bf16.msra.mxu0 %v8852_v34  ;;  %5977 = vmatpush1.bf16.msra.mxu1 %v8855_v36  ;;  %v8926_v34 = vld [vmem:[%s9722_s6 + $0x3f4] ss:$400 sps:$4 sm:$0xff]  }
 0x1b1   : > { %7243 = vst [vmem:[%s10019_s7 + $0x3a0] sm:$0xff] %v5359_v46  ;;  %7245 = vst [vmem:[%s10019_s7 + $0x3b0] sm:$0xff] %v5402_v47  ;;  %v5361_v48 = vpop.f32.mrb[19].mxu0  ;;  %v5404_v35 = vpop.f32.mrb[19].mxu1  ;;  %5935 = vmatprep.subr.bf16.mxu0 %v8860_v37  ;;  %5978 = vmatprep.subr.bf16.mxu1 %v8863_v38  ;;  %v8929_v36 = vld [vmem:[%s9722_s6 + $0x3fc] ss:$400 sps:$4 sm:$0xff]  }
 0x1b2   : > { %7244 = vst [vmem:[%s10019_s7 + $0x3a8] sm:$0xff] %v5361_v48  ;;  %7246 = vst [vmem:[%s10019_s7 + $0x3b8] sm:$0xff] %v5404_v35  ;;  %v8924_v37 = vld [vmem:[%s9722_s6 + $0x3f0] ss:$400 sps:$4 sm:$0xff]   ;;  %v8927_v38 = vld [vmem:[%s9722_s6 + $0x3f8] ss:$400 sps:$4 sm:$0xff]  }
 0x1b3   : > { %v8935_v40 = vld [vmem:[%s9722_s6 + $0x71c] ss:$400 sps:$4 sm:$0xff]   ;;  %v8936_v45 = vld [vmem:[%s9722_s6 + $0xa30] ss:$400 sps:$4 sm:$0xff]   ;;  %v8939_v46 = vld [vmem:[%s9722_s6 + $0xa38] ss:$400 sps:$4 sm:$0xff]  }
 0x1b4   : > { %5936 = vmatpush1.bf16.msra.mxu0 %v8858_v42  ;;  %5979 = vmatpush1.bf16.msra.mxu1 %v8861_v43  ;;  %v8933_v42 = vld [vmem:[%s9722_s6 + $0x718] ss:$400 sps:$4 sm:$0xff]   ;;  %v8938_v43 = vld [vmem:[%s9722_s6 + $0xa34] ss:$400 sps:$4 sm:$0xff]   ;;  %v8941_v44 = vld [vmem:[%s9722_s6 + $0xa3c] ss:$400 sps:$4 sm:$0xff]  }
 0x1b5   : > { %5937 = vmatprep.subr.bf16.mxu0 %v8866_v49  ;;  %5980 = vmatprep.subr.bf16.mxu1 %v8869_v50  ;;  %v8944_v47 = vld [vmem:[%s9722_s6 + $0xd54] ss:$400 sps:$4 sm:$0xff]   ;;  %v8947_v48 = vld [vmem:[%s9722_s6 + $0xd5c] ss:$400 sps:$4 sm:$0xff]   ;;  %v8942_v35 = vld [vmem:[%s9722_s6 + $0xd50] ss:$400 sps:$4 sm:$0xff]  }
 0x1b6   : > { %v8945_v49 = vld [vmem:[%s9722_s6 + $0xd58] ss:$400 sps:$4 sm:$0xff]   ;;  %v8950_v50 = vld [vmem:[%s9722_s6 + $0x1074] ss:$400 sps:$4 sm:$0xff]  }
 0x1b8   : > { %5938 = vmatpush1.bf16.msra.mxu0 %v8864_v51  ;;  %5981 = vmatpush1.bf16.msra.mxu1 %v8867_v52  ;;  %v8953_v51 = vld [vmem:[%s9722_s6 + $0x107c] ss:$400 sps:$4 sm:$0xff]   ;;  %v8948_v52 = vld [vmem:[%s9722_s6 + $0x1070] ss:$400 sps:$4 sm:$0xff]  }
 0x1b9   : > { %6009 = vmatprep.subr.bf16.mxu0 %v8872_v53  ;;  %6052 = vmatprep.subr.bf16.mxu1 %v8875_v54  ;;  %v8951_v53 = vld [vmem:[%s9722_s6 + $0x1078] ss:$400 sps:$4 sm:$0xff]   ;;  %v8956_v54 = vld [vmem:[%s9722_s6 + $0x1394] ss:$400 sps:$4 sm:$0xff]  }
 0x1bb   : > { %5956 = vmatmul.mubr.bf16.vlgmr.msra.gmra.mrb[44].mxu0 %v10132_v41  ;;  %5999 = vmatmul.mubr.bf16.vlgmr.msra.gmra.mrb[44].mxu1 %v10132_v41 }
 0x1bc   : > { %6010 = vmatpush1.bf16.msra.mxu0 %v8870_v55  ;;  %6053 = vmatpush1.bf16.msra.mxu1 %v8873_v56  ;;  %v8959_v55 = vld [vmem:[%s9722_s6 + $0x139c] ss:$400 sps:$4 sm:$0xff]  }
 0x1bd   : > { %6011 = vmatprep.subr.bf16.mxu0 %v8878_v57  ;;  %6054 = vmatprep.subr.bf16.mxu1 %v8881_v58  ;;  %v8954_v58 = vld [vmem:[%s9722_s6 + $0x1390] ss:$400 sps:$4 sm:$0xff]  }
 0x1be   : > { %6041 = vmatprep.mubr.bf16.mxu0 %v9600_v0  ;;  %6084 = vmatprep.mubr.bf16.mxu1 %v9600_v0 }
 0x1c0   : > { %6012 = vmatpush1.bf16.msra.mxu0 %v8876_v59  ;;  %6055 = vmatpush1.bf16.msra.mxu1 %v8879_v60  ;;  %v8957_v59 = vld [vmem:[%s9722_s6 + $0x1398] ss:$400 sps:$4 sm:$0xff]  }
 0x1c1   : > { %6013 = vmatprep.subr.bf16.mxu0 %v8884_v61  ;;  %6056 = vmatprep.subr.bf16.mxu1 %v8887_v62 }
 0x1c4   : > { %6014 = vmatpush1.bf16.msra.mxu0 %v8882_v63  ;;  %6057 = vmatpush1.bf16.msra.mxu1 %v8885_v1 }
 0x1c5   : > { %6015 = vmatprep.subr.bf16.mxu0 %v8890_v2  ;;  %6058 = vmatprep.subr.bf16.mxu1 %v8893_v3  ;;  %v8962_v3 = vld [vmem:[%s9722_s6 + $0x16b4] ss:$400 sps:$4 sm:$0xff]  }
 0x1c8   : > { %6016 = vmatpush1.bf16.msra.mxu0 %v8888_v12  ;;  %6059 = vmatpush1.bf16.msra.mxu1 %v8891_v4  ;;  %v8965_v12 = vld [vmem:[%s9722_s6 + $0x16bc] ss:$400 sps:$4 sm:$0xff]   ;;  %v8960_v4 = vld [vmem:[%s9722_s6 + $0x16b0] ss:$400 sps:$4 sm:$0xff]  }
 0x1c9   : > { %6017 = vmatprep.subr.bf16.mxu0 %v8896_v5  ;;  %6060 = vmatprep.subr.bf16.mxu1 %v8899_v6  ;;  %v8963_v5 = vld [vmem:[%s9722_s6 + $0x16b8] ss:$400 sps:$4 sm:$0xff]   ;;  %v8968_v6 = vld [vmem:[%s9722_s6 + $0xe4] ss:$400 sps:$4 sm:$0xff]  }
 0x1cc   : > { %6018 = vmatpush1.bf16.msra.mxu0 %v8894_v7  ;;  %6061 = vmatpush1.bf16.msra.mxu1 %v8897_v8  ;;  %v8971_v7 = vld [vmem:[%s9722_s6 + $0xec] ss:$400 sps:$4 sm:$0xff]   ;;  %v8966_v8 = vld [vmem:[%s9722_s6 + $0xe0] ss:$400 sps:$4 sm:$0xff]  }
 0x1cd   : > { %6019 = vmatprep.subr.bf16.mxu0 %v8902_v9  ;;  %6062 = vmatprep.subr.bf16.mxu1 %v8905_v10  ;;  %v8969_v9 = vld [vmem:[%s9722_s6 + $0xe8] ss:$400 sps:$4 sm:$0xff]   ;;  %v8974_v10 = vld [vmem:[%s9722_s6 + $0x404] ss:$400 sps:$4 sm:$0xff]  }
 0x1ce   : > { %v5441_v16 = vpop.f32.mrb[20].mxu0  ;;  %v5484_v17 = vpop.f32.mrb[20].mxu1 }
 0x1cf   : > { %7147 = vst [vmem:[%s10019_s7 + $0xa0] sm:$0xff] %v5441_v16  ;;  %7149 = vst [vmem:[%s10019_s7 + $0xb0] sm:$0xff] %v5484_v17  ;;  %v5443_v20 = vpop.f32.mrb[21].mxu0  ;;  %v5486_v21 = vpop.f32.mrb[21].mxu1  ;;  %v8980_v16 = vld [vmem:[%s9722_s6 + $0x724] ss:$400 sps:$4 sm:$0xff]  }
 0x1d0   : > { %7148 = vst [vmem:[%s10019_s7 + $0xa8] sm:$0xff] %v5443_v20  ;;  %7150 = vst [vmem:[%s10019_s7 + $0xb8] sm:$0xff] %v5486_v21  ;;  %v5445_v22 = vpop.f32.mrb[22].mxu0  ;;  %v5488_v23 = vpop.f32.mrb[22].mxu1  ;;  %6020 = vmatpush1.bf16.msra.mxu0 %v8900_v11  ;;  %6063 = vmatpush1.bf16.msra.mxu1 %v8903_v13  ;;  %v8977_v11 = vld [vmem:[%s9722_s6 + $0x40c] ss:$400 sps:$4 sm:$0xff]  }
 0x1d1   : > { %7247 = vst [vmem:[%s10019_s7 + $0x3c0] sm:$0xff] %v5445_v22  ;;  %7249 = vst [vmem:[%s10019_s7 + $0x3d0] sm:$0xff] %v5488_v23  ;;  %v5447_v24 = vpop.f32.mrb[23].mxu0  ;;  %v5490_v25 = vpop.f32.mrb[23].mxu1  ;;  %6021 = vmatprep.subr.bf16.mxu0 %v8908_v14  ;;  %6064 = vmatprep.subr.bf16.mxu1 %v8911_v15  ;;  %v10313_v13 = vld [vmem:[%s10924_s0] sm:$0xff]  }
 0x1d2   : > { %7248 = vst [vmem:[%s10019_s7 + $0x3c8] sm:$0xff] %v5447_v24  ;;  %7250 = vst [vmem:[%s10019_s7 + $0x3d8] sm:$0xff] %v5490_v25  ;;  %v8972_v14 = vld [vmem:[%s9722_s6 + $0x400] ss:$400 sps:$4 sm:$0xff]   ;;  %v8975_v15 = vld [vmem:[%s9722_s6 + $0x408] ss:$400 sps:$4 sm:$0xff]  }
 0x1d3   : > { %v8983_v17 = vld [vmem:[%s9722_s6 + $0x72c] ss:$400 sps:$4 sm:$0xff]   ;;  %v8986_v20 = vld [vmem:[%s9722_s6 + $0xa44] ss:$400 sps:$4 sm:$0xff]   ;;  %v8984_v22 = vld [vmem:[%s9722_s6 + $0xa40] ss:$400 sps:$4 sm:$0xff]  }
 0x1d4   : > { %6022 = vmatpush1.bf16.msra.mxu0 %v8906_v18  ;;  %6065 = vmatpush1.bf16.msra.mxu1 %v8909_v19  ;;  %v8978_v18 = vld [vmem:[%s9722_s6 + $0x720] ss:$400 sps:$4 sm:$0xff]   ;;  %v8981_v19 = vld [vmem:[%s9722_s6 + $0x728] ss:$400 sps:$4 sm:$0xff]   ;;  %v8989_v21 = vld [vmem:[%s9722_s6 + $0xa4c] ss:$400 sps:$4 sm:$0xff]  }
 0x1d5   : > { %6023 = vmatprep.subr.bf16.mxu0 %v8914_v26  ;;  %6066 = vmatprep.subr.bf16.mxu1 %v8917_v27  ;;  %v8987_v23 = vld [vmem:[%s9722_s6 + $0xa48] ss:$400 sps:$4 sm:$0xff]   ;;  %v8992_v24 = vld [vmem:[%s9722_s6 + $0xd64] ss:$400 sps:$4 sm:$0xff]   ;;  %v8995_v25 = vld [vmem:[%s9722_s6 + $0xd6c] ss:$400 sps:$4 sm:$0xff]  }
 0x1d6   : > { %v8990_v26 = vld [vmem:[%s9722_s6 + $0xd60] ss:$400 sps:$4 sm:$0xff]   ;;  %v8993_v27 = vld [vmem:[%s9722_s6 + $0xd68] ss:$400 sps:$4 sm:$0xff]  }
 0x1d8   : > { %6024 = vmatpush1.bf16.msra.mxu0 %v8912_v28  ;;  %6067 = vmatpush1.bf16.msra.mxu1 %v8915_v29  ;;  %v8998_v28 = vld [vmem:[%s9722_s6 + $0x1084] ss:$400 sps:$4 sm:$0xff]   ;;  %v9001_v29 = vld [vmem:[%s9722_s6 + $0x108c] ss:$400 sps:$4 sm:$0xff]  }
 0x1d9   : > { %6095 = vmatprep.subr.bf16.mxu0 %v8920_v30  ;;  %6138 = vmatprep.subr.bf16.mxu1 %v8923_v31  ;;  %v8996_v30 = vld [vmem:[%s9722_s6 + $0x1080] ss:$400 sps:$4 sm:$0xff]   ;;  %v8999_v31 = vld [vmem:[%s9722_s6 + $0x1088] ss:$400 sps:$4 sm:$0xff]  }
 0x1db   : > { %6042 = vmatmul.mubr.bf16.vlgmr.msra.gmra.mrb[48].mxu0 %v10132_v41  ;;  %6085 = vmatmul.mubr.bf16.vlgmr.msra.gmra.mrb[48].mxu1 %v10132_v41  ;;  %v8930_v41 = vld [vmem:[%s9722_s6 + $0x710] ss:$400 sps:$4 sm:$0xff]  }
 0x1dc   : > { %6096 = vmatpush1.bf16.msra.mxu0 %v8918_v32  ;;  %6139 = vmatpush1.bf16.msra.mxu1 %v8921_v33  ;;  %v9004_v32 = vld [vmem:[%s9722_s6 + $0x13a4] ss:$400 sps:$4 sm:$0xff]   ;;  %v9007_v33 = vld [vmem:[%s9722_s6 + $0x13ac] ss:$400 sps:$4 sm:$0xff]  }
 0x1dd   : > { %6097 = vmatprep.subr.bf16.mxu0 %v8926_v34  ;;  %6140 = vmatprep.subr.bf16.mxu1 %v8929_v36 }
 0x1de   : > { %6127 = vmatprep.mubr.bf16.mxu0 %v9600_v0  ;;  %6170 = vmatprep.mubr.bf16.mxu1 %v9600_v0 }
 0x1e0   : > { %6098 = vmatpush1.bf16.msra.mxu0 %v8924_v37  ;;  %6141 = vmatpush1.bf16.msra.mxu1 %v8927_v38  ;;  %v9002_v37 = vld [vmem:[%s9722_s6 + $0x13a0] ss:$400 sps:$4 sm:$0xff]  }
 0x1e1   : > { %6099 = vmatprep.subr.bf16.mxu0 %v8932_v39  ;;  %6142 = vmatprep.subr.bf16.mxu1 %v8935_v40 }
 0x1e4   : > { %6100 = vmatpush1.bf16.msra.mxu0 %v8930_v41  ;;  %6143 = vmatpush1.bf16.msra.mxu1 %v8933_v42  ;;  %v9005_v42 = vld [vmem:[%s9722_s6 + $0x13a8] ss:$400 sps:$4 sm:$0xff]  }
 0x1e5   : > { %6101 = vmatprep.subr.bf16.mxu0 %v8938_v43  ;;  %6144 = vmatprep.subr.bf16.mxu1 %v8941_v44 }
 0x1e8   : > { %6102 = vmatpush1.bf16.msra.mxu0 %v8936_v45  ;;  %6145 = vmatpush1.bf16.msra.mxu1 %v8939_v46  ;;  %v9010_v45 = vld [vmem:[%s9722_s6 + $0x16c4] ss:$400 sps:$4 sm:$0xff]   ;;  %v9013_v46 = vld [vmem:[%s9722_s6 + $0x16cc] ss:$400 sps:$4 sm:$0xff]  }
 0x1e9   : > { %6103 = vmatprep.subr.bf16.mxu0 %v8944_v47  ;;  %6146 = vmatprep.subr.bf16.mxu1 %v8947_v48  ;;  %v9008_v47 = vld [vmem:[%s9722_s6 + $0x16c0] ss:$400 sps:$4 sm:$0xff]   ;;  %v9011_v48 = vld [vmem:[%s9722_s6 + $0x16c8] ss:$400 sps:$4 sm:$0xff]  }
 0x1ec   : > { %6104 = vmatpush1.bf16.msra.mxu0 %v8942_v35  ;;  %6147 = vmatpush1.bf16.msra.mxu1 %v8945_v49  ;;  %v9016_v35 = vld [vmem:[%s9722_s6 + $0xf4] ss:$400 sps:$4 sm:$0xff]   ;;  %v9019_v49 = vld [vmem:[%s9722_s6 + $0xfc] ss:$400 sps:$4 sm:$0xff]  }
 0x1ed   : > { %6105 = vmatprep.subr.bf16.mxu0 %v8950_v50  ;;  %6148 = vmatprep.subr.bf16.mxu1 %v8953_v51  ;;  %v9014_v50 = vld [vmem:[%s9722_s6 + $0xf0] ss:$400 sps:$4 sm:$0xff]   ;;  %v9017_v51 = vld [vmem:[%s9722_s6 + $0xf8] ss:$400 sps:$4 sm:$0xff]  }
 0x1ee   : > { %v5527_v56 = vpop.f32.mrb[24].mxu0  ;;  %v5570_v57 = vpop.f32.mrb[24].mxu1 }
 0x1ef   : > { %7151 = vst [vmem:[%s10019_s7 + $0xc0] sm:$0xff] %v5527_v56  ;;  %7153 = vst [vmem:[%s10019_s7 + $0xd0] sm:$0xff] %v5570_v57  ;;  %v5529_v60 = vpop.f32.mrb[25].mxu0  ;;  %v5572_v61 = vpop.f32.mrb[25].mxu1  ;;  %v9028_v56 = vld [vmem:[%s9722_s6 + $0x734] ss:$400 sps:$4 sm:$0xff]  }
 0x1f0   : > { %7152 = vst [vmem:[%s10019_s7 + $0xc8] sm:$0xff] %v5529_v60  ;;  %7154 = vst [vmem:[%s10019_s7 + $0xd8] sm:$0xff] %v5572_v61  ;;  %v5531_v62 = vpop.f32.mrb[26].mxu0  ;;  %v5574_v63 = vpop.f32.mrb[26].mxu1  ;;  %6106 = vmatpush1.bf16.msra.mxu0 %v8948_v52  ;;  %6149 = vmatpush1.bf16.msra.mxu1 %v8951_v53  ;;  %v9022_v52 = vld [vmem:[%s9722_s6 + $0x414] ss:$400 sps:$4 sm:$0xff]  }
 0x1f1   : > { %7251 = vst [vmem:[%s10019_s7 + $0x3e0] sm:$0xff] %v5531_v62  ;;  %7253 = vst [vmem:[%s10019_s7 + $0x3f0] sm:$0xff] %v5574_v63  ;;  %v5533_v1 = vpop.f32.mrb[27].mxu0  ;;  %v5576_v2 = vpop.f32.mrb[27].mxu1  ;;  %6107 = vmatprep.subr.bf16.mxu0 %v8956_v54  ;;  %6150 = vmatprep.subr.bf16.mxu1 %v8959_v55  ;;  %v9025_v53 = vld [vmem:[%s9722_s6 + $0x41c] ss:$400 sps:$4 sm:$0xff]  }
 0x1f2   : > { %7252 = vst [vmem:[%s10019_s7 + $0x3e8] sm:$0xff] %v5533_v1  ;;  %7254 = vst [vmem:[%s10019_s7 + $0x3f8] sm:$0xff] %v5576_v2  ;;  %v9020_v54 = vld [vmem:[%s9722_s6 + $0x410] ss:$400 sps:$4 sm:$0xff]   ;;  %v9023_v55 = vld [vmem:[%s9722_s6 + $0x418] ss:$400 sps:$4 sm:$0xff]  }
 0x1f3   : > { %v9031_v57 = vld [vmem:[%s9722_s6 + $0x73c] ss:$400 sps:$4 sm:$0xff]   ;;  %v9034_v60 = vld [vmem:[%s9722_s6 + $0xa54] ss:$400 sps:$4 sm:$0xff]   ;;  %v9032_v62 = vld [vmem:[%s9722_s6 + $0xa50] ss:$400 sps:$4 sm:$0xff]  }
 0x1f4   : > { %6108 = vmatpush1.bf16.msra.mxu0 %v8954_v58  ;;  %6151 = vmatpush1.bf16.msra.mxu1 %v8957_v59  ;;  %v9026_v58 = vld [vmem:[%s9722_s6 + $0x730] ss:$400 sps:$4 sm:$0xff]   ;;  %v9029_v59 = vld [vmem:[%s9722_s6 + $0x738] ss:$400 sps:$4 sm:$0xff]   ;;  %v9037_v61 = vld [vmem:[%s9722_s6 + $0xa5c] ss:$400 sps:$4 sm:$0xff]  }
 0x1f5   : > { %6109 = vmatprep.subr.bf16.mxu0 %v8962_v3  ;;  %6152 = vmatprep.subr.bf16.mxu1 %v8965_v12  ;;  %v9035_v63 = vld [vmem:[%s9722_s6 + $0xa58] ss:$400 sps:$4 sm:$0xff]   ;;  %v9040_v1 = vld [vmem:[%s9722_s6 + $0xd74] ss:$400 sps:$4 sm:$0xff]   ;;  %v9043_v2 = vld [vmem:[%s9722_s6 + $0xd7c] ss:$400 sps:$4 sm:$0xff]  }
 0x1f6   : > { %v9038_v3 = vld [vmem:[%s9722_s6 + $0xd70] ss:$400 sps:$4 sm:$0xff]   ;;  %v9041_v12 = vld [vmem:[%s9722_s6 + $0xd78] ss:$400 sps:$4 sm:$0xff]  }
 0x1f8   : > { %6110 = vmatpush1.bf16.msra.mxu0 %v8960_v4  ;;  %6153 = vmatpush1.bf16.msra.mxu1 %v8963_v5  ;;  %v9046_v4 = vld [vmem:[%s9722_s6 + $0x1094] ss:$400 sps:$4 sm:$0xff]   ;;  %v9049_v5 = vld [vmem:[%s9722_s6 + $0x109c] ss:$400 sps:$4 sm:$0xff]  }
 0x1f9   : > { %6181 = vmatprep.subr.bf16.mxu0 %v8968_v6  ;;  %6224 = vmatprep.subr.bf16.mxu1 %v8971_v7  ;;  %v9044_v6 = vld [vmem:[%s9722_s6 + $0x1090] ss:$400 sps:$4 sm:$0xff]   ;;  %v9047_v7 = vld [vmem:[%s9722_s6 + $0x1098] ss:$400 sps:$4 sm:$0xff]  }
 0x1fb   : > { %6128 = vmatmul.mubr.bf16.vlgmr.msra.gmra.mrb[52].mxu0 %v10313_v13  ;;  %6171 = vmatmul.mubr.bf16.vlgmr.msra.gmra.mrb[52].mxu1 %v10313_v13 }
 0x1fc   : > { %6182 = vmatpush1.bf16.msra.mxu0 %v8966_v8  ;;  %6225 = vmatpush1.bf16.msra.mxu1 %v8969_v9  ;;  %v9052_v8 = vld [vmem:[%s9722_s6 + $0x13b4] ss:$400 sps:$4 sm:$0xff]   ;;  %v9055_v9 = vld [vmem:[%s9722_s6 + $0x13bc] ss:$400 sps:$4 sm:$0xff]  }
 0x1fd   : > { %6183 = vmatprep.subr.bf16.mxu0 %v8974_v10  ;;  %6226 = vmatprep.subr.bf16.mxu1 %v8977_v11 }
 0x1fe   : > { %6213 = vmatprep.mubr.bf16.mxu0 %v9600_v0  ;;  %6256 = vmatprep.mubr.bf16.mxu1 %v9600_v0 }
 0x200   : > { %6184 = vmatpush1.bf16.msra.mxu0 %v8972_v14  ;;  %6227 = vmatpush1.bf16.msra.mxu1 %v8975_v15 }
 0x201   : > { %6185 = vmatprep.subr.bf16.mxu0 %v8980_v16  ;;  %6228 = vmatprep.subr.bf16.mxu1 %v8983_v17 }
 0x204   : > { %6186 = vmatpush1.bf16.msra.mxu0 %v8978_v18  ;;  %6229 = vmatpush1.bf16.msra.mxu1 %v8981_v19  ;;  %v9050_v18 = vld [vmem:[%s9722_s6 + $0x13b0] ss:$400 sps:$4 sm:$0xff]   ;;  %v9053_v19 = vld [vmem:[%s9722_s6 + $0x13b8] ss:$400 sps:$4 sm:$0xff]  }
 0x205   : > { %6187 = vmatprep.subr.bf16.mxu0 %v8986_v20  ;;  %6230 = vmatprep.subr.bf16.mxu1 %v8989_v21 }
 0x208   : > { %6188 = vmatpush1.bf16.msra.mxu0 %v8984_v22  ;;  %6231 = vmatpush1.bf16.msra.mxu1 %v8987_v23  ;;  %v9058_v22 = vld [vmem:[%s9722_s6 + $0x16d4] ss:$400 sps:$4 sm:$0xff]   ;;  %v9061_v23 = vld [vmem:[%s9722_s6 + $0x16dc] ss:$400 sps:$4 sm:$0xff]  }
 0x209   : > { %6189 = vmatprep.subr.bf16.mxu0 %v8992_v24  ;;  %6232 = vmatprep.subr.bf16.mxu1 %v8995_v25  ;;  %v9056_v24 = vld [vmem:[%s9722_s6 + $0x16d0] ss:$400 sps:$4 sm:$0xff]   ;;  %v9059_v25 = vld [vmem:[%s9722_s6 + $0x16d8] ss:$400 sps:$4 sm:$0xff]  }
 0x20c   : > { %6190 = vmatpush1.bf16.msra.mxu0 %v8990_v26  ;;  %6233 = vmatpush1.bf16.msra.mxu1 %v8993_v27  ;;  %v9064_v26 = vld [vmem:[%s9722_s6 + $0x104] ss:$400 sps:$4 sm:$0xff]   ;;  %v9067_v27 = vld [vmem:[%s9722_s6 + $0x10c] ss:$400 sps:$4 sm:$0xff]  }
 0x20d   : > { %6191 = vmatprep.subr.bf16.mxu0 %v8998_v28  ;;  %6234 = vmatprep.subr.bf16.mxu1 %v9001_v29  ;;  %v9062_v28 = vld [vmem:[%s9722_s6 + $0x100] ss:$400 sps:$4 sm:$0xff]   ;;  %v9065_v29 = vld [vmem:[%s9722_s6 + $0x108] ss:$400 sps:$4 sm:$0xff]  }
 0x20e   : > { %v5613_v34 = vpop.f32.mrb[28].mxu0  ;;  %v5656_v36 = vpop.f32.mrb[28].mxu1 }
 0x20f   : > { %7155 = vst [vmem:[%s10019_s7 + $0xe0] sm:$0xff] %v5613_v34  ;;  %7157 = vst [vmem:[%s10019_s7 + $0xf0] sm:$0xff] %v5656_v36  ;;  %v5615_v38 = vpop.f32.mrb[29].mxu0  ;;  %v5658_v39 = vpop.f32.mrb[29].mxu1  ;;  %v9076_v34 = vld [vmem:[%s9722_s6 + $0x744] ss:$400 sps:$4 sm:$0xff]  }
 0x210   : > { %7156 = vst [vmem:[%s10019_s7 + $0xe8] sm:$0xff] %v5615_v38  ;;  %7158 = vst [vmem:[%s10019_s7 + $0xf8] sm:$0xff] %v5658_v39  ;;  %v5617_v40 = vpop.f32.mrb[30].mxu0  ;;  %v5660_v41 = vpop.f32.mrb[30].mxu1  ;;  %6192 = vmatpush1.bf16.msra.mxu0 %v8996_v30  ;;  %6235 = vmatpush1.bf16.msra.mxu1 %v8999_v31  ;;  %v9070_v30 = vld [vmem:[%s9722_s6 + $0x424] ss:$400 sps:$4 sm:$0xff]  }
 0x211   : > { %7255 = vst [vmem:[%s10019_s7 + $0x400] sm:$0xff] %v5617_v40  ;;  %7257 = vst [vmem:[%s10019_s7 + $0x410] sm:$0xff] %v5660_v41  ;;  %v5619_v43 = vpop.f32.mrb[31].mxu0  ;;  %v5662_v44 = vpop.f32.mrb[31].mxu1  ;;  %6193 = vmatprep.subr.bf16.mxu0 %v9004_v32  ;;  %6236 = vmatprep.subr.bf16.mxu1 %v9007_v33  ;;  %v9073_v31 = vld [vmem:[%s9722_s6 + $0x42c] ss:$400 sps:$4 sm:$0xff]  }
 0x212   : > { %7256 = vst [vmem:[%s10019_s7 + $0x408] sm:$0xff] %v5619_v43  ;;  %7258 = vst [vmem:[%s10019_s7 + $0x418] sm:$0xff] %v5662_v44  ;;  %v9068_v32 = vld [vmem:[%s9722_s6 + $0x420] ss:$400 sps:$4 sm:$0xff]   ;;  %v9071_v33 = vld [vmem:[%s9722_s6 + $0x428] ss:$400 sps:$4 sm:$0xff]  }
 0x213   : > { %v9079_v36 = vld [vmem:[%s9722_s6 + $0x74c] ss:$400 sps:$4 sm:$0xff]   ;;  %v9077_v38 = vld [vmem:[%s9722_s6 + $0x748] ss:$400 sps:$4 sm:$0xff]   ;;  %v9082_v39 = vld [vmem:[%s9722_s6 + $0xa64] ss:$400 sps:$4 sm:$0xff]  }
 0x214   : > { %6194 = vmatpush1.bf16.msra.mxu0 %v9002_v37  ;;  %6237 = vmatpush1.bf16.msra.mxu1 %v9005_v42  ;;  %v9074_v37 = vld [vmem:[%s9722_s6 + $0x740] ss:$400 sps:$4 sm:$0xff]   ;;  %v9085_v40 = vld [vmem:[%s9722_s6 + $0xa6c] ss:$400 sps:$4 sm:$0xff]   ;;  %v9083_v42 = vld [vmem:[%s9722_s6 + $0xa68] ss:$400 sps:$4 sm:$0xff]  }
 0x215   : > { %6195 = vmatprep.subr.bf16.mxu0 %v9010_v45  ;;  %6238 = vmatprep.subr.bf16.mxu1 %v9013_v46  ;;  %v9080_v41 = vld [vmem:[%s9722_s6 + $0xa60] ss:$400 sps:$4 sm:$0xff]   ;;  %v9088_v43 = vld [vmem:[%s9722_s6 + $0xd84] ss:$400 sps:$4 sm:$0xff]   ;;  %v9091_v44 = vld [vmem:[%s9722_s6 + $0xd8c] ss:$400 sps:$4 sm:$0xff]  }
 0x216   : > { %v9086_v45 = vld [vmem:[%s9722_s6 + $0xd80] ss:$400 sps:$4 sm:$0xff]   ;;  %v9089_v46 = vld [vmem:[%s9722_s6 + $0xd88] ss:$400 sps:$4 sm:$0xff]  }
 0x218   : > { %6196 = vmatpush1.bf16.msra.mxu0 %v9008_v47  ;;  %6239 = vmatpush1.bf16.msra.mxu1 %v9011_v48  ;;  %v9094_v47 = vld [vmem:[%s9722_s6 + $0x10a4] ss:$400 sps:$4 sm:$0xff]   ;;  %v9097_v48 = vld [vmem:[%s9722_s6 + $0x10ac] ss:$400 sps:$4 sm:$0xff]  }
 0x219   : > { %6267 = vmatprep.subr.bf16.mxu0 %v9016_v35  ;;  %6310 = vmatprep.subr.bf16.mxu1 %v9019_v49  ;;  %v9092_v35 = vld [vmem:[%s9722_s6 + $0x10a0] ss:$400 sps:$4 sm:$0xff]   ;;  %v9095_v49 = vld [vmem:[%s9722_s6 + $0x10a8] ss:$400 sps:$4 sm:$0xff]  }
 0x21b   : > { %6214 = vmatmul.mubr.bf16.vlgmr.msra.gmra.mrb[56].mxu0 %v10313_v13  ;;  %6257 = vmatmul.mubr.bf16.vlgmr.msra.gmra.mrb[56].mxu1 %v10313_v13 }
 0x21c   : > { %6268 = vmatpush1.bf16.msra.mxu0 %v9014_v50  ;;  %6311 = vmatpush1.bf16.msra.mxu1 %v9017_v51  ;;  %v9100_v50 = vld [vmem:[%s9722_s6 + $0x13c4] ss:$400 sps:$4 sm:$0xff]   ;;  %v9103_v51 = vld [vmem:[%s9722_s6 + $0x13cc] ss:$400 sps:$4 sm:$0xff]  }
 0x21d   : > { %6269 = vmatprep.subr.bf16.mxu0 %v9022_v52  ;;  %6312 = vmatprep.subr.bf16.mxu1 %v9025_v53 }
 0x21e   : > { %6299 = vmatprep.mubr.bf16.mxu0 %v9600_v0  ;;  %6342 = vmatprep.mubr.bf16.mxu1 %v9600_v0 }
 0x220   : > { %6270 = vmatpush1.bf16.msra.mxu0 %v9020_v54  ;;  %6313 = vmatpush1.bf16.msra.mxu1 %v9023_v55 }
 0x221   : > { %6271 = vmatprep.subr.bf16.mxu0 %v9028_v56  ;;  %6314 = vmatprep.subr.bf16.mxu1 %v9031_v57 }
 0x224   : > { %6272 = vmatpush1.bf16.msra.mxu0 %v9026_v58  ;;  %6315 = vmatpush1.bf16.msra.mxu1 %v9029_v59  ;;  %v9098_v58 = vld [vmem:[%s9722_s6 + $0x13c0] ss:$400 sps:$4 sm:$0xff]   ;;  %v9101_v59 = vld [vmem:[%s9722_s6 + $0x13c8] ss:$400 sps:$4 sm:$0xff]  }
 0x225   : > { %6273 = vmatprep.subr.bf16.mxu0 %v9034_v60  ;;  %6316 = vmatprep.subr.bf16.mxu1 %v9037_v61 }
 0x228   : > { %6274 = vmatpush1.bf16.msra.mxu0 %v9032_v62  ;;  %6317 = vmatpush1.bf16.msra.mxu1 %v9035_v63  ;;  %v9106_v62 = vld [vmem:[%s9722_s6 + $0x16e4] ss:$400 sps:$4 sm:$0xff]   ;;  %v9109_v63 = vld [vmem:[%s9722_s6 + $0x16ec] ss:$400 sps:$4 sm:$0xff]  }
 0x229   : > { %6275 = vmatprep.subr.bf16.mxu0 %v9040_v1  ;;  %6318 = vmatprep.subr.bf16.mxu1 %v9043_v2  ;;  %v9104_v1 = vld [vmem:[%s9722_s6 + $0x16e0] ss:$400 sps:$4 sm:$0xff]   ;;  %v9107_v2 = vld [vmem:[%s9722_s6 + $0x16e8] ss:$400 sps:$4 sm:$0xff]  }
 0x22c   : > { %6276 = vmatpush1.bf16.msra.mxu0 %v9038_v3  ;;  %6319 = vmatpush1.bf16.msra.mxu1 %v9041_v12  ;;  %v9112_v3 = vld [vmem:[%s9722_s6 + $0x114] ss:$400 sps:$4 sm:$0xff]   ;;  %v9115_v12 = vld [vmem:[%s9722_s6 + $0x11c] ss:$400 sps:$4 sm:$0xff]  }
 0x22d   : > { %6277 = vmatprep.subr.bf16.mxu0 %v9046_v4  ;;  %6320 = vmatprep.subr.bf16.mxu1 %v9049_v5  ;;  %v9110_v4 = vld [vmem:[%s9722_s6 + $0x110] ss:$400 sps:$4 sm:$0xff]   ;;  %v9113_v5 = vld [vmem:[%s9722_s6 + $0x118] ss:$400 sps:$4 sm:$0xff]  }
 0x22e   : > { %v5699_v10 = vpop.f32.mrb[32].mxu0  ;;  %v5742_v11 = vpop.f32.mrb[32].mxu1 }
 0x22f   : > { %7159 = vst [vmem:[%s10019_s7 + $0x100] sm:$0xff] %v5699_v10  ;;  %7161 = vst [vmem:[%s10019_s7 + $0x110] sm:$0xff] %v5742_v11  ;;  %v5701_v14 = vpop.f32.mrb[33].mxu0  ;;  %v5744_v15 = vpop.f32.mrb[33].mxu1  ;;  %v9124_v10 = vld [vmem:[%s9722_s6 + $0x754] ss:$400 sps:$4 sm:$0xff]  }
 0x230   : > { %7160 = vst [vmem:[%s10019_s7 + $0x108] sm:$0xff] %v5701_v14  ;;  %7162 = vst [vmem:[%s10019_s7 + $0x118] sm:$0xff] %v5744_v15  ;;  %v5703_v16 = vpop.f32.mrb[34].mxu0  ;;  %v5746_v17 = vpop.f32.mrb[34].mxu1  ;;  %6278 = vmatpush1.bf16.msra.mxu0 %v9044_v6  ;;  %6321 = vmatpush1.bf16.msra.mxu1 %v9047_v7  ;;  %v9118_v6 = vld [vmem:[%s9722_s6 + $0x434] ss:$400 sps:$4 sm:$0xff]  }
 0x231   : > { %7259 = vst [vmem:[%s10019_s7 + $0x420] sm:$0xff] %v5703_v16  ;;  %7261 = vst [vmem:[%s10019_s7 + $0x430] sm:$0xff] %v5746_v17  ;;  %v5705_v20 = vpop.f32.mrb[35].mxu0  ;;  %v5748_v21 = vpop.f32.mrb[35].mxu1  ;;  %6279 = vmatprep.subr.bf16.mxu0 %v9052_v8  ;;  %6322 = vmatprep.subr.bf16.mxu1 %v9055_v9  ;;  %v9121_v7 = vld [vmem:[%s9722_s6 + $0x43c] ss:$400 sps:$4 sm:$0xff]  }
 0x232   : > { %7260 = vst [vmem:[%s10019_s7 + $0x428] sm:$0xff] %v5705_v20  ;;  %7262 = vst [vmem:[%s10019_s7 + $0x438] sm:$0xff] %v5748_v21  ;;  %v9116_v8 = vld [vmem:[%s9722_s6 + $0x430] ss:$400 sps:$4 sm:$0xff]   ;;  %v9119_v9 = vld [vmem:[%s9722_s6 + $0x438] ss:$400 sps:$4 sm:$0xff]  }
 0x233   : > { %v9127_v11 = vld [vmem:[%s9722_s6 + $0x75c] ss:$400 sps:$4 sm:$0xff]   ;;  %v9122_v14 = vld [vmem:[%s9722_s6 + $0x750] ss:$400 sps:$4 sm:$0xff]   ;;  %v9125_v15 = vld [vmem:[%s9722_s6 + $0x758] ss:$400 sps:$4 sm:$0xff]  }
 0x234   : > { %6280 = vmatpush1.bf16.msra.mxu0 %v9050_v18  ;;  %6323 = vmatpush1.bf16.msra.mxu1 %v9053_v19  ;;  %v9130_v16 = vld [vmem:[%s9722_s6 + $0xa74] ss:$400 sps:$4 sm:$0xff]   ;;  %v9133_v17 = vld [vmem:[%s9722_s6 + $0xa7c] ss:$400 sps:$4 sm:$0xff]   ;;  %v9128_v18 = vld [vmem:[%s9722_s6 + $0xa70] ss:$400 sps:$4 sm:$0xff]  }
 0x235   : > { %6281 = vmatprep.subr.bf16.mxu0 %v9058_v22  ;;  %6324 = vmatprep.subr.bf16.mxu1 %v9061_v23  ;;  %v9131_v19 = vld [vmem:[%s9722_s6 + $0xa78] ss:$400 sps:$4 sm:$0xff]   ;;  %v9136_v20 = vld [vmem:[%s9722_s6 + $0xd94] ss:$400 sps:$4 sm:$0xff]   ;;  %v9139_v21 = vld [vmem:[%s9722_s6 + $0xd9c] ss:$400 sps:$4 sm:$0xff]  }
 0x236   : > { %v9134_v22 = vld [vmem:[%s9722_s6 + $0xd90] ss:$400 sps:$4 sm:$0xff]   ;;  %v9137_v23 = vld [vmem:[%s9722_s6 + $0xd98] ss:$400 sps:$4 sm:$0xff]  }
 0x238   : > { %6282 = vmatpush1.bf16.msra.mxu0 %v9056_v24  ;;  %6325 = vmatpush1.bf16.msra.mxu1 %v9059_v25  ;;  %v9142_v24 = vld [vmem:[%s9722_s6 + $0x10b4] ss:$400 sps:$4 sm:$0xff]   ;;  %v9145_v25 = vld [vmem:[%s9722_s6 + $0x10bc] ss:$400 sps:$4 sm:$0xff]  }
 0x239   : > { %6353 = vmatprep.subr.bf16.mxu0 %v9064_v26  ;;  %6396 = vmatprep.subr.bf16.mxu1 %v9067_v27  ;;  %v9140_v26 = vld [vmem:[%s9722_s6 + $0x10b0] ss:$400 sps:$4 sm:$0xff]   ;;  %v9143_v27 = vld [vmem:[%s9722_s6 + $0x10b8] ss:$400 sps:$4 sm:$0xff]  }
 0x23b   : > { %6300 = vmatmul.mubr.bf16.vlgmr.msra.gmra.mrb[60].mxu0 %v10313_v13  ;;  %6343 = vmatmul.mubr.bf16.vlgmr.msra.gmra.mrb[60].mxu1 %v10313_v13 }
 0x23c   : > { %6354 = vmatpush1.bf16.msra.mxu0 %v9062_v28  ;;  %6397 = vmatpush1.bf16.msra.mxu1 %v9065_v29  ;;  %v9148_v28 = vld [vmem:[%s9722_s6 + $0x13d4] ss:$400 sps:$4 sm:$0xff]   ;;  %v9151_v29 = vld [vmem:[%s9722_s6 + $0x13dc] ss:$400 sps:$4 sm:$0xff]  }
 0x23d   : > { %6355 = vmatprep.subr.bf16.mxu0 %v9070_v30  ;;  %6398 = vmatprep.subr.bf16.mxu1 %v9073_v31 }
 0x23e   : > { %6385 = vmatprep.mubr.bf16.mxu0 %v9600_v0  ;;  %6428 = vmatprep.mubr.bf16.mxu1 %v9600_v0 }
 0x240   : > { %6356 = vmatpush1.bf16.msra.mxu0 %v9068_v32  ;;  %6399 = vmatpush1.bf16.msra.mxu1 %v9071_v33 }
 0x241   : > { %6357 = vmatprep.subr.bf16.mxu0 %v9076_v34  ;;  %6400 = vmatprep.subr.bf16.mxu1 %v9079_v36 }
 0x244   : > { %6358 = vmatpush1.bf16.msra.mxu0 %v9074_v37  ;;  %6401 = vmatpush1.bf16.msra.mxu1 %v9077_v38  ;;  %v9146_v37 = vld [vmem:[%s9722_s6 + $0x13d0] ss:$400 sps:$4 sm:$0xff]   ;;  %v9149_v38 = vld [vmem:[%s9722_s6 + $0x13d8] ss:$400 sps:$4 sm:$0xff]  }
 0x245   : > { %6359 = vmatprep.subr.bf16.mxu0 %v9082_v39  ;;  %6402 = vmatprep.subr.bf16.mxu1 %v9085_v40 }
 0x248   : > { %6360 = vmatpush1.bf16.msra.mxu0 %v9080_v41  ;;  %6403 = vmatpush1.bf16.msra.mxu1 %v9083_v42  ;;  %v9154_v41 = vld [vmem:[%s9722_s6 + $0x16f4] ss:$400 sps:$4 sm:$0xff]   ;;  %v9157_v42 = vld [vmem:[%s9722_s6 + $0x16fc] ss:$400 sps:$4 sm:$0xff]  }
 0x249   : > { %6361 = vmatprep.subr.bf16.mxu0 %v9088_v43  ;;  %6404 = vmatprep.subr.bf16.mxu1 %v9091_v44  ;;  %v9152_v43 = vld [vmem:[%s9722_s6 + $0x16f0] ss:$400 sps:$4 sm:$0xff]   ;;  %v9155_v44 = vld [vmem:[%s9722_s6 + $0x16f8] ss:$400 sps:$4 sm:$0xff]  }
 0x24c   : > { %6362 = vmatpush1.bf16.msra.mxu0 %v9086_v45  ;;  %6405 = vmatpush1.bf16.msra.mxu1 %v9089_v46  ;;  %v9160_v45 = vld [vmem:[%s9722_s6 + $0x124] ss:$400 sps:$4 sm:$0xff]   ;;  %v9163_v46 = vld [vmem:[%s9722_s6 + $0x12c] ss:$400 sps:$4 sm:$0xff]  }
 0x24d   : > { %6363 = vmatprep.subr.bf16.mxu0 %v9094_v47  ;;  %6406 = vmatprep.subr.bf16.mxu1 %v9097_v48  ;;  %v9158_v47 = vld [vmem:[%s9722_s6 + $0x120] ss:$400 sps:$4 sm:$0xff]   ;;  %v9161_v48 = vld [vmem:[%s9722_s6 + $0x128] ss:$400 sps:$4 sm:$0xff]  }
 0x24e   : > { %v5785_v52 = vpop.f32.mrb[36].mxu0  ;;  %v5828_v53 = vpop.f32.mrb[36].mxu1 }
 0x24f   : > { %7163 = vst [vmem:[%s10019_s7 + $0x120] sm:$0xff] %v5785_v52  ;;  %7165 = vst [vmem:[%s10019_s7 + $0x130] sm:$0xff] %v5828_v53  ;;  %v5787_v54 = vpop.f32.mrb[37].mxu0  ;;  %v5830_v55 = vpop.f32.mrb[37].mxu1  ;;  %v9172_v52 = vld [vmem:[%s9722_s6 + $0x764] ss:$400 sps:$4 sm:$0xff]  }
 0x250   : > { %7164 = vst [vmem:[%s10019_s7 + $0x128] sm:$0xff] %v5787_v54  ;;  %7166 = vst [vmem:[%s10019_s7 + $0x138] sm:$0xff] %v5830_v55  ;;  %v5789_v56 = vpop.f32.mrb[38].mxu0  ;;  %v5832_v57 = vpop.f32.mrb[38].mxu1  ;;  %6364 = vmatpush1.bf16.msra.mxu0 %v9092_v35  ;;  %6407 = vmatpush1.bf16.msra.mxu1 %v9095_v49  ;;  %v9166_v35 = vld [vmem:[%s9722_s6 + $0x444] ss:$400 sps:$4 sm:$0xff]  }
 0x251   : > { %7263 = vst [vmem:[%s10019_s7 + $0x440] sm:$0xff] %v5789_v56  ;;  %7265 = vst [vmem:[%s10019_s7 + $0x450] sm:$0xff] %v5832_v57  ;;  %v5791_v60 = vpop.f32.mrb[39].mxu0  ;;  %v5834_v61 = vpop.f32.mrb[39].mxu1  ;;  %6365 = vmatprep.subr.bf16.mxu0 %v9100_v50  ;;  %6408 = vmatprep.subr.bf16.mxu1 %v9103_v51  ;;  %v9169_v49 = vld [vmem:[%s9722_s6 + $0x44c] ss:$400 sps:$4 sm:$0xff]  }
 0x252   : > { %7264 = vst [vmem:[%s10019_s7 + $0x448] sm:$0xff] %v5791_v60  ;;  %7266 = vst [vmem:[%s10019_s7 + $0x458] sm:$0xff] %v5834_v61  ;;  %v9164_v50 = vld [vmem:[%s9722_s6 + $0x440] ss:$400 sps:$4 sm:$0xff]   ;;  %v9167_v51 = vld [vmem:[%s9722_s6 + $0x448] ss:$400 sps:$4 sm:$0xff]  }
 0x253   : > { %v9175_v53 = vld [vmem:[%s9722_s6 + $0x76c] ss:$400 sps:$4 sm:$0xff]   ;;  %v9170_v54 = vld [vmem:[%s9722_s6 + $0x760] ss:$400 sps:$4 sm:$0xff]   ;;  %v9173_v55 = vld [vmem:[%s9722_s6 + $0x768] ss:$400 sps:$4 sm:$0xff]  }
 0x254   : > { %6366 = vmatpush1.bf16.msra.mxu0 %v9098_v58  ;;  %6409 = vmatpush1.bf16.msra.mxu1 %v9101_v59  ;;  %v9178_v56 = vld [vmem:[%s9722_s6 + $0xa84] ss:$400 sps:$4 sm:$0xff]   ;;  %v9181_v57 = vld [vmem:[%s9722_s6 + $0xa8c] ss:$400 sps:$4 sm:$0xff]   ;;  %v9176_v58 = vld [vmem:[%s9722_s6 + $0xa80] ss:$400 sps:$4 sm:$0xff]  }
 0x255   : > { %6367 = vmatprep.subr.bf16.mxu0 %v9106_v62  ;;  %6410 = vmatprep.subr.bf16.mxu1 %v9109_v63  ;;  %v9179_v59 = vld [vmem:[%s9722_s6 + $0xa88] ss:$400 sps:$4 sm:$0xff]   ;;  %v9184_v60 = vld [vmem:[%s9722_s6 + $0xda4] ss:$400 sps:$4 sm:$0xff]   ;;  %v9187_v61 = vld [vmem:[%s9722_s6 + $0xdac] ss:$400 sps:$4 sm:$0xff]  }
 0x256   : > { %v9182_v62 = vld [vmem:[%s9722_s6 + $0xda0] ss:$400 sps:$4 sm:$0xff]   ;;  %v9185_v63 = vld [vmem:[%s9722_s6 + $0xda8] ss:$400 sps:$4 sm:$0xff]  }
 0x258   : > { %6368 = vmatpush1.bf16.msra.mxu0 %v9104_v1  ;;  %6411 = vmatpush1.bf16.msra.mxu1 %v9107_v2  ;;  %v9190_v1 = vld [vmem:[%s9722_s6 + $0x10c4] ss:$400 sps:$4 sm:$0xff]   ;;  %v9193_v2 = vld [vmem:[%s9722_s6 + $0x10cc] ss:$400 sps:$4 sm:$0xff]  }
 0x259   : > { %6439 = vmatprep.subr.bf16.mxu0 %v9112_v3  ;;  %6482 = vmatprep.subr.bf16.mxu1 %v9115_v12  ;;  %v9188_v3 = vld [vmem:[%s9722_s6 + $0x10c0] ss:$400 sps:$4 sm:$0xff]   ;;  %v9191_v12 = vld [vmem:[%s9722_s6 + $0x10c8] ss:$400 sps:$4 sm:$0xff]  }
 0x25b   : > { %6386 = vmatmul.mubr.bf16.vlgmr.msra.gmra.mrb[64].mxu0 %v10313_v13  ;;  %6429 = vmatmul.mubr.bf16.vlgmr.msra.gmra.mrb[64].mxu1 %v10313_v13 }
 0x25c   : > { %6440 = vmatpush1.bf16.msra.mxu0 %v9110_v4  ;;  %6483 = vmatpush1.bf16.msra.mxu1 %v9113_v5  ;;  %v9196_v4 = vld [vmem:[%s9722_s6 + $0x13e4] ss:$400 sps:$4 sm:$0xff]   ;;  %v9199_v5 = vld [vmem:[%s9722_s6 + $0x13ec] ss:$400 sps:$4 sm:$0xff]  }
 0x25d   : > { %6441 = vmatprep.subr.bf16.mxu0 %v9118_v6  ;;  %6484 = vmatprep.subr.bf16.mxu1 %v9121_v7 }
 0x25e   : > { %6471 = vmatprep.mubr.bf16.mxu0 %v9600_v0  ;;  %6514 = vmatprep.mubr.bf16.mxu1 %v9600_v0 }
 0x260   : > { %6442 = vmatpush1.bf16.msra.mxu0 %v9116_v8  ;;  %6485 = vmatpush1.bf16.msra.mxu1 %v9119_v9 }
 0x261   : > { %6443 = vmatprep.subr.bf16.mxu0 %v9124_v10  ;;  %6486 = vmatprep.subr.bf16.mxu1 %v9127_v11 }
 0x264   : > { %6444 = vmatpush1.bf16.msra.mxu0 %v9122_v14  ;;  %6487 = vmatpush1.bf16.msra.mxu1 %v9125_v15  ;;  %v9194_v14 = vld [vmem:[%s9722_s6 + $0x13e0] ss:$400 sps:$4 sm:$0xff]   ;;  %v9197_v15 = vld [vmem:[%s9722_s6 + $0x13e8] ss:$400 sps:$4 sm:$0xff]  }
 0x265   : > { %6445 = vmatprep.subr.bf16.mxu0 %v9130_v16  ;;  %6488 = vmatprep.subr.bf16.mxu1 %v9133_v17 }
 0x268   : > { %6446 = vmatpush1.bf16.msra.mxu0 %v9128_v18  ;;  %6489 = vmatpush1.bf16.msra.mxu1 %v9131_v19  ;;  %v9202_v18 = vld [vmem:[%s9722_s6 + $0x1704] ss:$400 sps:$4 sm:$0xff]   ;;  %v9205_v19 = vld [vmem:[%s9722_s6 + $0x170c] ss:$400 sps:$4 sm:$0xff]  }
 0x269   : > { %6447 = vmatprep.subr.bf16.mxu0 %v9136_v20  ;;  %6490 = vmatprep.subr.bf16.mxu1 %v9139_v21  ;;  %v9200_v20 = vld [vmem:[%s9722_s6 + $0x1700] ss:$400 sps:$4 sm:$0xff]   ;;  %v9203_v21 = vld [vmem:[%s9722_s6 + $0x1708] ss:$400 sps:$4 sm:$0xff]  }
 0x26c   : > { %6448 = vmatpush1.bf16.msra.mxu0 %v9134_v22  ;;  %6491 = vmatpush1.bf16.msra.mxu1 %v9137_v23  ;;  %v9208_v22 = vld [vmem:[%s9722_s6 + $0x134] ss:$400 sps:$4 sm:$0xff]   ;;  %v9211_v23 = vld [vmem:[%s9722_s6 + $0x13c] ss:$400 sps:$4 sm:$0xff]  }
 0x26d   : > { %6449 = vmatprep.subr.bf16.mxu0 %v9142_v24  ;;  %6492 = vmatprep.subr.bf16.mxu1 %v9145_v25  ;;  %v9206_v24 = vld [vmem:[%s9722_s6 + $0x130] ss:$400 sps:$4 sm:$0xff]   ;;  %v9209_v25 = vld [vmem:[%s9722_s6 + $0x138] ss:$400 sps:$4 sm:$0xff]  }
 0x26e   : > { %v5871_v30 = vpop.f32.mrb[40].mxu0  ;;  %v5914_v31 = vpop.f32.mrb[40].mxu1 }
 0x26f   : > { %7167 = vst [vmem:[%s10019_s7 + $0x140] sm:$0xff] %v5871_v30  ;;  %7169 = vst [vmem:[%s10019_s7 + $0x150] sm:$0xff] %v5914_v31  ;;  %v5873_v32 = vpop.f32.mrb[41].mxu0  ;;  %v5916_v33 = vpop.f32.mrb[41].mxu1  ;;  %v9220_v30 = vld [vmem:[%s9722_s6 + $0x774] ss:$400 sps:$4 sm:$0xff]  }
 0x270   : > { %7168 = vst [vmem:[%s10019_s7 + $0x148] sm:$0xff] %v5873_v32  ;;  %7170 = vst [vmem:[%s10019_s7 + $0x158] sm:$0xff] %v5916_v33  ;;  %v5875_v34 = vpop.f32.mrb[42].mxu0  ;;  %v5918_v36 = vpop.f32.mrb[42].mxu1  ;;  %6450 = vmatpush1.bf16.msra.mxu0 %v9140_v26  ;;  %6493 = vmatpush1.bf16.msra.mxu1 %v9143_v27  ;;  %v9214_v26 = vld [vmem:[%s9722_s6 + $0x454] ss:$400 sps:$4 sm:$0xff]  }
 0x271   : > { %7267 = vst [vmem:[%s10019_s7 + $0x460] sm:$0xff] %v5875_v34  ;;  %7269 = vst [vmem:[%s10019_s7 + $0x470] sm:$0xff] %v5918_v36  ;;  %v5877_v39 = vpop.f32.mrb[43].mxu0  ;;  %v5920_v40 = vpop.f32.mrb[43].mxu1  ;;  %6451 = vmatprep.subr.bf16.mxu0 %v9148_v28  ;;  %6494 = vmatprep.subr.bf16.mxu1 %v9151_v29  ;;  %v9217_v27 = vld [vmem:[%s9722_s6 + $0x45c] ss:$400 sps:$4 sm:$0xff]  }
 0x272   : > { %7268 = vst [vmem:[%s10019_s7 + $0x468] sm:$0xff] %v5877_v39  ;;  %7270 = vst [vmem:[%s10019_s7 + $0x478] sm:$0xff] %v5920_v40  ;;  %v9212_v28 = vld [vmem:[%s9722_s6 + $0x450] ss:$400 sps:$4 sm:$0xff]   ;;  %v9215_v29 = vld [vmem:[%s9722_s6 + $0x458] ss:$400 sps:$4 sm:$0xff]  }
 0x273   : > { %v9223_v31 = vld [vmem:[%s9722_s6 + $0x77c] ss:$400 sps:$4 sm:$0xff]   ;;  %v9221_v32 = vld [vmem:[%s9722_s6 + $0x778] ss:$400 sps:$4 sm:$0xff]   ;;  %v9226_v33 = vld [vmem:[%s9722_s6 + $0xa94] ss:$400 sps:$4 sm:$0xff]  }
 0x274   : > { %6452 = vmatpush1.bf16.msra.mxu0 %v9146_v37  ;;  %6495 = vmatpush1.bf16.msra.mxu1 %v9149_v38  ;;  %v9229_v34 = vld [vmem:[%s9722_s6 + $0xa9c] ss:$400 sps:$4 sm:$0xff]   ;;  %v9224_v36 = vld [vmem:[%s9722_s6 + $0xa90] ss:$400 sps:$4 sm:$0xff]   ;;  %v9227_v37 = vld [vmem:[%s9722_s6 + $0xa98] ss:$400 sps:$4 sm:$0xff]  }
 0x275   : > { %6453 = vmatprep.subr.bf16.mxu0 %v9154_v41  ;;  %6496 = vmatprep.subr.bf16.mxu1 %v9157_v42  ;;  %v9232_v38 = vld [vmem:[%s9722_s6 + $0xdb4] ss:$400 sps:$4 sm:$0xff]   ;;  %v9235_v39 = vld [vmem:[%s9722_s6 + $0xdbc] ss:$400 sps:$4 sm:$0xff]   ;;  %v9230_v40 = vld [vmem:[%s9722_s6 + $0xdb0] ss:$400 sps:$4 sm:$0xff]  }
 0x276   : > { %v9233_v41 = vld [vmem:[%s9722_s6 + $0xdb8] ss:$400 sps:$4 sm:$0xff]   ;;  %v9238_v42 = vld [vmem:[%s9722_s6 + $0x10d4] ss:$400 sps:$4 sm:$0xff]  }
 0x278   : > { %6454 = vmatpush1.bf16.msra.mxu0 %v9152_v43  ;;  %6497 = vmatpush1.bf16.msra.mxu1 %v9155_v44  ;;  %v9241_v43 = vld [vmem:[%s9722_s6 + $0x10dc] ss:$400 sps:$4 sm:$0xff]   ;;  %v9236_v44 = vld [vmem:[%s9722_s6 + $0x10d0] ss:$400 sps:$4 sm:$0xff]  }
 0x279   : > { %6525 = vmatprep.subr.bf16.mxu0 %v9160_v45  ;;  %6568 = vmatprep.subr.bf16.mxu1 %v9163_v46  ;;  %v9239_v45 = vld [vmem:[%s9722_s6 + $0x10d8] ss:$400 sps:$4 sm:$0xff]   ;;  %v9244_v46 = vld [vmem:[%s9722_s6 + $0x13f4] ss:$400 sps:$4 sm:$0xff]  }
 0x27b   : > { %6472 = vmatmul.mubr.bf16.vlgmr.msra.gmra.mrb[68].mxu0 %v10313_v13  ;;  %6515 = vmatmul.mubr.bf16.vlgmr.msra.gmra.mrb[68].mxu1 %v10313_v13 }
 0x27c   : > { %6526 = vmatpush1.bf16.msra.mxu0 %v9158_v47  ;;  %6569 = vmatpush1.bf16.msra.mxu1 %v9161_v48  ;;  %v9247_v47 = vld [vmem:[%s9722_s6 + $0x13fc] ss:$400 sps:$4 sm:$0xff]  }
 0x27d   : > { %6527 = vmatprep.subr.bf16.mxu0 %v9166_v35  ;;  %6570 = vmatprep.subr.bf16.mxu1 %v9169_v49 }
 0x27e   : > { %6557 = vmatprep.mubr.bf16.mxu0 %v9600_v0  ;;  %6600 = vmatprep.mubr.bf16.mxu1 %v9600_v0 }
 0x280   : > { %6528 = vmatpush1.bf16.msra.mxu0 %v9164_v50  ;;  %6571 = vmatpush1.bf16.msra.mxu1 %v9167_v51 }
 0x281   : > { %6529 = vmatprep.subr.bf16.mxu0 %v9172_v52  ;;  %6572 = vmatprep.subr.bf16.mxu1 %v9175_v53  ;;  %v9242_v53 = vld [vmem:[%s9722_s6 + $0x13f0] ss:$400 sps:$4 sm:$0xff]  }
 0x284   : > { %6530 = vmatpush1.bf16.msra.mxu0 %v9170_v54  ;;  %6573 = vmatpush1.bf16.msra.mxu1 %v9173_v55  ;;  %v9245_v54 = vld [vmem:[%s9722_s6 + $0x13f8] ss:$400 sps:$4 sm:$0xff]  }
 0x285   : > { %6531 = vmatprep.subr.bf16.mxu0 %v9178_v56  ;;  %6574 = vmatprep.subr.bf16.mxu1 %v9181_v57  ;;  %v9250_v57 = vld [vmem:[%s9722_s6 + $0x1714] ss:$400 sps:$4 sm:$0xff]  }
 0x288   : > { %6532 = vmatpush1.bf16.msra.mxu0 %v9176_v58  ;;  %6575 = vmatpush1.bf16.msra.mxu1 %v9179_v59  ;;  %v9253_v58 = vld [vmem:[%s9722_s6 + $0x171c] ss:$400 sps:$4 sm:$0xff]   ;;  %v9248_v59 = vld [vmem:[%s9722_s6 + $0x1710] ss:$400 sps:$4 sm:$0xff]  }
 0x289   : > { %6533 = vmatprep.subr.bf16.mxu0 %v9184_v60  ;;  %6576 = vmatprep.subr.bf16.mxu1 %v9187_v61  ;;  %v9251_v60 = vld [vmem:[%s9722_s6 + $0x1718] ss:$400 sps:$4 sm:$0xff]   ;;  %v9256_v61 = vld [vmem:[%s9722_s6 + $0x144] ss:$400 sps:$4 sm:$0xff]  }
 0x28c   : > { %6534 = vmatpush1.bf16.msra.mxu0 %v9182_v62  ;;  %6577 = vmatpush1.bf16.msra.mxu1 %v9185_v63  ;;  %v9259_v62 = vld [vmem:[%s9722_s6 + $0x14c] ss:$400 sps:$4 sm:$0xff]   ;;  %v9254_v63 = vld [vmem:[%s9722_s6 + $0x140] ss:$400 sps:$4 sm:$0xff]  }
 0x28d   : > { %6535 = vmatprep.subr.bf16.mxu0 %v9190_v1  ;;  %6578 = vmatprep.subr.bf16.mxu1 %v9193_v2  ;;  %v9257_v1 = vld [vmem:[%s9722_s6 + $0x148] ss:$400 sps:$4 sm:$0xff]   ;;  %v9262_v2 = vld [vmem:[%s9722_s6 + $0x464] ss:$400 sps:$4 sm:$0xff]  }
 0x28e   : > { %v5957_v6 = vpop.f32.mrb[44].mxu0  ;;  %v6000_v7 = vpop.f32.mrb[44].mxu1 }
 0x28f   : > { %7171 = vst [vmem:[%s10019_s7 + $0x160] sm:$0xff] %v5957_v6  ;;  %7173 = vst [vmem:[%s10019_s7 + $0x170] sm:$0xff] %v6000_v7  ;;  %v5959_v8 = vpop.f32.mrb[45].mxu0  ;;  %v6002_v9 = vpop.f32.mrb[45].mxu1  ;;  %v9268_v6 = vld [vmem:[%s9722_s6 + $0x784] ss:$400 sps:$4 sm:$0xff]  }
 0x290   : > { %7172 = vst [vmem:[%s10019_s7 + $0x168] sm:$0xff] %v5959_v8  ;;  %7174 = vst [vmem:[%s10019_s7 + $0x178] sm:$0xff] %v6002_v9  ;;  %v5961_v10 = vpop.f32.mrb[46].mxu0  ;;  %v6004_v11 = vpop.f32.mrb[46].mxu1  ;;  %6536 = vmatpush1.bf16.msra.mxu0 %v9188_v3  ;;  %6579 = vmatpush1.bf16.msra.mxu1 %v9191_v12  ;;  %v9265_v3 = vld [vmem:[%s9722_s6 + $0x46c] ss:$400 sps:$4 sm:$0xff]  }
 0x291   : > { %7271 = vst [vmem:[%s10019_s7 + $0x480] sm:$0xff] %v5961_v10  ;;  %7273 = vst [vmem:[%s10019_s7 + $0x490] sm:$0xff] %v6004_v11  ;;  %v5963_v16 = vpop.f32.mrb[47].mxu0  ;;  %v6006_v17 = vpop.f32.mrb[47].mxu1  ;;  %6537 = vmatprep.subr.bf16.mxu0 %v9196_v4  ;;  %6580 = vmatprep.subr.bf16.mxu1 %v9199_v5  ;;  %v10582_v12 = vld [vmem:[%s10924_s0] sm:$0xff]  }
 0x292   : > { %7272 = vst [vmem:[%s10019_s7 + $0x488] sm:$0xff] %v5963_v16  ;;  %7274 = vst [vmem:[%s10019_s7 + $0x498] sm:$0xff] %v6006_v17  ;;  %v9260_v4 = vld [vmem:[%s9722_s6 + $0x460] ss:$400 sps:$4 sm:$0xff]   ;;  %v9263_v5 = vld [vmem:[%s9722_s6 + $0x468] ss:$400 sps:$4 sm:$0xff]  }
 0x293   : > { %v9271_v7 = vld [vmem:[%s9722_s6 + $0x78c] ss:$400 sps:$4 sm:$0xff]   ;;  %v9266_v8 = vld [vmem:[%s9722_s6 + $0x780] ss:$400 sps:$4 sm:$0xff]   ;;  %v9269_v9 = vld [vmem:[%s9722_s6 + $0x788] ss:$400 sps:$4 sm:$0xff]  }
 0x294   : > { %6538 = vmatpush1.bf16.msra.mxu0 %v9194_v14  ;;  %6581 = vmatpush1.bf16.msra.mxu1 %v9197_v15  ;;  %v9274_v10 = vld [vmem:[%s9722_s6 + $0xaa4] ss:$400 sps:$4 sm:$0xff]   ;;  %v9277_v11 = vld [vmem:[%s9722_s6 + $0xaac] ss:$400 sps:$4 sm:$0xff]   ;;  %v9272_v14 = vld [vmem:[%s9722_s6 + $0xaa0] ss:$400 sps:$4 sm:$0xff]  }
 0x295   : > { %6539 = vmatprep.subr.bf16.mxu0 %v9202_v18  ;;  %6582 = vmatprep.subr.bf16.mxu1 %v9205_v19  ;;  %v9275_v15 = vld [vmem:[%s9722_s6 + $0xaa8] ss:$400 sps:$4 sm:$0xff]   ;;  %v9280_v16 = vld [vmem:[%s9722_s6 + $0xdc4] ss:$400 sps:$4 sm:$0xff]   ;;  %v9283_v17 = vld [vmem:[%s9722_s6 + $0xdcc] ss:$400 sps:$4 sm:$0xff]  }
 0x296   : > { %v9278_v18 = vld [vmem:[%s9722_s6 + $0xdc0] ss:$400 sps:$4 sm:$0xff]   ;;  %v9281_v19 = vld [vmem:[%s9722_s6 + $0xdc8] ss:$400 sps:$4 sm:$0xff]  }
 0x298   : > { %6540 = vmatpush1.bf16.msra.mxu0 %v9200_v20  ;;  %6583 = vmatpush1.bf16.msra.mxu1 %v9203_v21  ;;  %v9286_v20 = vld [vmem:[%s9722_s6 + $0x10e4] ss:$400 sps:$4 sm:$0xff]   ;;  %v9289_v21 = vld [vmem:[%s9722_s6 + $0x10ec] ss:$400 sps:$4 sm:$0xff]  }
 0x299   : > { %6611 = vmatprep.subr.bf16.mxu0 %v9208_v22  ;;  %6654 = vmatprep.subr.bf16.mxu1 %v9211_v23  ;;  %v9284_v22 = vld [vmem:[%s9722_s6 + $0x10e0] ss:$400 sps:$4 sm:$0xff]   ;;  %v9287_v23 = vld [vmem:[%s9722_s6 + $0x10e8] ss:$400 sps:$4 sm:$0xff]  }
 0x29b   : > { %6558 = vmatmul.mubr.bf16.vlgmr.msra.gmra.mrb[72].mxu0 %v10313_v13  ;;  %6601 = vmatmul.mubr.bf16.vlgmr.msra.gmra.mrb[72].mxu1 %v10313_v13  ;;  %v9218_v13 = vld [vmem:[%s9722_s6 + $0x770] ss:$400 sps:$4 sm:$0xff]  }
 0x29c   : > { %6612 = vmatpush1.bf16.msra.mxu0 %v9206_v24  ;;  %6655 = vmatpush1.bf16.msra.mxu1 %v9209_v25  ;;  %v9292_v24 = vld [vmem:[%s9722_s6 + $0x1404] ss:$400 sps:$4 sm:$0xff]   ;;  %v9295_v25 = vld [vmem:[%s9722_s6 + $0x140c] ss:$400 sps:$4 sm:$0xff]  }
 0x29d   : > { %6613 = vmatprep.subr.bf16.mxu0 %v9214_v26  ;;  %6656 = vmatprep.subr.bf16.mxu1 %v9217_v27 }
 0x29e   : > { %6643 = vmatprep.mubr.bf16.mxu0 %v9600_v0  ;;  %6686 = vmatprep.mubr.bf16.mxu1 %v9600_v0 }
 0x2a0   : > { %6614 = vmatpush1.bf16.msra.mxu0 %v9212_v28  ;;  %6657 = vmatpush1.bf16.msra.mxu1 %v9215_v29 }
 0x2a1   : > { %6615 = vmatprep.subr.bf16.mxu0 %v9220_v30  ;;  %6658 = vmatprep.subr.bf16.mxu1 %v9223_v31 }
 0x2a4   : > { %6616 = vmatpush1.bf16.msra.mxu0 %v9218_v13  ;;  %6659 = vmatpush1.bf16.msra.mxu1 %v9221_v32  ;;  %v9290_v13 = vld [vmem:[%s9722_s6 + $0x1400] ss:$400 sps:$4 sm:$0xff]   ;;  %v9293_v32 = vld [vmem:[%s9722_s6 + $0x1408] ss:$400 sps:$4 sm:$0xff]  }
 0x2a5   : > { %6617 = vmatprep.subr.bf16.mxu0 %v9226_v33  ;;  %6660 = vmatprep.subr.bf16.mxu1 %v9229_v34 }
 0x2a8   : > { %6618 = vmatpush1.bf16.msra.mxu0 %v9224_v36  ;;  %6661 = vmatpush1.bf16.msra.mxu1 %v9227_v37  ;;  %v9298_v36 = vld [vmem:[%s9722_s6 + $0x1724] ss:$400 sps:$4 sm:$0xff]   ;;  %v9301_v37 = vld [vmem:[%s9722_s6 + $0x172c] ss:$400 sps:$4 sm:$0xff]  }
 0x2a9   : > { %6619 = vmatprep.subr.bf16.mxu0 %v9232_v38  ;;  %6662 = vmatprep.subr.bf16.mxu1 %v9235_v39  ;;  %v9296_v38 = vld [vmem:[%s9722_s6 + $0x1720] ss:$400 sps:$4 sm:$0xff]   ;;  %v9299_v39 = vld [vmem:[%s9722_s6 + $0x1728] ss:$400 sps:$4 sm:$0xff]  }
 0x2ac   : > { %6620 = vmatpush1.bf16.msra.mxu0 %v9230_v40  ;;  %6663 = vmatpush1.bf16.msra.mxu1 %v9233_v41  ;;  %v9304_v40 = vld [vmem:[%s9722_s6 + $0x154] ss:$400 sps:$4 sm:$0xff]   ;;  %v9307_v41 = vld [vmem:[%s9722_s6 + $0x15c] ss:$400 sps:$4 sm:$0xff]  }
 0x2ad   : > { %6621 = vmatprep.subr.bf16.mxu0 %v9238_v42  ;;  %6664 = vmatprep.subr.bf16.mxu1 %v9241_v43  ;;  %v9302_v42 = vld [vmem:[%s9722_s6 + $0x150] ss:$400 sps:$4 sm:$0xff]   ;;  %v9305_v43 = vld [vmem:[%s9722_s6 + $0x158] ss:$400 sps:$4 sm:$0xff]  }
 0x2ae   : > { %v6043_v48 = vpop.f32.mrb[48].mxu0  ;;  %v6086_v35 = vpop.f32.mrb[48].mxu1 }
 0x2af   : > { %7175 = vst [vmem:[%s10019_s7 + $0x180] sm:$0xff] %v6043_v48  ;;  %7177 = vst [vmem:[%s10019_s7 + $0x190] sm:$0xff] %v6086_v35  ;;  %v6045_v49 = vpop.f32.mrb[49].mxu0  ;;  %v6088_v50 = vpop.f32.mrb[49].mxu1  ;;  %v9316_v48 = vld [vmem:[%s9722_s6 + $0x794] ss:$400 sps:$4 sm:$0xff]  }
 0x2b0   : > { %7176 = vst [vmem:[%s10019_s7 + $0x188] sm:$0xff] %v6045_v49  ;;  %7178 = vst [vmem:[%s10019_s7 + $0x198] sm:$0xff] %v6088_v50  ;;  %v6047_v51 = vpop.f32.mrb[50].mxu0  ;;  %v6090_v52 = vpop.f32.mrb[50].mxu1  ;;  %6622 = vmatpush1.bf16.msra.mxu0 %v9236_v44  ;;  %6665 = vmatpush1.bf16.msra.mxu1 %v9239_v45  ;;  %v9310_v44 = vld [vmem:[%s9722_s6 + $0x474] ss:$400 sps:$4 sm:$0xff]  }
 0x2b1   : > { %7275 = vst [vmem:[%s10019_s7 + $0x4a0] sm:$0xff] %v6047_v51  ;;  %7277 = vst [vmem:[%s10019_s7 + $0x4b0] sm:$0xff] %v6090_v52  ;;  %v6049_v55 = vpop.f32.mrb[51].mxu0  ;;  %v6092_v56 = vpop.f32.mrb[51].mxu1  ;;  %6623 = vmatprep.subr.bf16.mxu0 %v9244_v46  ;;  %6666 = vmatprep.subr.bf16.mxu1 %v9247_v47  ;;  %v9313_v45 = vld [vmem:[%s9722_s6 + $0x47c] ss:$400 sps:$4 sm:$0xff]  }
 0x2b2   : > { %7276 = vst [vmem:[%s10019_s7 + $0x4a8] sm:$0xff] %v6049_v55  ;;  %7278 = vst [vmem:[%s10019_s7 + $0x4b8] sm:$0xff] %v6092_v56  ;;  %v9308_v46 = vld [vmem:[%s9722_s6 + $0x470] ss:$400 sps:$4 sm:$0xff]   ;;  %v9311_v47 = vld [vmem:[%s9722_s6 + $0x478] ss:$400 sps:$4 sm:$0xff]  }
 0x2b3   : > { %v9319_v35 = vld [vmem:[%s9722_s6 + $0x79c] ss:$400 sps:$4 sm:$0xff]   ;;  %v9314_v49 = vld [vmem:[%s9722_s6 + $0x790] ss:$400 sps:$4 sm:$0xff]   ;;  %v9317_v50 = vld [vmem:[%s9722_s6 + $0x798] ss:$400 sps:$4 sm:$0xff]  }
 0x2b4   : > { %6624 = vmatpush1.bf16.msra.mxu0 %v9242_v53  ;;  %6667 = vmatpush1.bf16.msra.mxu1 %v9245_v54  ;;  %v9322_v51 = vld [vmem:[%s9722_s6 + $0xab4] ss:$400 sps:$4 sm:$0xff]   ;;  %v9325_v52 = vld [vmem:[%s9722_s6 + $0xabc] ss:$400 sps:$4 sm:$0xff]   ;;  %v9320_v53 = vld [vmem:[%s9722_s6 + $0xab0] ss:$400 sps:$4 sm:$0xff]  }
 0x2b5   : > { %6625 = vmatprep.subr.bf16.mxu0 %v9250_v57  ;;  %6668 = vmatprep.subr.bf16.mxu1 %v9253_v58  ;;  %v9323_v54 = vld [vmem:[%s9722_s6 + $0xab8] ss:$400 sps:$4 sm:$0xff]   ;;  %v9328_v55 = vld [vmem:[%s9722_s6 + $0xdd4] ss:$400 sps:$4 sm:$0xff]   ;;  %v9331_v56 = vld [vmem:[%s9722_s6 + $0xddc] ss:$400 sps:$4 sm:$0xff]  }
 0x2b6   : > { %v9326_v57 = vld [vmem:[%s9722_s6 + $0xdd0] ss:$400 sps:$4 sm:$0xff]   ;;  %v9329_v58 = vld [vmem:[%s9722_s6 + $0xdd8] ss:$400 sps:$4 sm:$0xff]  }
 0x2b8   : > { %6626 = vmatpush1.bf16.msra.mxu0 %v9248_v59  ;;  %6669 = vmatpush1.bf16.msra.mxu1 %v9251_v60  ;;  %v9334_v59 = vld [vmem:[%s9722_s6 + $0x10f4] ss:$400 sps:$4 sm:$0xff]   ;;  %v9337_v60 = vld [vmem:[%s9722_s6 + $0x10fc] ss:$400 sps:$4 sm:$0xff]  }
 0x2b9   : > { %6697 = vmatprep.subr.bf16.mxu0 %v9256_v61  ;;  %6740 = vmatprep.subr.bf16.mxu1 %v9259_v62  ;;  %v9332_v61 = vld [vmem:[%s9722_s6 + $0x10f0] ss:$400 sps:$4 sm:$0xff]   ;;  %v9335_v62 = vld [vmem:[%s9722_s6 + $0x10f8] ss:$400 sps:$4 sm:$0xff]  }
 0x2bb   : > { %6644 = vmatmul.mubr.bf16.vlgmr.msra.gmra.mrb[76].mxu0 %v10582_v12  ;;  %6687 = vmatmul.mubr.bf16.vlgmr.msra.gmra.mrb[76].mxu1 %v10582_v12 }
 0x2bc   : > { %6698 = vmatpush1.bf16.msra.mxu0 %v9254_v63  ;;  %6741 = vmatpush1.bf16.msra.mxu1 %v9257_v1  ;;  %v9340_v63 = vld [vmem:[%s9722_s6 + $0x1414] ss:$400 sps:$4 sm:$0xff]   ;;  %v9343_v1 = vld [vmem:[%s9722_s6 + $0x141c] ss:$400 sps:$4 sm:$0xff]  }
 0x2bd   : > { %6699 = vmatprep.subr.bf16.mxu0 %v9262_v2  ;;  %6742 = vmatprep.subr.bf16.mxu1 %v9265_v3 }
 0x2be   : > { %6729 = vmatprep.mubr.bf16.mxu0 %v9600_v0  ;;  %6772 = vmatprep.mubr.bf16.mxu1 %v9600_v0 }
 0x2c0   : > { %6700 = vmatpush1.bf16.msra.mxu0 %v9260_v4  ;;  %6743 = vmatpush1.bf16.msra.mxu1 %v9263_v5 }
 0x2c1   : > { %6701 = vmatprep.subr.bf16.mxu0 %v9268_v6  ;;  %6744 = vmatprep.subr.bf16.mxu1 %v9271_v7 }
 0x2c4   : > { %6702 = vmatpush1.bf16.msra.mxu0 %v9266_v8  ;;  %6745 = vmatpush1.bf16.msra.mxu1 %v9269_v9  ;;  %v9338_v8 = vld [vmem:[%s9722_s6 + $0x1410] ss:$400 sps:$4 sm:$0xff]   ;;  %v9341_v9 = vld [vmem:[%s9722_s6 + $0x1418] ss:$400 sps:$4 sm:$0xff]  }
 0x2c5   : > { %6703 = vmatprep.subr.bf16.mxu0 %v9274_v10  ;;  %6746 = vmatprep.subr.bf16.mxu1 %v9277_v11 }
 0x2c8   : > { %6704 = vmatpush1.bf16.msra.mxu0 %v9272_v14  ;;  %6747 = vmatpush1.bf16.msra.mxu1 %v9275_v15  ;;  %v9346_v14 = vld [vmem:[%s9722_s6 + $0x1734] ss:$400 sps:$4 sm:$0xff]   ;;  %v9349_v15 = vld [vmem:[%s9722_s6 + $0x173c] ss:$400 sps:$4 sm:$0xff]  }
 0x2c9   : > { %6705 = vmatprep.subr.bf16.mxu0 %v9280_v16  ;;  %6748 = vmatprep.subr.bf16.mxu1 %v9283_v17  ;;  %v9344_v16 = vld [vmem:[%s9722_s6 + $0x1730] ss:$400 sps:$4 sm:$0xff]   ;;  %v9347_v17 = vld [vmem:[%s9722_s6 + $0x1738] ss:$400 sps:$4 sm:$0xff]  }
 0x2cc   : > { %6706 = vmatpush1.bf16.msra.mxu0 %v9278_v18  ;;  %6749 = vmatpush1.bf16.msra.mxu1 %v9281_v19  ;;  %v9352_v18 = vld [vmem:[%s9722_s6 + $0x164] ss:$400 sps:$4 sm:$0xff]   ;;  %v9355_v19 = vld [vmem:[%s9722_s6 + $0x16c] ss:$400 sps:$4 sm:$0xff]  }
 0x2cd   : > { %6707 = vmatprep.subr.bf16.mxu0 %v9286_v20  ;;  %6750 = vmatprep.subr.bf16.mxu1 %v9289_v21  ;;  %v9350_v20 = vld [vmem:[%s9722_s6 + $0x160] ss:$400 sps:$4 sm:$0xff]   ;;  %v9353_v21 = vld [vmem:[%s9722_s6 + $0x168] ss:$400 sps:$4 sm:$0xff]  }
 0x2ce   : > { %v6129_v26 = vpop.f32.mrb[52].mxu0  ;;  %v6172_v27 = vpop.f32.mrb[52].mxu1 }
 0x2cf   : > { %7179 = vst [vmem:[%s10019_s7 + $0x1a0] sm:$0xff] %v6129_v26  ;;  %7181 = vst [vmem:[%s10019_s7 + $0x1b0] sm:$0xff] %v6172_v27  ;;  %v6131_v28 = vpop.f32.mrb[53].mxu0  ;;  %v6174_v29 = vpop.f32.mrb[53].mxu1  ;;  %v9364_v26 = vld [vmem:[%s9722_s6 + $0x7a4] ss:$400 sps:$4 sm:$0xff]  }
 0x2d0   : > { %7180 = vst [vmem:[%s10019_s7 + $0x1a8] sm:$0xff] %v6131_v28  ;;  %7182 = vst [vmem:[%s10019_s7 + $0x1b8] sm:$0xff] %v6174_v29  ;;  %v6133_v30 = vpop.f32.mrb[54].mxu0  ;;  %v6176_v31 = vpop.f32.mrb[54].mxu1  ;;  %6708 = vmatpush1.bf16.msra.mxu0 %v9284_v22  ;;  %6751 = vmatpush1.bf16.msra.mxu1 %v9287_v23  ;;  %v9358_v22 = vld [vmem:[%s9722_s6 + $0x484] ss:$400 sps:$4 sm:$0xff]  }
 0x2d1   : > { %7279 = vst [vmem:[%s10019_s7 + $0x4c0] sm:$0xff] %v6133_v30  ;;  %7281 = vst [vmem:[%s10019_s7 + $0x4d0] sm:$0xff] %v6176_v31  ;;  %v6135_v33 = vpop.f32.mrb[55].mxu0  ;;  %v6178_v34 = vpop.f32.mrb[55].mxu1  ;;  %6709 = vmatprep.subr.bf16.mxu0 %v9292_v24  ;;  %6752 = vmatprep.subr.bf16.mxu1 %v9295_v25  ;;  %v9361_v23 = vld [vmem:[%s9722_s6 + $0x48c] ss:$400 sps:$4 sm:$0xff]  }
 0x2d2   : > { %7280 = vst [vmem:[%s10019_s7 + $0x4c8] sm:$0xff] %v6135_v33  ;;  %7282 = vst [vmem:[%s10019_s7 + $0x4d8] sm:$0xff] %v6178_v34  ;;  %v9356_v24 = vld [vmem:[%s9722_s6 + $0x480] ss:$400 sps:$4 sm:$0xff]   ;;  %v9359_v25 = vld [vmem:[%s9722_s6 + $0x488] ss:$400 sps:$4 sm:$0xff]  }
 0x2d3   : > { %v9367_v27 = vld [vmem:[%s9722_s6 + $0x7ac] ss:$400 sps:$4 sm:$0xff]   ;;  %v9362_v28 = vld [vmem:[%s9722_s6 + $0x7a0] ss:$400 sps:$4 sm:$0xff]   ;;  %v9365_v29 = vld [vmem:[%s9722_s6 + $0x7a8] ss:$400 sps:$4 sm:$0xff]  }
 0x2d4   : > { %6710 = vmatpush1.bf16.msra.mxu0 %v9290_v13  ;;  %6753 = vmatpush1.bf16.msra.mxu1 %v9293_v32  ;;  %v9370_v30 = vld [vmem:[%s9722_s6 + $0xac4] ss:$400 sps:$4 sm:$0xff]   ;;  %v9373_v31 = vld [vmem:[%s9722_s6 + $0xacc] ss:$400 sps:$4 sm:$0xff]   ;;  %v9368_v13 = vld [vmem:[%s9722_s6 + $0xac0] ss:$400 sps:$4 sm:$0xff]  }
 0x2d5   : > { %6711 = vmatprep.subr.bf16.mxu0 %v9298_v36  ;;  %6754 = vmatprep.subr.bf16.mxu1 %v9301_v37  ;;  %v9371_v32 = vld [vmem:[%s9722_s6 + $0xac8] ss:$400 sps:$4 sm:$0xff]   ;;  %v9376_v33 = vld [vmem:[%s9722_s6 + $0xde4] ss:$400 sps:$4 sm:$0xff]   ;;  %v9379_v34 = vld [vmem:[%s9722_s6 + $0xdec] ss:$400 sps:$4 sm:$0xff]  }
 0x2d6   : > { %v9374_v36 = vld [vmem:[%s9722_s6 + $0xde0] ss:$400 sps:$4 sm:$0xff]   ;;  %v9377_v37 = vld [vmem:[%s9722_s6 + $0xde8] ss:$400 sps:$4 sm:$0xff]  }
 0x2d8   : > { %6712 = vmatpush1.bf16.msra.mxu0 %v9296_v38  ;;  %6755 = vmatpush1.bf16.msra.mxu1 %v9299_v39  ;;  %v9382_v38 = vld [vmem:[%s9722_s6 + $0x1104] ss:$400 sps:$4 sm:$0xff]   ;;  %v9385_v39 = vld [vmem:[%s9722_s6 + $0x110c] ss:$400 sps:$4 sm:$0xff]  }
 0x2d9   : > { %6783 = vmatprep.subr.bf16.mxu0 %v9304_v40  ;;  %6826 = vmatprep.subr.bf16.mxu1 %v9307_v41  ;;  %v9380_v40 = vld [vmem:[%s9722_s6 + $0x1100] ss:$400 sps:$4 sm:$0xff]   ;;  %v9383_v41 = vld [vmem:[%s9722_s6 + $0x1108] ss:$400 sps:$4 sm:$0xff]  }
 0x2db   : > { %6730 = vmatmul.mubr.bf16.vlgmr.msra.gmra.mrb[80].mxu0 %v10582_v12  ;;  %6773 = vmatmul.mubr.bf16.vlgmr.msra.gmra.mrb[80].mxu1 %v10582_v12 }
 0x2dc   : > { %6784 = vmatpush1.bf16.msra.mxu0 %v9302_v42  ;;  %6827 = vmatpush1.bf16.msra.mxu1 %v9305_v43  ;;  %v9388_v42 = vld [vmem:[%s9722_s6 + $0x1424] ss:$400 sps:$4 sm:$0xff]   ;;  %v9391_v43 = vld [vmem:[%s9722_s6 + $0x142c] ss:$400 sps:$4 sm:$0xff]  }
 0x2dd   : > { %6785 = vmatprep.subr.bf16.mxu0 %v9310_v44  ;;  %6828 = vmatprep.subr.bf16.mxu1 %v9313_v45 }
 0x2de   : > { %6815 = vmatprep.mubr.bf16.mxu0 %v9600_v0  ;;  %6858 = vmatprep.mubr.bf16.mxu1 %v9600_v0 }
 0x2e0   : > { %6786 = vmatpush1.bf16.msra.mxu0 %v9308_v46  ;;  %6829 = vmatpush1.bf16.msra.mxu1 %v9311_v47 }
 0x2e1   : > { %6787 = vmatprep.subr.bf16.mxu0 %v9316_v48  ;;  %6830 = vmatprep.subr.bf16.mxu1 %v9319_v35 }
 0x2e4   : > { %6788 = vmatpush1.bf16.msra.mxu0 %v9314_v49  ;;  %6831 = vmatpush1.bf16.msra.mxu1 %v9317_v50  ;;  %v9386_v49 = vld [vmem:[%s9722_s6 + $0x1420] ss:$400 sps:$4 sm:$0xff]   ;;  %v9389_v50 = vld [vmem:[%s9722_s6 + $0x1428] ss:$400 sps:$4 sm:$0xff]  }
 0x2e5   : > { %6789 = vmatprep.subr.bf16.mxu0 %v9322_v51  ;;  %6832 = vmatprep.subr.bf16.mxu1 %v9325_v52 }
 0x2e8   : > { %6790 = vmatpush1.bf16.msra.mxu0 %v9320_v53  ;;  %6833 = vmatpush1.bf16.msra.mxu1 %v9323_v54  ;;  %v9394_v53 = vld [vmem:[%s9722_s6 + $0x1744] ss:$400 sps:$4 sm:$0xff]   ;;  %v9397_v54 = vld [vmem:[%s9722_s6 + $0x174c] ss:$400 sps:$4 sm:$0xff]  }
 0x2e9   : > { %6791 = vmatprep.subr.bf16.mxu0 %v9328_v55  ;;  %6834 = vmatprep.subr.bf16.mxu1 %v9331_v56  ;;  %v9392_v55 = vld [vmem:[%s9722_s6 + $0x1740] ss:$400 sps:$4 sm:$0xff]   ;;  %v9395_v56 = vld [vmem:[%s9722_s6 + $0x1748] ss:$400 sps:$4 sm:$0xff]  }
 0x2ec   : > { %6792 = vmatpush1.bf16.msra.mxu0 %v9326_v57  ;;  %6835 = vmatpush1.bf16.msra.mxu1 %v9329_v58  ;;  %v9400_v57 = vld [vmem:[%s9722_s6 + $0x174] ss:$400 sps:$4 sm:$0xff]   ;;  %v9403_v58 = vld [vmem:[%s9722_s6 + $0x17c] ss:$400 sps:$4 sm:$0xff]  }
 0x2ed   : > { %6793 = vmatprep.subr.bf16.mxu0 %v9334_v59  ;;  %6836 = vmatprep.subr.bf16.mxu1 %v9337_v60  ;;  %v9398_v59 = vld [vmem:[%s9722_s6 + $0x170] ss:$400 sps:$4 sm:$0xff]   ;;  %v9401_v60 = vld [vmem:[%s9722_s6 + $0x178] ss:$400 sps:$4 sm:$0xff]  }
 0x2ee   : > { %v6215_v2 = vpop.f32.mrb[56].mxu0  ;;  %v6258_v3 = vpop.f32.mrb[56].mxu1 }
 0x2ef   : > { %7183 = vst [vmem:[%s10019_s7 + $0x1c0] sm:$0xff] %v6215_v2  ;;  %7185 = vst [vmem:[%s10019_s7 + $0x1d0] sm:$0xff] %v6258_v3  ;;  %v6217_v4 = vpop.f32.mrb[57].mxu0  ;;  %v6260_v5 = vpop.f32.mrb[57].mxu1  ;;  %v9412_v2 = vld [vmem:[%s9722_s6 + $0x7b4] ss:$400 sps:$4 sm:$0xff]  }
 0x2f0   : > { %7184 = vst [vmem:[%s10019_s7 + $0x1c8] sm:$0xff] %v6217_v4  ;;  %7186 = vst [vmem:[%s10019_s7 + $0x1d8] sm:$0xff] %v6260_v5  ;;  %v6219_v6 = vpop.f32.mrb[58].mxu0  ;;  %v6262_v7 = vpop.f32.mrb[58].mxu1  ;;  %6794 = vmatpush1.bf16.msra.mxu0 %v9332_v61  ;;  %6837 = vmatpush1.bf16.msra.mxu1 %v9335_v62  ;;  %v9406_v61 = vld [vmem:[%s9722_s6 + $0x494] ss:$400 sps:$4 sm:$0xff]  }
 0x2f1   : > { %7283 = vst [vmem:[%s10019_s7 + $0x4e0] sm:$0xff] %v6219_v6  ;;  %7285 = vst [vmem:[%s10019_s7 + $0x4f0] sm:$0xff] %v6262_v7  ;;  %v6221_v10 = vpop.f32.mrb[59].mxu0  ;;  %v6264_v11 = vpop.f32.mrb[59].mxu1  ;;  %6795 = vmatprep.subr.bf16.mxu0 %v9340_v63  ;;  %6838 = vmatprep.subr.bf16.mxu1 %v9343_v1  ;;  %v9409_v62 = vld [vmem:[%s9722_s6 + $0x49c] ss:$400 sps:$4 sm:$0xff]  }
 0x2f2   : > { %7284 = vst [vmem:[%s10019_s7 + $0x4e8] sm:$0xff] %v6221_v10  ;;  %7286 = vst [vmem:[%s10019_s7 + $0x4f8] sm:$0xff] %v6264_v11  ;;  %v9404_v63 = vld [vmem:[%s9722_s6 + $0x490] ss:$400 sps:$4 sm:$0xff]   ;;  %v9407_v1 = vld [vmem:[%s9722_s6 + $0x498] ss:$400 sps:$4 sm:$0xff]  }
 0x2f3   : > { %v9415_v3 = vld [vmem:[%s9722_s6 + $0x7bc] ss:$400 sps:$4 sm:$0xff]   ;;  %v9410_v4 = vld [vmem:[%s9722_s6 + $0x7b0] ss:$400 sps:$4 sm:$0xff]   ;;  %v9413_v5 = vld [vmem:[%s9722_s6 + $0x7b8] ss:$400 sps:$4 sm:$0xff]  }
 0x2f4   : > { %6796 = vmatpush1.bf16.msra.mxu0 %v9338_v8  ;;  %6839 = vmatpush1.bf16.msra.mxu1 %v9341_v9  ;;  %v9418_v6 = vld [vmem:[%s9722_s6 + $0xad4] ss:$400 sps:$4 sm:$0xff]   ;;  %v9421_v7 = vld [vmem:[%s9722_s6 + $0xadc] ss:$400 sps:$4 sm:$0xff]   ;;  %v9416_v8 = vld [vmem:[%s9722_s6 + $0xad0] ss:$400 sps:$4 sm:$0xff]  }
 0x2f5   : > { %6797 = vmatprep.subr.bf16.mxu0 %v9346_v14  ;;  %6840 = vmatprep.subr.bf16.mxu1 %v9349_v15  ;;  %v9419_v9 = vld [vmem:[%s9722_s6 + $0xad8] ss:$400 sps:$4 sm:$0xff]   ;;  %v9424_v10 = vld [vmem:[%s9722_s6 + $0xdf4] ss:$400 sps:$4 sm:$0xff]   ;;  %v9427_v11 = vld [vmem:[%s9722_s6 + $0xdfc] ss:$400 sps:$4 sm:$0xff]  }
 0x2f6   : > { %v9422_v14 = vld [vmem:[%s9722_s6 + $0xdf0] ss:$400 sps:$4 sm:$0xff]   ;;  %v9425_v15 = vld [vmem:[%s9722_s6 + $0xdf8] ss:$400 sps:$4 sm:$0xff]  }
 0x2f8   : > { %6798 = vmatpush1.bf16.msra.mxu0 %v9344_v16  ;;  %6841 = vmatpush1.bf16.msra.mxu1 %v9347_v17  ;;  %v9430_v16 = vld [vmem:[%s9722_s6 + $0x1114] ss:$400 sps:$4 sm:$0xff]   ;;  %v9433_v17 = vld [vmem:[%s9722_s6 + $0x111c] ss:$400 sps:$4 sm:$0xff]  }
 0x2f9   : > { %6869 = vmatprep.subr.bf16.mxu0 %v9352_v18  ;;  %6912 = vmatprep.subr.bf16.mxu1 %v9355_v19  ;;  %v9428_v18 = vld [vmem:[%s9722_s6 + $0x1110] ss:$400 sps:$4 sm:$0xff]   ;;  %v9431_v19 = vld [vmem:[%s9722_s6 + $0x1118] ss:$400 sps:$4 sm:$0xff]  }
 0x2fb   : > { %6816 = vmatmul.mubr.bf16.vlgmr.msra.gmra.mrb[84].mxu0 %v10582_v12  ;;  %6859 = vmatmul.mubr.bf16.vlgmr.msra.gmra.mrb[84].mxu1 %v10582_v12 }
 0x2fc   : > { %6870 = vmatpush1.bf16.msra.mxu0 %v9350_v20  ;;  %6913 = vmatpush1.bf16.msra.mxu1 %v9353_v21  ;;  %v9436_v20 = vld [vmem:[%s9722_s6 + $0x1434] ss:$400 sps:$4 sm:$0xff]   ;;  %v9439_v21 = vld [vmem:[%s9722_s6 + $0x143c] ss:$400 sps:$4 sm:$0xff]  }
 0x2fd   : > { %6871 = vmatprep.subr.bf16.mxu0 %v9358_v22  ;;  %6914 = vmatprep.subr.bf16.mxu1 %v9361_v23 }
 0x2fe   : > { %6901 = vmatprep.mubr.bf16.mxu0 %v9600_v0  ;;  %6944 = vmatprep.mubr.bf16.mxu1 %v9600_v0 }
 0x300   : > { %6872 = vmatpush1.bf16.msra.mxu0 %v9356_v24  ;;  %6915 = vmatpush1.bf16.msra.mxu1 %v9359_v25 }
 0x301   : > { %6873 = vmatprep.subr.bf16.mxu0 %v9364_v26  ;;  %6916 = vmatprep.subr.bf16.mxu1 %v9367_v27 }
 0x304   : > { %6874 = vmatpush1.bf16.msra.mxu0 %v9362_v28  ;;  %6917 = vmatpush1.bf16.msra.mxu1 %v9365_v29  ;;  %v9434_v28 = vld [vmem:[%s9722_s6 + $0x1430] ss:$400 sps:$4 sm:$0xff]   ;;  %v9437_v29 = vld [vmem:[%s9722_s6 + $0x1438] ss:$400 sps:$4 sm:$0xff]  }
 0x305   : > { %6875 = vmatprep.subr.bf16.mxu0 %v9370_v30  ;;  %6918 = vmatprep.subr.bf16.mxu1 %v9373_v31 }
 0x308   : > { %6876 = vmatpush1.bf16.msra.mxu0 %v9368_v13  ;;  %6919 = vmatpush1.bf16.msra.mxu1 %v9371_v32  ;;  %v9442_v13 = vld [vmem:[%s9722_s6 + $0x1754] ss:$400 sps:$4 sm:$0xff]   ;;  %v9445_v32 = vld [vmem:[%s9722_s6 + $0x175c] ss:$400 sps:$4 sm:$0xff]  }
 0x309   : > { %6877 = vmatprep.subr.bf16.mxu0 %v9376_v33  ;;  %6920 = vmatprep.subr.bf16.mxu1 %v9379_v34  ;;  %v9440_v33 = vld [vmem:[%s9722_s6 + $0x1750] ss:$400 sps:$4 sm:$0xff]   ;;  %v9443_v34 = vld [vmem:[%s9722_s6 + $0x1758] ss:$400 sps:$4 sm:$0xff]  }
 0x30c   : > { %6878 = vmatpush1.bf16.msra.mxu0 %v9374_v36  ;;  %6921 = vmatpush1.bf16.msra.mxu1 %v9377_v37  ;;  %v9448_v36 = vld [vmem:[%s9722_s6 + $0x184] ss:$400 sps:$4 sm:$0xff]   ;;  %v9451_v37 = vld [vmem:[%s9722_s6 + $0x18c] ss:$400 sps:$4 sm:$0xff]  }
 0x30d   : > { %6879 = vmatprep.subr.bf16.mxu0 %v9382_v38  ;;  %6922 = vmatprep.subr.bf16.mxu1 %v9385_v39  ;;  %v9446_v38 = vld [vmem:[%s9722_s6 + $0x180] ss:$400 sps:$4 sm:$0xff]   ;;  %v9449_v39 = vld [vmem:[%s9722_s6 + $0x188] ss:$400 sps:$4 sm:$0xff]  }
 0x30e   : > { %v6301_v44 = vpop.f32.mrb[60].mxu0  ;;  %v6344_v45 = vpop.f32.mrb[60].mxu1 }
 0x30f   : > { %7187 = vst [vmem:[%s10019_s7 + $0x1e0] sm:$0xff] %v6301_v44  ;;  %7189 = vst [vmem:[%s10019_s7 + $0x1f0] sm:$0xff] %v6344_v45  ;;  %v6303_v46 = vpop.f32.mrb[61].mxu0  ;;  %v6346_v47 = vpop.f32.mrb[61].mxu1  ;;  %v9460_v44 = vld [vmem:[%s9722_s6 + $0x7c4] ss:$400 sps:$4 sm:$0xff]  }
 0x310   : > { %7188 = vst [vmem:[%s10019_s7 + $0x1e8] sm:$0xff] %v6303_v46  ;;  %7190 = vst [vmem:[%s10019_s7 + $0x1f8] sm:$0xff] %v6346_v47  ;;  %v6305_v48 = vpop.f32.mrb[62].mxu0  ;;  %v6348_v35 = vpop.f32.mrb[62].mxu1  ;;  %6880 = vmatpush1.bf16.msra.mxu0 %v9380_v40  ;;  %6923 = vmatpush1.bf16.msra.mxu1 %v9383_v41  ;;  %v9454_v40 = vld [vmem:[%s9722_s6 + $0x4a4] ss:$400 sps:$4 sm:$0xff]  }
 0x311   : > { %7287 = vst [vmem:[%s10019_s7 + $0x500] sm:$0xff] %v6305_v48  ;;  %7289 = vst [vmem:[%s10019_s7 + $0x510] sm:$0xff] %v6348_v35  ;;  %v6307_v51 = vpop.f32.mrb[63].mxu0  ;;  %v6350_v52 = vpop.f32.mrb[63].mxu1  ;;  %6881 = vmatprep.subr.bf16.mxu0 %v9388_v42  ;;  %6924 = vmatprep.subr.bf16.mxu1 %v9391_v43  ;;  %v9457_v41 = vld [vmem:[%s9722_s6 + $0x4ac] ss:$400 sps:$4 sm:$0xff]  }
 0x312   : > { %7288 = vst [vmem:[%s10019_s7 + $0x508] sm:$0xff] %v6307_v51  ;;  %7290 = vst [vmem:[%s10019_s7 + $0x518] sm:$0xff] %v6350_v52  ;;  %v9452_v42 = vld [vmem:[%s9722_s6 + $0x4a0] ss:$400 sps:$4 sm:$0xff]   ;;  %v9455_v43 = vld [vmem:[%s9722_s6 + $0x4a8] ss:$400 sps:$4 sm:$0xff]  }
 0x313   : > { %v9463_v45 = vld [vmem:[%s9722_s6 + $0x7cc] ss:$400 sps:$4 sm:$0xff]   ;;  %v9458_v46 = vld [vmem:[%s9722_s6 + $0x7c0] ss:$400 sps:$4 sm:$0xff]   ;;  %v9461_v47 = vld [vmem:[%s9722_s6 + $0x7c8] ss:$400 sps:$4 sm:$0xff]  }
 0x314   : > { %6882 = vmatpush1.bf16.msra.mxu0 %v9386_v49  ;;  %6925 = vmatpush1.bf16.msra.mxu1 %v9389_v50  ;;  %v9466_v48 = vld [vmem:[%s9722_s6 + $0xae4] ss:$400 sps:$4 sm:$0xff]   ;;  %v9469_v35 = vld [vmem:[%s9722_s6 + $0xaec] ss:$400 sps:$4 sm:$0xff]   ;;  %v9464_v49 = vld [vmem:[%s9722_s6 + $0xae0] ss:$400 sps:$4 sm:$0xff]  }
 0x315   : > { %6883 = vmatprep.subr.bf16.mxu0 %v9394_v53  ;;  %6926 = vmatprep.subr.bf16.mxu1 %v9397_v54  ;;  %v9467_v50 = vld [vmem:[%s9722_s6 + $0xae8] ss:$400 sps:$4 sm:$0xff]   ;;  %v9475_v51 = vld [vmem:[%s9722_s6 + $0xe0c] ss:$400 sps:$4 sm:$0xff]   ;;  %v9470_v52 = vld [vmem:[%s9722_s6 + $0xe00] ss:$400 sps:$4 sm:$0xff]  }
 0x316   : > { %v9473_v53 = vld [vmem:[%s9722_s6 + $0xe08] ss:$400 sps:$4 sm:$0xff]   ;;  %v9478_v54 = vld [vmem:[%s9722_s6 + $0x1124] ss:$400 sps:$4 sm:$0xff]  }
 0x318   : > { %6884 = vmatpush1.bf16.msra.mxu0 %v9392_v55  ;;  %6927 = vmatpush1.bf16.msra.mxu1 %v9395_v56  ;;  %v9481_v55 = vld [vmem:[%s9722_s6 + $0x112c] ss:$400 sps:$4 sm:$0xff]   ;;  %v9476_v56 = vld [vmem:[%s9722_s6 + $0x1120] ss:$400 sps:$4 sm:$0xff]  }
 0x319   : > { %6955 = vmatprep.subr.bf16.mxu0 %v9400_v57  ;;  %6998 = vmatprep.subr.bf16.mxu1 %v9403_v58  ;;  %v9479_v57 = vld [vmem:[%s9722_s6 + $0x1128] ss:$400 sps:$4 sm:$0xff]   ;;  %v9484_v58 = vld [vmem:[%s9722_s6 + $0x1444] ss:$400 sps:$4 sm:$0xff]  }
 0x31b   : > { %6902 = vmatmul.mubr.bf16.vlgmr.msra.gmra.mrb[88].mxu0 %v10582_v12  ;;  %6945 = vmatmul.mubr.bf16.vlgmr.msra.gmra.mrb[88].mxu1 %v10582_v12 }
 0x31c   : > { %6956 = vmatpush1.bf16.msra.mxu0 %v9398_v59  ;;  %6999 = vmatpush1.bf16.msra.mxu1 %v9401_v60  ;;  %v9487_v59 = vld [vmem:[%s9722_s6 + $0x144c] ss:$400 sps:$4 sm:$0xff]  }
 0x31d   : > { %6957 = vmatprep.subr.bf16.mxu0 %v9406_v61  ;;  %7000 = vmatprep.subr.bf16.mxu1 %v9409_v62 }
 0x31e   : > { %6987 = vmatprep.mubr.bf16.mxu0 %v9600_v0  ;;  %7030 = vmatprep.mubr.bf16.mxu1 %v9600_v0 }
 0x320   : > { %6958 = vmatpush1.bf16.msra.mxu0 %v9404_v63  ;;  %7001 = vmatpush1.bf16.msra.mxu1 %v9407_v1 }
 0x321   : > { %6959 = vmatprep.subr.bf16.mxu0 %v9412_v2  ;;  %7002 = vmatprep.subr.bf16.mxu1 %v9415_v3  ;;  %v9482_v3 = vld [vmem:[%s9722_s6 + $0x1440] ss:$400 sps:$4 sm:$0xff]  }
 0x324   : > { %6960 = vmatpush1.bf16.msra.mxu0 %v9410_v4  ;;  %7003 = vmatpush1.bf16.msra.mxu1 %v9413_v5  ;;  %v9485_v4 = vld [vmem:[%s9722_s6 + $0x1448] ss:$400 sps:$4 sm:$0xff]  }
 0x325   : > { %6961 = vmatprep.subr.bf16.mxu0 %v9418_v6  ;;  %7004 = vmatprep.subr.bf16.mxu1 %v9421_v7  ;;  %v9490_v7 = vld [vmem:[%s9722_s6 + $0x1764] ss:$400 sps:$4 sm:$0xff]  }
 0x328   : > { %6962 = vmatpush1.bf16.msra.mxu0 %v9416_v8  ;;  %7005 = vmatpush1.bf16.msra.mxu1 %v9419_v9  ;;  %v9493_v8 = vld [vmem:[%s9722_s6 + $0x176c] ss:$400 sps:$4 sm:$0xff]   ;;  %v9488_v9 = vld [vmem:[%s9722_s6 + $0x1760] ss:$400 sps:$4 sm:$0xff]  }
 0x329   : > { %6963 = vmatprep.subr.bf16.mxu0 %v9424_v10  ;;  %7006 = vmatprep.subr.bf16.mxu1 %v9427_v11  ;;  %v9491_v10 = vld [vmem:[%s9722_s6 + $0x1768] ss:$400 sps:$4 sm:$0xff]  }
 0x32c   : > { %6964 = vmatpush1.bf16.msra.mxu0 %v9422_v14  ;;  %7007 = vmatpush1.bf16.msra.mxu1 %v9425_v15 }
 0x32d   : > { %6965 = vmatprep.subr.bf16.mxu0 %v9430_v16  ;;  %7008 = vmatprep.subr.bf16.mxu1 %v9433_v17 }
 0x32e   : > { %v6387_v22 = vpop.f32.mrb[64].mxu0  ;;  %v6430_v23 = vpop.f32.mrb[64].mxu1 }
 0x32f   : > { %7191 = vst [vmem:[%s10019_s7 + $0x200] sm:$0xff] %v6387_v22  ;;  %7193 = vst [vmem:[%s10019_s7 + $0x210] sm:$0xff] %v6430_v23  ;;  %v6389_v24 = vpop.f32.mrb[65].mxu0  ;;  %v6432_v25 = vpop.f32.mrb[65].mxu1 }
 0x330   : > { %7192 = vst [vmem:[%s10019_s7 + $0x208] sm:$0xff] %v6389_v24  ;;  %7194 = vst [vmem:[%s10019_s7 + $0x218] sm:$0xff] %v6432_v25  ;;  %v6391_v26 = vpop.f32.mrb[66].mxu0  ;;  %v6434_v27 = vpop.f32.mrb[66].mxu1  ;;  %6966 = vmatpush1.bf16.msra.mxu0 %v9428_v18  ;;  %7009 = vmatpush1.bf16.msra.mxu1 %v9431_v19 }
 0x331   : > { %7291 = vst [vmem:[%s10019_s7 + $0x520] sm:$0xff] %v6391_v26  ;;  %7293 = vst [vmem:[%s10019_s7 + $0x530] sm:$0xff] %v6434_v27  ;;  %v6393_v30 = vpop.f32.mrb[67].mxu0  ;;  %v6436_v31 = vpop.f32.mrb[67].mxu1  ;;  %6967 = vmatprep.subr.bf16.mxu0 %v9436_v20  ;;  %7010 = vmatprep.subr.bf16.mxu1 %v9439_v21 }
 0x332   : > { %7292 = vst [vmem:[%s10019_s7 + $0x528] sm:$0xff] %v6393_v30  ;;  %7294 = vst [vmem:[%s10019_s7 + $0x538] sm:$0xff] %v6436_v31 }
 0x334   : > { %6968 = vmatpush1.bf16.msra.mxu0 %v9434_v28  ;;  %7011 = vmatpush1.bf16.msra.mxu1 %v9437_v29 }
 0x335   : > { %6969 = vmatprep.subr.bf16.mxu0 %v9442_v13  ;;  %7012 = vmatprep.subr.bf16.mxu1 %v9445_v32 }
 0x338   : > { %6970 = vmatpush1.bf16.msra.mxu0 %v9440_v33  ;;  %7013 = vmatpush1.bf16.msra.mxu1 %v9443_v34 }
 0x339   : > { %7041 = vmatprep.subr.bf16.mxu0 %v9448_v36  ;;  %7084 = vmatprep.subr.bf16.mxu1 %v9451_v37 }
 0x33b   : > { %6988 = vmatmul.mubr.bf16.vlgmr.msra.gmra.mrb[92].mxu0 %v10582_v12  ;;  %7031 = vmatmul.mubr.bf16.vlgmr.msra.gmra.mrb[92].mxu1 %v10582_v12 }
 0x33c   : > { %7042 = vmatpush1.bf16.msra.mxu0 %v9446_v38  ;;  %7085 = vmatpush1.bf16.msra.mxu1 %v9449_v39 }
 0x33d   : > { %7043 = vmatprep.subr.bf16.mxu0 %v9454_v40  ;;  %7086 = vmatprep.subr.bf16.mxu1 %v9457_v41 }
 0x33e   : > { %7073 = vmatprep.mubr.bf16.mxu0 %v9600_v0  ;;  %7116 = vmatprep.mubr.bf16.mxu1 %v9600_v0  ;;  %v9472_v0 = vld [vmem:[%s9722_s6 + $0xe04] ss:$400 sps:$4 sm:$0xff]  }
 0x340   : > { %7044 = vmatpush1.bf16.msra.mxu0 %v9452_v42  ;;  %7087 = vmatpush1.bf16.msra.mxu1 %v9455_v43 }
 0x341   : > { %7045 = vmatprep.subr.bf16.mxu0 %v9460_v44  ;;  %7088 = vmatprep.subr.bf16.mxu1 %v9463_v45 }
 0x344   : > { %7046 = vmatpush1.bf16.msra.mxu0 %v9458_v46  ;;  %7089 = vmatpush1.bf16.msra.mxu1 %v9461_v47 }
 0x345   : > { %7047 = vmatprep.subr.bf16.mxu0 %v9466_v48  ;;  %7090 = vmatprep.subr.bf16.mxu1 %v9469_v35 }
 0x348   : > { %7048 = vmatpush1.bf16.msra.mxu0 %v9464_v49  ;;  %7091 = vmatpush1.bf16.msra.mxu1 %v9467_v50 }
 0x349   : > { %7049 = vmatprep.subr.bf16.mxu0 %v9472_v0  ;;  %7092 = vmatprep.subr.bf16.mxu1 %v9475_v51 }
 0x34c   : > { %7050 = vmatpush1.bf16.msra.mxu0 %v9470_v52  ;;  %7093 = vmatpush1.bf16.msra.mxu1 %v9473_v53 }
 0x34d   : > { %7051 = vmatprep.subr.bf16.mxu0 %v9478_v54  ;;  %7094 = vmatprep.subr.bf16.mxu1 %v9481_v55 }
 0x34e   : > { %v6473_v60 = vpop.f32.mrb[68].mxu0  ;;  %v6516_v61 = vpop.f32.mrb[68].mxu1 }
 0x34f   : > { %7195 = vst [vmem:[%s10019_s7 + $0x220] sm:$0xff] %v6473_v60  ;;  %7197 = vst [vmem:[%s10019_s7 + $0x230] sm:$0xff] %v6516_v61  ;;  %v6475_v62 = vpop.f32.mrb[69].mxu0  ;;  %v6518_v63 = vpop.f32.mrb[69].mxu1 }
 0x350   : > { %7196 = vst [vmem:[%s10019_s7 + $0x228] sm:$0xff] %v6475_v62  ;;  %7198 = vst [vmem:[%s10019_s7 + $0x238] sm:$0xff] %v6518_v63  ;;  %v6477_v1 = vpop.f32.mrb[70].mxu0  ;;  %v6520_v2 = vpop.f32.mrb[70].mxu1  ;;  %7052 = vmatpush1.bf16.msra.mxu0 %v9476_v56  ;;  %7095 = vmatpush1.bf16.msra.mxu1 %v9479_v57 }
 0x351   : > { %7295 = vst [vmem:[%s10019_s7 + $0x540] sm:$0xff] %v6477_v1  ;;  %7297 = vst [vmem:[%s10019_s7 + $0x550] sm:$0xff] %v6520_v2  ;;  %v6479_v5 = vpop.f32.mrb[71].mxu0  ;;  %v6522_v6 = vpop.f32.mrb[71].mxu1  ;;  %7053 = vmatprep.subr.bf16.mxu0 %v9484_v58  ;;  %7096 = vmatprep.subr.bf16.mxu1 %v9487_v59 }
 0x352   : > { %7296 = vst [vmem:[%s10019_s7 + $0x548] sm:$0xff] %v6479_v5  ;;  %7298 = vst [vmem:[%s10019_s7 + $0x558] sm:$0xff] %v6522_v6 }
 0x354   : > { %7054 = vmatpush1.bf16.msra.mxu0 %v9482_v3  ;;  %7097 = vmatpush1.bf16.msra.mxu1 %v9485_v4 }
 0x355   : > { %7055 = vmatprep.subr.bf16.mxu0 %v9490_v7  ;;  %7098 = vmatprep.subr.bf16.mxu1 %v9493_v8 }
 0x358   : > { %7056 = vmatpush1.bf16.msra.mxu0 %v9488_v9  ;;  %7099 = vmatpush1.bf16.msra.mxu1 %v9491_v10 }
 0x35b   : > { %7074 = vmatmul.mubr.bf16.vlgmr.msra.gmra.mrb[96].mxu0 %v10582_v12  ;;  %7117 = vmatmul.mubr.bf16.vlgmr.msra.gmra.mrb[96].mxu1 %v10582_v12 }
 0x36e   : > { %v6559_v11 = vpop.f32.mrb[72].mxu0  ;;  %v6602_v14 = vpop.f32.mrb[72].mxu1 }
 0x36f   : > { %7199 = vst [vmem:[%s10019_s7 + $0x240] sm:$0xff] %v6559_v11  ;;  %7201 = vst [vmem:[%s10019_s7 + $0x250] sm:$0xff] %v6602_v14  ;;  %v6561_v15 = vpop.f32.mrb[73].mxu0  ;;  %v6604_v16 = vpop.f32.mrb[73].mxu1 }
 0x370   : > { %7200 = vst [vmem:[%s10019_s7 + $0x248] sm:$0xff] %v6561_v15  ;;  %7202 = vst [vmem:[%s10019_s7 + $0x258] sm:$0xff] %v6604_v16  ;;  %v6563_v17 = vpop.f32.mrb[74].mxu0  ;;  %v6606_v18 = vpop.f32.mrb[74].mxu1 }
 0x371   : > { %7299 = vst [vmem:[%s10019_s7 + $0x560] sm:$0xff] %v6563_v17  ;;  %7301 = vst [vmem:[%s10019_s7 + $0x570] sm:$0xff] %v6606_v18  ;;  %v6565_v12 = vpop.f32.mrb[75].mxu0  ;;  %v6608_v19 = vpop.f32.mrb[75].mxu1 }
 0x372   : > { %7300 = vst [vmem:[%s10019_s7 + $0x568] sm:$0xff] %v6565_v12  ;;  %7302 = vst [vmem:[%s10019_s7 + $0x578] sm:$0xff] %v6608_v19 }
 0x38e   : > { %v6645_v20 = vpop.f32.mrb[76].mxu0  ;;  %v6688_v21 = vpop.f32.mrb[76].mxu1 }
 0x38f   : > { %7203 = vst [vmem:[%s10019_s7 + $0x260] sm:$0xff] %v6645_v20  ;;  %7205 = vst [vmem:[%s10019_s7 + $0x270] sm:$0xff] %v6688_v21  ;;  %v6647_v22 = vpop.f32.mrb[77].mxu0  ;;  %v6690_v23 = vpop.f32.mrb[77].mxu1 }
 0x390   : > { %7204 = vst [vmem:[%s10019_s7 + $0x268] sm:$0xff] %v6647_v22  ;;  %7206 = vst [vmem:[%s10019_s7 + $0x278] sm:$0xff] %v6690_v23  ;;  %v6649_v24 = vpop.f32.mrb[78].mxu0  ;;  %v6692_v25 = vpop.f32.mrb[78].mxu1 }
 0x391   : > { %7303 = vst [vmem:[%s10019_s7 + $0x580] sm:$0xff] %v6649_v24  ;;  %7305 = vst [vmem:[%s10019_s7 + $0x590] sm:$0xff] %v6692_v25  ;;  %v6651_v26 = vpop.f32.mrb[79].mxu0  ;;  %v6694_v27 = vpop.f32.mrb[79].mxu1 }
 0x392   : > { %7304 = vst [vmem:[%s10019_s7 + $0x588] sm:$0xff] %v6651_v26  ;;  %7306 = vst [vmem:[%s10019_s7 + $0x598] sm:$0xff] %v6694_v27 }
 0x3ae   : > { %v6731_v28 = vpop.f32.mrb[80].mxu0  ;;  %v6774_v29 = vpop.f32.mrb[80].mxu1 }
 0x3af   : > { %7207 = vst [vmem:[%s10019_s7 + $0x280] sm:$0xff] %v6731_v28  ;;  %7209 = vst [vmem:[%s10019_s7 + $0x290] sm:$0xff] %v6774_v29  ;;  %v6733_v30 = vpop.f32.mrb[81].mxu0  ;;  %v6776_v31 = vpop.f32.mrb[81].mxu1 }
 0x3b0   : > { %7208 = vst [vmem:[%s10019_s7 + $0x288] sm:$0xff] %v6733_v30  ;;  %7210 = vst [vmem:[%s10019_s7 + $0x298] sm:$0xff] %v6776_v31  ;;  %v6735_v13 = vpop.f32.mrb[82].mxu0  ;;  %v6778_v32 = vpop.f32.mrb[82].mxu1 }
 0x3b1   : > { %7307 = vst [vmem:[%s10019_s7 + $0x5a0] sm:$0xff] %v6735_v13  ;;  %7309 = vst [vmem:[%s10019_s7 + $0x5b0] sm:$0xff] %v6778_v32  ;;  %v6737_v33 = vpop.f32.mrb[83].mxu0  ;;  %v6780_v34 = vpop.f32.mrb[83].mxu1 }
 0x3b2   : > { %7308 = vst [vmem:[%s10019_s7 + $0x5a8] sm:$0xff] %v6737_v33  ;;  %7310 = vst [vmem:[%s10019_s7 + $0x5b8] sm:$0xff] %v6780_v34 }
 0x3ce   : > { %v6817_v36 = vpop.f32.mrb[84].mxu0  ;;  %v6860_v37 = vpop.f32.mrb[84].mxu1 }
 0x3cf   : > { %7211 = vst [vmem:[%s10019_s7 + $0x2a0] sm:$0xff] %v6817_v36  ;;  %7213 = vst [vmem:[%s10019_s7 + $0x2b0] sm:$0xff] %v6860_v37  ;;  %v6819_v38 = vpop.f32.mrb[85].mxu0  ;;  %v6862_v39 = vpop.f32.mrb[85].mxu1 }
 0x3d0   : > { %7212 = vst [vmem:[%s10019_s7 + $0x2a8] sm:$0xff] %v6819_v38  ;;  %7214 = vst [vmem:[%s10019_s7 + $0x2b8] sm:$0xff] %v6862_v39  ;;  %v6821_v40 = vpop.f32.mrb[86].mxu0  ;;  %v6864_v41 = vpop.f32.mrb[86].mxu1 }
 0x3d1   : > { %7311 = vst [vmem:[%s10019_s7 + $0x5c0] sm:$0xff] %v6821_v40  ;;  %7313 = vst [vmem:[%s10019_s7 + $0x5d0] sm:$0xff] %v6864_v41  ;;  %v6823_v42 = vpop.f32.mrb[87].mxu0  ;;  %v6866_v43 = vpop.f32.mrb[87].mxu1 }
 0x3d2   : > { %7312 = vst [vmem:[%s10019_s7 + $0x5c8] sm:$0xff] %v6823_v42  ;;  %7314 = vst [vmem:[%s10019_s7 + $0x5d8] sm:$0xff] %v6866_v43 }
 0x3ee   : > { %v6903_v44 = vpop.f32.mrb[88].mxu0  ;;  %v6946_v45 = vpop.f32.mrb[88].mxu1 }
 0x3ef   : > { %7215 = vst [vmem:[%s10019_s7 + $0x2c0] sm:$0xff] %v6903_v44  ;;  %7217 = vst [vmem:[%s10019_s7 + $0x2d0] sm:$0xff] %v6946_v45  ;;  %v6905_v46 = vpop.f32.mrb[89].mxu0  ;;  %v6948_v47 = vpop.f32.mrb[89].mxu1 }
 0x3f0   : > { %7216 = vst [vmem:[%s10019_s7 + $0x2c8] sm:$0xff] %v6905_v46  ;;  %7218 = vst [vmem:[%s10019_s7 + $0x2d8] sm:$0xff] %v6948_v47  ;;  %v6907_v48 = vpop.f32.mrb[90].mxu0  ;;  %v6950_v35 = vpop.f32.mrb[90].mxu1 }
 0x3f1   : > { %7315 = vst [vmem:[%s10019_s7 + $0x5e0] sm:$0xff] %v6907_v48  ;;  %7317 = vst [vmem:[%s10019_s7 + $0x5f0] sm:$0xff] %v6950_v35  ;;  %v6909_v49 = vpop.f32.mrb[91].mxu0  ;;  %v6952_v50 = vpop.f32.mrb[91].mxu1 }
 0x3f2   : > { %7316 = vst [vmem:[%s10019_s7 + $0x5e8] sm:$0xff] %v6909_v49  ;;  %7318 = vst [vmem:[%s10019_s7 + $0x5f8] sm:$0xff] %v6952_v50 }
 0x40e   : > { %v6989_v0 = vpop.f32.mrb[92].mxu0  ;;  %v7032_v51 = vpop.f32.mrb[92].mxu1 }
 0x40f   : > { %7219 = vst [vmem:[%s10019_s7 + $0x2e0] sm:$0xff] %v6989_v0  ;;  %7221 = vst [vmem:[%s10019_s7 + $0x2f0] sm:$0xff] %v7032_v51  ;;  %v6991_v52 = vpop.f32.mrb[93].mxu0  ;;  %v7034_v53 = vpop.f32.mrb[93].mxu1 }
 0x410   : > { %7220 = vst [vmem:[%s10019_s7 + $0x2e8] sm:$0xff] %v6991_v52  ;;  %7222 = vst [vmem:[%s10019_s7 + $0x2f8] sm:$0xff] %v7034_v53  ;;  %v6993_v54 = vpop.f32.mrb[94].mxu0  ;;  %v7036_v55 = vpop.f32.mrb[94].mxu1 }
 0x411   : > { %7319 = vst [vmem:[%s10019_s7 + $0x600] sm:$0xff] %v6993_v54  ;;  %7321 = vst [vmem:[%s10019_s7 + $0x610] sm:$0xff] %v7036_v55  ;;  %v6995_v56 = vpop.f32.mrb[95].mxu0  ;;  %v7038_v57 = vpop.f32.mrb[95].mxu1 }
 0x412   : > { %7320 = vst [vmem:[%s10019_s7 + $0x608] sm:$0xff] %v6995_v56  ;;  %7322 = vst [vmem:[%s10019_s7 + $0x618] sm:$0xff] %v7038_v57 }
 0x42c   : > { %7334 = sbr.rel (!%p10932_p6) target bundleno = 1104 (0x450), region = 36 }
 0x42e   : > { %v7075_v58 = vpop.f32.mrb[96].mxu0  ;;  %v7118_v59 = vpop.f32.mrb[96].mxu1 }
 0x42f   : > { %7223 = vst [vmem:[%s10019_s7 + $0x300] sm:$0xff] %v7075_v58  ;;  %7225 = vst [vmem:[%s10019_s7 + $0x310] sm:$0xff] %v7118_v59  ;;  %v7077_v60 = vpop.f32.mrb[97].mxu0  ;;  %v7120_v61 = vpop.f32.mrb[97].mxu1 }
 0x430   : > { %7224 = vst [vmem:[%s10019_s7 + $0x308] sm:$0xff] %v7077_v60  ;;  %7226 = vst [vmem:[%s10019_s7 + $0x318] sm:$0xff] %v7120_v61  ;;  %v7079_v62 = vpop.f32.mrb[98].mxu0  ;;  %v7122_v63 = vpop.f32.mrb[98].mxu1 }
 0x431   : > { %7323 = vst [vmem:[%s10019_s7 + $0x620] sm:$0xff] %v7079_v62  ;;  %7325 = vst [vmem:[%s10019_s7 + $0x630] sm:$0xff] %v7122_v63  ;;  %v7081_v1 = vpop.f32.mrb[99].mxu0  ;;  %v7124_v2 = vpop.f32.mrb[99].mxu1 }
 0x432   : > { %7324 = vst [vmem:[%s10019_s7 + $0x628] sm:$0xff] %v7081_v1  ;;  %7326 = vst [vmem:[%s10019_s7 + $0x638] sm:$0xff] %v7124_v2 }
 0x433   : > { %s10939_s26 = smov (!%p7337_p10, %s7336_s26), 100 }
 0x434   : > { %s10863_s4 = sshll.u32 %s10939_s26, 8 }
 0x435   : > { %s7341_s5 = ssub.s32 25600, %s10863_s4 }
 0x436   : > { %7342 = vsyncadd %s7328_s24, %s7341_s5  ;;  %p8228_p11 = scmp.ne.s32.totalorder %s10863_s4, 0  ;;  %s8236_s20 = smul.u32 12800, %s9640_s13 }
 0x437   : > { %s8230_s6 = sshll.u32 %s10939_s26, 3  ;;  %s7348_s19 = sshll.u32 %s10019_s7, 4  ;;  %s10877_s19 = int_to_ptr.vmem [resolvable:$true] %s7348_s19 }
 0x438   : > { %s10875_s30 = scalar_lea.hbm %s10926_s2, %s8236_s20  ;;  %s9528_s3 = scalar_lea.vmem %s10877_s19, %s10863_s4 }
 0x439   : > { %p9529_p12 = scmp.ne.s32.totalorder %s10877_s19, %s9528_s3  ;;  %s9601_s8 = smov [#allocation5]  }
 0x43a   : > { %s9532_s14 = sshll.u32 %s9601_s8, 4  ;;  %s9533_s14 = int_to_ptr.vmem [resolvable:$false] %s9532_s14 }
 0x43b   : > { %p9530_p8 = pnand %p9529_p12, %p8228_p11  ;;  %s9534_s13 = scalar_lea.vmem %s9533_s14, 51200 }
 0x43c   : > { %p9535_p0 = scmp.lt.s32.totalorder %s10877_s19, %s9533_s14  ;;  %p9536_p2 = scmp.lt.s32.totalorder %s9534_s13, %s9528_s3 }
 0x43d   : > { %p9531_p9 = pneg %p9530_p8 }
 0x43e   : > { %p9537_p4 = por %p9536_p2, %p9535_p0 }
 0x440   : > { %p9538_p5 = pnand %p9537_p4, %p9531_p9 }
 0x442   : > { %9541 = shalt.err (!%p9538_p5)
}
 0x443   : > { %s9542_s7 = scalar_lea.hbm %s10875_s30, %s10863_s4  ;;  %s9546_s22 = scalar_lea.hbm %s10926_s2, 100608 }
 0x444   : > { %p9543_p7 = scmp.ne.s32.totalorder %s10875_s30, %s9542_s7  ;;  %p9547_p3 = scmp.lt.u32.totalorder %s10875_s30, %s10926_s2 }
 0x445   : > { %p9548_p6 = scmp.lt.u32.totalorder %s9546_s22, %s9542_s7  ;;  %p9550_p12 = scmp.lt.u32.totalorder %s9542_s7, %s10875_s30 }
 0x446   : > { %p9544_p13 = pnand %p9543_p7, %p8228_p11 }
 0x447   : > { %p9549_p10 = por %p9548_p6, %p9547_p3 }
 0x448   : > { %p9545_p1 = pneg %p9544_p13 }
 0x449   : > { %p9551_p8 = por %p9550_p12, %p9549_p10 }
 0x44b   : > { %p9552_p9 = pnand %p9551_p8, %p9545_p1 }
 0x44d   : > { %9555 = shalt.err (!%p9552_p9)
}
 0x44e   : > { %s9602_s5 = smov 12800   ;;  %s9603_s20 = smov 50304  }
 0x44f   : > { %7354 = dma.vmem_to_hbm [thread:$0]  (%p8228_p11), %s10877_s19, %s10863_s4, %s10875_s30, %s7328_s24, %s9602_s5, %s9603_s20, %s8230_s6  }
 0x450 PF: > { %p8254_p0 = scmp.ge.s32.totalorder %s9594_s12, 2  ;;  %s7363_s27 = sand.u32 1, %s9582_s9  }
 0x451   : > { %p10933_p2 = scmp.ne.s32.totalorder %s10929_s21, 0  ;;  %s7364_s28 = scalar_lea.sflag [#allocation4], %s7363_s27 }
 0x453   : > { %p8250_p4 = pnand %p8254_p0, %p10933_p2 }
 0x455   : > { %9577 = dma.done.wait (!%p8250_p4), %s7364_s28, 25600  }
 0x456   : > { %9579 = vsyncadd (!%p8250_p4), %s7364_s28, 4294941696  ;;  %p15_p5 = scmp.ge.s32.totalorder %s9644_s15, 6   ;;  %s10934_s9 = smov %s9586_s10 }
 0x457   : > { %s10935_s10 = smov %s9590_s11  ;;  %s10936_s11 = smov %s9656_s18 }
 0x458   : > { %s10937_s12 = smov %s9644_s15  ;;  %17 = sbr.rel (!%p15_p5) target bundleno = 5 (0x5), region = 73 }
 0x45f   :  { %7369 = vsyncpa [#allocation3], 1 }
 0x460   :  { %7371 = vsyncpa [#allocation3 + $0x1], 1 }
 0x461   :  { %7372 = vsyncpa [#allocation4], 1 }
 0x462   :  { %7374 = vsyncpa [#allocation4 + $0x1], 1 }

</bundles_post_ra>
